<compile_context>
chip_gen: v7x
topology: tpu7x:2x2x1
jax: 0.10.0
libtpu: 0.0.40
codegen_flags: <defaults>
</compile_context>

<pallas_src>
import functools

import jax
import jax.numpy as jnp
import numpy as np
from jax.experimental import pallas as pl
from jax.experimental.pallas import tpu as pltpu


def attn_kernel(x_ref, xq_ref, wq_ref, wk_ref, wv_ref, wo_ref, b_ref, out_ref,
                *, heads, dim_head):
    """One (batch, query-tile) step of the fused attention forward.

    x_ref   : (1, C, N)   full input tile (channels-first) for K/V
    xq_ref  : (1, C, TQ)  query slice of the input
    wq_ref  : (hd, C)     bf16, 1/sqrt(D) pre-folded
    wk_ref  : (hd, C)     bf16
    wv_ref  : (hd, C)     bf16
    wo_ref  : (C, hd)     bf16
    b_ref   : (C, 1)      f32 bias
    out_ref : (1, C, TQ)  output tile
    """
    f32 = jnp.float32
    bf16 = jnp.bfloat16
    D = dim_head

    x = x_ref[0].astype(bf16)     # (C, N)
    xq = xq_ref[0].astype(bf16)   # (C, TQ)

    # 1x1 conv == channel matmul (scale already folded into wq).
    q = jnp.dot(wq_ref[...], xq, preferred_element_type=f32)   # (hd, TQ)
    k = jnp.dot(wk_ref[...], x, preferred_element_type=f32)    # (hd, N)
    v = jnp.dot(wv_ref[...], x, preferred_element_type=f32)    # (hd, N)

    TQ = q.shape[-1]
    N = k.shape[-1]
    q3 = q.astype(bf16).reshape(heads, D, TQ)
    k3 = k.astype(bf16).reshape(heads, D, N)
    v3 = v.astype(bf16).reshape(heads, D, N)

    # sim[h, i, j] = sum_d q[h, d, i] * k[h, d, j]
    sim = jnp.einsum('hdi,hdj->hij', q3, k3,
                     preferred_element_type=f32)               # (heads, TQ, N)
    sim = sim - jnp.max(sim, axis=-1, keepdims=True)
    p = jnp.exp(sim)
    inv = pl.reciprocal(jnp.sum(p, axis=-1, keepdims=True), approx=True)
    attn = (p * inv).astype(bf16)                              # (heads, TQ, N)

    # out[h, d, i] = sum_j attn[h, i, j] * v[h, d, j]
    o3 = jnp.einsum('hij,hdj->hdi', attn, v3,
                    preferred_element_type=f32)                # (heads, D, TQ)
    o = o3.astype(bf16).reshape(heads * D, TQ)                 # (hd, TQ)

    # to_out 1x1 conv + bias.
    y = jnp.dot(wo_ref[...], o, preferred_element_type=f32)    # (C, TQ)
    out_ref[0] = (y + b_ref[...]).astype(out_ref.dtype)


def attention_forward(x_nchw, w_qkv, w_out, b_out, *, heads, dim_head,
                      q_tile=None):
    """x_nchw: (B, C, H, W); w_qkv: (3*heads*dim_head, C);
    w_out: (C, heads*dim_head); b_out: (C,)."""
    B, C, H, W = x_nchw.shape
    N = H * W
    D = dim_head
    hd = heads * D
    scale = float(D) ** -0.5

    # NCHW -> (B, C, N): free reshape, channels-first, lane dim = N.
    x = x_nchw.reshape(B, C, N)

    # Conv weights used directly in (out_ch, in_ch) form; rows are head-major
    # (channel index = head * D + d), matching einops 'b (h c) x y'.
    wq, wk, wv = jnp.split(w_qkv, 3, axis=0)               # (hd, C) each
    wq = (wq * scale).astype(jnp.bfloat16)                 # fold 1/sqrt(D)
    wk = wk.astype(jnp.bfloat16)
    wv = wv.astype(jnp.bfloat16)
    wo = w_out.astype(jnp.bfloat16)                        # (C, hd)
    b2 = b_out.astype(jnp.float32).reshape(C, 1)

    # Query tiling keeps the (heads, TQ, N) probabilities bounded in VMEM.
    if q_tile is None:
        if N % 256 == 0:
            q_tile = 256
        elif N % 128 == 0:
            q_tile = 128
        else:
            q_tile = N
    n_q = N // q_tile
    grid = (B, n_q)

    # Rough VMEM working-set estimate (sim f32 + p f32 + attn bf16 + q/k/v
    # bf16 + o f32 + double-buffered I/O tiles), with headroom.
    work_bytes = (heads * q_tile * N * (4 + 4 + 2)
                  + 2 * hd * (q_tile + 2 * N)
                  + 4 * hd * q_tile
                  + 4 * 2 * 2 * C * (N + q_tile))
    vmem_limit = int(min(64 * 1024 * 1024,
                         max(16 * 1024 * 1024, 4 * work_bytes)))

    cost = pl.CostEstimate(
        flops=int(B * (2 * (3 * hd) * C * N            # qkv projection
                       + 2 * heads * N * N * D          # q @ k^T
                       + 2 * heads * N * N * D          # attn @ v
                       + 2 * C * hd * N)),              # output projection
        transcendentals=int(B * heads * N * N),
        bytes_accessed=int(2 * B * C * N * 4 + B * C * N * 4
                           + (3 * hd * C + C * hd) * 2 + C * 4),
    )

    out_flat = pl.pallas_call(
        functools.partial(attn_kernel, heads=heads, dim_head=D),
        out_shape=jax.ShapeDtypeStruct((B, C, N), x_nchw.dtype),
        grid=grid,
        in_specs=[
            pl.BlockSpec((1, C, N), lambda b, qi: (b, 0, 0)),       # x (K/V)
            pl.BlockSpec((1, C, q_tile), lambda b, qi: (b, 0, qi)),  # x (Q)
            pl.BlockSpec((hd, C), lambda b, qi: (0, 0)),             # wq
            pl.BlockSpec((hd, C), lambda b, qi: (0, 0)),             # wk
            pl.BlockSpec((hd, C), lambda b, qi: (0, 0)),             # wv
            pl.BlockSpec((C, hd), lambda b, qi: (0, 0)),             # wo
            pl.BlockSpec((C, 1), lambda b, qi: (0, 0)),              # bias
        ],
        out_specs=pl.BlockSpec((1, C, q_tile), lambda b, qi: (b, 0, qi)),
        compiler_params=pltpu.CompilerParams(
            dimension_semantics=("parallel", "parallel"),
            vmem_limit_bytes=vmem_limit),
        cost_estimate=cost,
    )(x, x, wq, wk, wv, wo, b2)

    # (B, C, N) -> NCHW: free reshape.
    return out_flat.reshape(B, C, H, W)


def attention_reference(x_nchw, w_qkv, w_out, b_out, *, heads, dim_head):
    """Pure-JAX reference mirroring the PyTorch forward exactly (f32)."""
    B, C, H, W = x_nchw.shape
    N = H * W
    hidden = heads * dim_head
    x = x_nchw.reshape(B, C, N)
    qkv = jnp.einsum('oc,bcn->bon', w_qkv, x)
    q, k, v = jnp.split(qkv, 3, axis=1)
    r = lambda t: t.reshape(B, heads, dim_head, N)
    q, k, v = r(q), r(k), r(v)
    q = q * (dim_head ** -0.5)
    sim = jnp.einsum('bhdi,bhdj->bhij', q, k)
    sim = sim - jnp.max(sim, axis=-1, keepdims=True)
    attn = jax.nn.softmax(sim, axis=-1)
    out = jnp.einsum('bhij,bhdj->bhid', attn, v)                  # (B, h, N, d)
    out = jnp.transpose(out, (0, 1, 3, 2)).reshape(B, hidden, N)  # b (h d) n
    y = jnp.einsum('oc,bcn->bon', w_out, out) + b_out[None, :, None]
    return y.reshape(B, C, H, W)


if __name__ == "__main__":
    B, C, H, W = 2, 4, 16, 16
    heads, dim_head = 4, 32
    hidden = heads * dim_head

    key = jax.random.PRNGKey(0)
    kx, kq, ko, kb = jax.random.split(key, 4)
    x = jax.random.normal(kx, (B, C, H, W), dtype=jnp.float32)
    # Deterministic synthetic parameters (1x1 conv kernels squeezed to 2D).
    w_qkv = jax.random.normal(kq, (3 * hidden, C), dtype=jnp.float32) * 0.05
    w_out = jax.random.normal(ko, (C, hidden), dtype=jnp.float32) * 0.05
    b_out = jax.random.normal(kb, (C,), dtype=jnp.float32) * 0.05

    y = attention_forward(x, w_qkv, w_out, b_out, heads=heads, dim_head=dim_head)
    y = jax.block_until_ready(y)

    y_ref = attention_reference(x, w_qkv, w_out, b_out,
                                heads=heads, dim_head=dim_head)
    # bf16 MXU operands + approx reciprocal => slightly looser tolerance vs f32.
    np.testing.assert_allclose(np.asarray(y), np.asarray(y_ref),
                               rtol=2e-2, atol=2e-2)
    print("KERNEL_OK")
</pallas_src>

<mosaic_0001>
module attributes {stable_mosaic.version = 11 : i64} {
  func.func @attn_kernel(%arg0: i32, %arg1: i32, %arg2: memref<1x4x256xf32, #tpu.memory_space<vmem>>, %arg3: memref<1x4x256xf32, #tpu.memory_space<vmem>>, %arg4: memref<128x4xbf16, #tpu.memory_space<vmem>>, %arg5: memref<128x4xbf16, #tpu.memory_space<vmem>>, %arg6: memref<128x4xbf16, #tpu.memory_space<vmem>>, %arg7: memref<4x128xbf16, #tpu.memory_space<vmem>>, %arg8: memref<4x1xf32, #tpu.memory_space<vmem>>, %arg9: memref<1x4x256xf32, #tpu.memory_space<vmem>>) attributes {dimension_semantics = [#tpu.dimension_semantics<parallel>, #tpu.dimension_semantics<parallel>], iteration_bounds = array<i64: 2, 1>, scalar_prefetch = 0 : i64, scratch_operands = 0 : i64, tpu.core_type = #tpu.core_type<tc>, window_params = [{transform_indices = @transform_0, window_bounds = array<i64: 1, 4, 256>}, {transform_indices = @transform_1, window_bounds = array<i64: 1, 4, 256>}, {pipeline_mode = #tpu.pipeline_mode<synchronous>, transform_indices = @transform_2, window_bounds = array<i64: 128, 4>}, {pipeline_mode = #tpu.pipeline_mode<synchronous>, transform_indices = @transform_3, window_bounds = array<i64: 128, 4>}, {pipeline_mode = #tpu.pipeline_mode<synchronous>, transform_indices = @transform_4, window_bounds = array<i64: 128, 4>}, {pipeline_mode = #tpu.pipeline_mode<synchronous>, transform_indices = @transform_5, window_bounds = array<i64: 4, 128>}, {pipeline_mode = #tpu.pipeline_mode<synchronous>, transform_indices = @transform_6, window_bounds = array<i64: 4, 1>}, {transform_indices = @transform_7, window_bounds = array<i64: 1, 4, 256>}]} {
    %c0 = arith.constant 0 : index
    %c0_0 = arith.constant 0 : index
    %c0_1 = arith.constant 0 : index
    %0 = vector.load %arg2[%c0, %c0_0, %c0_1] : memref<1x4x256xf32, #tpu.memory_space<vmem>>, vector<1x4x256xf32>
    %1 = vector.shape_cast %0 : vector<1x4x256xf32> to vector<4x256xf32>
    %2 = arith.truncf %1 : vector<4x256xf32> to vector<4x256xbf16>
    %c0_2 = arith.constant 0 : index
    %c0_3 = arith.constant 0 : index
    %c0_4 = arith.constant 0 : index
    %3 = vector.load %arg3[%c0_2, %c0_3, %c0_4] : memref<1x4x256xf32, #tpu.memory_space<vmem>>, vector<1x4x256xf32>
    %4 = vector.shape_cast %3 : vector<1x4x256xf32> to vector<4x256xf32>
    %5 = arith.truncf %4 : vector<4x256xf32> to vector<4x256xbf16>
    %c0_5 = arith.constant 0 : index
    %c0_6 = arith.constant 0 : index
    %6 = vector.load %arg4[%c0_5, %c0_6] : memref<128x4xbf16, #tpu.memory_space<vmem>>, vector<128x4xbf16>
    %cst = arith.constant dense<0.000000e+00> : vector<128x256xf32>
    %7 = tpu.matmul %6, %5, %cst {dimension_numbers = #tpu.dot_dimension_numbers<[1], [0], [0], [1], [0, 0, 1, 1], [], []>} : vector<128x4xbf16>, vector<4x256xbf16>, vector<128x256xf32> -> vector<128x256xf32>
    %c0_7 = arith.constant 0 : index
    %c0_8 = arith.constant 0 : index
    %8 = vector.load %arg5[%c0_7, %c0_8] : memref<128x4xbf16, #tpu.memory_space<vmem>>, vector<128x4xbf16>
    %cst_9 = arith.constant dense<0.000000e+00> : vector<128x256xf32>
    %9 = tpu.matmul %8, %2, %cst_9 {dimension_numbers = #tpu.dot_dimension_numbers<[1], [0], [0], [1], [0, 0, 1, 1], [], []>} : vector<128x4xbf16>, vector<4x256xbf16>, vector<128x256xf32> -> vector<128x256xf32>
    %c0_10 = arith.constant 0 : index
    %c0_11 = arith.constant 0 : index
    %10 = vector.load %arg6[%c0_10, %c0_11] : memref<128x4xbf16, #tpu.memory_space<vmem>>, vector<128x4xbf16>
    %cst_12 = arith.constant dense<0.000000e+00> : vector<128x256xf32>
    %11 = tpu.matmul %10, %2, %cst_12 {dimension_numbers = #tpu.dot_dimension_numbers<[1], [0], [0], [1], [0, 0, 1, 1], [], []>} : vector<128x4xbf16>, vector<4x256xbf16>, vector<128x256xf32> -> vector<128x256xf32>
    %12 = arith.truncf %7 : vector<128x256xf32> to vector<128x256xbf16>
    %13 = vector.shape_cast %12 : vector<128x256xbf16> to vector<4x32x256xbf16>
    %14 = arith.truncf %9 : vector<128x256xf32> to vector<128x256xbf16>
    %15 = vector.shape_cast %14 : vector<128x256xbf16> to vector<4x32x256xbf16>
    %16 = arith.truncf %11 : vector<128x256xf32> to vector<128x256xbf16>
    %17 = vector.shape_cast %16 : vector<128x256xbf16> to vector<4x32x256xbf16>
    "tpu.trace_start"() <{level = 10 : i32, message = "hdi,hdj->hij"}> : () -> ()
    %cst_13 = arith.constant dense<0.000000e+00> : vector<4x256x256xf32>
    %18 = tpu.matmul %13, %15, %cst_13 {dimension_numbers = #tpu.dot_dimension_numbers<[1], [1], [2], [2], [0, 0, 0, 2, 1, 2], [0], [0]>} : vector<4x32x256xbf16>, vector<4x32x256xbf16>, vector<4x256x256xf32> -> vector<4x256x256xf32>
    "tpu.trace_stop"() : () -> ()
    %cst_14 = arith.constant dense<0xFF800000> : vector<4x256xf32>
    %19 = vector.multi_reduction <maximumf>, %18, %cst_14 [2] : vector<4x256x256xf32> to vector<4x256xf32>
    %20 = vector.shape_cast %19 : vector<4x256xf32> to vector<4x256x1xf32>
    %21 = vector.broadcast %20 : vector<4x256x1xf32> to vector<4x256x256xf32>
    %22 = arith.subf %18, %21 : vector<4x256x256xf32>
    %23 = math.exp %22 : vector<4x256x256xf32>
    %cst_15 = arith.constant dense<0.000000e+00> : vector<4x256xf32>
    %24 = vector.multi_reduction <add>, %23, %cst_15 [2] : vector<4x256x256xf32> to vector<4x256xf32>
    %25 = vector.shape_cast %24 : vector<4x256xf32> to vector<4x256x1xf32>
    %26 = tpu.reciprocal %25 {approx = true} : vector<4x256x1xf32> -> vector<4x256x1xf32>
    %27 = vector.broadcast %26 : vector<4x256x1xf32> to vector<4x256x256xf32>
    %28 = arith.mulf %23, %27 : vector<4x256x256xf32>
    %29 = arith.truncf %28 : vector<4x256x256xf32> to vector<4x256x256xbf16>
    "tpu.trace_start"() <{level = 10 : i32, message = "hij,hdj->hdi"}> : () -> ()
    %cst_16 = arith.constant dense<0.000000e+00> : vector<4x32x256xf32>
    %30 = tpu.matmul %17, %29, %cst_16 {dimension_numbers = #tpu.dot_dimension_numbers<[2], [2], [1], [1], [0, 0, 0, 1, 1, 1], [0], [0]>} : vector<4x32x256xbf16>, vector<4x256x256xbf16>, vector<4x32x256xf32> -> vector<4x32x256xf32>
    "tpu.trace_stop"() : () -> ()
    %31 = arith.truncf %30 : vector<4x32x256xf32> to vector<4x32x256xbf16>
    %32 = vector.shape_cast %31 : vector<4x32x256xbf16> to vector<128x256xbf16>
    %c0_17 = arith.constant 0 : index
    %c0_18 = arith.constant 0 : index
    %33 = vector.load %arg7[%c0_17, %c0_18] : memref<4x128xbf16, #tpu.memory_space<vmem>>, vector<4x128xbf16>
    %cst_19 = arith.constant dense<0.000000e+00> : vector<4x256xf32>
    %34 = tpu.matmul %33, %32, %cst_19 {dimension_numbers = #tpu.dot_dimension_numbers<[1], [0], [0], [1], [0, 0, 1, 1], [], []>} : vector<4x128xbf16>, vector<128x256xbf16>, vector<4x256xf32> -> vector<4x256xf32>
    %c0_20 = arith.constant 0 : index
    %c0_21 = arith.constant 0 : index
    %35 = vector.load %arg8[%c0_20, %c0_21] : memref<4x1xf32, #tpu.memory_space<vmem>>, vector<4x1xf32>
    %36 = vector.broadcast %35 : vector<4x1xf32> to vector<4x256xf32>
    %37 = arith.addf %34, %36 : vector<4x256xf32>
    %c0_22 = arith.constant 0 : index
    %c0_23 = arith.constant 0 : index
    %c0_24 = arith.constant 0 : index
    %38 = vector.load %arg9[%c0_22, %c0_23, %c0_24] : memref<1x4x256xf32, #tpu.memory_space<vmem>>, vector<1x4x256xf32>
    %39 = vector.shape_cast %38 : vector<1x4x256xf32> to vector<4x256xf32>
    %40 = vector.shape_cast %37 : vector<4x256xf32> to vector<1x4x256xf32>
    tpu.vector_store %arg9[%c0_22, %c0_23, %c0_24], %40 {strides = array<i32>} : memref<1x4x256xf32, #tpu.memory_space<vmem>>, vector<1x4x256xf32>,
    return
  }
  func.func @transform_0(%arg0: i32, %arg1: i32) -> (i32, i32, i32) {
    %c0_i32 = arith.constant 0 : i32
    %c0_i32_0 = arith.constant 0 : i32
    %c0_i32_1 = arith.constant 0 : i32
    return %arg0, %c0_i32, %c0_i32_0 : i32, i32, i32
  }
  func.func @transform_1(%arg0: i32, %arg1: i32) -> (i32, i32, i32) {
    %c0_i32 = arith.constant 0 : i32
    %c0_i32_0 = arith.constant 0 : i32
    return %arg0, %c0_i32, %arg1 : i32, i32, i32
  }
  func.func @transform_2(%arg0: i32, %arg1: i32) -> (i32, i32) {
    %c0_i32 = arith.constant 0 : i32
    %c0_i32_0 = arith.constant 0 : i32
    %c0_i32_1 = arith.constant 0 : i32
    return %c0_i32, %c0_i32_0 : i32, i32
  }
  func.func @transform_3(%arg0: i32, %arg1: i32) -> (i32, i32) {
    %c0_i32 = arith.constant 0 : i32
    %c0_i32_0 = arith.constant 0 : i32
    %c0_i32_1 = arith.constant 0 : i32
    return %c0_i32, %c0_i32_0 : i32, i32
  }
  func.func @transform_4(%arg0: i32, %arg1: i32) -> (i32, i32) {
    %c0_i32 = arith.constant 0 : i32
    %c0_i32_0 = arith.constant 0 : i32
    %c0_i32_1 = arith.constant 0 : i32
    return %c0_i32, %c0_i32_0 : i32, i32
  }
  func.func @transform_5(%arg0: i32, %arg1: i32) -> (i32, i32) {
    %c0_i32 = arith.constant 0 : i32
    %c0_i32_0 = arith.constant 0 : i32
    %c0_i32_1 = arith.constant 0 : i32
    return %c0_i32, %c0_i32_0 : i32, i32
  }
  func.func @transform_6(%arg0: i32, %arg1: i32) -> (i32, i32) {
    %c0_i32 = arith.constant 0 : i32
    %c0_i32_0 = arith.constant 0 : i32
    %c0_i32_1 = arith.constant 0 : i32
    return %c0_i32, %c0_i32_0 : i32, i32
  }
  func.func @transform_7(%arg0: i32, %arg1: i32) -> (i32, i32, i32) {
    %c0_i32 = arith.constant 0 : i32
    %c0_i32_0 = arith.constant 0 : i32
    return %arg0, %c0_i32, %arg1 : i32, i32, i32
  }
}

</mosaic_0001>

<bundles_post_ra>
// kernel: tpu_custom_call.1
= control target key start
LH: loop header
LB: loop body
LE: loop exit
PB: predicated region body
PF: predicated region fallthrough
CT: control target
= control target key end

     0   :  { %12 = vsyncpa [#allocation3], 0  ;;  %s9234_s0 = inlined_call_operand.vmem [shape: f32[2,4,256], index: 0, kind: input, shape index: {}]   ;;  %s9235_s1 = inlined_call_operand.vmem [shape: f32[2,4,256], index: 1, kind: input, shape index: {}]   ;;  %s9236_s2 = inlined_call_operand.vmem [shape: bf16[128,4], index: 2, kind: input, shape index: {}]   ;;  %s9237_s3 = inlined_call_operand.vmem [shape: bf16[128,4], index: 3, kind: input, shape index: {}]   ;;  %s9238_s4 = inlined_call_operand.vmem [shape: bf16[128,4], index: 4, kind: input, shape index: {}]   ;;  %s9239_s5 = inlined_call_operand.vmem [shape: bf16[4,128], index: 5, kind: input, shape index: {}]   ;;  %s9240_s6 = inlined_call_operand.vmem [shape: f32[4,1], index: 6, kind: input, shape index: {}]   ;;  %s9241_s7 = inlined_call_operand.hbm [shape: f32[2,4,256], index: 7, kind: output, shape index: {}]  }
   0x1   :  { %14 = vsyncpa [#allocation3 + $0x1], 0  ;;  %s5617_s24 = smov 0   ;;  %s5619_s25 = smov 0  }
   0x2   :  { %s5621_s26 = smov 0   ;;  %s5623_s27 = smov 0  }
   0x3   :  { %s5625_s28 = smov 0   ;;  %s5627_s29 = smov 0  }
   0x4 LB: > { %s4509_s30 = sadd.s32 4294967295, %s5573_s29   ;;  %s4510_s8 = sadd.s32 4294967294, %s5573_s29   ;;  %s5573_s29 = sphi %s5627_s29, %s20_s29   ;;  %s5569_s28 = sphi %s5625_s28, %s11206_s28   ;;  %s5565_s27 = sphi %s5623_s27, %s11205_s27   ;;  %s5561_s26 = sphi %s5621_s26, %s11204_s26   ;;  %s5557_s25 = sphi %s5619_s25, %s11203_s25   ;;  %s5553_s24 = sphi %s5617_s24, %s11202_s24  }
   0x5   : > { %s32_s9 = sadd.s32 1, %s5569_s28  ;;  %s200_s10 = sadd.s32 1, %s5561_s26 }
   0x6   : > { %p34_p0 = scmp.ge.s32.totalorder %s32_s9, 2  ;;  %p210_p1 = scmp.ne.s32.totalorder %s5561_s26, %s5557_s25 }
   0x7   : > { %p211_p2 = scmp.eq.s32.totalorder %s4509_s30, 1  ;;  %p216_p3 = scmp.ne.s32.totalorder %s5557_s25, %s5553_s24 }
   0x8   : > { %s11208_s9 = smov (%p34_p0, %s32_s9), 0  ;;  %p217_p5 = scmp.eq.s32.totalorder %s4510_s8, 1 }
   0x9   : > { %p5657_p4 = por %p211_p2, %p210_p1  ;;  %s195_s12 = ssub.s32 %s5569_s28, %s11208_s9 }
   0xa   : > { %p4513_p6 = scmp.ge.s32.totalorder %s5573_s29, 1  ;;  %p198_p7 = scmp.eq.s32.totalorder %s195_s12, 0 }
   0xb   : > { %p5664_p8 = por %p217_p5, %p216_p3  ;;  %p271_p9 = scmp.lt.s32.totalorder %s5573_s29, 3 }
   0xc   : > { %s5670_s14 = scalar_select %p198_p7, %s5561_s26, %s200_s10  }
   0xd   : > { %p272_p10 = pnand %p4513_p6, %p271_p9 }
   0xf   : > { %275 = sbr.rel (%p272_p10) target bundleno = 1760 (0x6e0), region = 48 }
  0x16   : > { %p312_p11 = scmp.lt.s32.totalorder %s5565_s27, 1  ;;  %v9245_v0 = vmov 0   ;;  %vm422_vm0 = vcmask 1041408   ;;  %v4703_v9 = vld [vmem:[%s9236_s2] sm:$0xff]   ;;  %v4704_v11 = vld [vmem:[%s9236_s2 + $0x30] sm:$0xff]   ;;  %vm397_vm1 = vcmask 31744  }
  0x17   : > { %461 = vmatprep.mubr.bf16.mxu0 %v9245_v0  ;;  %521 = vmatprep.mubr.bf16.mxu1 %v9245_v0  ;;  %v4705_v13 = vld [vmem:[%s9236_s2 + $0x8] sm:$0xff]   ;;  %v4706_v14 = vld [vmem:[%s9236_s2 + $0x38] sm:$0xff]   ;;  %v4707_v15 = vld [vmem:[%s9236_s2 + $0x10] sm:$0xff]   ;;  %vm1014_vm2 = vcmask 261120   ;;  %s309_s23 = sand.u32 1, %s5557_s25   ;;  %s4641_s8 = sshll.u32 %s5565_s27, 7 }
  0x18   : > { %s313_s15 = scalar_select %p312_p11, %s5565_s27, 1  ;;  %v4709_v16 = vld [vmem:[%s9237_s3] sm:$0xff]   ;;  %v4708_v17 = vld [vmem:[%s9236_s2 + $0x18] sm:$0xff]   ;;  %v4710_v18 = vld [vmem:[%s9237_s3 + $0x8] sm:$0xff]  }
  0x19   : > { %v4711_v19 = vld [vmem:[%s9237_s3 + $0x10] sm:$0xff]   ;;  %v4713_v20 = vld [vmem:[%s9236_s2 + $0x20] sm:$0xff]   ;;  %v4712_v21 = vld [vmem:[%s9237_s3 + $0x18] sm:$0xff]   ;;  %s4514_s30 = sshll.u32 %s309_s23, 3  ;;  %s9187_s17 = scalar_lea.hbm %s9241_s7, %s4641_s8 }
  0x1a   : > { %s4639_s16 = sshll.u32 %s313_s15, 3  ;;  %v4715_v22 = vld [vmem:[%s9236_s2 + $0x28] sm:$0xff]   ;;  %v4714_v23 = vld [vmem:[%s9237_s3 + $0x20] sm:$0xff]   ;;  %v4717_v25 = vld [vmem:[%s9237_s3 + $0x30] sm:$0xff]   ;;  %s311_s10 = scalar_lea.vmem [#allocation2], %s4514_s30 }
  0x1b   : > { %s316_s19 = scalar_lea.vmem %s9234_s0, %s4639_s16  ;;  %s325_s22 = scalar_lea.vmem %s9235_s1, %s4639_s16  ;;  %v4716_v24 = vld [vmem:[%s9237_s3 + $0x28] sm:$0xff]   ;;  %v4718_v26 = vld [vmem:[%s9237_s3 + $0x38] sm:$0xff]   ;;  %v4719_v27 = vld [vmem:[%s9238_s4] sm:$0xff]  }
  0x1c   : > { %v329_v1 = vld [vmem:[%s316_s19] sm:$0xff]  ;;  %v4720_v28 = vld [vmem:[%s9238_s4 + $0x8] sm:$0xff]   ;;  %v4721_v29 = vld [vmem:[%s9238_s4 + $0x10] sm:$0xff]   ;;  %s4421_s12 = sshll.u32 %s311_s10, 4  ;;  %s4405_s18 = scalar_lea.sflag [#allocation3], %s309_s23  ;;  %s9189_s12 = int_to_ptr.vmem [resolvable:$true] %s4421_s12 }
  0x1d   : > { %v335_v2 = vld [vmem:[%s325_s22] sm:$0xff]  ;;  %v331_v3 = vcombine.high %v329_v1, %v329_v1  ;;  %v333_v10 = vpack.c.bf16 %v329_v1, %v329_v1  ;;  %v4722_v30 = vld [vmem:[%s9238_s4 + $0x18] sm:$0xff]   ;;  %v4724_v32 = vld [vmem:[%s9238_s4 + $0x28] sm:$0xff]   ;;  %s5495_s19 = scalar_lea.vmem %s9189_s12, 128  ;;  %s5576_s27 = smov [#allocation2]  }
  0x1e   : > { %v337_v4 = vcombine.high %v335_v2, %v335_v2  ;;  %v339_v5 = vpack.c.bf16 %v335_v2, %v335_v2  ;;  %v4723_v31 = vld [vmem:[%s9238_s4 + $0x20] sm:$0xff]   ;;  %v4725_v33 = vld [vmem:[%s9238_s4 + $0x30] sm:$0xff]   ;;  %v4726_v44 = vld [vmem:[%s9238_s4 + $0x38] sm:$0xff]   ;;  %p5496_p12 = scmp.ne.s32.totalorder %s9189_s12, %s5495_s19  ;;  %s5499_s20 = sshll.u32 %s5576_s27, 4  ;;  %s5500_s20 = int_to_ptr.vmem [resolvable:$false] %s5499_s20 }
  0x1f   : > { %v334_v6 = vpack.c.bf16 %v331_v3, %v331_v3  ;;  %v623_v12 = vsel %vm422_vm0, %v333_v10, 0  ;;  %s5501_s21 = scalar_lea.vmem %s5500_s20, 256  ;;  %p5502_p1 = scmp.lt.s32.totalorder %s9189_s12, %s5500_s20 }
  0x20   : > { %v340_v7 = vpack.c.bf16 %v337_v4, %v337_v4  ;;  %v424_v8 = vsel %vm422_vm0, %v339_v5, 0  ;;  %p5497_p13 = pnand %p5496_p12, %p5657_p4  ;;  %p5503_p2 = scmp.lt.s32.totalorder %s5501_s21, %s5495_s19 }
  0x22   : > { %4527 = vmatprep.subr.msk.bf16.mxu0 %vm422_vm0, %v340_v7  ;;  %4642 = vmatprep.subr.msk.bf16.mxu1 %vm422_vm0, %v340_v7  ;;  %p5498_p0 = pneg %p5497_p13  ;;  %p5504_p3 = por %p5503_p2, %p5502_p1 }
  0x23   : > { %430 = vmatpush1.bf16.msra.mxu0 %v424_v8  ;;  %4643 = vmatpush1.bf16.msra.mxu1 %v424_v8 }
  0x24   : > { %4544 = vmatprep.subr.msk.bf16.mxu1 %vm422_vm0, %v334_v6  ;;  %4561 = vmatprep.subr.msk.bf16.mxu0 %vm422_vm0, %v334_v6  ;;  %p5505_p5 = pnand %p5504_p3, %p5498_p0 }
  0x26   : > { %4528 = vmatmul.mubr.msk.bf16.vlgmr.msra.gmra.mrb[0].mxu0 %vm397_vm1, %v4703_v9  ;;  %4534 = vmatmul.mubr.msk.bf16.vlgmr.msra.gmra.mrb[0].mxu1 %vm397_vm1, %v4704_v11 }
  0x27   : > { %471 = vmatprep.mubr.bf16.mxu0 %v9245_v0  ;;  %531 = vmatprep.mubr.bf16.mxu1 %v9245_v0 }
  0x28   : > { %629 = vmatpush1.bf16.msra.mxu1 %v623_v12  ;;  %822 = vmatpush1.bf16.msra.mxu0 %v623_v12 }
  0x2e   : > { %4529 = vmatmul.mubr.msk.bf16.gmra.mrb[4].mxu0 %vm397_vm1, %v4705_v13  ;;  %4535 = vmatmul.mubr.msk.bf16.gmra.mrb[4].mxu1 %vm397_vm1, %v4706_v14 }
  0x2f   : > { %481 = vmatprep.mubr.bf16.mxu0 %v9245_v0  ;;  %660 = vmatprep.mubr.bf16.mxu1 %v9245_v0 }
  0x36   : > { %4530 = vmatmul.mubr.msk.bf16.gmra.mrb[8].mxu0 %vm397_vm1, %v4707_v15  ;;  %4545 = vmatmul.mubr.msk.bf16.vlgmr.msra.gmra.mrb[8].mxu1 %vm397_vm1, %v4709_v16 }
  0x37   : > { %491 = vmatprep.mubr.bf16.mxu0 %v9245_v0  ;;  %670 = vmatprep.mubr.bf16.mxu1 %v9245_v0 }
  0x3e   : > { %4531 = vmatmul.mubr.msk.bf16.gmra.mrb[12].mxu0 %vm397_vm1, %v4708_v17  ;;  %4546 = vmatmul.mubr.msk.bf16.gmra.mrb[12].mxu1 %vm397_vm1, %v4710_v18 }
  0x3f   : > { %680 = vmatprep.mubr.bf16.mxu1 %v9245_v0  ;;  %501 = vmatprep.mubr.bf16.mxu0 %v9245_v0 }
  0x46   : > { %4547 = vmatmul.mubr.msk.bf16.gmra.mrb[16].mxu1 %vm397_vm1, %v4711_v19  ;;  %4532 = vmatmul.mubr.msk.bf16.gmra.mrb[16].mxu0 %vm397_vm1, %v4713_v20 }
  0x47   : > { %690 = vmatprep.mubr.bf16.mxu1 %v9245_v0  ;;  %511 = vmatprep.mubr.bf16.mxu0 %v9245_v0 }
  0x4e   : > { %4548 = vmatmul.mubr.msk.bf16.gmra.mrb[20].mxu1 %vm397_vm1, %v4712_v21  ;;  %4533 = vmatmul.mubr.msk.bf16.gmra.mrb[20].mxu0 %vm397_vm1, %v4715_v22 }
  0x4f   : > { %700 = vmatprep.mubr.bf16.mxu1 %v9245_v0  ;;  %853 = vmatprep.mubr.bf16.mxu0 %v9245_v0 }
  0x56   : > { %4549 = vmatmul.mubr.msk.bf16.gmra.mrb[24].mxu1 %vm397_vm1, %v4714_v23  ;;  %4562 = vmatmul.mubr.msk.bf16.vlgmr.msra.gmra.mrb[24].mxu0 %vm397_vm1, %v4719_v27 }
  0x57   : > { %710 = vmatprep.mubr.bf16.mxu1 %v9245_v0  ;;  %863 = vmatprep.mubr.bf16.mxu0 %v9245_v0 }
  0x5e   : > { %4550 = vmatmul.mubr.msk.bf16.gmra.mrb[28].mxu1 %vm397_vm1, %v4716_v24  ;;  %4563 = vmatmul.mubr.msk.bf16.gmra.mrb[28].mxu0 %vm397_vm1, %v4720_v28 }
  0x5f   : > { %720 = vmatprep.mubr.bf16.mxu1 %v9245_v0  ;;  %873 = vmatprep.mubr.bf16.mxu0 %v9245_v0 }
  0x66   : > { %4551 = vmatmul.mubr.msk.bf16.gmra.mrb[32].mxu1 %vm397_vm1, %v4717_v25  ;;  %4564 = vmatmul.mubr.msk.bf16.gmra.mrb[32].mxu0 %vm397_vm1, %v4721_v29 }
  0x67   : > { %730 = vmatprep.mubr.bf16.mxu1 %v9245_v0  ;;  %883 = vmatprep.mubr.bf16.mxu0 %v9245_v0 }
  0x6e   : > { %4552 = vmatmul.mubr.msk.bf16.gmra.mrb[36].mxu1 %vm397_vm1, %v4718_v26  ;;  %4565 = vmatmul.mubr.msk.bf16.gmra.mrb[36].mxu0 %vm397_vm1, %v4722_v30 }
  0x6f   : > { %1095 = vmatprep.mubr.bf16.mxu1 %v9245_v0  ;;  %893 = vmatprep.mubr.bf16.mxu0 %v9245_v0 }
  0x76   : > { %4566 = vmatmul.mubr.msk.bf16.gmra.mrb[40].mxu0 %vm397_vm1, %v4723_v31 }
  0x77   : > { %903 = vmatprep.mubr.bf16.mxu0 %v9245_v0 }
  0x7e   : > { %4567 = vmatmul.mubr.msk.bf16.gmra.mrb[44].mxu0 %vm397_vm1, %v4724_v32 }
  0x7f   : > { %913 = vmatprep.mubr.bf16.mxu0 %v9245_v0 }
  0x86   : > { %4568 = vmatmul.mubr.msk.bf16.gmra.mrb[48].mxu0 %vm397_vm1, %v4725_v33 }
  0x87   : > { %923 = vmatprep.mubr.bf16.mxu0 %v9245_v0 }
  0x8e   : > { %4569 = vmatmul.mubr.msk.bf16.gmra.mrb[52].mxu0 %vm397_vm1, %v4726_v44 }
  0x8f   : > { %1368 = vmatprep.mubr.bf16.mxu0 %v9245_v0 }
  0xf9   : > { %v523_v34 = vpop.f32.mrb[0].mxu1  ;;  %v463_v35 = vpop.f32.mrb[0].mxu0 }
  0xfa   : > { %v5803_v36 = vpop.f32.mrb[1].mxu1  ;;  %v5805_v37 = vpop.f32.mrb[1].mxu0 }
  0xfb   : > { %v527_v38 = vpop.f32.mrb[2].mxu1  ;;  %v467_v39 = vpop.f32.mrb[2].mxu0 }
  0xfc   : > { %v5807_v40 = vpop.f32.mrb[3].mxu1  ;;  %v946_v41 = vpack.c.bf16 %v527_v38, %v523_v34  ;;  %v5809_v42 = vpop.f32.mrb[3].mxu0  ;;  %v934_v43 = vpack.c.bf16 %v467_v39, %v463_v35 }
  0xfd   : > { %v947_v45 = vpack.c.bf16 %v5807_v40, %v5803_v36  ;;  %v935_v46 = vpack.c.bf16 %v5809_v42, %v5805_v37 }
  0xfe   : > { %1802 = vxpose.xlu1.c.b16.start [1/2] (short) %v946_v41, 128  ;;  %982 = vxpose.xlu0.c.b16.start [1/2] (short) %v934_v43, 128 }
 0x101   : > { %v473_v47 = vpop.f32.mrb[4].mxu0  ;;  %v533_v48 = vpop.f32.mrb[4].mxu1 }
 0x102   : > { %v5820_v49 = vpop.f32.mrb[5].mxu1  ;;  %v475_v50 = vpop.f32.mrb[5].mxu0 }
 0x103   : > { %v477_v51 = vpop.f32.mrb[6].mxu0  ;;  %v537_v52 = vpop.f32.mrb[6].mxu1 }
 0x104   : > { %v936_v53 = vpack.c.bf16 %v477_v51, %v473_v47  ;;  %v948_v54 = vpack.c.bf16 %v537_v52, %v533_v48  ;;  %v5822_v55 = vpop.f32.mrb[7].mxu1  ;;  %v479_v56 = vpop.f32.mrb[7].mxu0 }
 0x105   : > { %v949_v57 = vpack.c.bf16 %v5822_v55, %v5820_v49  ;;  %v937_v58 = vpack.c.bf16 %v479_v56, %v475_v50 }
 0x106   : > { %1803 = vxpose.xlu1.c.b16.end [2/2] (short) %v948_v54, 128  ;;  %983 = vxpose.xlu0.c.b16.end [2/2] (short) %v936_v53, 128 }
 0x109   : > { %v483_v59 = vpop.f32.mrb[8].mxu0  ;;  %v662_v60 = vpop.f32.mrb[8].mxu1 }
 0x10a   : > { %v5826_v61 = vpop.f32.mrb[9].mxu0  ;;  %v664_v62 = vpop.f32.mrb[9].mxu1 }
 0x10b   : > { %v487_v63 = vpop.f32.mrb[10].mxu0  ;;  %v666_v1 = vpop.f32.mrb[10].mxu1 }
 0x10c   : > { %v938_v2 = vpack.c.bf16 %v487_v63, %v483_v59  ;;  %v5828_v3 = vpop.f32.mrb[11].mxu0  ;;  %v950_v4 = vpack.c.bf16 %v666_v1, %v662_v60  ;;  %v668_v5 = vpop.f32.mrb[11].mxu1 }
 0x10d   : > { %v939_v6 = vpack.c.bf16 %v5828_v3, %v5826_v61  ;;  %v951_v7 = vpack.c.bf16 %v668_v5, %v664_v62 }
 0x10f   : > { %1063 = vmatprep.subr.bf16.mxu1 %v951_v7 }
 0x110   : > { %1064 = vmatpush1.bf16.msra.mxu1 %v950_v4 }
 0x111   : > { %v493_v8 = vpop.f32.mrb[12].mxu0  ;;  %v672_v9 = vpop.f32.mrb[12].mxu1 }
 0x112   : > { %v5832_v10 = vpop.f32.mrb[13].mxu0  ;;  %v674_v11 = vpop.f32.mrb[13].mxu1 }
 0x113   : > { %v497_v12 = vpop.f32.mrb[14].mxu0  ;;  %v676_v13 = vpop.f32.mrb[14].mxu1 }
 0x114   : > { %v940_v14 = vpack.c.bf16 %v497_v12, %v493_v8  ;;  %v5834_v15 = vpop.f32.mrb[15].mxu0  ;;  %v952_v16 = vpack.c.bf16 %v676_v13, %v672_v9  ;;  %v678_v17 = vpop.f32.mrb[15].mxu1 }
 0x115   : > { %v941_v18 = vpack.c.bf16 %v5834_v15, %v5832_v10  ;;  %v953_v19 = vpack.c.bf16 %v678_v17, %v674_v11 }
 0x117   : > { %1065 = vmatprep.subr.bf16.mxu1 %v953_v19 }
 0x118   : > { %1066 = vmatpush1.bf16.msra.mxu1 %v952_v16 }
 0x119   : > { %v682_v20 = vpop.f32.mrb[16].mxu1  ;;  %v503_v21 = vpop.f32.mrb[16].mxu0 }
 0x11a   : > { %v684_v22 = vpop.f32.mrb[17].mxu1  ;;  %v505_v23 = vpop.f32.mrb[17].mxu0 }
 0x11b   : > { %v686_v24 = vpop.f32.mrb[18].mxu1  ;;  %v507_v25 = vpop.f32.mrb[18].mxu0 }
 0x11c   : > { %v954_v26 = vpack.c.bf16 %v686_v24, %v682_v20  ;;  %v688_v27 = vpop.f32.mrb[19].mxu1  ;;  %v942_v28 = vpack.c.bf16 %v507_v25, %v503_v21  ;;  %v509_v29 = vpop.f32.mrb[19].mxu0 }
 0x11d   : > { %v955_v30 = vpack.c.bf16 %v688_v27, %v684_v22  ;;  %v943_v31 = vpack.c.bf16 %v509_v29, %v505_v23 }
 0x11f   : > { %998 = vxpose.xlu0.c.b16.start [1/2] (short) %v935_v46, 128  ;;  %1256 = vxpose.xlu1.c.b16.start [1/2] (short) %v938_v2, 128 }
 0x120   : > { %1336 = vmatprep.subr.bf16.mxu0 %v955_v30 }
 0x121   : > { %1337 = vmatpush1.bf16.msra.mxu0 %v954_v26  ;;  %v692_v32 = vpop.f32.mrb[20].mxu1  ;;  %v513_v33 = vpop.f32.mrb[20].mxu0 }
 0x122   : > { %v694_v34 = vpop.f32.mrb[21].mxu1  ;;  %v515_v35 = vpop.f32.mrb[21].mxu0 }
 0x123   : > { %999 = vxpose.xlu0.c.b16.end [2/2] (short) %v937_v58, 128  ;;  %1257 = vxpose.xlu1.c.b16.end [2/2] (short) %v940_v14, 128  ;;  %v696_v37 = vpop.f32.mrb[22].mxu1  ;;  %v517_v38 = vpop.f32.mrb[22].mxu0 }
 0x124   : > { %v956_v39 = vpack.c.bf16 %v696_v37, %v692_v32  ;;  %v698_v41 = vpop.f32.mrb[23].mxu1  ;;  %v944_v42 = vpack.c.bf16 %v517_v38, %v513_v33  ;;  %v519_v43 = vpop.f32.mrb[23].mxu0 }
 0x125   : > { %v957_v44 = vpack.c.bf16 %v698_v41, %v694_v34  ;;  %v945_v47 = vpack.c.bf16 %v519_v43, %v515_v35 }
 0x127   : > { %1338 = vmatprep.subr.bf16.mxu0 %v957_v44 }
 0x128   : > { %1339 = vmatpush1.bf16.msra.mxu0 %v956_v39 }
 0x129   : > { %v702_v46 = vpop.f32.mrb[24].mxu1  ;;  %v5883_v23 = vpop.f32.mrb[24].mxu0 }
 0x12a   : > { %v704_v48 = vpop.f32.mrb[25].mxu1  ;;  %9906 = vst [vmem:[#allocation5_spill] sm:$0xff] %v5883_v23  ;;  %v5887_v26 = vpop.f32.mrb[25].mxu0 }
 0x12b   : > { %v706_v50 = vpop.f32.mrb[26].mxu1  ;;  %v5891_v27 = vpop.f32.mrb[26].mxu0 }
 0x12c   : > { %v958_v51 = vpack.c.bf16 %v706_v50, %v702_v46  ;;  %v708_v52 = vpop.f32.mrb[27].mxu1  ;;  %9907 = vst [vmem:[#allocation6_spill] sm:$0xff] %v5891_v27  ;;  %v5895_v29 = vpop.f32.mrb[27].mxu0 }
 0x12d   : > { %v959_v53 = vpack.c.bf16 %v708_v52, %v704_v48 }
 0x12f   : > { %1609 = vmatprep.subr.bf16.mxu1 %v959_v53 }
 0x131   : > { %v712_v54 = vpop.f32.mrb[28].mxu1  ;;  %v5899_v32 = vpop.f32.mrb[28].mxu0 }
 0x132   : > { %v714_v56 = vpop.f32.mrb[29].mxu1  ;;  %9908 = vst [vmem:[#allocation7_spill] sm:$0xff] %v5899_v32  ;;  %v5903_v35 = vpop.f32.mrb[29].mxu0 }
 0x133   : > { %v716_v58 = vpop.f32.mrb[30].mxu1  ;;  %9909 = vst [vmem:[#allocation8_spill] sm:$0xff] %v5903_v35  ;;  %v5907_v37 = vpop.f32.mrb[30].mxu0 }
 0x134   : > { %v960_v59 = vpack.c.bf16 %v716_v58, %v712_v54  ;;  %v718_v60 = vpop.f32.mrb[31].mxu1  ;;  %9910 = vst [vmem:[#allocation9_spill] sm:$0xff] %v5907_v37  ;;  %v5911_v39 = vpop.f32.mrb[31].mxu0 }
 0x135   : > { %v961_v62 = vpack.c.bf16 %v718_v60, %v714_v56  ;;  %9911 = vst [vmem:[#allocation10_spill] sm:$0xff] %v5911_v39 }
 0x139   : > { %v722_v63 = vpop.f32.mrb[32].mxu1  ;;  %v5915_v43 = vpop.f32.mrb[32].mxu0 }
 0x13a   : > { %v724_v1 = vpop.f32.mrb[33].mxu1  ;;  %9912 = vst [vmem:[#allocation11_spill] sm:$0xff] %v5915_v43  ;;  %v5921_v46 = vpop.f32.mrb[33].mxu0 }
 0x13b   : > { %v726_v2 = vpop.f32.mrb[34].mxu1  ;;  %v5925_v48 = vpop.f32.mrb[34].mxu0 }
 0x13c   : > { %1818 = vxpose.xlu1.c.b16.start [1/2] (short) %v947_v45, 128  ;;  %1529 = vxpose.xlu0.c.b16.start [1/2] (short) %v942_v28, 128  ;;  %v962_v4 = vpack.c.bf16 %v726_v2, %v722_v63  ;;  %v728_v5 = vpop.f32.mrb[35].mxu1  ;;  %9913 = vst [vmem:[#allocation12_spill] sm:$0xff] %v5925_v48 }
 0x13d   : > { %v963_v7 = vpack.c.bf16 %v728_v5, %v724_v1 }
 0x13f   : > { %1882 = vmatprep.subr.bf16.mxu0 %v963_v7 }
 0x140   : > { %1819 = vxpose.xlu1.c.b16.end [2/2] (short) %v949_v57, 128  ;;  %1530 = vxpose.xlu0.c.b16.end [2/2] (short) %v944_v42, 128 }
 0x141   : > { %v732_v8 = vpop.f32.mrb[36].mxu1 }
 0x142   : > { %v734_v9 = vpop.f32.mrb[37].mxu1 }
 0x143   : > { %v736_v11 = vpop.f32.mrb[38].mxu1 }
 0x144   : > { %v964_v12 = vpack.c.bf16 %v736_v11, %v732_v8  ;;  %v738_v13 = vpop.f32.mrb[39].mxu1 }
 0x145   : > { %v965_v14 = vpack.c.bf16 %v738_v13, %v734_v9 }
 0x159   : > { %1272 = vxpose.xlu1.c.b16.start [1/2] (short) %v939_v6, 128  ;;  %1545 = vxpose.xlu0.c.b16.start [1/2] (short) %v943_v31, 128 }
 0x15d   : > { %1273 = vxpose.xlu1.c.b16.end [2/2] (short) %v941_v18, 128  ;;  %1546 = vxpose.xlu0.c.b16.end [2/2] (short) %v945_v47, 128 }
 0x166   : > { %4700 = vset.pattern.permute.xlu0 %v9245_v0 }
 0x168   : > { %v5851_v36 = vpop.trf.xlu1  ;;  %v990_v40 = vpop.trf.xlu0 }
 0x169   : > { %4570 = vmatmul.mubr.msk.bf16.vlgmr.msra.gmra.mrb[40].mxu1 %vm1014_vm2, %v990_v40 }
 0x16a   : > { %1105 = vmatprep.mubr.bf16.mxu1 %v9245_v0  ;;  %1610 = vmatpush1.bf16.msra.mxu1 %v958_v51  ;;  %v5929_v51 = vpop.f32.mrb[35].mxu0 }
 0x16b   : > { %1611 = vmatprep.subr.bf16.mxu1 %v961_v62  ;;  %v5939_v58 = vpop.f32.mrb[36].mxu0 }
 0x16c   : > { %v5855_v45 = vpop.trf.xlu1  ;;  %v991_v49 = vpop.trf.xlu0  ;;  %9914 = vst [vmem:[#allocation13_spill] sm:$0xff] %v5939_v58 }
 0x16e   : > { %1612 = vmatpush1.bf16.msra.mxu1 %v960_v59  ;;  %v5943_v59 = vpop.f32.mrb[37].mxu0 }
 0x16f   : > { %9915 = vst [vmem:[#allocation14_spill] sm:$0xff] %v5943_v59  ;;  %v5945_v60 = vpop.f32.mrb[38].mxu0 }
 0x170   : > { %v5857_v55 = vpop.trf.xlu1  ;;  %v992_v61 = vpop.trf.xlu0  ;;  %9916 = vst [vmem:[#allocation15_spill] sm:$0xff] %v5945_v60 }
 0x171   : > { %4571 = vmatmul.mubr.msk.bf16.gmra.mrb[44].mxu1 %vm1014_vm2, %v991_v49  ;;  %v5951_v1 = vpop.f32.mrb[39].mxu0 }
 0x172   : > { %1115 = vmatprep.mubr.bf16.mxu1 %v9245_v0  ;;  %9917 = vst [vmem:[#allocation16_spill] sm:$0xff] %v5951_v1  ;;  %v5959_v7 = vpop.f32.mrb[40].mxu0 }
 0x173   : > { %9918 = vst [vmem:[#allocation17_spill] sm:$0xff] %v5959_v7  ;;  %v5963_v8 = vpop.f32.mrb[41].mxu0 }
 0x174   : > { %v5861_v57 = vpop.trf.xlu1  ;;  %v993_v10 = vpop.trf.xlu0  ;;  %9919 = vst [vmem:[#allocation18_spill] sm:$0xff] %v5963_v8 }
 0x175   : > { %v5965_v9 = vpop.f32.mrb[42].mxu0 }
 0x176   : > { %9920 = vst [vmem:[#allocation19_spill] sm:$0xff] %v5965_v9  ;;  %v5971_v13 = vpop.f32.mrb[43].mxu0 }
 0x177   : > { %9921 = vst [vmem:[#allocation20_spill] sm:$0xff] %v5971_v13 }
 0x178   : > { %v5863_v3 = vpop.trf.xlu1  ;;  %v994_v17 = vpop.trf.xlu0 }
 0x179   : > { %4572 = vmatmul.mubr.msk.bf16.gmra.mrb[48].mxu1 %vm1014_vm2, %v992_v61  ;;  %v5979_v61 = vpop.f32.mrb[44].mxu0 }
 0x17a   : > { %1125 = vmatprep.mubr.bf16.mxu1 %v9245_v0  ;;  %9922 = vst [vmem:[#allocation21_spill] sm:$0xff] %v5979_v61  ;;  %v9934_v61 = vpack.c.bf16 %v5895_v29, %v5887_v26 }
 0x17c   : > { %v5867_v6 = vpop.trf.xlu1  ;;  %v995_v20 = vpop.trf.xlu0 }
 0x180   : > { %v5869_v15 = vpop.trf.xlu1  ;;  %v996_v24 = vpop.trf.xlu0 }
 0x181   : > { %4573 = vmatmul.mubr.msk.bf16.gmra.mrb[52].mxu1 %vm1014_vm2, %v993_v10  ;;  %v5983_v10 = vpop.f32.mrb[45].mxu0 }
 0x182   : > { %1135 = vmatprep.mubr.bf16.mxu1 %v9245_v0  ;;  %9923 = vst [vmem:[#allocation22_spill] sm:$0xff] %v5983_v10 }
 0x184   : > { %v5873_v16 = vpop.trf.xlu1  ;;  %v997_v33 = vpop.trf.xlu0 }
 0x188   : > { %v1264_v18 = vpop.trf.xlu1  ;;  %v1006_v44 = vpop.trf.xlu0 }
 0x189   : > { %4574 = vmatmul.mubr.msk.bf16.gmra.mrb[56].mxu1 %vm1014_vm2, %v994_v17  ;;  %4586 = vmatmul.mubr.msk.bf16.vlgmr.msra.gmra.mrb[56].mxu0 %vm1014_vm2, %v1264_v18  ;;  %v5985_v17 = vpop.f32.mrb[46].mxu0 }
 0x18a   : > { %1883 = vmatpush1.bf16.msra.mxu0 %v962_v4  ;;  %1145 = vmatprep.mubr.bf16.mxu1 %v9245_v0  ;;  %9924 = vst [vmem:[#allocation23_spill] sm:$0xff] %v5985_v17  ;;  %v9935_v17 = vmov 0  }
 0x18b   : > { %1378 = vmatprep.mubr.bf16.mxu0 %v9245_v0  ;;  %1884 = vmatprep.subr.bf16.mxu0 %v965_v14 }
 0x18c   : > { %v1265_v19 = vpop.trf.xlu1  ;;  %v1007_v54 = vpop.trf.xlu0 }
 0x18e   : > { %1885 = vmatpush1.bf16.msra.mxu0 %v964_v12 }
 0x190   : > { %v1266_v21 = vpop.trf.xlu1  ;;  %v1008_v2 = vpop.trf.xlu0 }
 0x191   : > { %4575 = vmatmul.mubr.msk.bf16.gmra.mrb[60].mxu1 %vm1014_vm2, %v995_v20  ;;  %4587 = vmatmul.mubr.msk.bf16.gmra.mrb[60].mxu0 %vm1014_vm2, %v1265_v19  ;;  %v5991_v20 = vpop.f32.mrb[47].mxu0 }
 0x192   : > { %1155 = vmatprep.mubr.bf16.mxu1 %v9245_v0  ;;  %1388 = vmatprep.mubr.bf16.mxu0 %v9245_v0  ;;  %9925 = vst [vmem:[#allocation24_spill] sm:$0xff] %v5991_v20 }
 0x194   : > { %v1267_v22 = vpop.trf.xlu1  ;;  %v1009_v14 = vpop.trf.xlu0 }
 0x198   : > { %v1268_v25 = vpop.trf.xlu1 }
 0x199   : > { %4576 = vmatmul.mubr.msk.bf16.gmra.mrb[64].mxu1 %vm1014_vm2, %v996_v24  ;;  %4588 = vmatmul.mubr.msk.bf16.gmra.mrb[64].mxu0 %vm1014_vm2, %v1266_v21  ;;  %v1010_v21 = vpop.trf.xlu0 }
 0x19a   : > { %1165 = vmatprep.mubr.bf16.mxu1 %v9245_v0  ;;  %1398 = vmatprep.mubr.bf16.mxu0 %v9245_v0 }
 0x19c   : > { %v1269_v30 = vpop.trf.xlu1 }
 0x1a0   : > { %v1270_v34 = vpop.trf.xlu1 }
 0x1a1   : > { %4577 = vmatmul.mubr.msk.bf16.gmra.mrb[68].mxu1 %vm1014_vm2, %v997_v33  ;;  %4589 = vmatmul.mubr.msk.bf16.gmra.mrb[68].mxu0 %vm1014_vm2, %v1267_v22 }
 0x1a2   : > { %1175 = vmatprep.mubr.bf16.mxu1 %v9245_v0  ;;  %1408 = vmatprep.mubr.bf16.mxu0 %v9245_v0 }
 0x1a4   : > { %v1271_v41 = vpop.trf.xlu1 }
 0x1a8   : > { %v5917_v47 = vpop.trf.xlu1 }
 0x1a9   : > { %4578 = vmatmul.mubr.msk.bf16.gmra.mrb[72].mxu1 %vm1014_vm2, %v1006_v44  ;;  %4590 = vmatmul.mubr.msk.bf16.gmra.mrb[72].mxu0 %vm1014_vm2, %v1268_v25  ;;  %v5997_v25 = vpop.f32.mrb[48].mxu0  ;;  %v1011_v44 = vpop.trf.xlu0 }
 0x1aa   : > { %1185 = vmatprep.mubr.bf16.mxu1 %v9245_v0  ;;  %1418 = vmatprep.mubr.bf16.mxu0 %v9245_v0  ;;  %9926 = vst [vmem:[#allocation25_spill] sm:$0xff] %v5997_v25 }
 0x1ac   : > { %v5931_v52 = vpop.trf.xlu1 }
 0x1b0   : > { %v5935_v56 = vpop.trf.xlu1 }
 0x1b1   : > { %4579 = vmatmul.mubr.msk.bf16.gmra.mrb[76].mxu1 %vm1014_vm2, %v1007_v54  ;;  %4591 = vmatmul.mubr.msk.bf16.gmra.mrb[76].mxu0 %vm1014_vm2, %v1269_v30  ;;  %v6001_v30 = vpop.f32.mrb[49].mxu0 }
 0x1b2   : > { %1195 = vmatprep.mubr.bf16.mxu1 %v9245_v0  ;;  %1428 = vmatprep.mubr.bf16.mxu0 %v9245_v0  ;;  %9927 = vst [vmem:[#allocation26_spill] sm:$0xff] %v6001_v30  ;;  %v6003_v33 = vpop.f32.mrb[50].mxu0 }
 0x1b3   : > { %9928 = vst [vmem:[#allocation27_spill] sm:$0xff] %v6003_v33 }
 0x1b4   : > { %v5947_v62 = vpop.trf.xlu1 }
 0x1b8   : > { %v5955_v5 = vpop.trf.xlu1 }
 0x1b9   : > { %4580 = vmatmul.mubr.msk.bf16.gmra.mrb[80].mxu1 %vm1014_vm2, %v1008_v2  ;;  %4592 = vmatmul.mubr.msk.bf16.gmra.mrb[80].mxu0 %vm1014_vm2, %v1270_v34 }
 0x1ba   : > { %1205 = vmatprep.mubr.bf16.mxu1 %v9245_v0  ;;  %1438 = vmatprep.mubr.bf16.mxu0 %v9245_v0 }
 0x1bc   : > { %v5967_v11 = vpop.trf.xlu1 }
 0x1c0   : > { %v5975_v49 = vpop.trf.xlu1 }
 0x1c1   : > { %4581 = vmatmul.mubr.msk.bf16.gmra.mrb[84].mxu1 %vm1014_vm2, %v1009_v14  ;;  %4593 = vmatmul.mubr.msk.bf16.gmra.mrb[84].mxu0 %vm1014_vm2, %v1271_v41  ;;  %v6007_v41 = vpop.f32.mrb[51].mxu0 }
 0x1c2   : > { %1215 = vmatprep.mubr.bf16.mxu1 %v9245_v0  ;;  %1448 = vmatprep.mubr.bf16.mxu0 %v9245_v0  ;;  %9929 = vst [vmem:[#allocation28_spill] sm:$0xff] %v6007_v41  ;;  %v6015_v14 = vpop.f32.mrb[52].mxu0 }
 0x1c3   : > { %9930 = vst [vmem:[#allocation29_spill] sm:$0xff] %v6015_v14 }
 0x1c4   : > { %v5987_v18 = vpop.trf.xlu1 }
 0x1c8   : > { %v1280_v24 = vpop.trf.xlu1 }
 0x1c9   : > { %4582 = vmatmul.mubr.msk.bf16.gmra.mrb[88].mxu1 %vm1014_vm2, %v1010_v21  ;;  %4594 = vmatmul.mubr.msk.bf16.gmra.mrb[88].mxu0 %vm1014_vm2, %v1280_v24  ;;  %v6017_v21 = vpop.f32.mrb[53].mxu0  ;;  %v1012_v24 = vpop.trf.xlu0 }
 0x1ca   : > { %1225 = vmatprep.mubr.bf16.mxu1 %v9245_v0  ;;  %1458 = vmatprep.mubr.bf16.mxu0 %v9245_v0  ;;  %9931 = vst [vmem:[#allocation30_spill] sm:$0xff] %v6017_v21  ;;  %v6019_v34 = vpop.f32.mrb[54].mxu0 }
 0x1cb   : > { %9932 = vst [vmem:[#allocation31_spill] sm:$0xff] %v6019_v34  ;;  %v6023_v12 = vpop.f32.mrb[55].mxu0 }
 0x1cc   : > { %v1281_v54 = vpop.trf.xlu1  ;;  %9933 = vst [vmem:[#allocation32_spill] sm:$0xff] %v6023_v12 }
 0x1d0   : > { %v1282_v19 = vpop.trf.xlu1 }
 0x1d1   : > { %4583 = vmatmul.mubr.msk.bf16.gmra.mrb[92].mxu1 %vm1014_vm2, %v1011_v44  ;;  %4595 = vmatmul.mubr.msk.bf16.gmra.mrb[92].mxu0 %vm1014_vm2, %v1281_v54  ;;  %v1013_v54 = vpop.trf.xlu0 }
 0x1d2   : > { %1235 = vmatprep.mubr.bf16.mxu1 %v9245_v0  ;;  %1468 = vmatprep.mubr.bf16.mxu0 %v9245_v0 }
 0x1d4   : > { %v1283_v2 = vpop.trf.xlu1 }
 0x1d5   : > { %v1537_v44 = vpop.trf.xlu0 }
 0x1d8   : > { %v1284_v22 = vpop.trf.xlu1 }
 0x1d9   : > { %4584 = vmatmul.mubr.msk.bf16.gmra.mrb[96].mxu1 %vm1014_vm2, %v1012_v24  ;;  %4596 = vmatmul.mubr.msk.bf16.gmra.mrb[96].mxu0 %vm1014_vm2, %v1282_v19  ;;  %v1538_v24 = vpop.trf.xlu0 }
 0x1da   : > { %1245 = vmatprep.mubr.bf16.mxu1 %v9245_v0  ;;  %1478 = vmatprep.mubr.bf16.mxu0 %v9245_v0 }
 0x1dc   : > { %v1285_v19 = vpop.trf.xlu1 }
 0x1e1   : > { %4585 = vmatmul.mubr.msk.bf16.gmra.mrb[100].mxu1 %vm1014_vm2, %v1013_v54  ;;  %4597 = vmatmul.mubr.msk.bf16.gmra.mrb[100].mxu0 %vm1014_vm2, %v1283_v2  ;;  %v1286_v2 = vpop.trf.xlu1  ;;  %v1539_v54 = vpop.trf.xlu0 }
 0x1e2   : > { %1488 = vmatprep.mubr.bf16.mxu0 %v9245_v0  ;;  %1641 = vmatprep.mubr.bf16.mxu1 %v9245_v0 }
 0x1e9   : > { %4598 = vmatmul.mubr.msk.bf16.gmra.mrb[104].mxu0 %vm1014_vm2, %v1284_v22  ;;  %4602 = vmatmul.mubr.msk.bf16.vlgmr.msra.gmra.mrb[104].mxu1 %vm1014_vm2, %v1537_v44  ;;  %v1287_v22 = vpop.trf.xlu1  ;;  %v1540_v44 = vpop.trf.xlu0 }
 0x1ea   : > { %1498 = vmatprep.mubr.bf16.mxu0 %v9245_v0  ;;  %1651 = vmatprep.mubr.bf16.mxu1 %v9245_v0 }
 0x1f1   : > { %4599 = vmatmul.mubr.msk.bf16.gmra.mrb[108].mxu0 %vm1014_vm2, %v1285_v19  ;;  %4603 = vmatmul.mubr.msk.bf16.gmra.mrb[108].mxu1 %vm1014_vm2, %v1538_v24  ;;  %v1541_v19 = vpop.trf.xlu0 }
 0x1f2   : > { %1508 = vmatprep.mubr.bf16.mxu0 %v9245_v0  ;;  %1661 = vmatprep.mubr.bf16.mxu1 %v9245_v0 }
 0x1f5   : > { %v1542_v24 = vpop.trf.xlu0 }
 0x1f9   : > { %4600 = vmatmul.mubr.msk.bf16.gmra.mrb[112].mxu0 %vm1014_vm2, %v1286_v2  ;;  %4604 = vmatmul.mubr.msk.bf16.gmra.mrb[112].mxu1 %vm1014_vm2, %v1539_v54  ;;  %v1543_v2 = vpop.trf.xlu0 }
 0x1fa   : > { %1518 = vmatprep.mubr.bf16.mxu0 %v9245_v0  ;;  %1671 = vmatprep.mubr.bf16.mxu1 %v9245_v0 }
 0x201   : > { %4601 = vmatmul.mubr.msk.bf16.gmra.mrb[116].mxu0 %vm1014_vm2, %v1287_v22  ;;  %4605 = vmatmul.mubr.msk.bf16.gmra.mrb[116].mxu1 %vm1014_vm2, %v1540_v44 }
 0x202   : > { %1681 = vmatprep.mubr.bf16.mxu1 %v9245_v0  ;;  %1914 = vmatprep.mubr.bf16.mxu0 %v9245_v0 }
 0x209   : > { %4606 = vmatmul.mubr.msk.bf16.gmra.mrb[120].mxu1 %vm1014_vm2, %v1541_v19  ;;  %4618 = vmatmul.mubr.msk.bf16.vlgmr.msra.gmra.mrb[120].mxu0 %vm1014_vm2, %v5851_v36  ;;  %v1544_v36 = vpop.trf.xlu0 }
 0x20a   : > { %1691 = vmatprep.mubr.bf16.mxu1 %v9245_v0  ;;  %1924 = vmatprep.mubr.bf16.mxu0 %v9245_v0 }
 0x211   : > { %4607 = vmatmul.mubr.msk.bf16.gmra.mrb[124].mxu1 %vm1014_vm2, %v1542_v24  ;;  %4619 = vmatmul.mubr.msk.bf16.gmra.mrb[124].mxu0 %vm1014_vm2, %v5855_v45  ;;  %v1553_v45 = vpop.trf.xlu0 }
 0x212   : > { %1701 = vmatprep.mubr.bf16.mxu1 %v9245_v0  ;;  %1934 = vmatprep.mubr.bf16.mxu0 %v9245_v0 }
 0x219   : > { %4608 = vmatmul.mubr.msk.bf16.gmra.mrb[128].mxu1 %vm1014_vm2, %v1543_v2  ;;  %4620 = vmatmul.mubr.msk.bf16.gmra.mrb[128].mxu0 %vm1014_vm2, %v5857_v55  ;;  %v1554_v55 = vpop.trf.xlu0 }
 0x21a   : > { %1711 = vmatprep.mubr.bf16.mxu1 %v9245_v0  ;;  %1944 = vmatprep.mubr.bf16.mxu0 %v9245_v0 }
 0x221   : > { %4609 = vmatmul.mubr.msk.bf16.gmra.mrb[132].mxu1 %vm1014_vm2, %v1544_v36  ;;  %4621 = vmatmul.mubr.msk.bf16.gmra.mrb[132].mxu0 %vm1014_vm2, %v5861_v57  ;;  %v1555_v57 = vpop.trf.xlu0 }
 0x222   : > { %1721 = vmatprep.mubr.bf16.mxu1 %v9245_v0  ;;  %1954 = vmatprep.mubr.bf16.mxu0 %v9245_v0 }
 0x229   : > { %4610 = vmatmul.mubr.msk.bf16.gmra.mrb[136].mxu1 %vm1014_vm2, %v1553_v45  ;;  %4622 = vmatmul.mubr.msk.bf16.gmra.mrb[136].mxu0 %vm1014_vm2, %v5863_v3 }
 0x22a   : > { %1731 = vmatprep.mubr.bf16.mxu1 %v9245_v0  ;;  %1964 = vmatprep.mubr.bf16.mxu0 %v9245_v0 }
 0x231   : > { %4611 = vmatmul.mubr.msk.bf16.gmra.mrb[140].mxu1 %vm1014_vm2, %v1554_v55  ;;  %4623 = vmatmul.mubr.msk.bf16.gmra.mrb[140].mxu0 %vm1014_vm2, %v5867_v6  ;;  %v1556_v6 = vpop.trf.xlu0 }
 0x232   : > { %1741 = vmatprep.mubr.bf16.mxu1 %v9245_v0  ;;  %1974 = vmatprep.mubr.bf16.mxu0 %v9245_v0 }
 0x235   : > { %v1557_v45 = vpop.trf.xlu0 }
 0x239   : > { %4612 = vmatmul.mubr.msk.bf16.gmra.mrb[144].mxu1 %vm1014_vm2, %v1555_v57  ;;  %4624 = vmatmul.mubr.msk.bf16.gmra.mrb[144].mxu0 %vm1014_vm2, %v5869_v15 }
 0x23a   : > { %1751 = vmatprep.mubr.bf16.mxu1 %v9245_v0  ;;  %1984 = vmatprep.mubr.bf16.mxu0 %v9245_v0 }
 0x23c   : > { %v6086_v3 = vpop.f32.mrb[40].mxu1 }
 0x23d   : > { %v6088_v54 = vpop.f32.mrb[41].mxu1 }
 0x23e   : > { %v6090_v22 = vpop.f32.mrb[42].mxu1  ;;  %v2075_v44 = vmax.f32 %v6086_v3, %v6088_v54 }
 0x23f   : > { %v6094_v19 = vpop.f32.mrb[43].mxu1 }
 0x240   : > { %2076 = vmax.xlane.f32.xlu0 %v2075_v44  ;;  %v2078_v15 = vmax.f32 %v6090_v22, %v6094_v19 }
 0x241   : > { %4613 = vmatmul.mubr.msk.bf16.gmra.mrb[148].mxu1 %vm1014_vm2, %v1556_v6  ;;  %4625 = vmatmul.mubr.msk.bf16.gmra.mrb[148].mxu0 %vm1014_vm2, %v5873_v16 }
 0x242   : > { %2079 = vmax.xlane.f32.xlu1 %v2078_v15  ;;  %1761 = vmatprep.mubr.bf16.mxu1 %v9245_v0  ;;  %v1558_v15 = vpop.trf.xlu0 }
 0x243   : > { %1994 = vmatprep.mubr.bf16.mxu0 %v9245_v0 }
 0x244   : > { %v6103_v24 = vpop.f32.mrb[44].mxu1 }
 0x245   : > { %v6105_v2 = vpop.f32.mrb[45].mxu1 }
 0x246   : > { %v6107_v36 = vpop.f32.mrb[46].mxu1  ;;  %v2081_v55 = vmax.f32 %v6103_v24, %v6105_v2  ;;  %v1559_v50 = vpop.trf.xlu0 }
 0x247   : > { %v6111_v57 = vpop.f32.mrb[47].mxu1 }
 0x248   : > { %2082 = vmax.xlane.f32.xlu0 %v2081_v55  ;;  %v2084_v16 = vmax.f32 %v6107_v36, %v6111_v57 }
 0x249   : > { %4614 = vmatmul.mubr.msk.bf16.gmra.mrb[152].mxu1 %vm1014_vm2, %v1557_v45  ;;  %4626 = vmatmul.mubr.msk.bf16.gmra.mrb[152].mxu0 %vm1014_vm2, %v5917_v47 }
 0x24a   : > { %2085 = vmax.xlane.f32.xlu1 %v2084_v16  ;;  %1771 = vmatprep.mubr.bf16.mxu1 %v9245_v0 }
 0x24b   : > { %2004 = vmatprep.mubr.bf16.mxu0 %v9245_v0 }
 0x24c   : > { %v6120_v6 = vpop.f32.mrb[48].mxu1 }
 0x24d   : > { %v6122_v44 = vpop.f32.mrb[49].mxu1 }
 0x24e   : > { %v6124_v63 = vpop.f32.mrb[50].mxu1  ;;  %v2087_v55 = vmax.f32 %v6120_v6, %v6122_v44 }
 0x24f   : > { %v6128_v4 = vpop.f32.mrb[51].mxu1 }
 0x250   : > { %v2090_v47 = vmax.f32 %v6124_v63, %v6128_v4 }
 0x251   : > { %4615 = vmatmul.mubr.msk.bf16.gmra.mrb[156].mxu1 %vm1014_vm2, %v1558_v15  ;;  %4627 = vmatmul.mubr.msk.bf16.gmra.mrb[156].mxu0 %vm1014_vm2, %v5931_v52  ;;  %v1560_v52 = vpop.trf.xlu0 }
 0x252   : > { %1781 = vmatprep.mubr.bf16.mxu1 %v9245_v0  ;;  %2014 = vmatprep.mubr.bf16.mxu0 %v9245_v0 }
 0x254   : > { %v6137_v45 = vpop.f32.mrb[52].mxu1 }
 0x255   : > { %v6139_v16 = vpop.f32.mrb[53].mxu1 }
 0x256   : > { %v6141_v40 = vpop.f32.mrb[54].mxu1  ;;  %v2093_v38 = vmax.f32 %v6137_v45, %v6139_v16 }
 0x257   : > { %v6145_v42 = vpop.f32.mrb[55].mxu1 }
 0x258   : > { %v2096_v15 = vmax.f32 %v6141_v40, %v6145_v42 }
 0x259   : > { %4616 = vmatmul.mubr.msk.bf16.gmra.mrb[160].mxu1 %vm1014_vm2, %v1559_v50  ;;  %4628 = vmatmul.mubr.msk.bf16.gmra.mrb[160].mxu0 %vm1014_vm2, %v5935_v56 }
 0x25a   : > { %1791 = vmatprep.mubr.bf16.mxu1 %v9245_v0  ;;  %2024 = vmatprep.mubr.bf16.mxu0 %v9245_v0 }
 0x25c   : > { %v6154_v28 = vpop.f32.mrb[56].mxu0  ;;  %v6156_v53 = vpop.f32.mrb[56].mxu1 }
 0x25d   : > { %v6158_v31 = vpop.f32.mrb[57].mxu0  ;;  %v6160_v14 = vpop.f32.mrb[57].mxu1 }
 0x25e   : > { %v6162_v34 = vpop.f32.mrb[58].mxu0  ;;  %v2171_v50 = vmax.f32 %v6154_v28, %v6158_v31  ;;  %v6166_v21 = vpop.f32.mrb[58].mxu1  ;;  %v2099_v56 = vmax.f32 %v6156_v53, %v6160_v14 }
 0x25f   : > { %v6170_v0 = vpop.f32.mrb[59].mxu0  ;;  %v6172_v12 = vpop.f32.mrb[59].mxu1 }
 0x260   : > { %2172 = vmax.xlane.f32.xlu0 %v2171_v50  ;;  %v2174_v25 = vmax.f32 %v6162_v34, %v6170_v0  ;;  %v2102_v33 = vmax.f32 %v6166_v21, %v6172_v12 }
 0x261   : > { %4617 = vmatmul.mubr.msk.bf16.gmra.mrb[164].mxu1 %vm1014_vm2, %v1560_v52  ;;  %4629 = vmatmul.mubr.msk.bf16.gmra.mrb[164].mxu0 %vm1014_vm2, %v5947_v62 }
 0x262   : > { %4155 = vmatprep.mubr.bf16.mxu1 %v9934_v61  ;;  %2175 = vmax.xlane.f32.xlu1 %v2174_v25 }
 0x263   : > { %2034 = vmatprep.mubr.bf16.mxu0 %v9935_v17 }
 0x264   : > { %v6185_v10 = vpop.f32.mrb[60].mxu0  ;;  %2088 = vmax.xlane.f32.xlu0 %v2087_v55  ;;  %v6187_v50 = vpop.f32.mrb[60].mxu1 }
 0x265   : > { %v6189_v20 = vpop.f32.mrb[61].mxu0  ;;  %v6191_v7 = vpop.f32.mrb[61].mxu1 }
 0x266   : > { %v6193_v52 = vpop.f32.mrb[62].mxu0  ;;  %2091 = vmax.xlane.f32.xlu1 %v2090_v47  ;;  %v2177_v62 = vmax.f32 %v6185_v10, %v6189_v20  ;;  %v6197_v26 = vpop.f32.mrb[62].mxu1  ;;  %v2105_v29 = vmax.f32 %v6187_v50, %v6191_v7 }
 0x267   : > { %v6201_v61 = vpop.f32.mrb[63].mxu0  ;;  %v6203_v25 = vpop.f32.mrb[63].mxu1 }
 0x268   : > { %2178 = vmax.xlane.f32.xlu0 %v2177_v62  ;;  %v2180_v55 = vmax.f32 %v6193_v52, %v6201_v61  ;;  %v2108_v9 = vmax.f32 %v6197_v26, %v6203_v25 }
 0x269   : > { %4630 = vmatmul.mubr.msk.bf16.gmra.mrb[168].mxu0 %vm1014_vm2, %v5955_v5 }
 0x26a   : > { %2181 = vmax.xlane.f32.xlu1 %v2180_v55  ;;  %2044 = vmatprep.mubr.bf16.mxu0 %v9935_v17 }
 0x26c   : > { %v6212_v47 = vpop.f32.mrb[64].mxu0  ;;  %2094 = vmax.xlane.f32.xlu0 %v2093_v38  ;;  %v6214_v30 = vpop.f32.mrb[64].mxu1 }
 0x26d   : > { %9936 = vst [vmem:[#allocation33_spill] sm:$0xff] %v6214_v30  ;;  %v6216_v41 = vpop.f32.mrb[65].mxu0  ;;  %v6218_v62 = vpop.f32.mrb[65].mxu1 }
 0x26e   : > { %9937 = vst [vmem:[#allocation34_spill] sm:$0xff] %v6218_v62  ;;  %v6220_v58 = vpop.f32.mrb[66].mxu0  ;;  %2097 = vmax.xlane.f32.xlu1 %v2096_v15  ;;  %v2183_v60 = vmax.f32 %v6212_v47, %v6216_v41  ;;  %v6224_v59 = vpop.f32.mrb[66].mxu1  ;;  %v2111_v5 = vmax.f32 %v6214_v30, %v6218_v62 }
 0x26f   : > { %9938 = vst [vmem:[#allocation35_spill] sm:$0xff] %v6224_v59  ;;  %v6228_v55 = vpop.f32.mrb[67].mxu0  ;;  %v6230_v38 = vpop.f32.mrb[67].mxu1 }
 0x270   : > { %9939 = vst [vmem:[#allocation36_spill] sm:$0xff] %v6230_v38  ;;  %2184 = vmax.xlane.f32.xlu0 %v2183_v60  ;;  %v2186_v1 = vmax.f32 %v6220_v58, %v6228_v55  ;;  %v2114_v43 = vmax.f32 %v6224_v59, %v6230_v38 }
 0x271   : > { %4631 = vmatmul.mubr.msk.bf16.gmra.mrb[172].mxu0 %vm1014_vm2, %v5967_v11 }
 0x272   : > { %2187 = vmax.xlane.f32.xlu1 %v2186_v1  ;;  %2054 = vmatprep.mubr.bf16.mxu0 %v9935_v17 }
 0x274   : > { %v6239_v15 = vpop.f32.mrb[68].mxu0  ;;  %2100 = vmax.xlane.f32.xlu0 %v2099_v56  ;;  %v6241_v48 = vpop.f32.mrb[68].mxu1 }
 0x275   : > { %9940 = vst [vmem:[#allocation37_spill] sm:$0xff] %v6241_v48  ;;  %v6243_v8 = vpop.f32.mrb[69].mxu0  ;;  %v6245_v60 = vpop.f32.mrb[69].mxu1 }
 0x276   : > { %9941 = vst [vmem:[#allocation38_spill] sm:$0xff] %v6245_v60  ;;  %v6247_v13 = vpop.f32.mrb[70].mxu0  ;;  %2103 = vmax.xlane.f32.xlu1 %v2102_v33  ;;  %v2189_v32 = vmax.f32 %v6239_v15, %v6243_v8  ;;  %v6251_v37 = vpop.f32.mrb[70].mxu1  ;;  %v2117_v1 = vmax.f32 %v6241_v48, %v6245_v60 }
 0x277   : > { %9942 = vst [vmem:[#allocation39_spill] sm:$0xff] %v6251_v37  ;;  %v6255_v11 = vpop.f32.mrb[71].mxu0  ;;  %v6257_v56 = vpop.f32.mrb[71].mxu1 }
 0x278   : > { %9943 = vst [vmem:[#allocation40_spill] sm:$0xff] %v6257_v56  ;;  %2190 = vmax.xlane.f32.xlu0 %v2189_v32  ;;  %v2192_v35 = vmax.f32 %v6247_v13, %v6255_v11  ;;  %v2120_v39 = vmax.f32 %v6251_v37, %v6257_v56 }
 0x279   : > { %4632 = vmatmul.mubr.msk.bf16.gmra.mrb[176].mxu0 %vm1014_vm2, %v5975_v49 }
 0x27a   : > { %2193 = vmax.xlane.f32.xlu1 %v2192_v35  ;;  %2064 = vmatprep.mubr.bf16.mxu0 %v9935_v17 }
 0x27c   : > { %v6266_v33 = vpop.f32.mrb[72].mxu0  ;;  %2106 = vmax.xlane.f32.xlu0 %v2105_v29  ;;  %v6268_v23 = vpop.f32.mrb[72].mxu1 }
 0x27d   : > { %9944 = vst [vmem:[#allocation41_spill] sm:$0xff] %v6268_v23  ;;  %v6270_v27 = vpop.f32.mrb[73].mxu0  ;;  %v6272_v32 = vpop.f32.mrb[73].mxu1 }
 0x27e   : > { %9945 = vst [vmem:[#allocation42_spill] sm:$0xff] %v6272_v32  ;;  %v6274_v60 = vpop.f32.mrb[74].mxu0  ;;  %2109 = vmax.xlane.f32.xlu1 %v2108_v9  ;;  %v2195_v56 = vmax.f32 %v6266_v33, %v6270_v27  ;;  %v6278_v37 = vpop.f32.mrb[74].mxu1  ;;  %v2123_v35 = vmax.f32 %v6268_v23, %v6272_v32  ;;  %v9950_v9 = vpack.c.bf16 %v5929_v51, %v5921_v46 }
 0x27f   : > { %9946 = vst [vmem:[#allocation43_spill] sm:$0xff] %v6274_v60  ;;  %9947 = vst [vmem:[#allocation44_spill] sm:$0xff] %v6278_v37  ;;  %v6282_v49 = vpop.f32.mrb[75].mxu0  ;;  %v6284_v29 = vpop.f32.mrb[75].mxu1 }
 0x280   : > { %9948 = vst [vmem:[#allocation45_spill] sm:$0xff] %v6282_v49  ;;  %9949 = vst [vmem:[#allocation46_spill] sm:$0xff] %v6284_v29  ;;  %2196 = vmax.xlane.f32.xlu0 %v2195_v56  ;;  %v2198_v17 = vmax.f32 %v6274_v60, %v6282_v49  ;;  %v2126_v48 = vmax.f32 %v6278_v37, %v6284_v29 }
 0x281   : > { %4633 = vmatmul.mubr.msk.bf16.gmra.mrb[180].mxu0 %vm1014_vm2, %v5987_v18 }
 0x282   : > { %2199 = vmax.xlane.f32.xlu1 %v2198_v17  ;;  %4208 = vmatprep.mubr.bf16.mxu0 %v9950_v9 }
 0x284   : > { %v6295_v32 = vpop.f32.mrb[76].mxu0  ;;  %2112 = vmax.xlane.f32.xlu0 %v2111_v5  ;;  %v6297_v23 = vpop.f32.mrb[76].mxu1 }
 0x285   : > { %9951 = vst [vmem:[#allocation47_spill] sm:$0xff] %v6295_v32  ;;  %9952 = vst [vmem:[#allocation48_spill] sm:$0xff] %v6297_v23  ;;  %v6299_v56 = vpop.f32.mrb[77].mxu0  ;;  %v6301_v38 = vpop.f32.mrb[77].mxu1 }
 0x286   : > { %9953 = vst [vmem:[#allocation49_spill] sm:$0xff] %v6299_v56  ;;  %9954 = vst [vmem:[#allocation50_spill] sm:$0xff] %v6301_v38  ;;  %v6303_v59 = vpop.f32.mrb[78].mxu0  ;;  %2115 = vmax.xlane.f32.xlu1 %v2114_v43  ;;  %v2201_v18 = vmax.f32 %v6295_v32, %v6299_v56  ;;  %v2129_v17 = vmax.f32 %v6297_v23, %v6301_v38  ;;  %v6309_v46 = vpop.f32.mrb[78].mxu1 }
 0x287   : > { %9955 = vst [vmem:[#allocation51_spill] sm:$0xff] %v6303_v59  ;;  %9956 = vst [vmem:[#allocation52_spill] sm:$0xff] %v6309_v46  ;;  %v6311_v51 = vpop.f32.mrb[79].mxu0  ;;  %v6313_v5 = vpop.f32.mrb[79].mxu1 }
 0x288   : > { %9957 = vst [vmem:[#allocation53_spill] sm:$0xff] %v6311_v51  ;;  %9958 = vst [vmem:[#allocation54_spill] sm:$0xff] %v6313_v5  ;;  %2202 = vmax.xlane.f32.xlu0 %v2201_v18  ;;  %v2204_v9 = vmax.f32 %v6303_v59, %v6311_v51  ;;  %v2132_v29 = vmax.f32 %v6309_v46, %v6313_v5 }
 0x28a   : > { %2205 = vmax.xlane.f32.xlu1 %v2204_v9 }
 0x28c   : > { %v6319_v43 = vpop.f32.mrb[80].mxu0  ;;  %2118 = vmax.xlane.f32.xlu0 %v2117_v1  ;;  %v6321_v37 = vpop.f32.mrb[80].mxu1 }
 0x28d   : > { %9959 = vst [vmem:[#allocation55_spill] sm:$0xff] %v6319_v43  ;;  %9960 = vst [vmem:[#allocation56_spill] sm:$0xff] %v6321_v37  ;;  %v6323_v56 = vpop.f32.mrb[81].mxu0  ;;  %v6325_v32 = vpop.f32.mrb[81].mxu1 }
 0x28e   : > { %9961 = vst [vmem:[#allocation57_spill] sm:$0xff] %v6323_v56  ;;  %9962 = vst [vmem:[#allocation58_spill] sm:$0xff] %v6325_v32  ;;  %v6327_v38 = vpop.f32.mrb[82].mxu0  ;;  %2121 = vmax.xlane.f32.xlu1 %v2120_v39  ;;  %v2207_v18 = vmax.f32 %v6319_v43, %v6323_v56  ;;  %v2135_v51 = vmax.f32 %v6321_v37, %v6325_v32  ;;  %v6333_v59 = vpop.f32.mrb[82].mxu1 }
 0x28f   : > { %9963 = vst [vmem:[#allocation59_spill] sm:$0xff] %v6327_v38  ;;  %9964 = vst [vmem:[#allocation60_spill] sm:$0xff] %v6333_v59  ;;  %v6335_v9 = vpop.f32.mrb[83].mxu0  ;;  %v6337_v1 = vpop.f32.mrb[83].mxu1 }
 0x290   : > { %9965 = vst [vmem:[#allocation61_spill] sm:$0xff] %v6335_v9  ;;  %9966 = vst [vmem:[#allocation62_spill] sm:$0xff] %v6337_v1  ;;  %2208 = vmax.xlane.f32.xlu0 %v2207_v18  ;;  %v2210_v5 = vmax.f32 %v6327_v38, %v6335_v9  ;;  %v2138_v46 = vmax.f32 %v6333_v59, %v6337_v1 }
 0x292   : > { %2211 = vmax.xlane.f32.xlu1 %v2210_v5 }
 0x294   : > { %v6343_v39 = vpop.f32.mrb[84].mxu0  ;;  %2124 = vmax.xlane.f32.xlu0 %v2123_v35  ;;  %v6345_v56 = vpop.f32.mrb[84].mxu1 }
 0x295   : > { %9967 = vst [vmem:[#allocation63_spill] sm:$0xff] %v6343_v39  ;;  %9968 = vst [vmem:[#allocation64_spill] sm:$0xff] %v6345_v56  ;;  %v6347_v43 = vpop.f32.mrb[85].mxu0  ;;  %v6349_v32 = vpop.f32.mrb[85].mxu1 }
 0x296   : > { %9969 = vst [vmem:[#allocation65_spill] sm:$0xff] %v6347_v43  ;;  %9970 = vst [vmem:[#allocation66_spill] sm:$0xff] %v6349_v32  ;;  %v6351_v37 = vpop.f32.mrb[86].mxu0  ;;  %2127 = vmax.xlane.f32.xlu1 %v2126_v48  ;;  %v2213_v18 = vmax.f32 %v6343_v39, %v6347_v43  ;;  %v2141_v9 = vmax.f32 %v6345_v56, %v6349_v32  ;;  %v6357_v38 = vpop.f32.mrb[86].mxu1 }
 0x297   : > { %9971 = vst [vmem:[#allocation67_spill] sm:$0xff] %v6351_v37  ;;  %9972 = vst [vmem:[#allocation68_spill] sm:$0xff] %v6357_v38  ;;  %v6359_v5 = vpop.f32.mrb[87].mxu0  ;;  %v6361_v35 = vpop.f32.mrb[87].mxu1 }
 0x298   : > { %9973 = vst [vmem:[#allocation69_spill] sm:$0xff] %v6359_v5  ;;  %9974 = vst [vmem:[#allocation70_spill] sm:$0xff] %v6361_v35  ;;  %2214 = vmax.xlane.f32.xlu0 %v2213_v18  ;;  %v2216_v1 = vmax.f32 %v6351_v37, %v6359_v5  ;;  %v2144_v59 = vmax.f32 %v6357_v38, %v6361_v35 }
 0x29a   : > { %2217 = vmax.xlane.f32.xlu1 %v2216_v1 }
 0x29c   : > { %v6367_v48 = vpop.f32.mrb[88].mxu0  ;;  %2130 = vmax.xlane.f32.xlu0 %v2129_v17  ;;  %v6369_v23 = vpop.f32.mrb[88].mxu1 }
 0x29d   : > { %9975 = vst [vmem:[#allocation71_spill] sm:$0xff] %v6367_v48  ;;  %9976 = vst [vmem:[#allocation72_spill] sm:$0xff] %v6369_v23  ;;  %v6371_v32 = vpop.f32.mrb[89].mxu0  ;;  %v6373_v56 = vpop.f32.mrb[89].mxu1 }
 0x29e   : > { %9977 = vst [vmem:[#allocation73_spill] sm:$0xff] %v6371_v32  ;;  %9978 = vst [vmem:[#allocation74_spill] sm:$0xff] %v6373_v56  ;;  %v2219_v43 = vmax.f32 %v6367_v48, %v6371_v32  ;;  %v6377_v18 = vpop.f32.mrb[90].mxu0  ;;  %2133 = vmax.xlane.f32.xlu1 %v2132_v29  ;;  %v2147_v5 = vmax.f32 %v6369_v23, %v6373_v56  ;;  %v6381_v35 = vpop.f32.mrb[90].mxu1 }
 0x29f   : > { %9979 = vst [vmem:[#allocation75_spill] sm:$0xff] %v6377_v18  ;;  %9980 = vst [vmem:[#allocation76_spill] sm:$0xff] %v6381_v35  ;;  %v6383_v1 = vpop.f32.mrb[91].mxu0  ;;  %v6385_v17 = vpop.f32.mrb[91].mxu1 }
 0x2a0   : > { %9981 = vst [vmem:[#allocation77_spill] sm:$0xff] %v6383_v1  ;;  %9982 = vst [vmem:[#allocation78_spill] sm:$0xff] %v6385_v17  ;;  %v2222_v38 = vmax.f32 %v6377_v18, %v6383_v1  ;;  %2220 = vmax.xlane.f32.xlu0 %v2219_v43  ;;  %v2150_v37 = vmax.f32 %v6381_v35, %v6385_v17 }
 0x2a2   : > { %2223 = vmax.xlane.f32.xlu1 %v2222_v38 }
 0x2a4   : > { %v6391_v32 = vpop.f32.mrb[92].mxu0  ;;  %2136 = vmax.xlane.f32.xlu0 %v2135_v51  ;;  %v6393_v29 = vpop.f32.mrb[92].mxu1 }
 0x2a5   : > { %9983 = vst [vmem:[#allocation79_spill] sm:$0xff] %v6391_v32  ;;  %9984 = vst [vmem:[#allocation80_spill] sm:$0xff] %v6393_v29  ;;  %v6395_v56 = vpop.f32.mrb[93].mxu0  ;;  %v6397_v23 = vpop.f32.mrb[93].mxu1 }
 0x2a6   : > { %9985 = vst [vmem:[#allocation81_spill] sm:$0xff] %v6395_v56  ;;  %9986 = vst [vmem:[#allocation82_spill] sm:$0xff] %v6397_v23  ;;  %v2225_v48 = vmax.f32 %v6391_v32, %v6395_v56  ;;  %v6401_v62 = vpop.f32.mrb[94].mxu0  ;;  %2139 = vmax.xlane.f32.xlu1 %v2138_v46  ;;  %v2153_v43 = vmax.f32 %v6393_v29, %v6397_v23  ;;  %v6405_v17 = vpop.f32.mrb[94].mxu1 }
 0x2a7   : > { %9987 = vst [vmem:[#allocation83_spill] sm:$0xff] %v6401_v62  ;;  %9988 = vst [vmem:[#allocation84_spill] sm:$0xff] %v6405_v17  ;;  %v6407_v38 = vpop.f32.mrb[95].mxu0  ;;  %v6409_v51 = vpop.f32.mrb[95].mxu1 }
 0x2a8   : > { %9989 = vst [vmem:[#allocation85_spill] sm:$0xff] %v6407_v38  ;;  %9990 = vst [vmem:[#allocation86_spill] sm:$0xff] %v6409_v51  ;;  %v2228_v35 = vmax.f32 %v6401_v62, %v6407_v38  ;;  %2226 = vmax.xlane.f32.xlu0 %v2225_v48  ;;  %v2156_v1 = vmax.f32 %v6405_v17, %v6409_v51 }
 0x2aa   : > { %2229 = vmax.xlane.f32.xlu1 %v2228_v35 }
 0x2ac   : > { %v6415_v56 = vpop.f32.mrb[96].mxu0  ;;  %2142 = vmax.xlane.f32.xlu0 %v2141_v9  ;;  %v6417_v46 = vpop.f32.mrb[96].mxu1 }
 0x2ad   : > { %9991 = vst [vmem:[#allocation87_spill] sm:$0xff] %v6415_v56  ;;  %9992 = vst [vmem:[#allocation88_spill] sm:$0xff] %v6417_v46  ;;  %v6419_v23 = vpop.f32.mrb[97].mxu0  ;;  %v6421_v29 = vpop.f32.mrb[97].mxu1 }
 0x2ae   : > { %9993 = vst [vmem:[#allocation89_spill] sm:$0xff] %v6419_v23  ;;  %9994 = vst [vmem:[#allocation90_spill] sm:$0xff] %v6421_v29  ;;  %v2231_v32 = vmax.f32 %v6415_v56, %v6419_v23  ;;  %v6425_v18 = vpop.f32.mrb[98].mxu0  ;;  %2145 = vmax.xlane.f32.xlu1 %v2144_v59  ;;  %v2159_v48 = vmax.f32 %v6417_v46, %v6421_v29  ;;  %v6429_v51 = vpop.f32.mrb[98].mxu1 }
 0x2af   : > { %9995 = vst [vmem:[#allocation91_spill] sm:$0xff] %v6425_v18  ;;  %9996 = vst [vmem:[#allocation92_spill] sm:$0xff] %v6429_v51  ;;  %v6431_v35 = vpop.f32.mrb[99].mxu0  ;;  %v6433_v9 = vpop.f32.mrb[99].mxu1 }
 0x2b0   : > { %9997 = vst [vmem:[#allocation93_spill] sm:$0xff] %v6431_v35  ;;  %9998 = vst [vmem:[#allocation94_spill] sm:$0xff] %v6433_v9  ;;  %v2234_v17 = vmax.f32 %v6425_v18, %v6431_v35  ;;  %2232 = vmax.xlane.f32.xlu0 %v2231_v32  ;;  %v2162_v38 = vmax.f32 %v6429_v51, %v6433_v9 }
 0x2b2   : > { %2235 = vmax.xlane.f32.xlu1 %v2234_v17 }
 0x2b4   : > { %v6439_v23 = vpop.f32.mrb[100].mxu0  ;;  %2148 = vmax.xlane.f32.xlu0 %v2147_v5  ;;  %v6441_v59 = vpop.f32.mrb[100].mxu1 }
 0x2b5   : > { %9999 = vst [vmem:[#allocation95_spill] sm:$0xff] %v6439_v23  ;;  %10000 = vst [vmem:[#allocation96_spill] sm:$0xff] %v6441_v59  ;;  %v6443_v29 = vpop.f32.mrb[101].mxu0  ;;  %v6445_v46 = vpop.f32.mrb[101].mxu1 }
 0x2b6   : > { %10001 = vst [vmem:[#allocation97_spill] sm:$0xff] %v6443_v29  ;;  %10002 = vst [vmem:[#allocation98_spill] sm:$0xff] %v6445_v46  ;;  %v2237_v56 = vmax.f32 %v6439_v23, %v6443_v29  ;;  %v6449_v62 = vpop.f32.mrb[102].mxu0  ;;  %2151 = vmax.xlane.f32.xlu1 %v2150_v37  ;;  %v2165_v32 = vmax.f32 %v6441_v59, %v6445_v46  ;;  %v6453_v9 = vpop.f32.mrb[102].mxu1 }
 0x2b7   : > { %10003 = vst [vmem:[#allocation99_spill] sm:$0xff] %v6449_v62  ;;  %10004 = vst [vmem:[#allocation100_spill] sm:$0xff] %v6453_v9  ;;  %v6455_v17 = vpop.f32.mrb[103].mxu0  ;;  %v6457_v5 = vpop.f32.mrb[103].mxu1 }
 0x2b8   : > { %10005 = vst [vmem:[#allocation101_spill] sm:$0xff] %v6455_v17  ;;  %10006 = vst [vmem:[#allocation102_spill] sm:$0xff] %v6457_v5  ;;  %v2240_v51 = vmax.f32 %v6449_v62, %v6455_v17  ;;  %2238 = vmax.xlane.f32.xlu0 %v2237_v56  ;;  %v2168_v35 = vmax.f32 %v6453_v9, %v6457_v5 }
 0x2ba   : > { %2241 = vmax.xlane.f32.xlu1 %v2240_v51 }
 0x2bc   : > { %v6463_v29 = vpop.f32.mrb[104].mxu0  ;;  %2154 = vmax.xlane.f32.xlu0 %v2153_v43  ;;  %v6465_v37 = vpop.f32.mrb[104].mxu1 }
 0x2bd   : > { %10007 = vst [vmem:[#allocation103_spill] sm:$0xff] %v6463_v29  ;;  %10008 = vst [vmem:[#allocation104_spill] sm:$0xff] %v6465_v37  ;;  %v6467_v46 = vpop.f32.mrb[105].mxu0  ;;  %v6469_v59 = vpop.f32.mrb[105].mxu1 }
 0x2be   : > { %10009 = vst [vmem:[#allocation105_spill] sm:$0xff] %v6467_v46  ;;  %10010 = vst [vmem:[#allocation106_spill] sm:$0xff] %v6469_v59  ;;  %v2243_v23 = vmax.f32 %v6463_v29, %v6467_v46  ;;  %v6473_v18 = vpop.f32.mrb[106].mxu0  ;;  %2157 = vmax.xlane.f32.xlu1 %v2156_v1  ;;  %v2267_v56 = vmax.f32 %v6465_v37, %v6469_v59  ;;  %v6477_v5 = vpop.f32.mrb[106].mxu1 }
 0x2bf   : > { %10011 = vst [vmem:[#allocation107_spill] sm:$0xff] %v6473_v18  ;;  %10012 = vst [vmem:[#allocation108_spill] sm:$0xff] %v6477_v5  ;;  %v6479_v51 = vpop.f32.mrb[107].mxu0  ;;  %v6481_v43 = vpop.f32.mrb[107].mxu1 }
 0x2c0   : > { %10013 = vst [vmem:[#allocation109_spill] sm:$0xff] %v6479_v51  ;;  %10014 = vst [vmem:[#allocation110_spill] sm:$0xff] %v6481_v43  ;;  %v2246_v9 = vmax.f32 %v6473_v18, %v6479_v51  ;;  %2244 = vmax.xlane.f32.xlu0 %v2243_v23  ;;  %v2270_v17 = vmax.f32 %v6477_v5, %v6481_v43 }
 0x2c2   : > { %2247 = vmax.xlane.f32.xlu1 %v2246_v9 }
 0x2c4   : > { %v6487_v46 = vpop.f32.mrb[108].mxu0  ;;  %2160 = vmax.xlane.f32.xlu0 %v2159_v48  ;;  %v6489_v1 = vpop.f32.mrb[108].mxu1 }
 0x2c5   : > { %10015 = vst [vmem:[#allocation111_spill] sm:$0xff] %v6487_v46  ;;  %10016 = vst [vmem:[#allocation112_spill] sm:$0xff] %v6489_v1  ;;  %v6491_v59 = vpop.f32.mrb[109].mxu0  ;;  %v6493_v37 = vpop.f32.mrb[109].mxu1 }
 0x2c6   : > { %10017 = vst [vmem:[#allocation113_spill] sm:$0xff] %v6491_v59  ;;  %10018 = vst [vmem:[#allocation114_spill] sm:$0xff] %v6493_v37  ;;  %v2249_v29 = vmax.f32 %v6487_v46, %v6491_v59  ;;  %v6497_v62 = vpop.f32.mrb[110].mxu0  ;;  %2163 = vmax.xlane.f32.xlu1 %v2162_v38  ;;  %v2273_v23 = vmax.f32 %v6489_v1, %v6493_v37  ;;  %v6501_v43 = vpop.f32.mrb[110].mxu1 }
 0x2c7   : > { %10019 = vst [vmem:[#allocation115_spill] sm:$0xff] %v6497_v62  ;;  %10020 = vst [vmem:[#allocation116_spill] sm:$0xff] %v6501_v43  ;;  %v6503_v9 = vpop.f32.mrb[111].mxu0  ;;  %v6505_v48 = vpop.f32.mrb[111].mxu1 }
 0x2c8   : > { %10021 = vst [vmem:[#allocation117_spill] sm:$0xff] %v6503_v9  ;;  %10022 = vst [vmem:[#allocation118_spill] sm:$0xff] %v6505_v48  ;;  %v2252_v5 = vmax.f32 %v6497_v62, %v6503_v9  ;;  %2250 = vmax.xlane.f32.xlu0 %v2249_v29  ;;  %v2276_v51 = vmax.f32 %v6501_v43, %v6505_v48 }
 0x2ca   : > { %2253 = vmax.xlane.f32.xlu1 %v2252_v5 }
 0x2cc   : > { %v6511_v59 = vpop.f32.mrb[112].mxu0  ;;  %2166 = vmax.xlane.f32.xlu0 %v2165_v32  ;;  %v6513_v38 = vpop.f32.mrb[112].mxu1 }
 0x2cd   : > { %10023 = vst [vmem:[#allocation119_spill] sm:$0xff] %v6511_v59  ;;  %10024 = vst [vmem:[#allocation120_spill] sm:$0xff] %v6513_v38  ;;  %v6515_v37 = vpop.f32.mrb[113].mxu0  ;;  %v6521_v18 = vpop.f32.mrb[113].mxu1 }
 0x2ce   : > { %10025 = vst [vmem:[#allocation121_spill] sm:$0xff] %v6515_v37  ;;  %v2255_v1 = vmax.f32 %v6511_v59, %v6515_v37  ;;  %v6519_v46 = vpop.f32.mrb[114].mxu0  ;;  %2169 = vmax.xlane.f32.xlu1 %v2168_v35  ;;  %10027 = vst [vmem:[#allocation123_spill] sm:$0xff] %v6521_v18  ;;  %v2279_v5 = vmax.f32 %v6513_v38, %v6521_v18  ;;  %v6529_v48 = vpop.f32.mrb[114].mxu1 }
 0x2cf   : > { %10026 = vst [vmem:[#allocation122_spill] sm:$0xff] %v6519_v46  ;;  %v6523_v29 = vpop.f32.mrb[115].mxu0  ;;  %10029 = vst [vmem:[#allocation125_spill] sm:$0xff] %v6529_v48  ;;  %v6531_v43 = vpop.f32.mrb[115].mxu1 }
 0x2d0   : > { %10028 = vst [vmem:[#allocation124_spill] sm:$0xff] %v6523_v29  ;;  %v2258_v32 = vmax.f32 %v6519_v46, %v6523_v29  ;;  %2256 = vmax.xlane.f32.xlu0 %v2255_v1  ;;  %10030 = vst [vmem:[#allocation126_spill] sm:$0xff] %v6531_v43  ;;  %v2282_v37 = vmax.f32 %v6529_v48, %v6531_v43  ;;  %v2077_v9 = vpop.xlane.xlu0 %2076 }
 0x2d2   : > { %2259 = vmax.xlane.f32.xlu1 %v2258_v32  ;;  %v2080_v32 = vpop.xlane.xlu1 %2079 }
 0x2d3   : > { %v2462_v43 = vsub.f32 %v6094_v19, %v2080_v32 }
 0x2d4   : > { %v6535_v35 = vpop.f32.mrb[116].mxu0  ;;  %2268 = vmax.xlane.f32.xlu0 %v2267_v56  ;;  %v6537_v59 = vpop.f32.mrb[116].mxu1  ;;  %v2459_v56 = vsub.f32 %v6086_v3, %v2077_v9 }
 0x2d5   : > { %10031 = vst [vmem:[#allocation127_spill] sm:$0xff] %v6535_v35  ;;  %10032 = vst [vmem:[#allocation128_spill] sm:$0xff] %v6537_v59  ;;  %v6539_v62 = vpop.f32.mrb[117].mxu0  ;;  %v6545_v38 = vpop.f32.mrb[117].mxu1 }
 0x2d6   : > { %10033 = vst [vmem:[#allocation129_spill] sm:$0xff] %v6539_v62  ;;  %v2261_v18 = vmax.f32 %v6535_v35, %v6539_v62  ;;  %v6543_v1 = vpop.f32.mrb[118].mxu0  ;;  %2271 = vmax.xlane.f32.xlu1 %v2270_v17  ;;  %10035 = vst [vmem:[#allocation131_spill] sm:$0xff] %v6545_v38  ;;  %v6554_v46 = vpop.f32.mrb[118].mxu1  ;;  %v2460_v62 = vsub.f32 %v6088_v54, %v2077_v9  ;;  %v2461_v17 = vsub.f32 %v6090_v22, %v2080_v32 }
 0x2d7   : > { %10034 = vst [vmem:[#allocation130_spill] sm:$0xff] %v6543_v1  ;;  %v6547_v29 = vpop.f32.mrb[119].mxu0  ;;  %10037 = vst [vmem:[#allocation133_spill] sm:$0xff] %v6554_v46  ;;  %v6557_v35 = vpop.f32.mrb[119].mxu1  ;;  %v2715_v30 = vmul.f32 1.442695, %v2459_v56 }
 0x2d8   : > { %10036 = vst [vmem:[#allocation132_spill] sm:$0xff] %v6547_v29  ;;  %v2264_v48 = vmax.f32 %v6543_v1, %v6547_v29  ;;  %2262 = vmax.xlane.f32.xlu0 %v2261_v18  ;;  %10038 = vst [vmem:[#allocation134_spill] sm:$0xff] %v6557_v35  ;;  %v2717_v18 = vmul.f32 1.442695, %v2460_v62  ;;  %v2719_v9 = vmul.f32 1.442695, %v2461_v17  ;;  %v2083_v39 = vpop.xlane.xlu0 %2082  ;;  %v2086_v19 = vpop.xlane.xlu1 %2085 }
 0x2d9   : > { %v2721_v32 = vmul.f32 1.442695, %v2462_v43  ;;  %4727 = vpow2.f32 %v2715_v30  ;;  %v2463_v43 = vsub.f32 %v6103_v24, %v2083_v39  ;;  %v2464_v30 = vsub.f32 %v6105_v2, %v2083_v39 }
 0x2da   : > { %2265 = vmax.xlane.f32.xlu1 %v2264_v48  ;;  %4729 = vpow2.f32 %v2717_v18  ;;  %v2465_v18 = vsub.f32 %v6107_v36, %v2086_v19 }
 0x2db   : > { %4731 = vpow2.f32 %v2719_v9 }
 0x2dc   : > { %2274 = vmax.xlane.f32.xlu0 %v2273_v23  ;;  %v6563_v3 = vpop.f32.mrb[120].mxu0  ;;  %v6565_v29 = vpop.f32.mrb[120].mxu1  ;;  %4733 = vpow2.f32 %v2721_v32  ;;  %v2727_v24 = vmul.f32 1.442695, %v2465_v18 }
 0x2dd   : > { %10039 = vst [vmem:[#allocation135_spill] sm:$0xff] %v6563_v3  ;;  %10040 = vst [vmem:[#allocation136_spill] sm:$0xff] %v6565_v29  ;;  %v6567_v1 = vpop.f32.mrb[121].mxu0  ;;  %v6569_v54 = vpop.f32.mrb[121].mxu1 }
 0x2de   : > { %10041 = vst [vmem:[#allocation137_spill] sm:$0xff] %v6567_v1  ;;  %10042 = vst [vmem:[#allocation138_spill] sm:$0xff] %v6569_v54  ;;  %v2363_v22 = vmax.f32 %v6563_v3, %v6567_v1  ;;  %2277 = vmax.xlane.f32.xlu1 %v2276_v51  ;;  %v6573_v48 = vpop.f32.mrb[122].mxu0  ;;  %v6577_v23 = vpop.f32.mrb[122].mxu1  ;;  %v2723_v51 = vmul.f32 1.442695, %v2463_v43  ;;  %v10058_v43 = vmax.f32 %v6537_v59, %v6545_v38 }
 0x2df   : > { %10043 = vst [vmem:[#allocation139_spill] sm:$0xff] %v6573_v48  ;;  %10044 = vst [vmem:[#allocation140_spill] sm:$0xff] %v6577_v23  ;;  %v6579_v56 = vpop.f32.mrb[123].mxu0  ;;  %v6581_v62 = vpop.f32.mrb[123].mxu1  ;;  %v10078_v60 = vmax.f32 %v6565_v29, %v6569_v54 }
 0x2e0   : > { %10045 = vst [vmem:[#allocation141_spill] sm:$0xff] %v6579_v56  ;;  %10046 = vst [vmem:[#allocation142_spill] sm:$0xff] %v6581_v62  ;;  %v2366_v17 = vmax.f32 %v6573_v48, %v6579_v56  ;;  %2364 = vmax.xlane.f32.xlu0 %v2363_v22  ;;  %4735 = vpow2.f32 %v2723_v51  ;;  %v10063_v51 = vmax.f32 %v6554_v46, %v6557_v35 }
 0x2e2   : > { %2367 = vmax.xlane.f32.xlu1 %v2366_v17  ;;  %v2466_v17 = vsub.f32 %v6111_v57, %v2086_v19 }
 0x2e4   : > { %2280 = vmax.xlane.f32.xlu0 %v2279_v5  ;;  %v6588_v1 = vpop.f32.mrb[124].mxu0  ;;  %v6590_v3 = vpop.f32.mrb[124].mxu1  ;;  %v2729_v57 = vmul.f32 1.442695, %v2466_v17 }
 0x2e5   : > { %10047 = vst [vmem:[#allocation143_spill] sm:$0xff] %v6588_v1  ;;  %10048 = vst [vmem:[#allocation144_spill] sm:$0xff] %v6590_v3  ;;  %v6593_v56 = vpop.f32.mrb[125].mxu0  ;;  %v6595_v22 = vpop.f32.mrb[125].mxu1 }
 0x2e6   : > { %10049 = vst [vmem:[#allocation145_spill] sm:$0xff] %v6593_v56  ;;  %10050 = vst [vmem:[#allocation146_spill] sm:$0xff] %v6595_v22  ;;  %v2369_v9 = vmax.f32 %v6588_v1, %v6593_v56  ;;  %2283 = vmax.xlane.f32.xlu1 %v2282_v37  ;;  %v6600_v32 = vpop.f32.mrb[126].mxu0  ;;  %v6604_v5 = vpop.f32.mrb[126].mxu1  ;;  %v2725_v56 = vmul.f32 1.442695, %v2464_v30 }
 0x2e7   : > { %10051 = vst [vmem:[#allocation147_spill] sm:$0xff] %v6600_v32  ;;  %10052 = vst [vmem:[#allocation148_spill] sm:$0xff] %v6604_v5  ;;  %v6607_v2 = vpop.f32.mrb[127].mxu0  ;;  %v6609_v39 = vpop.f32.mrb[127].mxu1 }
 0x2e8   : > { %10053 = vst [vmem:[#allocation149_spill] sm:$0xff] %v6607_v2  ;;  %10054 = vst [vmem:[#allocation150_spill] sm:$0xff] %v6609_v39  ;;  %v2372_v36 = vmax.f32 %v6600_v32, %v6607_v2  ;;  %2370 = vmax.xlane.f32.xlu0 %v2369_v9  ;;  %v6615_v1 = vpop.eup %4727  ;;  %4737 = vpow2.f32 %v2725_v56 }
 0x2e9   : > { %10055 = vst [vmem:[#allocation151_spill] sm:$0xff] %v6615_v1  ;;  %v6617_v48 = vpop.eup %4729  ;;  %4739 = vpow2.f32 %v2727_v24 }
 0x2ea   : > { %2373 = vmax.xlane.f32.xlu1 %v2372_v36  ;;  %10056 = vst [vmem:[#allocation152_spill] sm:$0xff] %v6617_v48  ;;  %v6619_v19 = vpop.eup %4731  ;;  %4741 = vpow2.f32 %v2729_v57 }
 0x2eb   : > { %10057 = vst [vmem:[#allocation153_spill] sm:$0xff] %v6619_v19  ;;  %v6628_v37 = vpop.eup %4733 }
 0x2ec   : > { %2286 = vmax.xlane.f32.xlu0 %v10058_v43  ;;  %v6624_v2 = vpop.f32.mrb[128].mxu0  ;;  %v6626_v9 = vpop.f32.mrb[128].mxu1  ;;  %10061 = vst [vmem:[#allocation156_spill] sm:$0xff] %v6628_v37  ;;  %v3227_v43 = vadd.f32 %v6617_v48, %v6615_v1 }
 0x2ed   : > { %10059 = vst [vmem:[#allocation154_spill] sm:$0xff] %v6624_v2  ;;  %10060 = vst [vmem:[#allocation155_spill] sm:$0xff] %v6626_v9  ;;  %v2173_v30 = vpop.xlane.xlu0 %2172  ;;  %v6630_v18 = vpop.f32.mrb[129].mxu0 }
 0x2ee   : > { %10062 = vst [vmem:[#allocation157_spill] sm:$0xff] %v6630_v18  ;;  %v2375_v17 = vmax.f32 %v6624_v2, %v6630_v18  ;;  %2289 = vmax.xlane.f32.xlu1 %v10063_v51  ;;  %v6637_v36 = vpop.f32.mrb[130].mxu0  ;;  %v6641_v38 = vpop.f32.mrb[129].mxu1  ;;  %v2523_v18 = vsub.f32 %v6154_v28, %v2173_v30  ;;  %v3230_v51 = vadd.f32 %v6628_v37, %v6619_v19 }
 0x2ef   : > { %10064 = vst [vmem:[#allocation158_spill] sm:$0xff] %v6637_v36  ;;  %10065 = vst [vmem:[#allocation159_spill] sm:$0xff] %v6641_v38  ;;  %v2176_v56 = vpop.xlane.xlu1 %2175  ;;  %v6643_v59 = vpop.f32.mrb[131].mxu0  ;;  %v2524_v35 = vsub.f32 %v6158_v31, %v2173_v30 }
 0x2f0   : > { %10066 = vst [vmem:[#allocation160_spill] sm:$0xff] %v6643_v59  ;;  %3228 = vadd.xlane.f32.xlu0 %v3227_v43  ;;  %v6650_v2 = vpop.f32.mrb[130].mxu1  ;;  %v2378_v1 = vmax.f32 %v6637_v36, %v6643_v59  ;;  %v2525_v46 = vsub.f32 %v6162_v34, %v2176_v56  ;;  %v2526_v24 = vsub.f32 %v6170_v0, %v2176_v56  ;;  %v2843_v19 = vmul.f32 1.442695, %v2523_v18  ;;  %v6671_v0 = vpop.eup %4735 }
 0x2f1   : > { %10067 = vst [vmem:[#allocation161_spill] sm:$0xff] %v6650_v2  ;;  %v2089_v57 = vpop.xlane.xlu0 %2088  ;;  %v6655_v48 = vpop.f32.mrb[131].mxu1  ;;  %v2845_v59 = vmul.f32 1.442695, %v2524_v35  ;;  %10072 = vst [vmem:[#allocation166_spill] sm:$0xff] %v6671_v0 }
 0x2f2   : > { %10068 = vst [vmem:[#allocation162_spill] sm:$0xff] %v6655_v48  ;;  %3231 = vadd.xlane.f32.xlu1 %v3230_v51  ;;  %v2467_v37 = vsub.f32 %v6120_v6, %v2089_v57  ;;  %v2468_v36 = vsub.f32 %v6122_v44, %v2089_v57  ;;  %v2847_v56 = vmul.f32 1.442695, %v2525_v46  ;;  %v2849_v43 = vmul.f32 1.442695, %v2526_v24 }
 0x2f3   : > { %v2092_v28 = vpop.xlane.xlu1 %2091  ;;  %4743 = vpow2.f32 %v2843_v19 }
 0x2f4   : > { %2376 = vmax.xlane.f32.xlu0 %v2375_v17  ;;  %v6662_v31 = vpop.f32.mrb[132].mxu0  ;;  %v6664_v30 = vpop.f32.mrb[132].mxu1  ;;  %v2469_v51 = vsub.f32 %v6124_v63, %v2092_v28  ;;  %v2470_v35 = vsub.f32 %v6128_v4, %v2092_v28  ;;  %4745 = vpow2.f32 %v2845_v59  ;;  %v2733_v28 = vmul.f32 1.442695, %v2468_v36 }
 0x2f5   : > { %10069 = vst [vmem:[#allocation163_spill] sm:$0xff] %v6662_v31  ;;  %10070 = vst [vmem:[#allocation164_spill] sm:$0xff] %v6664_v30  ;;  %v6667_v32 = vpop.xlane.xlu0 %2178  ;;  %v6669_v34 = vpop.f32.mrb[133].mxu0  ;;  %4747 = vpow2.f32 %v2847_v56 }
 0x2f6   : > { %10071 = vst [vmem:[#allocation165_spill] sm:$0xff] %v6669_v34  ;;  %2379 = vmax.xlane.f32.xlu1 %v2378_v1  ;;  %v6674_v18 = vpop.f32.mrb[134].mxu0  ;;  %v6676_v6 = vpop.f32.mrb[133].mxu1  ;;  %v2381_v44 = vmax.f32 %v6662_v31, %v6669_v34  ;;  %v2731_v1 = vmul.f32 1.442695, %v2467_v37  ;;  %v10082_v37 = vmax.f32 %v6577_v23, %v6581_v62  ;;  %4749 = vpow2.f32 %v2849_v43 }
 0x2f7   : > { %10073 = vst [vmem:[#allocation167_spill] sm:$0xff] %v6674_v18  ;;  %10074 = vst [vmem:[#allocation168_spill] sm:$0xff] %v6676_v6  ;;  %v6678_v17 = vpop.eup %4737  ;;  %v6683_v57 = vpop.xlane.xlu1 %2181  ;;  %v2735_v19 = vmul.f32 1.442695, %v2469_v51  ;;  %v2737_v54 = vmul.f32 1.442695, %v2470_v35 }
 0x2f8   : > { %10075 = vst [vmem:[#allocation169_spill] sm:$0xff] %v6678_v17  ;;  %v6685_v49 = vpop.f32.mrb[135].mxu0  ;;  %v6689_v46 = vpop.eup %4739  ;;  %2292 = vmax.xlane.f32.xlu0 %v10078_v60  ;;  %v3233_v60 = vadd.f32 %v6678_v17, %v6671_v0  ;;  %4751 = vpow2.f32 %v2731_v1  ;;  %v2529_v17 = vsub.f32 %v6193_v52, %v6683_v57  ;;  %v10094_v52 = vmax.f32 %v6590_v3, %v6595_v22 }
 0x2f9   : > { %10076 = vst [vmem:[#allocation170_spill] sm:$0xff] %v6685_v49  ;;  %10077 = vst [vmem:[#allocation171_spill] sm:$0xff] %v6689_v46  ;;  %v6694_v24 = vpop.f32.mrb[134].mxu1  ;;  %v6696_v4 = vpop.eup %4741  ;;  %v2384_v34 = vmax.f32 %v6674_v18, %v6685_v49  ;;  %4753 = vpow2.f32 %v2733_v28  ;;  %v2527_v28 = vsub.f32 %v6185_v10, %v6667_v32  ;;  %v10100_v3 = vmax.f32 %v6604_v5, %v6609_v39 }
 0x2fa   : > { %10079 = vst [vmem:[#allocation172_spill] sm:$0xff] %v6694_v24  ;;  %10080 = vst [vmem:[#allocation173_spill] sm:$0xff] %v6696_v4  ;;  %v6700_v31 = vpop.xlane.xlu0 %2094  ;;  %v6702_v63 = vpop.f32.mrb[135].mxu1  ;;  %2295 = vmax.xlane.f32.xlu1 %v10082_v37  ;;  %v3236_v56 = vadd.f32 %v6696_v4, %v6689_v46  ;;  %4755 = vpow2.f32 %v2735_v19  ;;  %v2528_v19 = vsub.f32 %v6189_v20, %v6667_v32 }
 0x2fb   : > { %10081 = vst [vmem:[#allocation174_spill] sm:$0xff] %v6702_v63  ;;  %v6709_v59 = vpop.xlane.xlu1 %2097  ;;  %4757 = vpow2.f32 %v2737_v54  ;;  %v2471_v62 = vsub.f32 %v6137_v45, %v6700_v31  ;;  %v2472_v20 = vsub.f32 %v6139_v16, %v6700_v31 }
 0x2fc   : > { %3234 = vadd.xlane.f32.xlu0 %v3233_v60  ;;  %v6713_v49 = vpop.f32.mrb[136].mxu0  ;;  %v6717_v51 = vpop.f32.mrb[136].mxu1  ;;  %v2473_v22 = vsub.f32 %v6141_v40, %v6709_v59 }
 0x2fd   : > { %10083 = vst [vmem:[#allocation175_spill] sm:$0xff] %v6713_v49  ;;  %10084 = vst [vmem:[#allocation176_spill] sm:$0xff] %v6717_v51  ;;  %v6721_v0 = vpop.f32.mrb[137].mxu0  ;;  %v6725_v35 = vpop.f32.mrb[137].mxu1  ;;  %v2739_v5 = vmul.f32 1.442695, %v2471_v62 }
 0x2fe   : > { %v6719_v37 = vpop.xlane.xlu0 %2184  ;;  %10085 = vst [vmem:[#allocation177_spill] sm:$0xff] %v6721_v0  ;;  %3237 = vadd.xlane.f32.xlu1 %v3236_v56  ;;  %v6723_v43 = vpop.f32.mrb[138].mxu0  ;;  %10087 = vst [vmem:[#allocation179_spill] sm:$0xff] %v6725_v35  ;;  %v2851_v56 = vmul.f32 1.442695, %v2527_v28 }
 0x2ff   : > { %10086 = vst [vmem:[#allocation178_spill] sm:$0xff] %v6723_v43  ;;  %v6729_v60 = vpop.xlane.xlu1 %2187  ;;  %v6731_v36 = vpop.f32.mrb[139].mxu0 }
 0x300   : > { %10088 = vst [vmem:[#allocation180_spill] sm:$0xff] %v6731_v36  ;;  %2382 = vmax.xlane.f32.xlu0 %v2381_v44  ;;  %v6735_v46 = vpop.f32.mrb[138].mxu1  ;;  %v6745_v1 = vpop.eup %4743  ;;  %v2530_v44 = vsub.f32 %v6201_v61, %v6683_v57  ;;  %v2853_v57 = vmul.f32 1.442695, %v2528_v19  ;;  %4759 = vpow2.f32 %v2851_v56  ;;  %v2743_v56 = vmul.f32 1.442695, %v2473_v22 }
 0x301   : > { %10089 = vst [vmem:[#allocation181_spill] sm:$0xff] %v6735_v46  ;;  %v6743_v4 = vpop.f32.mrb[139].mxu1  ;;  %10091 = vst [vmem:[#allocation183_spill] sm:$0xff] %v6745_v1  ;;  %v6749_v10 = vpop.eup %4745 }
 0x302   : > { %v6741_v54 = vpop.xlane.xlu0 %2100  ;;  %10090 = vst [vmem:[#allocation182_spill] sm:$0xff] %v6743_v4  ;;  %2385 = vmax.xlane.f32.xlu1 %v2384_v34  ;;  %10092 = vst [vmem:[#allocation184_spill] sm:$0xff] %v6749_v10  ;;  %v6757_v32 = vpop.eup %4747  ;;  %v3323_v16 = vadd.f32 %v6749_v10, %v6745_v1  ;;  %v2857_v45 = vmul.f32 1.442695, %v2530_v44  ;;  %4761 = vpow2.f32 %v2853_v57 }
 0x303   : > { %v6753_v18 = vpop.xlane.xlu1 %2103  ;;  %10093 = vst [vmem:[#allocation185_spill] sm:$0xff] %v6757_v32  ;;  %v6768_v61 = vpop.eup %4749 }
 0x304   : > { %2298 = vmax.xlane.f32.xlu0 %v10094_v52  ;;  %v6764_v34 = vpop.f32.mrb[140].mxu0  ;;  %v6766_v23 = vpop.f32.mrb[140].mxu1  ;;  %10097 = vst [vmem:[#allocation188_spill] sm:$0xff] %v6768_v61  ;;  %v2855_v52 = vmul.f32 1.442695, %v2529_v17  ;;  %v2474_v17 = vsub.f32 %v6145_v42, %v6709_v59  ;;  %v3326_v1 = vadd.f32 %v6768_v61, %v6757_v32  ;;  %v2477_v61 = vsub.f32 %v6166_v21, %v6753_v18 }
 0x305   : > { %10095 = vst [vmem:[#allocation186_spill] sm:$0xff] %v6764_v34  ;;  %10096 = vst [vmem:[#allocation187_spill] sm:$0xff] %v6766_v23  ;;  %v6774_v28 = vpop.f32.mrb[141].mxu0  ;;  %v6778_v35 = vpop.eup %4751  ;;  %v2741_v42 = vmul.f32 1.442695, %v2472_v20 }
 0x306   : > { %v6772_v29 = vpop.xlane.xlu0 %2190  ;;  %10098 = vst [vmem:[#allocation189_spill] sm:$0xff] %v6774_v28  ;;  %10099 = vst [vmem:[#allocation190_spill] sm:$0xff] %v6778_v35  ;;  %2301 = vmax.xlane.f32.xlu1 %v10100_v3  ;;  %v6785_v19 = vpop.f32.mrb[142].mxu0  ;;  %4763 = vpow2.f32 %v2855_v52 }
 0x307   : > { %10101 = vst [vmem:[#allocation191_spill] sm:$0xff] %v6785_v19  ;;  %v6789_v31 = vpop.f32.mrb[141].mxu1  ;;  %v6791_v51 = vpop.eup %4753  ;;  %4765 = vpow2.f32 %v2857_v45  ;;  %v2532_v45 = vsub.f32 %v6216_v41, %v6719_v37  ;;  %v2534_v41 = vsub.f32 %v6228_v55, %v6729_v60  ;;  %v2476_v55 = vsub.f32 %v6160_v14, %v6741_v54 }
 0x308   : > { %10102 = vst [vmem:[#allocation192_spill] sm:$0xff] %v6789_v31  ;;  %10103 = vst [vmem:[#allocation193_spill] sm:$0xff] %v6791_v51  ;;  %v6797_v4 = vpop.xlane.xlu1 %2193  ;;  %v6799_v39 = vpop.f32.mrb[143].mxu0  ;;  %3324 = vadd.xlane.f32.xlu0 %v3323_v16  ;;  %v3239_v62 = vadd.f32 %v6791_v51, %v6778_v35  ;;  %v2745_v16 = vmul.f32 1.442695, %v2474_v17  ;;  %4767 = vpow2.f32 %v2739_v5 }
 0x309   : > { %10104 = vst [vmem:[#allocation194_spill] sm:$0xff] %v6799_v39  ;;  %v6801_v3 = vpop.eup %4755  ;;  %v6805_v10 = vpop.f32.mrb[142].mxu1  ;;  %4769 = vpow2.f32 %v2741_v42 }
 0x30a   : > { %10105 = vst [vmem:[#allocation195_spill] sm:$0xff] %v6801_v3  ;;  %10106 = vst [vmem:[#allocation196_spill] sm:$0xff] %v6805_v10  ;;  %v6807_v44 = vpop.eup %4757  ;;  %v6811_v40 = vpop.xlane.xlu0 %2106  ;;  %3327 = vadd.xlane.f32.xlu1 %v3326_v1  ;;  %4771 = vpow2.f32 %v2743_v56 }
 0x30b   : > { %10107 = vst [vmem:[#allocation197_spill] sm:$0xff] %v6807_v44  ;;  %v6813_v46 = vpop.f32.mrb[143].mxu1  ;;  %v3242_v59 = vadd.f32 %v6807_v44, %v6801_v3  ;;  %4773 = vpow2.f32 %v2745_v16  ;;  %v2533_v16 = vsub.f32 %v6220_v58, %v6729_v60  ;;  %v6860_v44 = vpop.eup %4759  ;;  %v2475_v58 = vsub.f32 %v6156_v53, %v6741_v54 }
 0x30c   : > { %10108 = vst [vmem:[#allocation198_spill] sm:$0xff] %v6813_v46  ;;  %v6817_v32 = vpop.xlane.xlu1 %2109  ;;  %3240 = vadd.xlane.f32.xlu0 %v3239_v62  ;;  %v6821_v57 = vpop.f32.mrb[144].mxu0  ;;  %v2531_v62 = vsub.f32 %v6212_v47, %v6719_v37  ;;  %10118 = vst [vmem:[#allocation207_spill] sm:$0xff] %v6860_v44  ;;  %v10119_v37 = vmax.f32 %v6723_v43, %v6731_v36  ;;  %v10122_v60 = vmax.f32 %v6626_v9, %v6641_v38 }
 0x30d   : > { %10109 = vst [vmem:[#allocation199_spill] sm:$0xff] %v6821_v57  ;;  %v6825_v52 = vpop.f32.mrb[144].mxu1  ;;  %v6829_v1 = vpop.f32.mrb[145].mxu0  ;;  %v2863_v36 = vmul.f32 1.442695, %v2533_v16  ;;  %v2478_v38 = vsub.f32 %v6172_v12, %v6753_v18  ;;  %v10128_v9 = vmax.f32 %v6650_v2, %v6655_v48  ;;  %v2537_v2 = vsub.f32 %v6247_v13, %v6797_v4 }
 0x30e   : > { %10110 = vst [vmem:[#allocation200_spill] sm:$0xff] %v6825_v52  ;;  %v6827_v22 = vpop.xlane.xlu0 %2196  ;;  %10111 = vst [vmem:[#allocation201_spill] sm:$0xff] %v6829_v1  ;;  %3243 = vadd.xlane.f32.xlu1 %v3242_v59  ;;  %v6833_v17 = vpop.f32.mrb[146].mxu0  ;;  %v10115_v59 = vmax.f32 %v6713_v49, %v6721_v0  ;;  %v2859_v51 = vmul.f32 1.442695, %v2531_v62  ;;  %v2479_v13 = vsub.f32 %v6187_v50, %v6811_v40 }
 0x30f   : > { %10112 = vst [vmem:[#allocation202_spill] sm:$0xff] %v6833_v17  ;;  %v6835_v5 = vpop.f32.mrb[145].mxu1  ;;  %v6843_v3 = vpop.f32.mrb[147].mxu0  ;;  %v2861_v49 = vmul.f32 1.442695, %v2532_v45 }
 0x310   : > { %10113 = vst [vmem:[#allocation203_spill] sm:$0xff] %v6835_v5  ;;  %v6841_v20 = vpop.xlane.xlu1 %2199  ;;  %10114 = vst [vmem:[#allocation204_spill] sm:$0xff] %v6843_v3  ;;  %2388 = vmax.xlane.f32.xlu0 %v10115_v59  ;;  %v6850_v56 = vpop.f32.mrb[146].mxu1  ;;  %4775 = vpow2.f32 %v2859_v51  ;;  %v2747_v14 = vmul.f32 1.442695, %v2475_v58 }
 0x311   : > { %10116 = vst [vmem:[#allocation205_spill] sm:$0xff] %v6850_v56  ;;  %v6858_v35 = vpop.f32.mrb[147].mxu1  ;;  %v6867_v59 = vpop.eup %4761  ;;  %4777 = vpow2.f32 %v2861_v49  ;;  %v2751_v12 = vmul.f32 1.442695, %v2477_v61  ;;  %v2871_v50 = vmul.f32 1.442695, %v2537_v2 }
 0x312   : > { %v6856_v42 = vpop.xlane.xlu0 %2112  ;;  %10117 = vst [vmem:[#allocation206_spill] sm:$0xff] %v6858_v35  ;;  %2391 = vmax.xlane.f32.xlu1 %v10119_v37  ;;  %10120 = vst [vmem:[#allocation208_spill] sm:$0xff] %v6867_v59  ;;  %v6875_v0 = vpop.eup %4763  ;;  %v3329_v21 = vadd.f32 %v6867_v59, %v6860_v44  ;;  %v2749_v44 = vmul.f32 1.442695, %v2476_v55  ;;  %v2536_v59 = vsub.f32 %v6243_v8, %v6772_v29  ;;  %4779 = vpow2.f32 %v2863_v36  ;;  %v10198_v56 = vld [vmem:[#allocation53_spill] sm:$0xff] }
 0x313   : > { %10121 = vst [vmem:[#allocation209_spill] sm:$0xff] %v6875_v0  ;;  %v6886_v53 = vpop.eup %4765  ;;  %v2753_v8 = vmul.f32 1.442695, %v2478_v38  ;;  %v2480_v38 = vsub.f32 %v6191_v7, %v6811_v40  ;;  %v2755_v2 = vmul.f32 1.442695, %v2479_v13 }
 0x314   : > { %v6871_v47 = vpop.xlane.xlu1 %2115  ;;  %2304 = vmax.xlane.f32.xlu0 %v10122_v60  ;;  %v6882_v37 = vpop.f32.mrb[148].mxu0  ;;  %10125 = vst [vmem:[#allocation212_spill] sm:$0xff] %v6886_v53  ;;  %v2865_v60 = vmul.f32 1.442695, %v2534_v41  ;;  %v2535_v41 = vsub.f32 %v6239_v15, %v6772_v29  ;;  %v3332_v51 = vadd.f32 %v6886_v53, %v6875_v0  ;;  %v2538_v29 = vsub.f32 %v6255_v11, %v6797_v4 }
 0x315   : > { %10123 = vst [vmem:[#allocation210_spill] sm:$0xff] %v6882_v37  ;;  %v6884_v62 = vpop.f32.mrb[148].mxu1  ;;  %v6892_v45 = vpop.f32.mrb[149].mxu0 }
 0x316   : > { %10124 = vst [vmem:[#allocation211_spill] sm:$0xff] %v6884_v62  ;;  %v6890_v43 = vpop.xlane.xlu0 %2202  ;;  %10126 = vst [vmem:[#allocation213_spill] sm:$0xff] %v6892_v45  ;;  %v6896_v54 = vpop.eup %4767  ;;  %2307 = vmax.xlane.f32.xlu1 %v10128_v9  ;;  %4781 = vpow2.f32 %v2865_v60  ;;  %v2867_v61 = vmul.f32 1.442695, %v2535_v41  ;;  %v2869_v60 = vmul.f32 1.442695, %v2536_v59  ;;  %v2481_v41 = vsub.f32 %v6197_v26, %v6817_v32 }
 0x317   : > { %10127 = vst [vmem:[#allocation214_spill] sm:$0xff] %v6896_v54  ;;  %v6903_v16 = vpop.f32.mrb[150].mxu0  ;;  %v6907_v5 = vpop.f32.mrb[149].mxu1  ;;  %4783 = vpow2.f32 %v2747_v14  ;;  %v2873_v40 = vmul.f32 1.442695, %v2538_v29  ;;  %v2482_v59 = vsub.f32 %v6203_v25, %v6817_v32  ;;  %v2539_v29 = vsub.f32 %v6266_v33, %v6827_v22 }
 0x318   : > { %10129 = vst [vmem:[#allocation215_spill] sm:$0xff] %v6903_v16  ;;  %10130 = vst [vmem:[#allocation216_spill] sm:$0xff] %v6907_v5  ;;  %v6909_v52 = vpop.eup %4769  ;;  %v6915_v18 = vpop.xlane.xlu1 %2205  ;;  %3330 = vadd.xlane.f32.xlu0 %v3329_v21  ;;  %4785 = vpow2.f32 %v2749_v44  ;;  %v10143_v25 = vmax.f32 %v6764_v34, %v6774_v28  ;;  %v2759_v13 = vmul.f32 1.442695, %v2481_v41  ;;  %v10148_v26 = vmax.f32 %v6785_v19, %v6799_v39  ;;  %v10165_v19 = vld [vmem:[#allocation34_spill] sm:$0xff]  ;;  %v10166_v28 = vld [vmem:[#allocation65_spill] sm:$0xff] }
 0x319   : > { %10131 = vst [vmem:[#allocation217_spill] sm:$0xff] %v6909_v52  ;;  %v6917_v9 = vpop.f32.mrb[151].mxu0  ;;  %v6919_v48 = vpop.eup %4771  ;;  %v3245_v36 = vadd.f32 %v6909_v52, %v6896_v54  ;;  %4787 = vpow2.f32 %v2751_v12  ;;  %v10156_v52 = vld [vmem:[#allocation45_spill] sm:$0xff] }
 0x31a   : > { %10132 = vst [vmem:[#allocation218_spill] sm:$0xff] %v6917_v9  ;;  %10133 = vst [vmem:[#allocation219_spill] sm:$0xff] %v6919_v48  ;;  %v6925_v58 = vpop.f32.mrb[150].mxu1  ;;  %v6927_v15 = vpop.eup %4773  ;;  %3333 = vadd.xlane.f32.xlu1 %v3332_v51  ;;  %4789 = vpow2.f32 %v2753_v8  ;;  %v2757_v8 = vmul.f32 1.442695, %v2480_v38  ;;  %v2542_v0 = vsub.f32 %v10156_v52, %v6841_v20 }
 0x31b   : > { %10134 = vst [vmem:[#allocation220_spill] sm:$0xff] %v6925_v58  ;;  %10135 = vst [vmem:[#allocation221_spill] sm:$0xff] %v6927_v15  ;;  %v6933_v55 = vpop.xlane.xlu0 %2118  ;;  %v6935_v35 = vpop.f32.mrb[151].mxu1  ;;  %v3248_v4 = vadd.f32 %v6927_v15, %v6919_v48  ;;  %4791 = vpow2.f32 %v2867_v61  ;;  %v10179_v58 = vld [vmem:[#allocation50_spill] sm:$0xff] }
 0x31c   : > { %10136 = vst [vmem:[#allocation222_spill] sm:$0xff] %v6935_v35  ;;  %v6943_v21 = vpop.xlane.xlu1 %2121  ;;  %3246 = vadd.xlane.f32.xlu0 %v3245_v36  ;;  %v6949_v11 = vpop.f32.mrb[152].mxu0  ;;  %4793 = vpow2.f32 %v2869_v60  ;;  %v10177_v35 = vld [vmem:[#allocation48_spill] sm:$0xff] }
 0x31d   : > { %10137 = vst [vmem:[#allocation223_spill] sm:$0xff] %v6949_v11  ;;  %v6953_v14 = vpop.f32.mrb[152].mxu1  ;;  %v6959_v44 = vpop.f32.mrb[153].mxu0  ;;  %4795 = vpow2.f32 %v2871_v50 }
 0x31e   : > { %10138 = vst [vmem:[#allocation224_spill] sm:$0xff] %v6953_v14  ;;  %10139 = vst [vmem:[#allocation225_spill] sm:$0xff] %v6959_v44  ;;  %3249 = vadd.xlane.f32.xlu1 %v3248_v4  ;;  %v6965_v36 = vpop.f32.mrb[154].mxu0  ;;  %v6967_v12 = vpop.f32.mrb[153].mxu1  ;;  %v2540_v4 = vsub.f32 %v6270_v27, %v6827_v22  ;;  %4797 = vpow2.f32 %v2873_v40  ;;  %v10150_v27 = vld [vmem:[#allocation43_spill] sm:$0xff]  ;;  %v10205_v44 = vld [vmem:[#allocation37_spill] sm:$0xff] }
 0x31f   : > { %v6957_v51 = vpop.xlane.xlu0 %2208  ;;  %10140 = vst [vmem:[#allocation226_spill] sm:$0xff] %v6965_v36  ;;  %10141 = vst [vmem:[#allocation227_spill] sm:$0xff] %v6967_v12  ;;  %v6973_v48 = vpop.f32.mrb[155].mxu0  ;;  %4799 = vpow2.f32 %v2755_v2  ;;  %v2541_v22 = vsub.f32 %v10150_v27, %v6841_v20  ;;  %v2875_v40 = vmul.f32 1.442695, %v2539_v29  ;;  %v2487_v36 = vsub.f32 %v10205_v44, %v6933_v55 }
 0x320   : > { %v6971_v49 = vpop.xlane.xlu1 %2211  ;;  %10142 = vst [vmem:[#allocation228_spill] sm:$0xff] %v6973_v48  ;;  %2394 = vmax.xlane.f32.xlu0 %v10143_v25  ;;  %v6980_v32 = vpop.f32.mrb[154].mxu1  ;;  %v2761_v25 = vmul.f32 1.442695, %v2482_v59  ;;  %4801 = vpow2.f32 %v2757_v8  ;;  %v10152_v59 = vmax.f32 %v6664_v30, %v6676_v6  ;;  %v2877_v27 = vmul.f32 1.442695, %v2540_v4 }
 0x321   : > { %10144 = vst [vmem:[#allocation229_spill] sm:$0xff] %v6980_v32  ;;  %v6982_v61 = vpop.eup %4775  ;;  %v6990_v7 = vpop.f32.mrb[155].mxu1  ;;  %4803 = vpow2.f32 %v2759_v13  ;;  %v10160_v30 = vld [vmem:[#allocation63_spill] sm:$0xff]  ;;  %v10161_v4 = vmax.f32 %v6694_v24, %v6702_v63  ;;  %v2881_v13 = vmul.f32 1.442695, %v2542_v0  ;;  %v2546_v48 = vsub.f32 %v10198_v56, %v6915_v18 }
 0x322   : > { %10145 = vst [vmem:[#allocation230_spill] sm:$0xff] %v6982_v61  ;;  %10146 = vst [vmem:[#allocation231_spill] sm:$0xff] %v6990_v7  ;;  %v6992_v33 = vpop.eup %4777  ;;  %2397 = vmax.xlane.f32.xlu1 %v10148_v26  ;;  %4805 = vpow2.f32 %v2761_v25  ;;  %v2879_v25 = vmul.f32 1.442695, %v2541_v22  ;;  %v10170_v22 = vld [vmem:[#allocation69_spill] sm:$0xff]  ;;  %v10173_v32 = vld [vmem:[#allocation35_spill] sm:$0xff] }
 0x323   : > { %v6988_v38 = vpop.xlane.xlu0 %2124  ;;  %10147 = vst [vmem:[#allocation232_spill] sm:$0xff] %v6992_v33  ;;  %v6997_v50 = vpop.eup %4779  ;;  %v3335_v52 = vadd.f32 %v6992_v33, %v6982_v61  ;;  %4807 = vpow2.f32 %v2875_v40  ;;  %v10169_v61 = vld [vmem:[#allocation67_spill] sm:$0xff]  ;;  %v2485_v12 = vsub.f32 %v10173_v32, %v6871_v47 }
 0x324   : > { %10149 = vst [vmem:[#allocation233_spill] sm:$0xff] %v6997_v50  ;;  %v7001_v41 = vpop.xlane.xlu1 %2127  ;;  %v7005_v54 = vpop.eup %4781  ;;  %2310 = vmax.xlane.f32.xlu0 %v10152_v59  ;;  %v10159_v59 = vld [vmem:[#allocation33_spill] sm:$0xff]  ;;  %4809 = vpow2.f32 %v2877_v27  ;;  %v10182_v27 = vld [vmem:[#allocation52_spill] sm:$0xff] }
 0x325   : > { %10151 = vst [vmem:[#allocation43_spill] sm:$0xff] %v7005_v54  ;;  %v7010_v26 = vpop.f32.mrb[156].mxu0  ;;  %v7012_v15 = vpop.f32.mrb[156].mxu1  ;;  %v2483_v6 = vsub.f32 %v10159_v59, %v6856_v42  ;;  %v2484_v59 = vsub.f32 %v10165_v19, %v6856_v42  ;;  %v3338_v19 = vadd.f32 %v7005_v54, %v6997_v50  ;;  %v10176_v50 = vld [vmem:[#allocation36_spill] sm:$0xff]  ;;  %4811 = vpow2.f32 %v2879_v25 }
 0x326   : > { %10153 = vst [vmem:[#allocation234_spill] sm:$0xff] %v7010_v26  ;;  %10154 = vst [vmem:[#allocation235_spill] sm:$0xff] %v7012_v15  ;;  %v7014_v2 = vpop.eup %4783  ;;  %v7020_v53 = vpop.f32.mrb[157].mxu0  ;;  %2313 = vmax.xlane.f32.xlu1 %v10161_v4  ;;  %v2486_v54 = vsub.f32 %v10176_v50, %v6871_v47  ;;  %v10181_v50 = vld [vmem:[#allocation47_spill] sm:$0xff]  ;;  %4813 = vpow2.f32 %v2881_v13 }
 0x327   : > { %10155 = vst [vmem:[#allocation236_spill] sm:$0xff] %v7014_v2  ;;  %v7018_v60 = vpop.xlane.xlu0 %2214  ;;  %10157 = vst [vmem:[#allocation45_spill] sm:$0xff] %v7020_v53  ;;  %v7024_v29 = vpop.eup %4785  ;;  %v2763_v7 = vmul.f32 1.442695, %v2483_v6  ;;  %v2765_v40 = vmul.f32 1.442695, %v2484_v59 }
 0x328   : > { %10158 = vst [vmem:[#allocation237_spill] sm:$0xff] %v7024_v29  ;;  %v7033_v20 = vpop.f32.mrb[158].mxu0  ;;  %v7037_v39 = vpop.f32.mrb[157].mxu1  ;;  %3336 = vadd.xlane.f32.xlu0 %v3335_v52  ;;  %v3251_v0 = vadd.f32 %v7024_v29, %v7014_v2  ;;  %v10183_v29 = vld [vmem:[#allocation54_spill] sm:$0xff] }
 0x329   : > { %10162 = vst [vmem:[#allocation33_spill] sm:$0xff] %v7033_v20  ;;  %10163 = vst [vmem:[#allocation63_spill] sm:$0xff] %v7037_v39  ;;  %v7039_v8 = vpop.eup %4787  ;;  %v7047_v4 = vpop.xlane.xlu1 %2217  ;;  %v2767_v39 = vmul.f32 1.442695, %v2485_v12  ;;  %4815 = vpow2.f32 %v2763_v7 }
 0x32a   : > { %10164 = vst [vmem:[#allocation238_spill] sm:$0xff] %v7039_v8  ;;  %v7049_v24 = vpop.f32.mrb[159].mxu0  ;;  %v7051_v34 = vpop.eup %4789  ;;  %3339 = vadd.xlane.f32.xlu1 %v3338_v19  ;;  %v2543_v19 = vsub.f32 %v10181_v50, %v6890_v43  ;;  %v10187_v50 = vld [vmem:[#allocation49_spill] sm:$0xff]  ;;  %4817 = vpow2.f32 %v2765_v40  ;;  %v10199_v40 = vld [vmem:[#allocation75_spill] sm:$0xff] }
 0x32b   : > { %10167 = vst [vmem:[#allocation34_spill] sm:$0xff] %v7049_v24  ;;  %10168 = vst [vmem:[#allocation65_spill] sm:$0xff] %v7051_v34  ;;  %v7059_v42 = vpop.f32.mrb[158].mxu1  ;;  %v7061_v63 = vpop.eup %4791  ;;  %v3254_v5 = vadd.f32 %v7051_v34, %v7039_v8  ;;  %v2544_v15 = vsub.f32 %v10187_v50, %v6890_v43  ;;  %v2769_v8 = vmul.f32 1.442695, %v2486_v54  ;;  %v10190_v34 = vld [vmem:[#allocation71_spill] sm:$0xff]  ;;  %4819 = vpow2.f32 %v2767_v39 }
 0x32c   : > { %10171 = vst [vmem:[#allocation67_spill] sm:$0xff] %v7059_v42  ;;  %10172 = vst [vmem:[#allocation69_spill] sm:$0xff] %v7061_v63  ;;  %v7067_v33 = vpop.xlane.xlu0 %2130  ;;  %v7069_v14 = vpop.f32.mrb[159].mxu1  ;;  %3252 = vadd.xlane.f32.xlu0 %v3251_v0  ;;  %v10194_v50 = vld [vmem:[#allocation51_spill] sm:$0xff]  ;;  %v10195_v0 = vld [vmem:[#allocation73_spill] sm:$0xff]  ;;  %v10207_v39 = vmax.f32 %v6833_v17, %v6843_v3 }
 0x32d   : > { %10174 = vst [vmem:[#allocation35_spill] sm:$0xff] %v7069_v14  ;;  %v7071_v52 = vpop.eup %4793  ;;  %v7083_v62 = vpop.xlane.xlu1 %2133  ;;  %v2545_v26 = vsub.f32 %v10194_v50, %v6915_v18  ;;  %v2883_v42 = vmul.f32 1.442695, %v2543_v19  ;;  %v10201_v14 = vmax.f32 %v6821_v57, %v6829_v1  ;;  %4821 = vpow2.f32 %v2769_v8  ;;  %v10215_v1 = vld [vmem:[#allocation179_spill] sm:$0xff] }
 0x32e   : > { %10175 = vst [vmem:[#allocation239_spill] sm:$0xff] %v7071_v52  ;;  %v7079_v32 = vpop.eup %4795  ;;  %v7095_v59 = vpop.f32.mrb[160].mxu0  ;;  %3255 = vadd.xlane.f32.xlu1 %v3254_v5  ;;  %v2889_v3 = vmul.f32 1.442695, %v2546_v48 }
 0x32f   : > { %10178 = vst [vmem:[#allocation36_spill] sm:$0xff] %v7079_v32  ;;  %v7087_v47 = vpop.eup %4797  ;;  %10184 = vst [vmem:[#allocation50_spill] sm:$0xff] %v7095_v59  ;;  %v7099_v24 = vpop.f32.mrb[160].mxu1  ;;  %v2887_v57 = vmul.f32 1.442695, %v2545_v26  ;;  %4823 = vpow2.f32 %v2883_v42  ;;  %v10214_v26 = vld [vmem:[#allocation176_spill] sm:$0xff] }
 0x330   : > { %10180 = vst [vmem:[#allocation48_spill] sm:$0xff] %v7087_v47  ;;  %10185 = vst [vmem:[#allocation47_spill] sm:$0xff] %v7099_v24  ;;  %v7101_v6 = vpop.eup %4799  ;;  %v7105_v20 = vpop.xlane.xlu0 %2220  ;;  %2400 = vmax.xlane.f32.xlu0 %v10201_v14  ;;  %v10216_v50 = vmax.f32 %v10214_v26, %v10215_v1  ;;  %v10220_v42 = vld [vmem:[#allocation39_spill] sm:$0xff]  ;;  %v2771_v1 = vmul.f32 1.442695, %v2487_v36  ;;  %v10222_v26 = vld [vmem:[#allocation40_spill] sm:$0xff] }
 0x331   : > { %10186 = vst [vmem:[#allocation52_spill] sm:$0xff] %v7101_v6  ;;  %v7107_v2 = vpop.f32.mrb[161].mxu0  ;;  %v7111_v25 = vpop.eup %4801  ;;  %v2489_v48 = vsub.f32 %v10220_v42, %v6943_v21  ;;  %v10223_v24 = vld [vmem:[#allocation79_spill] sm:$0xff] }
 0x332   : > { %10188 = vst [vmem:[#allocation54_spill] sm:$0xff] %v7107_v2  ;;  %10189 = vst [vmem:[#allocation49_spill] sm:$0xff] %v7111_v25  ;;  %v7115_v13 = vpop.f32.mrb[162].mxu0  ;;  %v7117_v12 = vpop.f32.mrb[161].mxu1  ;;  %v2885_v2 = vmul.f32 1.442695, %v2544_v15  ;;  %2403 = vmax.xlane.f32.xlu1 %v10207_v39  ;;  %v3341_v15 = vadd.f32 %v7071_v52, %v7061_v63  ;;  %v3344_v52 = vadd.f32 %v7087_v47, %v7079_v32 }
 0x333   : > { %10191 = vst [vmem:[#allocation71_spill] sm:$0xff] %v7115_v13  ;;  %10192 = vst [vmem:[#allocation240_spill] sm:$0xff] %v7117_v12  ;;  %v7119_v43 = vpop.eup %4803  ;;  %v7127_v7 = vpop.xlane.xlu1 %2223  ;;  %v2490_v12 = vsub.f32 %v10222_v26, %v6943_v21  ;;  %v10224_v63 = vld [vmem:[#allocation181_spill] sm:$0xff]  ;;  %v3257_v8 = vadd.f32 %v7111_v25, %v7101_v6  ;;  %v10234_v6 = vld [vmem:[#allocation55_spill] sm:$0xff] }
 0x334   : > { %10193 = vst [vmem:[#allocation241_spill] sm:$0xff] %v7119_v43  ;;  %v7129_v53 = vpop.f32.mrb[163].mxu0  ;;  %v7131_v5 = vpop.eup %4805  ;;  %2316 = vmax.xlane.f32.xlu0 %v10216_v50  ;;  %4825 = vpow2.f32 %v2885_v2  ;;  %v2547_v25 = vsub.f32 %v10234_v6, %v6957_v51 }
 0x335   : > { %10196 = vst [vmem:[#allocation51_spill] sm:$0xff] %v7129_v53  ;;  %10197 = vst [vmem:[#allocation73_spill] sm:$0xff] %v7131_v5  ;;  %v7142_v54 = vpop.f32.mrb[162].mxu1  ;;  %v7146_v59 = vpop.xlane.xlu0 %2136  ;;  %v10209_v53 = vld [vmem:[#allocation38_spill] sm:$0xff]  ;;  %4827 = vpow2.f32 %v2887_v57  ;;  %v3260_v6 = vadd.f32 %v7131_v5, %v7119_v43 }
 0x336   : > { %10202 = vst [vmem:[#allocation53_spill] sm:$0xff] %v7142_v54  ;;  %v7148_v56 = vpop.f32.mrb[163].mxu1  ;;  %v7150_v18 = vpop.eup %4807  ;;  %v2488_v13 = vsub.f32 %v10209_v53, %v6933_v55  ;;  %4829 = vpow2.f32 %v2889_v3  ;;  %v2775_v54 = vmul.f32 1.442695, %v2489_v48 }
 0x337   : > { %10203 = vst [vmem:[#allocation75_spill] sm:$0xff] %v7148_v56  ;;  %10204 = vst [vmem:[#allocation242_spill] sm:$0xff] %v7150_v18  ;;  %v7161_v19 = vpop.eup %4809  ;;  %v7167_v44 = vpop.xlane.xlu1 %2139  ;;  %4831 = vpow2.f32 %v2771_v1  ;;  %v10241_v56 = vld [vmem:[#allocation59_spill] sm:$0xff] }
 0x338   : > { %10208 = vst [vmem:[#allocation37_spill] sm:$0xff] %v7161_v19  ;;  %10211 = vst [vmem:[#allocation38_spill] sm:$0xff] %v7167_v44  ;;  %v7178_v53 = vpop.f32.mrb[164].mxu0  ;;  %v7180_v55 = vpop.f32.mrb[164].mxu1  ;;  %v10225_v44 = vld [vmem:[#allocation182_spill] sm:$0xff]  ;;  %3342 = vadd.xlane.f32.xlu0 %v3341_v15 }
 0x339   : > { %10217 = vst [vmem:[#allocation243_spill] sm:$0xff] %v7178_v53  ;;  %10218 = vst [vmem:[#allocation244_spill] sm:$0xff] %v7180_v55  ;;  %v7182_v11 = vpop.eup %4811  ;;  %v7186_v14 = vpop.xlane.xlu0 %2226  ;;  %v10226_v42 = vmax.f32 %v10224_v63, %v10225_v44  ;;  %v2773_v36 = vmul.f32 1.442695, %v2488_v13  ;;  %v10235_v63 = vld [vmem:[#allocation83_spill] sm:$0xff]  ;;  %v2549_v13 = vsub.f32 %v10241_v56, %v6971_v49 }
 0x33a   : > { %10219 = vst [vmem:[#allocation245_spill] sm:$0xff] %v7182_v11  ;;  %v7188_v17 = vpop.f32.mrb[165].mxu0  ;;  %v7205_v32 = vpop.f32.mrb[165].mxu1  ;;  %v2777_v15 = vmul.f32 1.442695, %v2490_v12 }
 0x33b   : > { %10221 = vst [vmem:[#allocation39_spill] sm:$0xff] %v7188_v17  ;;  %2319 = vmax.xlane.f32.xlu1 %v10226_v42  ;;  %v7201_v39 = vpop.f32.mrb[166].mxu0  ;;  %10228 = vst [vmem:[#allocation79_spill] sm:$0xff] %v7205_v32  ;;  %v7207_v47 = vpop.eup %4813  ;;  %v10239_v17 = vld [vmem:[#allocation57_spill] sm:$0xff]  ;;  %4833 = vpow2.f32 %v2773_v36  ;;  %v2891_v56 = vmul.f32 1.442695, %v2547_v25 }
 0x33c   : > { %10227 = vst [vmem:[#allocation40_spill] sm:$0xff] %v7201_v39  ;;  %10229 = vst [vmem:[#allocation246_spill] sm:$0xff] %v7207_v47  ;;  %v7213_v2 = vpop.xlane.xlu1 %2229  ;;  %v7215_v42 = vpop.f32.mrb[167].mxu0  ;;  %v2548_v53 = vsub.f32 %v10239_v17, %v6957_v51  ;;  %v10244_v51 = vld [vmem:[#allocation61_spill] sm:$0xff]  ;;  %3258 = vadd.xlane.f32.xlu0 %v3257_v8  ;;  %4835 = vpow2.f32 %v2775_v54  ;;  %v2895_v36 = vmul.f32 1.442695, %v2549_v13 }
 0x33d   : > { %10231 = vst [vmem:[#allocation247_spill] sm:$0xff] %v7213_v2  ;;  %10232 = vst [vmem:[#allocation248_spill] sm:$0xff] %v7215_v42  ;;  %v7217_v44 = vpop.eup %4815  ;;  %v7225_v26 = vpop.f32.mrb[166].mxu1  ;;  %v2550_v3 = vsub.f32 %v10244_v51, %v6971_v49  ;;  %v10248_v2 = vld [vmem:[#allocation41_spill] sm:$0xff]  ;;  %v10252_v42 = vld [vmem:[#allocation42_spill] sm:$0xff]  ;;  %4837 = vpow2.f32 %v2777_v15 }
 0x33e   : > { %10233 = vst [vmem:[#allocation249_spill] sm:$0xff] %v7217_v44  ;;  %10237 = vst [vmem:[#allocation55_spill] sm:$0xff] %v7225_v26  ;;  %v7227_v50 = vpop.eup %4817  ;;  %v7233_v21 = vpop.xlane.xlu0 %2142  ;;  %v2893_v43 = vmul.f32 1.442695, %v2548_v53  ;;  %v2492_v1 = vsub.f32 %v10252_v42, %v6988_v38  ;;  %v10255_v8 = vld [vmem:[#allocation44_spill] sm:$0xff]  ;;  %4839 = vpow2.f32 %v2891_v56  ;;  %v10262_v53 = vld [vmem:[#allocation91_spill] sm:$0xff] }
 0x33f   : > { %10238 = vst [vmem:[#allocation83_spill] sm:$0xff] %v7227_v50  ;;  %v7237_v57 = vpop.f32.mrb[167].mxu1  ;;  %3345 = vadd.xlane.f32.xlu1 %v3344_v52  ;;  %v7243_v17 = vpop.eup %4819  ;;  %v2491_v52 = vsub.f32 %v10248_v2, %v6988_v38  ;;  %v2493_v49 = vsub.f32 %v10255_v8, %v7001_v41  ;;  %v2897_v42 = vmul.f32 1.442695, %v2550_v3  ;;  %v10260_v2 = vld [vmem:[#allocation89_spill] sm:$0xff]  ;;  %v10267_v26 = vld [vmem:[#allocation72_spill] sm:$0xff] }
 0x340   : > { %10240 = vst [vmem:[#allocation57_spill] sm:$0xff] %v7237_v57  ;;  %10243 = vst [vmem:[#allocation59_spill] sm:$0xff] %v7243_v17  ;;  %v7249_v5 = vpop.xlane.xlu1 %2145  ;;  %v7253_v12 = vpop.eup %4821  ;;  %v10263_v3 = vld [vmem:[#allocation93_spill] sm:$0xff]  ;;  %4841 = vpow2.f32 %v2893_v43  ;;  %v2781_v13 = vmul.f32 1.442695, %v2492_v1  ;;  %v10269_v43 = vld [vmem:[#allocation74_spill] sm:$0xff] }
 0x341   : > { %10246 = vst [vmem:[#allocation61_spill] sm:$0xff] %v7249_v5  ;;  %10247 = vst [vmem:[#allocation250_spill] sm:$0xff] %v7253_v12  ;;  %v7261_v51 = vpop.f32.mrb[168].mxu0  ;;  %v7271_v55 = vpop.eup %4823  ;;  %v10259_v5 = vld [vmem:[#allocation46_spill] sm:$0xff]  ;;  %4843 = vpow2.f32 %v2895_v36  ;;  %v10271_v36 = vsub.f32 %v10160_v30, %v7018_v60  ;;  %v10272_v54 = vld [vmem:[#allocation76_spill] sm:$0xff] }
 0x342   : > { %10251 = vst [vmem:[#allocation41_spill] sm:$0xff] %v7261_v51  ;;  %v7265_v32 = vpop.xlane.xlu0 %2232  ;;  %v7267_v25 = vpop.f32.mrb[169].mxu0  ;;  %10254 = vst [vmem:[#allocation251_spill] sm:$0xff] %v7271_v55  ;;  %v2494_v39 = vsub.f32 %v10259_v5, %v7001_v41  ;;  %v10264_v41 = vmax.f32 %v6882_v37, %v6892_v45  ;;  %v10268_v45 = vmax.f32 %v6903_v16, %v6917_v9  ;;  %4845 = vpow2.f32 %v2897_v42  ;;  %v10273_v9 = vld [vmem:[#allocation78_spill] sm:$0xff]  ;;  %v10322_v51 = vld [vmem:[#allocation223_spill] sm:$0xff] }
 0x343   : > { %10253 = vst [vmem:[#allocation42_spill] sm:$0xff] %v7267_v25  ;;  %3261 = vadd.xlane.f32.xlu1 %v3260_v6  ;;  %v7277_v48 = vpop.f32.mrb[170].mxu0  ;;  %v7279_v38 = vpop.eup %4825  ;;  %v2779_v6 = vmul.f32 1.442695, %v2491_v52  ;;  %v2783_v52 = vmul.f32 1.442695, %v2493_v49 }
 0x344   : > { %10257 = vst [vmem:[#allocation44_spill] sm:$0xff] %v7277_v48  ;;  %10258 = vst [vmem:[#allocation252_spill] sm:$0xff] %v7279_v38  ;;  %v7287_v15 = vpop.xlane.xlu1 %2235  ;;  %v7289_v8 = vpop.f32.mrb[171].mxu0  ;;  %2406 = vmax.xlane.f32.xlu0 %v10264_v41  ;;  %v2785_v41 = vmul.f32 1.442695, %v2494_v39  ;;  %v10274_v39 = vmax.f32 %v6766_v23, %v6789_v31  ;;  %v10280_v31 = vld [vmem:[#allocation95_spill] sm:$0xff]  ;;  %v10291_v23 = vsub.f32 %v10179_v58, %v7067_v33 }
 0x345   : > { %10261 = vst [vmem:[#allocation46_spill] sm:$0xff] %v7289_v8  ;;  %v7298_v5 = vpop.eup %4827  ;;  %4847 = vpow2.f32 %v2779_v6  ;;  %v2899_v49 = vmul.f32 1.442695, %v10271_v36  ;;  %v7327_v42 = vpop.f32.mrb[172].mxu0  ;;  %v10277_v6 = vsub.f32 %v10166_v28, %v7018_v60  ;;  %v3350_v60 = vadd.f32 %v7207_v47, %v7182_v11 }
 0x346   : > { %10265 = vst [vmem:[#allocation89_spill] sm:$0xff] %v7298_v5  ;;  %v7302_v25 = vpop.xlane.xlu0 %2148  ;;  %v7304_v56 = vpop.eup %4829  ;;  %10275 = vst [vmem:[#allocation72_spill] sm:$0xff] %v7327_v42  ;;  %4849 = vpow2.f32 %v2781_v13  ;;  %v10281_v13 = vmax.f32 %v6805_v10, %v6813_v46  ;;  %v2789_v47 = vmul.f32 1.442695, %v10291_v23  ;;  %v3263_v58 = vadd.f32 %v7227_v50, %v7217_v44  ;;  %v10318_v50 = vld [vmem:[#allocation56_spill] sm:$0xff] }
 0x347   : > { %10266 = vst [vmem:[#allocation91_spill] sm:$0xff] %v7304_v56  ;;  %2409 = vmax.xlane.f32.xlu1 %v10268_v45  ;;  %v7315_v57 = vpop.eup %4831  ;;  %v2901_v30 = vmul.f32 1.442695, %v10277_v6  ;;  %v7336_v16 = vpop.f32.mrb[173].mxu0  ;;  %v3347_v45 = vadd.f32 %v7161_v19, %v7150_v18  ;;  %4851 = vpow2.f32 %v2783_v52  ;;  %v10284_v52 = vsub.f32 %v10170_v22, %v7047_v4  ;;  %v10294_v18 = vld [vmem:[#allocation80_spill] sm:$0xff] }
 0x348   : > { %v7313_v37 = vpop.xlane.xlu1 %2151  ;;  %10270 = vst [vmem:[#allocation93_spill] sm:$0xff] %v7315_v57  ;;  %2322 = vmax.xlane.f32.xlu0 %v10274_v39  ;;  %v7329_v1 = vpop.eup %4833  ;;  %10278 = vst [vmem:[#allocation76_spill] sm:$0xff] %v7336_v16  ;;  %v10279_v39 = vsub.f32 %v10169_v61, %v7047_v4  ;;  %4853 = vpow2.f32 %v2785_v41  ;;  %v10288_v41 = vsub.f32 %v10177_v35, %v7067_v33  ;;  %v10289_v4 = vld [vmem:[#allocation99_spill] sm:$0xff] }
 0x349   : > { %10276 = vst [vmem:[#allocation74_spill] sm:$0xff] %v7329_v1  ;;  %v7348_v28 = vpop.f32.mrb[174].mxu0  ;;  %v7352_v6 = vpop.eup %4835  ;;  %v2905_v61 = vmul.f32 1.442695, %v10284_v52  ;;  %4855 = vpow2.f32 %v2899_v49  ;;  %v10290_v52 = vld [vmem:[#allocation101_spill] sm:$0xff]  ;;  %v10293_v35 = vsub.f32 %v10182_v27, %v7083_v62  ;;  %v10296_v33 = vsub.f32 %v10183_v29, %v7083_v62  ;;  %v10301_v62 = vld [vmem:[#allocation86_spill] sm:$0xff] }
 0x34a   : > { %v7334_v36 = vpop.xlane.xlu0 %2238  ;;  %v2903_v8 = vmul.f32 1.442695, %v10279_v39  ;;  %10282 = vst [vmem:[#allocation78_spill] sm:$0xff] %v7348_v28  ;;  %10283 = vst [vmem:[#allocation95_spill] sm:$0xff] %v7352_v6  ;;  %v10285_v39 = vld [vmem:[#allocation97_spill] sm:$0xff]  ;;  %v7365_v10 = vpop.eup %4837  ;;  %4857 = vpow2.f32 %v2901_v30  ;;  %v3266_v27 = vadd.f32 %v7253_v12, %v7243_v17  ;;  %v10304_v17 = vsub.f32 %v10195_v0, %v7105_v20 }
 0x34b   : > { %2325 = vmax.xlane.f32.xlu1 %v10281_v13  ;;  %v7363_v13 = vpop.f32.mrb[175].mxu0  ;;  %10287 = vst [vmem:[#allocation253_spill] sm:$0xff] %v7365_v10  ;;  %v2787_v11 = vmul.f32 1.442695, %v10288_v41  ;;  %v7381_v16 = vpop.eup %4839  ;;  %v2791_v41 = vmul.f32 1.442695, %v10293_v35  ;;  %v10308_v29 = vsub.f32 %v10199_v40, %v7127_v7 }
 0x34c   : > { %v7361_v46 = vpop.xlane.xlu1 %2241  ;;  %10286 = vst [vmem:[#allocation97_spill] sm:$0xff] %v7363_v13  ;;  %3348 = vadd.xlane.f32.xlu0 %v3347_v45  ;;  %10292 = vst [vmem:[#allocation99_spill] sm:$0xff] %v7381_v16  ;;  %4859 = vpow2.f32 %v2903_v8  ;;  %v7390_v23 = vpop.eup %4841  ;;  %v2793_v30 = vmul.f32 1.442695, %v10296_v33  ;;  %v10297_v8 = vld [vmem:[#allocation82_spill] sm:$0xff]  ;;  %v10323_v28 = vld [vmem:[#allocation225_spill] sm:$0xff] }
 0x34d   : > { %10295 = vst [vmem:[#allocation101_spill] sm:$0xff] %v7390_v23  ;;  %4861 = vpow2.f32 %v2905_v61  ;;  %v7401_v35 = vpop.eup %4843  ;;  %v10300_v61 = vld [vmem:[#allocation84_spill] sm:$0xff]  ;;  %v7410_v33 = vpop.f32.mrb[176].mxu0  ;;  %v10324_v40 = vmax.f32 %v10322_v51, %v10323_v28 }
 0x34e   : > { %v7379_v49 = vpop.xlane.xlu0 %2154  ;;  %10298 = vst [vmem:[#allocation80_spill] sm:$0xff] %v7401_v35  ;;  %4863 = vpow2.f32 %v2787_v11  ;;  %10302 = vst [vmem:[#allocation82_spill] sm:$0xff] %v7410_v33  ;;  %v7412_v19 = vpop.eup %4845  ;;  %v2909_v11 = vmul.f32 1.442695, %v10304_v17  ;;  %v10326_v33 = vld [vmem:[#allocation58_spill] sm:$0xff] }
 0x34f   : > { %3351 = vadd.xlane.f32.xlu1 %v3350_v60  ;;  %v10299_v60 = vsub.f32 %v10190_v34, %v7105_v20  ;;  %10303 = vst [vmem:[#allocation84_spill] sm:$0xff] %v7412_v19  ;;  %4865 = vpow2.f32 %v2789_v47  ;;  %v7419_v34 = vpop.f32.mrb[177].mxu0  ;;  %v10312_v20 = vld [vmem:[#allocation77_spill] sm:$0xff] }
 0x350   : > { %v7397_v22 = vpop.xlane.xlu1 %2157  ;;  %3264 = vadd.xlane.f32.xlu0 %v3263_v58  ;;  %10306 = vst [vmem:[#allocation254_spill] sm:$0xff] %v7419_v34  ;;  %4867 = vpow2.f32 %v2791_v41  ;;  %v2911_v58 = vmul.f32 1.442695, %v10308_v29  ;;  %v7428_v47 = vpop.f32.mrb[178].mxu0  ;;  %v10313_v0 = vsub.f32 %v10312_v20, %v7127_v7  ;;  %v10329_v41 = vld [vmem:[#allocation60_spill] sm:$0xff] }
 0x351   : > { %v2907_v45 = vmul.f32 1.442695, %v10299_v60  ;;  %v7421_v60 = vpop.eup %4847  ;;  %10310 = vst [vmem:[#allocation256_spill] sm:$0xff] %v7428_v47  ;;  %4869 = vpow2.f32 %v2793_v30  ;;  %v7441_v42 = vpop.f32.mrb[179].mxu0  ;;  %v10319_v30 = vsub.f32 %v10318_v50, %v7146_v59  ;;  %v10334_v7 = vld [vmem:[#allocation228_spill] sm:$0xff] }
 0x352   : > { %v7417_v12 = vpop.xlane.xlu0 %2244  ;;  %10307 = vst [vmem:[#allocation255_spill] sm:$0xff] %v7421_v60  ;;  %v7430_v13 = vpop.eup %4849  ;;  %v2913_v17 = vmul.f32 1.442695, %v10313_v0  ;;  %10316 = vst [vmem:[#allocation258_spill] sm:$0xff] %v7441_v42  ;;  %v10330_v0 = vld [vmem:[#allocation38_spill] sm:$0xff] }
 0x353   : > { %10305 = vst [vmem:[#allocation86_spill] sm:$0xff] %v7417_v12  ;;  %3267 = vadd.xlane.f32.xlu1 %v3266_v27  ;;  %10311 = vst [vmem:[#allocation257_spill] sm:$0xff] %v7430_v13  ;;  %v7443_v27 = vpop.eup %4851  ;;  %4871 = vpow2.f32 %v2907_v45  ;;  %v2795_v48 = vmul.f32 1.442695, %v10319_v30  ;;  %v10327_v45 = vsub.f32 %v10326_v33, %v7146_v59  ;;  %v10337_v33 = vld [vmem:[#allocation62_spill] sm:$0xff] }
 0x354   : > { %v7439_v29 = vpop.xlane.xlu1 %2247  ;;  %10317 = vst [vmem:[#allocation259_spill] sm:$0xff] %v7443_v27  ;;  %2412 = vmax.xlane.f32.xlu0 %v10324_v40  ;;  %v7455_v34 = vpop.eup %4853  ;;  %4873 = vpow2.f32 %v2909_v11  ;;  %v10332_v40 = vld [vmem:[#allocation88_spill] sm:$0xff]  ;;  %v10333_v11 = vld [vmem:[#allocation226_spill] sm:$0xff] }
 0x355   : > { %10315 = vst [vmem:[#allocation77_spill] sm:$0xff] %v7439_v29  ;;  %10325 = vst [vmem:[#allocation56_spill] sm:$0xff] %v7455_v34  ;;  %v2797_v12 = vmul.f32 1.442695, %v10327_v45  ;;  %v7464_v20 = vpop.eup %4855  ;;  %4875 = vpow2.f32 %v2911_v58  ;;  %v10331_v29 = vsub.f32 %v10329_v41, %v10330_v0  ;;  %v10335_v44 = vmax.f32 %v10333_v11, %v10334_v7  ;;  %v10339_v58 = vld [vmem:[#allocation90_spill] sm:$0xff]  ;;  %v7495_v42 = vpop.f32.mrb[180].mxu0 }
 0x356   : > { %v7462_v30 = vpop.xlane.xlu0 %2160  ;;  %10328 = vst [vmem:[#allocation58_spill] sm:$0xff] %v7464_v20  ;;  %v7474_v59 = vpop.eup %4857  ;;  %4877 = vpow2.f32 %v2913_v17  ;;  %v10338_v45 = vsub.f32 %v10337_v33, %v10330_v0  ;;  %v10345_v0 = vld [vmem:[#allocation200_spill] sm:$0xff]  ;;  %v10346_v33 = vld [vmem:[#allocation203_spill] sm:$0xff]  ;;  %10348 = vst [vmem:[#allocation62_spill] sm:$0xff] %v7495_v42  ;;  %v3353_v11 = vadd.f32 %v7279_v38, %v7271_v55 }
 0x357   : > { %v2799_v28 = vmul.f32 1.442695, %v10331_v29  ;;  %2415 = vmax.xlane.f32.xlu1 %v10335_v44  ;;  %10336 = vst [vmem:[#allocation60_spill] sm:$0xff] %v7474_v59  ;;  %v7483_v41 = vpop.eup %4859  ;;  %4879 = vpow2.f32 %v2795_v48  ;;  %v10342_v29 = vsub.f32 %v10223_v24, %v7186_v14  ;;  %v10343_v44 = vld [vmem:[#allocation92_spill] sm:$0xff]  ;;  %v10350_v48 = vld [vmem:[#allocation81_spill] sm:$0xff]  ;;  %v7504_v20 = vpop.f32.mrb[181].mxu0 }
 0x358   : > { %v2801_v50 = vmul.f32 1.442695, %v10338_v45  ;;  %v7481_v47 = vpop.xlane.xlu1 %2163  ;;  %10341 = vst [vmem:[#allocation88_spill] sm:$0xff] %v7483_v41  ;;  %v10347_v45 = vmax.f32 %v10345_v0, %v10346_v33  ;;  %v7497_v59 = vpop.eup %4861  ;;  %4881 = vpow2.f32 %v2797_v12  ;;  %v10351_v41 = vsub.f32 %v10350_v48, %v7186_v14  ;;  %10352 = vst [vmem:[#allocation92_spill] sm:$0xff] %v7504_v20  ;;  %v10356_v12 = vld [vmem:[#allocation111_spill] sm:$0xff]  ;;  %v10357_v17 = vld [vmem:[#allocation205_spill] sm:$0xff] }
 0x359   : > { %10340 = vst [vmem:[#allocation38_spill] sm:$0xff] %v7481_v47  ;;  %v2915_v51 = vmul.f32 1.442695, %v10342_v29  ;;  %10349 = vst [vmem:[#allocation90_spill] sm:$0xff] %v7497_v59  ;;  %v7508_v7 = vpop.eup %4863  ;;  %4883 = vpow2.f32 %v2799_v28  ;;  %v10358_v14 = vld [vmem:[#allocation206_spill] sm:$0xff]  ;;  %v7518_v48 = vpop.f32.mrb[182].mxu0  ;;  %v3356_v47 = vadd.f32 %v7304_v56, %v7298_v5 }
 0x35a   : > { %2328 = vmax.xlane.f32.xlu0 %v10347_v45  ;;  %v2917_v24 = vmul.f32 1.442695, %v10351_v41  ;;  %v7502_v29 = vpop.xlane.xlu0 %2250  ;;  %10353 = vst [vmem:[#allocation81_spill] sm:$0xff] %v7508_v7  ;;  %v10354_v45 = vld [vmem:[#allocation247_spill] sm:$0xff]  ;;  %v10359_v41 = vmax.f32 %v10357_v17, %v10358_v14  ;;  %v7522_v55 = vpop.eup %4865  ;;  %4885 = vpow2.f32 %v2801_v50  ;;  %v10362_v28 = vld [vmem:[#allocation85_spill] sm:$0xff]  ;;  %v10367_v5 = vld [vmem:[#allocation64_spill] sm:$0xff] }
 0x35b   : > { %v10355_v33 = vsub.f32 %v10235_v63, %v10354_v45  ;;  %10360 = vst [vmem:[#allocation247_spill] sm:$0xff] %v7518_v48  ;;  %10361 = vst [vmem:[#allocation111_spill] sm:$0xff] %v7522_v55  ;;  %v10363_v38 = vsub.f32 %v10362_v28, %v10354_v45  ;;  %v7535_v17 = vpop.eup %4867  ;;  %4887 = vpow2.f32 %v2915_v51  ;;  %v10368_v50 = vsub.f32 %v10367_v5, %v7233_v21  ;;  %v10370_v28 = vld [vmem:[#allocation117_spill] sm:$0xff]  ;;  %v10372_v59 = vld [vmem:[#allocation66_spill] sm:$0xff] }
 0x35c   : > { %2331 = vmax.xlane.f32.xlu1 %v10359_v41  ;;  %v7531_v14 = vpop.xlane.xlu1 %2253  ;;  %v7533_v41 = vpop.f32.mrb[183].mxu0  ;;  %4889 = vpow2.f32 %v2917_v24  ;;  %v10373_v20 = vsub.f32 %v10372_v59, %v7233_v21  ;;  %v3269_v21 = vadd.f32 %v7329_v1, %v7315_v57  ;;  %v10380_v59 = vld [vmem:[#allocation70_spill] sm:$0xff]  ;;  %v10392_v1 = vld [vmem:[#allocation119_spill] sm:$0xff] }
 0x35d   : > { %v2919_v0 = vmul.f32 1.442695, %v10355_v33  ;;  %v2921_v63 = vmul.f32 1.442695, %v10363_v38  ;;  %v10364_v33 = vld [vmem:[#allocation113_spill] sm:$0xff]  ;;  %10365 = vst [vmem:[#allocation85_spill] sm:$0xff] %v7533_v41  ;;  %v7544_v55 = vpop.eup %4869  ;;  %v10389_v41 = vsub.f32 %v10260_v2, %v7265_v32 }
 0x35e   : > { %10366 = vst [vmem:[#allocation113_spill] sm:$0xff] %v7535_v17  ;;  %v2803_v56 = vmul.f32 1.442695, %v10368_v50  ;;  %3354 = vadd.xlane.f32.xlu0 %v3353_v11  ;;  %10371 = vst [vmem:[#allocation64_spill] sm:$0xff] %v7544_v55  ;;  %v2805_v42 = vmul.f32 1.442695, %v10373_v20  ;;  %v7551_v17 = vpop.xlane.xlu0 %2166  ;;  %v7553_v5 = vpop.eup %4871 }
 0x35f   : > { %10374 = vst [vmem:[#allocation117_spill] sm:$0xff] %v7553_v5  ;;  %4891 = vpow2.f32 %v2919_v0  ;;  %v10375_v50 = vld [vmem:[#allocation68_spill] sm:$0xff]  ;;  %v10376_v38 = vld [vmem:[#allocation61_spill] sm:$0xff]  ;;  %v7562_v20 = vpop.eup %4873  ;;  %v10382_v0 = vld [vmem:[#allocation98_spill] sm:$0xff] }
 0x360   : > { %v10377_v45 = vsub.f32 %v10375_v50, %v10376_v38  ;;  %v10378_v11 = vld [vmem:[#allocation96_spill] sm:$0xff]  ;;  %3357 = vadd.xlane.f32.xlu1 %v3356_v47  ;;  %10379 = vst [vmem:[#allocation66_spill] sm:$0xff] %v7562_v20  ;;  %4893 = vpow2.f32 %v2921_v63  ;;  %v10381_v24 = vsub.f32 %v10380_v59, %v10376_v38  ;;  %v7569_v48 = vpop.xlane.xlu1 %2169  ;;  %v7573_v50 = vpop.eup %4875  ;;  %v10384_v47 = vld [vmem:[#allocation87_spill] sm:$0xff]  ;;  %v10387_v38 = vld [vmem:[#allocation102_spill] sm:$0xff] }
 0x361   : > { %10383 = vst [vmem:[#allocation68_spill] sm:$0xff] %v7573_v50  ;;  %4895 = vpow2.f32 %v2803_v56  ;;  %v10385_v55 = vsub.f32 %v10384_v47, %v7265_v32  ;;  %v10386_v63 = vld [vmem:[#allocation100_spill] sm:$0xff]  ;;  %v10394_v32 = vsub.f32 %v10263_v3, %v7287_v15  ;;  %v10401_v3 = vld [vmem:[#allocation45_spill] sm:$0xff] }
 0x362   : > { %v2807_v7 = vmul.f32 1.442695, %v10377_v45  ;;  %v2809_v51 = vmul.f32 1.442695, %v10381_v24  ;;  %v3272_v45 = vadd.f32 %v7365_v10, %v7352_v6  ;;  %3270 = vadd.xlane.f32.xlu0 %v3269_v21  ;;  %v7582_v24 = vpop.eup %4877  ;;  %4897 = vpow2.f32 %v2805_v42  ;;  %v7587_v10 = vpop.xlane.xlu0 %2256  ;;  %v10395_v42 = vld [vmem:[#allocation121_spill] sm:$0xff]  ;;  %v10407_v59 = vld [vmem:[#allocation104_spill] sm:$0xff] }
 0x363   : > { %v2923_v57 = vmul.f32 1.442695, %v10385_v55  ;;  %10388 = vst [vmem:[#allocation61_spill] sm:$0xff] %v7582_v24  ;;  %v2925_v6 = vmul.f32 1.442695, %v10389_v41  ;;  %v7589_v56 = vpop.eup %4879  ;;  %v10391_v55 = vsub.f32 %v10262_v53, %v7287_v15  ;;  %v10397_v53 = vsub.f32 %v10267_v26, %v7302_v25  ;;  %v10400_v15 = vld [vmem:[#allocation234_spill] sm:$0xff] }
 0x364   : > { %10390 = vst [vmem:[#allocation96_spill] sm:$0xff] %v7589_v56  ;;  %4899 = vpow2.f32 %v2807_v7  ;;  %3273 = vadd.xlane.f32.xlu1 %v3272_v45  ;;  %v7596_v21 = vpop.eup %4881  ;;  %v2929_v2 = vmul.f32 1.442695, %v10394_v32  ;;  %v7603_v56 = vpop.xlane.xlu1 %2259  ;;  %v10398_v45 = vld [vmem:[#allocation122_spill] sm:$0xff]  ;;  %v10402_v32 = vmax.f32 %v10400_v15, %v10401_v3 }
 0x365   : > { %v2927_v47 = vmul.f32 1.442695, %v10391_v55  ;;  %10393 = vst [vmem:[#allocation70_spill] sm:$0xff] %v7596_v21  ;;  %4901 = vpow2.f32 %v2809_v51  ;;  %v7605_v7 = vpop.eup %4883  ;;  %v2811_v55 = vmul.f32 1.442695, %v10397_v53  ;;  %v10399_v51 = vld [vmem:[#allocation124_spill] sm:$0xff]  ;;  %v10406_v53 = vsub.f32 %v10272_v54, %v7313_v37 }
 0x366   : > { %10396 = vst [vmem:[#allocation98_spill] sm:$0xff] %v7605_v7  ;;  %4903 = vpow2.f32 %v2923_v57  ;;  %2418 = vmax.xlane.f32.xlu0 %v10402_v32  ;;  %v7617_v41 = vpop.eup %4885  ;;  %v10404_v57 = vsub.f32 %v10269_v43, %v7302_v25  ;;  %v7622_v24 = vpop.xlane.xlu0 %2268  ;;  %v10408_v32 = vld [vmem:[#allocation33_spill] sm:$0xff]  ;;  %v10409_v15 = vld [vmem:[#allocation34_spill] sm:$0xff]  ;;  %v10412_v25 = vsub.f32 %v10273_v9, %v7313_v37  ;;  %v10418_v37 = vld [vmem:[#allocation211_spill] sm:$0xff] }
 0x367   : > { %10403 = vst [vmem:[#allocation87_spill] sm:$0xff] %v7617_v41  ;;  %4905 = vpow2.f32 %v2925_v6  ;;  %v7624_v26 = vpop.eup %4887  ;;  %v2815_v21 = vmul.f32 1.442695, %v10406_v53  ;;  %v10410_v41 = vmax.f32 %v10408_v32, %v10409_v15  ;;  %v10415_v53 = vsub.f32 %v10280_v31, %v7334_v36  ;;  %v10419_v9 = vld [vmem:[#allocation216_spill] sm:$0xff]  ;;  %v10425_v15 = vld [vmem:[#allocation127_spill] sm:$0xff] }
 0x368   : > { %v2813_v7 = vmul.f32 1.442695, %v10404_v57  ;;  %10405 = vst [vmem:[#allocation100_spill] sm:$0xff] %v7624_v26  ;;  %4907 = vpow2.f32 %v2927_v47  ;;  %v7634_v6 = vpop.eup %4889  ;;  %v2817_v43 = vmul.f32 1.442695, %v10412_v25  ;;  %v10413_v47 = vld [vmem:[#allocation106_spill] sm:$0xff]  ;;  %v7641_v26 = vpop.xlane.xlu1 %2271  ;;  %v10420_v25 = vmax.f32 %v10418_v37, %v10419_v9 }
 0x369   : > { %2421 = vmax.xlane.f32.xlu1 %v10410_v41  ;;  %10411 = vst [vmem:[#allocation102_spill] sm:$0xff] %v7634_v6  ;;  %4909 = vpow2.f32 %v2929_v2  ;;  %v7643_v54 = vpop.eup %4891  ;;  %v2931_v3 = vmul.f32 1.442695, %v10415_v53  ;;  %v10416_v41 = vld [vmem:[#allocation108_spill] sm:$0xff]  ;;  %v10417_v2 = vld [vmem:[#allocation110_spill] sm:$0xff]  ;;  %v10424_v53 = vsub.f32 %v10289_v4, %v7361_v46  ;;  %v10431_v4 = vld [vmem:[#allocation129_spill] sm:$0xff]  ;;  %v3362_v9 = vadd.f32 %v7412_v19, %v7401_v35 }
 0x36a   : > { %10414 = vst [vmem:[#allocation119_spill] sm:$0xff] %v7643_v54  ;;  %4911 = vpow2.f32 %v2811_v55  ;;  %2334 = vmax.xlane.f32.xlu0 %v10420_v25  ;;  %v7655_v57 = vpop.eup %4893  ;;  %v10422_v55 = vsub.f32 %v10285_v39, %v7334_v36  ;;  %v7660_v6 = vpop.xlane.xlu0 %2262  ;;  %v10426_v25 = vld [vmem:[#allocation220_spill] sm:$0xff]  ;;  %v10427_v37 = vld [vmem:[#allocation222_spill] sm:$0xff]  ;;  %v3359_v36 = vadd.f32 %v7390_v23, %v7381_v16 }
 0x36b   : > { %10421 = vst [vmem:[#allocation121_spill] sm:$0xff] %v7655_v57  ;;  %4913 = vpow2.f32 %v2813_v7  ;;  %v7662_v31 = vpop.eup %4895  ;;  %v2935_v32 = vmul.f32 1.442695, %v10424_v53  ;;  %v10428_v57 = vmax.f32 %v10426_v25, %v10427_v37  ;;  %v10440_v23 = vld [vmem:[#allocation112_spill] sm:$0xff] }
 0x36c   : > { %v2933_v54 = vmul.f32 1.442695, %v10422_v55  ;;  %10423 = vst [vmem:[#allocation122_spill] sm:$0xff] %v7662_v31  ;;  %4915 = vpow2.f32 %v2815_v21  ;;  %v7674_v39 = vpop.eup %4897  ;;  %v10430_v21 = vsub.f32 %v10290_v52, %v7361_v46  ;;  %v7681_v53 = vpop.xlane.xlu1 %2265  ;;  %v10435_v46 = vld [vmem:[#allocation132_spill] sm:$0xff]  ;;  %v10437_v55 = vsub.f32 %v10297_v8, %v7379_v49  ;;  %v10446_v52 = vld [vmem:[#allocation86_spill] sm:$0xff] }
 0x36d   : > { %2337 = vmax.xlane.f32.xlu1 %v10428_v57  ;;  %10429 = vst [vmem:[#allocation124_spill] sm:$0xff] %v7674_v39  ;;  %4917 = vpow2.f32 %v2817_v43  ;;  %v10433_v57 = vsub.f32 %v10294_v18, %v7379_v49  ;;  %v10434_v43 = vld [vmem:[#allocation130_spill] sm:$0xff]  ;;  %v10439_v18 = vsub.f32 %v10300_v61, %v7397_v22  ;;  %v10442_v49 = vsub.f32 %v10301_v62, %v7397_v22  ;;  %v10474_v39 = vld [vmem:[#allocation120_spill] sm:$0xff] }
 0x36e   : > { %v2937_v7 = vmul.f32 1.442695, %v10430_v21  ;;  %v7685_v37 = vpop.eup %4899  ;;  %4919 = vpow2.f32 %v2931_v3  ;;  %3360 = vadd.xlane.f32.xlu0 %v3359_v36  ;;  %v2821_v35 = vmul.f32 1.442695, %v10437_v55  ;;  %v7699_v19 = vpop.xlane.xlu0 %2274  ;;  %v3278_v61 = vadd.f32 %v7455_v34, %v7443_v27  ;;  %v10449_v22 = vld [vmem:[#allocation118_spill] sm:$0xff]  ;;  %v10451_v55 = vld [vmem:[#allocation105_spill] sm:$0xff] }
 0x36f   : > { %10432 = vst [vmem:[#allocation104_spill] sm:$0xff] %v7685_v37  ;;  %v2819_v16 = vmul.f32 1.442695, %v10433_v57  ;;  %v7694_v21 = vpop.eup %4901  ;;  %4921 = vpow2.f32 %v2933_v54  ;;  %v2823_v57 = vmul.f32 1.442695, %v10439_v18  ;;  %v3275_v54 = vadd.f32 %v7430_v13, %v7421_v60 }
 0x370   : > { %10436 = vst [vmem:[#allocation106_spill] sm:$0xff] %v7694_v21  ;;  %v7701_v3 = vpop.eup %4903  ;;  %4923 = vpow2.f32 %v2935_v32  ;;  %v2825_v8 = vmul.f32 1.442695, %v10442_v49  ;;  %v10443_v32 = vld [vmem:[#allocation114_spill] sm:$0xff]  ;;  %v7717_v25 = vpop.xlane.xlu1 %2277  ;;  %v10452_v27 = vsub.f32 %v10451_v55, %v10446_v52  ;;  %v10457_v21 = vld [vmem:[#allocation135_spill] sm:$0xff]  ;;  %v10461_v55 = vld [vmem:[#allocation137_spill] sm:$0xff] }
 0x371   : > { %10438 = vst [vmem:[#allocation108_spill] sm:$0xff] %v7701_v3  ;;  %3363 = vadd.xlane.f32.xlu1 %v3362_v9  ;;  %v7710_v36 = vpop.eup %4905  ;;  %4925 = vpow2.f32 %v2937_v7  ;;  %v10445_v9 = vld [vmem:[#allocation103_spill] sm:$0xff]  ;;  %v10448_v7 = vld [vmem:[#allocation116_spill] sm:$0xff] }
 0x372   : > { %10441 = vst [vmem:[#allocation110_spill] sm:$0xff] %v7710_v36  ;;  %v7721_v18 = vpop.eup %4907  ;;  %4927 = vpow2.f32 %v2819_v16  ;;  %v10447_v60 = vsub.f32 %v10445_v9, %v10446_v52  ;;  %3276 = vadd.xlane.f32.xlu0 %v3275_v54  ;;  %v2941_v34 = vmul.f32 1.442695, %v10452_v27  ;;  %v10455_v9 = vld [vmem:[#allocation77_spill] sm:$0xff] }
 0x373   : > { %10444 = vst [vmem:[#allocation127_spill] sm:$0xff] %v7721_v18  ;;  %v7730_v49 = vpop.eup %4909  ;;  %4929 = vpow2.f32 %v2821_v35  ;;  %v7735_v18 = vpop.xlane.xlu0 %2364  ;;  %v10459_v35 = vld [vmem:[#allocation109_spill] sm:$0xff] }
 0x374   : > { %v2939_v13 = vmul.f32 1.442695, %v10447_v60  ;;  %10450 = vst [vmem:[#allocation129_spill] sm:$0xff] %v7730_v49  ;;  %v7737_v16 = vpop.eup %4911  ;;  %4931 = vpow2.f32 %v2823_v57  ;;  %v10454_v60 = vld [vmem:[#allocation107_spill] sm:$0xff]  ;;  %v10460_v52 = vsub.f32 %v10459_v35, %v10455_v9  ;;  %v10467_v35 = vld [vmem:[#allocation54_spill] sm:$0xff] }
 0x375   : > { %10453 = vst [vmem:[#allocation130_spill] sm:$0xff] %v7737_v16  ;;  %v10456_v3 = vsub.f32 %v10454_v60, %v10455_v9  ;;  %3279 = vadd.xlane.f32.xlu1 %v3278_v61  ;;  %v7744_v54 = vpop.eup %4913  ;;  %4933 = vpow2.f32 %v2825_v8  ;;  %v7751_v16 = vpop.xlane.xlu1 %2367  ;;  %v10464_v61 = vld [vmem:[#allocation139_spill] sm:$0xff]  ;;  %v10465_v8 = vld [vmem:[#allocation141_spill] sm:$0xff]  ;;  %v10466_v9 = vld [vmem:[#allocation50_spill] sm:$0xff] }
 0x376   : > { %10458 = vst [vmem:[#allocation132_spill] sm:$0xff] %v7744_v54  ;;  %v2945_v27 = vmul.f32 1.442695, %v10460_v52  ;;  %v7753_v57 = vpop.eup %4915  ;;  %4935 = vpow2.f32 %v2939_v13  ;;  %v10468_v52 = vmax.f32 %v10466_v9, %v10467_v35  ;;  %v10470_v13 = vsub.f32 %v10339_v58, %v7462_v30  ;;  %v10476_v9 = vld [vmem:[#allocation51_spill] sm:$0xff] }
 0x377   : > { %v2943_v36 = vmul.f32 1.442695, %v10456_v3  ;;  %10462 = vst [vmem:[#allocation112_spill] sm:$0xff] %v7753_v57  ;;  %v10463_v3 = vsub.f32 %v10332_v40, %v7462_v30  ;;  %v7765_v49 = vpop.eup %4917  ;;  %4937 = vpow2.f32 %v2941_v34  ;;  %v7770_v37 = vpop.xlane.xlu0 %2280  ;;  %v10479_v30 = vld [vmem:[#allocation94_spill] sm:$0xff] }
 0x378   : > { %2424 = vmax.xlane.f32.xlu0 %v10468_v52  ;;  %10469 = vst [vmem:[#allocation114_spill] sm:$0xff] %v7765_v49  ;;  %v2829_v57 = vmul.f32 1.442695, %v10470_v13  ;;  %v7772_v40 = vpop.eup %4919  ;;  %v10475_v52 = vld [vmem:[#allocation71_spill] sm:$0xff] }
 0x379   : > { %v2827_v60 = vmul.f32 1.442695, %v10463_v3  ;;  %10471 = vst [vmem:[#allocation103_spill] sm:$0xff] %v7772_v40  ;;  %4939 = vpow2.f32 %v2943_v36  ;;  %v10472_v3 = vld [vmem:[#allocation38_spill] sm:$0xff]  ;;  %v10477_v49 = vmax.f32 %v10475_v52, %v10476_v9  ;;  %v7782_v34 = vpop.eup %4921  ;;  %v10481_v36 = vld [vmem:[#allocation123_spill] sm:$0xff]  ;;  %v7789_v31 = vpop.xlane.xlu1 %2283 }
 0x37a   : > { %v10473_v62 = vsub.f32 %v10343_v44, %v10472_v3  ;;  %10478 = vst [vmem:[#allocation86_spill] sm:$0xff] %v7782_v34  ;;  %4941 = vpow2.f32 %v2945_v27  ;;  %v10480_v58 = vsub.f32 %v10479_v30, %v10472_v3  ;;  %10482 = vst [vmem:[#allocation116_spill] sm:$0xff] %v7789_v31  ;;  %v7791_v44 = vpop.eup %4923  ;;  %v10487_v3 = vld [vmem:[#allocation224_spill] sm:$0xff]  ;;  %v10488_v30 = vld [vmem:[#allocation227_spill] sm:$0xff] }
 0x37b   : > { %2427 = vmax.xlane.f32.xlu1 %v10477_v49  ;;  %10483 = vst [vmem:[#allocation118_spill] sm:$0xff] %v7791_v44  ;;  %4943 = vpow2.f32 %v2827_v60  ;;  %v7803_v40 = vpop.eup %4925  ;;  %v10491_v60 = vsub.f32 %v10364_v33, %v7502_v29  ;;  %v7808_v34 = vpop.xlane.xlu0 %2370  ;;  %v10500_v31 = vld [vmem:[#allocation60_spill] sm:$0xff]  ;;  %v10505_v27 = vld [vmem:[#allocation90_spill] sm:$0xff] }
 0x37c   : > { %v2831_v54 = vmul.f32 1.442695, %v10473_v62  ;;  %v2833_v13 = vmul.f32 1.442695, %v10480_v58  ;;  %v10484_v62 = vsub.f32 %v10356_v12, %v7502_v29  ;;  %v10489_v58 = vmax.f32 %v10487_v3, %v10488_v30  ;;  %10490 = vst [vmem:[#allocation105_spill] sm:$0xff] %v7803_v40  ;;  %v7810_v12 = vpop.eup %4927  ;;  %v10497_v3 = vld [vmem:[#allocation231_spill] sm:$0xff] }
 0x37d   : > { %4945 = vpow2.f32 %v2829_v57  ;;  %v2949_v44 = vmul.f32 1.442695, %v10491_v60  ;;  %10492 = vst [vmem:[#allocation107_spill] sm:$0xff] %v7810_v12  ;;  %v10499_v57 = vld [vmem:[#allocation58_spill] sm:$0xff]  ;;  %v7822_v33 = vpop.eup %4929  ;;  %v7829_v12 = vpop.xlane.xlu1 %2373  ;;  %v10504_v30 = vld [vmem:[#allocation88_spill] sm:$0xff] }
 0x37e   : > { %v2947_v35 = vmul.f32 1.442695, %v10484_v62  ;;  %2340 = vmax.xlane.f32.xlu0 %v10489_v58  ;;  %4947 = vpow2.f32 %v2831_v54  ;;  %v10493_v62 = vld [vmem:[#allocation115_spill] sm:$0xff]  ;;  %v10496_v58 = vld [vmem:[#allocation229_spill] sm:$0xff]  ;;  %v3365_v29 = vadd.f32 %v10500_v31, %v10499_v57  ;;  %10501 = vst [vmem:[#allocation77_spill] sm:$0xff] %v7822_v33  ;;  %v10502_v54 = vsub.f32 %v10370_v28, %v7531_v14  ;;  %v10514_v31 = vld [vmem:[#allocation128_spill] sm:$0xff] }
 0x37f   : > { %v10494_v9 = vsub.f32 %v10493_v62, %v7531_v14  ;;  %v10498_v40 = vmax.f32 %v10496_v58, %v10497_v3  ;;  %4949 = vpow2.f32 %v2833_v13  ;;  %v10503_v62 = vld [vmem:[#allocation145_spill] sm:$0xff]  ;;  %v3368_v49 = vadd.f32 %v10505_v27, %v10504_v30  ;;  %v7833_v3 = vpop.eup %4931  ;;  %v10508_v13 = vld [vmem:[#allocation147_spill] sm:$0xff]  ;;  %v7847_v27 = vpop.xlane.xlu0 %2286 }
 0x380   : > { %v2953_v60 = vmul.f32 1.442695, %v10502_v54  ;;  %10506 = vst [vmem:[#allocation135_spill] sm:$0xff] %v7833_v3  ;;  %4951 = vpow2.f32 %v2947_v35  ;;  %v10509_v14 = vld [vmem:[#allocation149_spill] sm:$0xff]  ;;  %v7842_v54 = vpop.eup %4933  ;;  %v10516_v58 = vld [vmem:[#allocation111_spill] sm:$0xff] }
 0x381   : > { %v2951_v52 = vmul.f32 1.442695, %v10494_v9  ;;  %2343 = vmax.xlane.f32.xlu1 %v10498_v40  ;;  %v10507_v40 = vsub.f32 %v10378_v11, %v7551_v17  ;;  %10510 = vst [vmem:[#allocation109_spill] sm:$0xff] %v7842_v54  ;;  %4953 = vpow2.f32 %v2949_v44  ;;  %v10511_v9 = vsub.f32 %v10382_v0, %v7551_v17  ;;  %v7849_v35 = vpop.eup %4935 }
 0x382   : > { %3366 = vadd.xlane.f32.xlu0 %v3365_v29  ;;  %10512 = vst [vmem:[#allocation137_spill] sm:$0xff] %v7849_v35  ;;  %v10513_v11 = vsub.f32 %v10386_v63, %v7569_v48  ;;  %v10515_v29 = vld [vmem:[#allocation81_spill] sm:$0xff]  ;;  %v7858_v54 = vpop.eup %4937  ;;  %v10518_v17 = vsub.f32 %v10387_v38, %v7569_v48  ;;  %v7865_v35 = vpop.xlane.xlu1 %2289  ;;  %v10525_v48 = vld [vmem:[#allocation134_spill] sm:$0xff]  ;;  %v10532_v38 = vld [vmem:[#allocation243_spill] sm:$0xff] }
 0x383   : > { %v2835_v57 = vmul.f32 1.442695, %v10507_v40  ;;  %v2837_v30 = vmul.f32 1.442695, %v10511_v9  ;;  %4955 = vpow2.f32 %v2951_v52  ;;  %v3281_v44 = vadd.f32 %v10516_v58, %v10515_v29  ;;  %10517 = vst [vmem:[#allocation139_spill] sm:$0xff] %v7858_v54  ;;  %v10519_v52 = vld [vmem:[#allocation131_spill] sm:$0xff]  ;;  %v7869_v28 = vpop.eup %4939 }
 0x384   : > { %v2839_v40 = vmul.f32 1.442695, %v10513_v11  ;;  %4957 = vpow2.f32 %v2953_v60  ;;  %v2841_v0 = vmul.f32 1.442695, %v10518_v17  ;;  %v10520_v63 = vld [vmem:[#allocation113_spill] sm:$0xff]  ;;  %v10521_v11 = vld [vmem:[#allocation64_spill] sm:$0xff]  ;;  %v7878_v17 = vpop.eup %4941  ;;  %v10527_v9 = vsub.f32 %v10395_v42, %v7587_v10 }
 0x385   : > { %3369 = vadd.xlane.f32.xlu1 %v3368_v49  ;;  %v3284_v3 = vadd.f32 %v10521_v11, %v10520_v63  ;;  %10522 = vst [vmem:[#allocation141_spill] sm:$0xff] %v7869_v28  ;;  %4959 = vpow2.f32 %v2835_v57  ;;  %v10523_v49 = vsub.f32 %v10392_v1, %v7587_v10  ;;  %v10524_v60 = vld [vmem:[#allocation133_spill] sm:$0xff]  ;;  %10526 = vst [vmem:[#allocation38_spill] sm:$0xff] %v7878_v17  ;;  %v3229_v11 = vpop.xlane.xlu0 %3228  ;;  %v7883_v57 = vpop.eup %4943  ;;  %v10533_v17 = vld [vmem:[#allocation39_spill] sm:$0xff] }
 0x386   : > { %3282 = vadd.xlane.f32.xlu0 %v3281_v44  ;;  %4961 = vpow2.f32 %v2837_v30  ;;  %v2957_v63 = vmul.f32 1.442695, %v10527_v9  ;;  %10528 = vst [vmem:[#allocation120_spill] sm:$0xff] %v7883_v57  ;;  %v10531_v44 = vsub.f32 %v10398_v45, %v7603_v56  ;;  %v10534_v10 = vmax.f32 %v10532_v38, %v10533_v17  ;;  %v10548_v17 = vld [vmem:[#allocation158_spill] sm:$0xff] }
 0x387   : > { %v2955_v29 = vmul.f32 1.442695, %v10523_v49  ;;  %4963 = vpow2.f32 %v2839_v40  ;;  %v7885_v1 = vpop.eup %4945  ;;  %v3232_v49 = vpop.xlane.xlu1 %3231 }
 0x388   : > { %10529 = vst [vmem:[#allocation94_spill] sm:$0xff] %v7885_v1  ;;  %4965 = vpow2.f32 %v2841_v0  ;;  %v7887_v58 = vpop.eup %4947  ;;  %v2959_v30 = vmul.f32 1.442695, %v10531_v44  ;;  %v10539_v44 = vld [vmem:[#allocation154_spill] sm:$0xff]  ;;  %v10638_v1 = vld [vmem:[#allocation104_spill] sm:$0xff] }
 0x389   : > { %3285 = vadd.xlane.f32.xlu1 %v3284_v3  ;;  %10530 = vst [vmem:[#allocation123_spill] sm:$0xff] %v7887_v58  ;;  %4967 = vpow2.f32 %v2955_v29  ;;  %v7895_v42 = vpop.eup %4949  ;;  %v10536_v3 = vsub.f32 %v10399_v51, %v7603_v56  ;;  %v7900_v0 = vpop.xlane.xlu0 %2376  ;;  %v10538_v29 = vsub.f32 %v10407_v59, %v7622_v24  ;;  %v10545_v51 = vsub.f32 %v10413_v47, %v7622_v24 }
 0x38a   : > { %2430 = vmax.xlane.f32.xlu0 %v10534_v10  ;;  %10535 = vst [vmem:[#allocation115_spill] sm:$0xff] %v7895_v42  ;;  %4969 = vpow2.f32 %v2957_v63  ;;  %v7902_v9 = vpop.eup %4951  ;;  %v10540_v10 = vld [vmem:[#allocation157_spill] sm:$0xff]  ;;  %v10541_v63 = vld [vmem:[#allocation40_spill] sm:$0xff] }
 0x38b   : > { %v2961_v40 = vmul.f32 1.442695, %v10536_v3  ;;  %10537 = vst [vmem:[#allocation145_spill] sm:$0xff] %v7902_v9  ;;  %v2971_v45 = vmul.f32 1.442695, %v10538_v29  ;;  %4971 = vrcp.f32 %v3229_v11  ;;  %v10542_v42 = vld [vmem:[#allocation248_spill] sm:$0xff]  ;;  %v7914_v56 = vpop.eup %4953  ;;  %v7919_v59 = vpop.xlane.xlu1 %2379  ;;  %v10547_v29 = vsub.f32 %v10416_v41, %v7641_v26 }
 0x38c   : > { %v10543_v58 = vmax.f32 %v10541_v63, %v10542_v42  ;;  %10544 = vst [vmem:[#allocation147_spill] sm:$0xff] %v7914_v56  ;;  %v2973_v3 = vmul.f32 1.442695, %v10545_v51  ;;  %4973 = vrcp.f32 %v3232_v49  ;;  %v10550_v56 = vld [vmem:[#allocation235_spill] sm:$0xff]  ;;  %v10554_v49 = vsub.f32 %v10417_v2, %v7641_v26  ;;  %v10557_v42 = vld [vmem:[#allocation136_spill] sm:$0xff] }
 0x38d   : > { %v7921_v11 = vpop.eup %4955  ;;  %4975 = vpow2.f32 %v2959_v30  ;;  %v2975_v38 = vmul.f32 1.442695, %v10547_v29  ;;  %v10551_v9 = vld [vmem:[#allocation63_spill] sm:$0xff]  ;;  %v7938_v51 = vpop.xlane.xlu0 %2292  ;;  %v10556_v29 = vsub.f32 %v10425_v15, %v7660_v6  ;;  %v3371_v26 = vadd.f32 %v7562_v20, %v7553_v5  ;;  %v10563_v15 = vld [vmem:[#allocation138_spill] sm:$0xff] }
 0x38e   : > { %2433 = vmax.xlane.f32.xlu1 %v10543_v58  ;;  %10546 = vst [vmem:[#allocation149_spill] sm:$0xff] %v7921_v11  ;;  %v10549_v58 = vld [vmem:[#allocation160_spill] sm:$0xff]  ;;  %v10552_v24 = vmax.f32 %v10550_v56, %v10551_v9  ;;  %v7933_v47 = vpop.eup %4957  ;;  %4977 = vpow2.f32 %v2961_v40  ;;  %v2977_v30 = vmul.f32 1.442695, %v10554_v49  ;;  %v10559_v56 = vld [vmem:[#allocation35_spill] sm:$0xff]  ;;  %v10562_v40 = vsub.f32 %v10431_v4, %v7660_v6  ;;  %v10564_v9 = vld [vmem:[#allocation61_spill] sm:$0xff] }
 0x38f   : > { %10553 = vst [vmem:[#allocation128_spill] sm:$0xff] %v7933_v47  ;;  %v7940_v41 = vpop.eup %4959  ;;  %4979 = vpow2.f32 %v2971_v45  ;;  %v2963_v63 = vmul.f32 1.442695, %v10556_v29  ;;  %v7959_v29 = vpop.xlane.xlu1 %2295  ;;  %v10568_v6 = vld [vmem:[#allocation142_spill] sm:$0xff]  ;;  %v10570_v49 = vsub.f32 %v10435_v46, %v7681_v53  ;;  %v10577_v46 = vld [vmem:[#allocation87_spill] sm:$0xff] }
 0x390   : > { %2346 = vmax.xlane.f32.xlu0 %v10552_v24  ;;  %10555 = vst [vmem:[#allocation131_spill] sm:$0xff] %v7940_v41  ;;  %v10558_v24 = vld [vmem:[#allocation67_spill] sm:$0xff]  ;;  %v7952_v2 = vpop.eup %4961  ;;  %4981 = vpow2.f32 %v2973_v3  ;;  %v2965_v45 = vmul.f32 1.442695, %v10562_v40  ;;  %v3374_v41 = vadd.f32 %v10564_v9, %v7573_v50  ;;  %v10567_v3 = vld [vmem:[#allocation140_spill] sm:$0xff] }
 0x391   : > { %v10560_v47 = vmax.f32 %v10558_v24, %v10559_v56  ;;  %10561 = vst [vmem:[#allocation133_spill] sm:$0xff] %v7952_v2  ;;  %v7963_v56 = vpop.eup %4963  ;;  %4983 = vpow2.f32 %v2975_v38  ;;  %v2969_v50 = vmul.f32 1.442695, %v10570_v49  ;;  %v3235_v9 = vpop.xlane.xlu0 %3234  ;;  %v10603_v2 = vld [vmem:[#allocation46_spill] sm:$0xff] }
 0x392   : > { %10565 = vst [vmem:[#allocation134_spill] sm:$0xff] %v7963_v56  ;;  %v7972_v40 = vpop.eup %4965  ;;  %4985 = vpow2.f32 %v2977_v30  ;;  %v10575_v30 = vsub.f32 %v10440_v23, %v7699_v19 }
 0x393   : > { %2349 = vmax.xlane.f32.xlu1 %v10560_v47  ;;  %v10566_v47 = vsub.f32 %v10434_v43, %v7681_v53  ;;  %10569 = vst [vmem:[#allocation154_spill] sm:$0xff] %v7972_v40  ;;  %v7977_v38 = vpop.eup %4967  ;;  %4987 = vpow2.f32 %v2963_v63  ;;  %v10572_v43 = vld [vmem:[#allocation96_spill] sm:$0xff]  ;;  %v3238_v4 = vpop.xlane.xlu1 %3237  ;;  %v10576_v53 = vld [vmem:[#allocation98_spill] sm:$0xff]  ;;  %v10578_v63 = vsub.f32 %v10443_v32, %v7699_v19 }
 0x394   : > { %3372 = vadd.xlane.f32.xlu0 %v3371_v26  ;;  %10571 = vst [vmem:[#allocation157_spill] sm:$0xff] %v7977_v38  ;;  %v7981_v20 = vpop.eup %4969  ;;  %4989 = vpow2.f32 %v2965_v45  ;;  %v2979_v40 = vmul.f32 1.442695, %v10575_v30  ;;  %v3290_v49 = vadd.f32 %v10577_v46, %v10576_v53  ;;  %v10579_v45 = vsub.f32 %v10448_v7, %v7717_v25  ;;  %v10584_v19 = vld [vmem:[#allocation156_spill] sm:$0xff]  ;;  %v10587_v46 = vld [vmem:[#allocation151_spill] sm:$0xff] }
 0x395   : > { %v2967_v5 = vmul.f32 1.442695, %v10566_v47  ;;  %v10573_v47 = vld [vmem:[#allocation70_spill] sm:$0xff]  ;;  %10574 = vst [vmem:[#allocation158_spill] sm:$0xff] %v7981_v20  ;;  %v4972_v26 = vpop.eup %4971  ;;  %v10586_v7 = vsub.f32 %v10449_v22, %v7717_v25  ;;  %v10592_v25 = vld [vmem:[#allocation41_spill] sm:$0xff] }
 0x396   : > { %v3287_v24 = vadd.f32 %v10573_v47, %v10572_v43  ;;  %v4974_v38 = vpop.eup %4973  ;;  %v2983_v43 = vmul.f32 1.442695, %v10579_v45  ;;  %v7994_v47 = vpop.xlane.xlu0 %2382  ;;  %v10593_v22 = vld [vmem:[#allocation42_spill] sm:$0xff] }
 0x397   : > { %3375 = vadd.xlane.f32.xlu1 %v3374_v41  ;;  %4991 = vpow2.f32 %v2967_v5  ;;  %v2981_v41 = vmul.f32 1.442695, %v10578_v63  ;;  %v10580_v5 = vld [vmem:[#allocation152_spill] sm:$0xff]  ;;  %v7997_v23 = vpop.eup %4975  ;;  %v3742_v32 = vmul.f32 %v4974_v38, %v10584_v19  ;;  %v2985_v45 = vmul.f32 1.442695, %v10586_v7 }
 0x398   : > { %3288 = vadd.xlane.f32.xlu0 %v3287_v24  ;;  %4993 = vpow2.f32 %v2969_v50  ;;  %v3740_v20 = vmul.f32 %v4972_v26, %v10580_v5  ;;  %10581 = vst [vmem:[#allocation160_spill] sm:$0xff] %v7997_v23  ;;  %v10582_v24 = vld [vmem:[#allocation163_spill] sm:$0xff]  ;;  %v10583_v50 = vld [vmem:[#allocation165_spill] sm:$0xff]  ;;  %v8004_v63 = vpop.eup %4977  ;;  %v8009_v5 = vpop.xlane.xlu1 %2385 }
 0x399   : > { %4995 = vrcp.f32 %v3235_v9  ;;  %10585 = vst [vmem:[#allocation136_spill] sm:$0xff] %v8004_v63  ;;  %v3739_v9 = vmul.f32 %v4972_v26, %v10587_v46  ;;  %v10588_v23 = vld [vmem:[#allocation153_spill] sm:$0xff]  ;;  %v8013_v30 = vpop.eup %4979  ;;  %v10591_v63 = vld [vmem:[#allocation167_spill] sm:$0xff] }
 0x39a   : > { %4997 = vrcp.f32 %v3238_v4  ;;  %v3741_v56 = vmul.f32 %v4974_v38, %v10588_v23  ;;  %10589 = vst [vmem:[#allocation138_spill] sm:$0xff] %v8013_v30  ;;  %v3996_v53 = vpack.c.bf16 %v3742_v32, %v3740_v20  ;;  %v10594_v4 = vmax.f32 %v10592_v25, %v10593_v22  ;;  %v8023_v7 = vpop.eup %4981  ;;  %v8030_v23 = vpop.xlane.xlu0 %2298 }
 0x39b   : > { %3291 = vadd.xlane.f32.xlu1 %v3290_v49  ;;  %4999 = vpow2.f32 %v2979_v40  ;;  %v10590_v49 = vsub.f32 %v10457_v21, %v7735_v18  ;;  %10595 = vst [vmem:[#allocation140_spill] sm:$0xff] %v8023_v7  ;;  %v10596_v38 = vsub.f32 %v10461_v55, %v7735_v18  ;;  %v10597_v40 = vld [vmem:[#allocation170_spill] sm:$0xff]  ;;  %v8032_v20 = vpop.eup %4983  ;;  %v10599_v32 = vsub.f32 %v10464_v61, %v7751_v16 }
 0x39c   : > { %2436 = vmax.xlane.f32.xlu0 %v10594_v4  ;;  %5001 = vpow2.f32 %v2981_v41  ;;  %v3995_v21 = vpack.c.bf16 %v3741_v56, %v3739_v9  ;;  %10598 = vst [vmem:[#allocation142_spill] sm:$0xff] %v8032_v20  ;;  %4123 = vmatprep.subr.bf16.mxu1 %v3996_v53  ;;  %v10600_v41 = vld [vmem:[#allocation144_spill] sm:$0xff]  ;;  %v10601_v18 = vld [vmem:[#allocation146_spill] sm:$0xff]  ;;  %v8044_v56 = vpop.eup %4985  ;;  %v8049_v61 = vpop.xlane.xlu1 %2301 }
 0x39d   : > { %v3099_v19 = vmul.f32 1.442695, %v10590_v49  ;;  %v3101_v26 = vmul.f32 1.442695, %v10596_v38  ;;  %5003 = vpow2.f32 %v2983_v43  ;;  %v3103_v49 = vmul.f32 1.442695, %v10599_v32  ;;  %v8051_v53 = vpop.eup %4987 }
 0x39e   : > { %v10602_v38 = vld [vmem:[#allocation44_spill] sm:$0xff]  ;;  %10605 = vst [vmem:[#allocation152_spill] sm:$0xff] %v8044_v56  ;;  %5005 = vpow2.f32 %v2985_v45  ;;  %v10606_v43 = vsub.f32 %v10465_v8, %v7751_v16  ;;  %4124 = vmatpush1.bf16.xpose.msra.mxu1 %v3995_v21  ;;  %10607 = vst [vmem:[#allocation163_spill] sm:$0xff] %v8051_v53  ;;  %v10608_v32 = vsub.f32 %v10474_v39, %v7770_v37  ;;  %v8061_v22 = vpop.eup %4989  ;;  %v10633_v7 = vld [vmem:[#allocation166_spill] sm:$0xff] }
 0x39f   : > { %v10604_v46 = vmax.f32 %v10602_v38, %v10603_v2  ;;  %5007 = vpow2.f32 %v3099_v19  ;;  %v10609_v4 = vld [vmem:[#allocation148_spill] sm:$0xff]  ;;  %v10610_v2 = vld [vmem:[#allocation47_spill] sm:$0xff]  ;;  %10613 = vst [vmem:[#allocation165_spill] sm:$0xff] %v8061_v22  ;;  %v10614_v16 = vsub.f32 %v10481_v36, %v7770_v37  ;;  %v10615_v19 = vld [vmem:[#allocation150_spill] sm:$0xff] }
 0x3a0   : > { %v3105_v9 = vmul.f32 1.442695, %v10606_v43  ;;  %v2987_v55 = vmul.f32 1.442695, %v10608_v32  ;;  %v10611_v38 = vld [vmem:[#allocation240_spill] sm:$0xff]  ;;  %5009 = vpow2.f32 %v3101_v26  ;;  %v3325_v43 = vpop.xlane.xlu0 %3324  ;;  %v10617_v32 = vld [vmem:[#allocation53_spill] sm:$0xff]  ;;  %v3328_v26 = vpop.xlane.xlu1 %3327 }
 0x3a1   : > { %2439 = vmax.xlane.f32.xlu1 %v10604_v46  ;;  %v10612_v45 = vmax.f32 %v10610_v2, %v10611_v38  ;;  %v2989_v8 = vmul.f32 1.442695, %v10614_v16  ;;  %v8068_v39 = vpop.eup %4991  ;;  %5011 = vpow2.f32 %v3103_v49  ;;  %v10618_v46 = vld [vmem:[#allocation75_spill] sm:$0xff]  ;;  %v10620_v38 = vld [vmem:[#allocation100_spill] sm:$0xff]  ;;  %v10624_v16 = vld [vmem:[#allocation121_spill] sm:$0xff] }
 0x3a2   : > { %10616 = vst [vmem:[#allocation156_spill] sm:$0xff] %v8068_v39  ;;  %v10619_v25 = vmax.f32 %v10617_v32, %v10618_v46  ;;  %v8075_v22 = vpop.eup %4993  ;;  %5013 = vpow2.f32 %v3105_v9  ;;  %v10623_v36 = vld [vmem:[#allocation119_spill] sm:$0xff]  ;;  %v10625_v49 = vld [vmem:[#allocation125_spill] sm:$0xff]  ;;  %v10626_v39 = vld [vmem:[#allocation116_spill] sm:$0xff] }
 0x3a3   : > { %2352 = vmax.xlane.f32.xlu0 %v10612_v45  ;;  %v10621_v45 = vld [vmem:[#allocation102_spill] sm:$0xff]  ;;  %10622 = vst [vmem:[#allocation151_spill] sm:$0xff] %v8075_v22  ;;  %v4996_v37 = vpop.eup %4995  ;;  %5015 = vpow2.f32 %v2987_v55  ;;  %v3380_v21 = vadd.f32 %v10624_v16, %v10623_v36  ;;  %v10627_v56 = vsub.f32 %v10625_v49, %v10626_v39  ;;  %v10628_v32 = vld [vmem:[#allocation169_spill] sm:$0xff]  ;;  %v10634_v16 = vld [vmem:[#allocation171_spill] sm:$0xff] }
 0x3a4   : > { %v3377_v2 = vadd.f32 %v10621_v45, %v10620_v38  ;;  %v4998_v53 = vpop.eup %4997  ;;  %5017 = vpow2.f32 %v2989_v8  ;;  %v3744_v20 = vmul.f32 %v4996_v37, %v10628_v32  ;;  %v10629_v38 = vld [vmem:[#allocation122_spill] sm:$0xff]  ;;  %v10630_v45 = vld [vmem:[#allocation124_spill] sm:$0xff]  ;;  %v3743_v36 = vmul.f32 %v4996_v37, %v10633_v7  ;;  %v3244_v32 = vpop.xlane.xlu1 %3243 }
 0x3a5   : > { %2355 = vmax.xlane.f32.xlu1 %v10619_v25  ;;  %v2991_v46 = vmul.f32 1.442695, %v10627_v56  ;;  %v3241_v25 = vpop.xlane.xlu0 %3240  ;;  %v3293_v22 = vadd.f32 %v10630_v45, %v10629_v38  ;;  %v8085_v9 = vpop.eup %4999  ;;  %5019 = vrcp.f32 %v3325_v43  ;;  %v3745_v8 = vmul.f32 %v4998_v53, %v10634_v16  ;;  %v10636_v49 = vld [vmem:[#allocation126_spill] sm:$0xff] }
 0x3a6   : > { %10631 = vst [vmem:[#allocation153_spill] sm:$0xff] %v8085_v9  ;;  %v8090_v30 = vpop.eup %5001  ;;  %v10637_v56 = vsub.f32 %v10636_v49, %v10626_v39  ;;  %5021 = vrcp.f32 %v3328_v26  ;;  %v10639_v38 = vld [vmem:[#allocation106_spill] sm:$0xff]  ;;  %v10644_v39 = vsub.f32 %v10503_v62, %v7808_v34  ;;  %v10650_v62 = vsub.f32 %v10509_v14, %v7829_v12 }
 0x3a7   : > { %3378 = vadd.xlane.f32.xlu0 %v3377_v2  ;;  %v10632_v2 = vld [vmem:[#allocation173_spill] sm:$0xff]  ;;  %10635 = vst [vmem:[#allocation167_spill] sm:$0xff] %v8090_v30  ;;  %v3296_v45 = vadd.f32 %v10639_v38, %v10638_v1  ;;  %v8097_v9 = vpop.eup %5003  ;;  %5023 = vrcp.f32 %v3241_v25  ;;  %v10678_v25 = vld [vmem:[#allocation55_spill] sm:$0xff] }
 0x3a8   : > { %v3746_v55 = vmul.f32 %v4998_v53, %v10632_v2  ;;  %v2993_v11 = vmul.f32 1.442695, %v10637_v56  ;;  %10640 = vst [vmem:[#allocation170_spill] sm:$0xff] %v8097_v9  ;;  %v3997_v53 = vpack.c.bf16 %v3745_v8, %v3743_v36  ;;  %v8102_v37 = vpop.eup %5005  ;;  %v3109_v26 = vmul.f32 1.442695, %v10644_v39  ;;  %v10648_v36 = vld [vmem:[#allocation177_spill] sm:$0xff] }
 0x3a9   : > { %3381 = vadd.xlane.f32.xlu1 %v3380_v21  ;;  %v10641_v21 = vld [vmem:[#allocation143_spill] sm:$0xff]  ;;  %10643 = vst [vmem:[#allocation144_spill] sm:$0xff] %v8102_v37  ;;  %5025 = vrcp.f32 %v3244_v32  ;;  %v8107_v16 = vpop.xlane.xlu0 %2388  ;;  %v8109_v49 = vpop.eup %5007  ;;  %v10646_v56 = vsub.f32 %v10508_v13, %v7829_v12  ;;  %v10652_v8 = vsub.f32 %v10514_v31, %v7847_v27  ;;  %v10655_v39 = vld [vmem:[#allocation72_spill] sm:$0xff]  ;;  %v10686_v30 = vld [vmem:[#allocation185_spill] sm:$0xff] }
 0x3aa   : > { %v10642_v43 = vsub.f32 %v10641_v21, %v7808_v34  ;;  %v3998_v7 = vpack.c.bf16 %v3746_v55, %v3744_v20  ;;  %10645 = vst [vmem:[#allocation146_spill] sm:$0xff] %v8109_v49  ;;  %5027 = vpow2.f32 %v2991_v46  ;;  %v10647_v20 = vld [vmem:[#allocation175_spill] sm:$0xff]  ;;  %v8118_v34 = vpop.eup %5009  ;;  %v3113_v55 = vmul.f32 1.442695, %v10650_v62  ;;  %v8123_v46 = vpop.xlane.xlu1 %2391 }
 0x3ab   : > { %3294 = vadd.xlane.f32.xlu0 %v3293_v22  ;;  %v3111_v21 = vmul.f32 1.442695, %v10646_v56  ;;  %10649 = vst [vmem:[#allocation148_spill] sm:$0xff] %v8118_v34  ;;  %5029 = vpow2.f32 %v2993_v11  ;;  %v8125_v13 = vpop.eup %5011  ;;  %v2995_v32 = vmul.f32 1.442695, %v10652_v8  ;;  %v10656_v56 = vld [vmem:[#allocation76_spill] sm:$0xff]  ;;  %v10661_v8 = vsub.f32 %v10524_v60, %v7865_v35 }
 0x3ac   : > { %v3107_v2 = vmul.f32 1.442695, %v10642_v43  ;;  %4125 = vmatprep.subr.bf16.mxu1 %v3998_v7  ;;  %10651 = vst [vmem:[#allocation150_spill] sm:$0xff] %v8125_v13  ;;  %v10653_v43 = vld [vmem:[#allocation178_spill] sm:$0xff]  ;;  %v10654_v7 = vld [vmem:[#allocation180_spill] sm:$0xff]  ;;  %v10657_v12 = vmax.f32 %v10655_v39, %v10656_v56  ;;  %v8137_v14 = vpop.eup %5013  ;;  %v10664_v22 = vld [vmem:[#allocation97_spill] sm:$0xff] }
 0x3ad   : > { %3297 = vadd.xlane.f32.xlu1 %v3296_v45  ;;  %4126 = vmatpush1.bf16.xpose.msra.mxu1 %v3997_v53  ;;  %10658 = vst [vmem:[#allocation125_spill] sm:$0xff] %v8137_v14  ;;  %v8142_v62 = vpop.xlane.xlu0 %2304  ;;  %v8144_v31 = vpop.eup %5015  ;;  %v2999_v11 = vmul.f32 1.442695, %v10661_v8  ;;  %v10662_v45 = vld [vmem:[#allocation155_spill] sm:$0xff]  ;;  %v10679_v14 = vld [vmem:[#allocation57_spill] sm:$0xff] }
 0x3ae   : > { %5031 = vpow2.f32 %v3107_v2  ;;  %v10659_v2 = vsub.f32 %v10519_v52, %v7847_v27  ;;  %10660 = vst [vmem:[#allocation116_spill] sm:$0xff] %v8144_v31  ;;  %v10667_v27 = vsub.f32 %v10525_v48, %v7865_v35  ;;  %v8161_v38 = vpop.xlane.xlu1 %2307  ;;  %v10673_v56 = vld [vmem:[#allocation79_spill] sm:$0xff]  ;;  %v10675_v35 = vsub.f32 %v10539_v44, %v7900_v0 }
 0x3af   : > { %2442 = vmax.xlane.f32.xlu0 %v10657_v12  ;;  %5033 = vpow2.f32 %v3109_v26  ;;  %v10663_v12 = vld [vmem:[#allocation78_spill] sm:$0xff]  ;;  %v8154_v26 = vpop.eup %5017  ;;  %10669 = vst [vmem:[#allocation173_spill] sm:$0xff] %v8161_v38  ;;  %v10680_v13 = vmax.f32 %v10678_v25, %v10679_v14  ;;  %v10691_v38 = vld [vmem:[#allocation195_spill] sm:$0xff] }
 0x3b0   : > { %v2997_v53 = vmul.f32 1.442695, %v10659_v2  ;;  %5035 = vpow2.f32 %v3111_v21  ;;  %v10665_v1 = vmax.f32 %v10663_v12, %v10664_v22  ;;  %10666 = vst [vmem:[#allocation169_spill] sm:$0xff] %v8154_v26  ;;  %v3001_v52 = vmul.f32 1.442695, %v10667_v27  ;;  %v10668_v21 = vld [vmem:[#allocation159_spill] sm:$0xff]  ;;  %v5020_v60 = vpop.eup %5019 }
 0x3b1   : > { %5037 = vpow2.f32 %v3113_v55  ;;  %v10672_v12 = vld [vmem:[#allocation244_spill] sm:$0xff]  ;;  %v5022_v39 = vpop.eup %5021  ;;  %v3115_v48 = vmul.f32 1.442695, %v10675_v35  ;;  %v3331_v27 = vpop.xlane.xlu0 %3330  ;;  %v10677_v26 = vld [vmem:[#allocation110_spill] sm:$0xff]  ;;  %v10685_v35 = vld [vmem:[#allocation183_spill] sm:$0xff] }
 0x3b2   : > { %2445 = vmax.xlane.f32.xlu1 %v10665_v1  ;;  %5039 = vpow2.f32 %v2995_v32  ;;  %v10674_v55 = vmax.f32 %v10672_v12, %v10673_v56  ;;  %v10676_v2 = vld [vmem:[#allocation108_spill] sm:$0xff]  ;;  %v5024_v31 = vpop.eup %5023  ;;  %v10683_v12 = vld [vmem:[#allocation127_spill] sm:$0xff]  ;;  %v3334_v44 = vpop.xlane.xlu1 %3333  ;;  %v3803_v9 = vmul.f32 %v5020_v60, %v10685_v35  ;;  %v10690_v25 = vld [vmem:[#allocation190_spill] sm:$0xff] }
 0x3b3   : > { %5041 = vpow2.f32 %v2997_v53  ;;  %v3383_v32 = vadd.f32 %v10677_v26, %v10676_v2  ;;  %v10681_v1 = vld [vmem:[#allocation184_spill] sm:$0xff]  ;;  %v10684_v53 = vld [vmem:[#allocation129_spill] sm:$0xff]  ;;  %v5026_v37 = vpop.eup %5025  ;;  %v3805_v2 = vmul.f32 %v5022_v39, %v10686_v30 }
 0x3b4   : > { %2358 = vmax.xlane.f32.xlu0 %v10674_v55  ;;  %5043 = vpow2.f32 %v2999_v11  ;;  %v3804_v34 = vmul.f32 %v5020_v60, %v10681_v1  ;;  %v10682_v56 = vld [vmem:[#allocation188_spill] sm:$0xff]  ;;  %v3386_v49 = vadd.f32 %v10684_v53, %v10683_v12  ;;  %v10687_v26 = vld [vmem:[#allocation193_spill] sm:$0xff]  ;;  %v8185_v22 = vpop.eup %5027  ;;  %v3749_v8 = vmul.f32 %v5026_v37, %v10691_v38  ;;  %v10693_v60 = vld [vmem:[#allocation130_spill] sm:$0xff] }
 0x3b5   : > { %v3806_v55 = vmul.f32 %v5022_v39, %v10682_v56  ;;  %5045 = vpow2.f32 %v3001_v52  ;;  %v3748_v11 = vmul.f32 %v5024_v31, %v10687_v26  ;;  %10688 = vst [vmem:[#allocation166_spill] sm:$0xff] %v8185_v22  ;;  %v3747_v56 = vmul.f32 %v5024_v31, %v10690_v25  ;;  %v8190_v12 = vpop.eup %5029  ;;  %v3247_v53 = vpop.xlane.xlu0 %3246  ;;  %v10694_v35 = vld [vmem:[#allocation132_spill] sm:$0xff] }
 0x3b6   : > { %2361 = vmax.xlane.f32.xlu1 %v10680_v13  ;;  %v10689_v13 = vld [vmem:[#allocation197_spill] sm:$0xff]  ;;  %10692 = vst [vmem:[#allocation171_spill] sm:$0xff] %v8190_v12  ;;  %5047 = vpow2.f32 %v3115_v48  ;;  %v4027_v52 = vpack.c.bf16 %v3805_v2, %v3803_v9  ;;  %v3299_v30 = vadd.f32 %v10694_v35, %v10693_v60  ;;  %v10698_v9 = vsub.f32 %v10548_v17, %v7919_v59  ;;  %v3250_v2 = vpop.xlane.xlu1 %3249  ;;  %v10735_v35 = vld [vmem:[#allocation107_spill] sm:$0xff] }
 0x3b7   : > { %v4028_v14 = vpack.c.bf16 %v3806_v55, %v3804_v34  ;;  %v3750_v1 = vmul.f32 %v5026_v37, %v10689_v13  ;;  %v10696_v34 = vsub.f32 %v10540_v10, %v7900_v0  ;;  %5049 = vrcp.f32 %v3331_v27  ;;  %v10708_v13 = vld [vmem:[#allocation189_spill] sm:$0xff] }
 0x3b8   : > { %3384 = vadd.xlane.f32.xlu0 %v3383_v32  ;;  %v8194_v39 = vpop.eup %5031  ;;  %v3999_v31 = vpack.c.bf16 %v3749_v8, %v3747_v56  ;;  %v3119_v37 = vmul.f32 1.442695, %v10698_v9  ;;  %5051 = vrcp.f32 %v3334_v44  ;;  %v10700_v0 = vsub.f32 %v10549_v58, %v7919_v59  ;;  %v10723_v9 = vld [vmem:[#allocation258_spill] sm:$0xff] }
 0x3b9   : > { %10695 = vst [vmem:[#allocation126_spill] sm:$0xff] %v8194_v39  ;;  %v3117_v26 = vmul.f32 1.442695, %v10696_v34  ;;  %4176 = vmatprep.subr.bf16.mxu0 %v4028_v14  ;;  %v4000_v25 = vpack.c.bf16 %v3750_v1, %v3748_v11  ;;  %v8199_v38 = vpop.eup %5033  ;;  %5053 = vrcp.f32 %v3247_v53  ;;  %v10702_v14 = vld [vmem:[#allocation114_spill] sm:$0xff]  ;;  %v10704_v17 = vsub.f32 %v10557_v42, %v7938_v51  ;;  %v8216_v55 = vpop.xlane.xlu0 %2394 }
 0x3ba   : > { %3387 = vadd.xlane.f32.xlu1 %v3386_v49  ;;  %10697 = vst [vmem:[#allocation143_spill] sm:$0xff] %v8199_v38  ;;  %4177 = vmatpush1.bf16.xpose.msra.mxu0 %v4027_v52  ;;  %v8204_v48 = vpop.eup %5035  ;;  %v3121_v10 = vmul.f32 1.442695, %v10700_v0  ;;  %v10701_v49 = vld [vmem:[#allocation112_spill] sm:$0xff]  ;;  %5055 = vrcp.f32 %v3250_v2  ;;  %v10706_v59 = vsub.f32 %v10563_v15, %v7938_v51  ;;  %v10707_v53 = vld [vmem:[#allocation186_spill] sm:$0xff]  ;;  %v10710_v56 = vsub.f32 %v10567_v3, %v7959_v29 }
 0x3bb   : > { %10699 = vst [vmem:[#allocation175_spill] sm:$0xff] %v8204_v48  ;;  %4127 = vmatprep.subr.bf16.mxu1 %v4000_v25  ;;  %v3302_v8 = vadd.f32 %v10702_v14, %v10701_v49  ;;  %v8211_v27 = vpop.eup %5037  ;;  %v3003_v32 = vmul.f32 1.442695, %v10704_v17  ;;  %5057 = vpow2.f32 %v3117_v26  ;;  %v10712_v51 = vsub.f32 %v10568_v6, %v7959_v29  ;;  %v10713_v26 = vld [vmem:[#allocation191_spill] sm:$0xff]  ;;  %v10716_v2 = vld [vmem:[#allocation254_spill] sm:$0xff] }
 0x3bc   : > { %3300 = vadd.xlane.f32.xlu0 %v3299_v30  ;;  %10703 = vst [vmem:[#allocation177_spill] sm:$0xff] %v8211_v27  ;;  %4128 = vmatpush1.bf16.xpose.msra.mxu1 %v3999_v31  ;;  %v8218_v44 = vpop.eup %5039  ;;  %v3005_v58 = vmul.f32 1.442695, %v10706_v59  ;;  %5059 = vpow2.f32 %v3119_v37  ;;  %v3007_v52 = vmul.f32 1.442695, %v10710_v56  ;;  %v8232_v30 = vpop.xlane.xlu1 %2397  ;;  %v10714_v31 = vld [vmem:[#allocation194_spill] sm:$0xff]  ;;  %v10720_v29 = vsub.f32 %v10583_v50, %v7994_v47 }
 0x3bd   : > { %10705 = vst [vmem:[#allocation178_spill] sm:$0xff] %v8218_v44  ;;  %v8227_v42 = vpop.eup %5041  ;;  %5061 = vpow2.f32 %v3121_v10  ;;  %v3009_v15 = vmul.f32 1.442695, %v10712_v51  ;;  %v10715_v37 = vld [vmem:[#allocation82_spill] sm:$0xff]  ;;  %v10719_v10 = vsub.f32 %v10582_v24, %v7994_v47  ;;  %v8251_v17 = vpop.xlane.xlu0 %2310  ;;  %v10721_v59 = vld [vmem:[#allocation164_spill] sm:$0xff]  ;;  %v10725_v25 = vld [vmem:[#allocation103_spill] sm:$0xff]  ;;  %v10728_v24 = vsub.f32 %v10591_v63, %v8009_v5 }
 0x3be   : > { %3303 = vadd.xlane.f32.xlu1 %v3302_v8  ;;  %10709 = vst [vmem:[#allocation180_spill] sm:$0xff] %v8227_v42  ;;  %v8234_v34 = vpop.eup %5043  ;;  %v10717_v0 = vmax.f32 %v10715_v37, %v10716_v2  ;;  %5063 = vpow2.f32 %v3003_v32  ;;  %v3125_v6 = vmul.f32 1.442695, %v10720_v29  ;;  %v10722_v51 = vld [vmem:[#allocation256_spill] sm:$0xff]  ;;  %v10726_v32 = vld [vmem:[#allocation86_spill] sm:$0xff]  ;;  %v10734_v63 = vsub.f32 %v10597_v40, %v8009_v5  ;;  %v10738_v2 = vld [vmem:[#allocation135_spill] sm:$0xff] }
 0x3bf   : > { %10711 = vst [vmem:[#allocation155_spill] sm:$0xff] %v8234_v34  ;;  %v8246_v3 = vpop.eup %5045  ;;  %v3123_v8 = vmul.f32 1.442695, %v10719_v10  ;;  %5065 = vpow2.f32 %v3005_v58  ;;  %v3389_v1 = vadd.f32 %v10726_v32, %v10725_v25  ;;  %v3127_v58 = vmul.f32 1.442695, %v10728_v24  ;;  %v10729_v47 = vld [vmem:[#allocation168_spill] sm:$0xff] }
 0x3c0   : > { %2448 = vmax.xlane.f32.xlu0 %v10717_v0  ;;  %10718 = vst [vmem:[#allocation159_spill] sm:$0xff] %v8246_v3  ;;  %v10724_v0 = vmax.f32 %v10722_v51, %v10723_v9  ;;  %v8263_v11 = vpop.eup %5047  ;;  %5067 = vpow2.f32 %v3007_v52  ;;  %v8270_v10 = vpop.xlane.xlu1 %2313  ;;  %v10730_v56 = vld [vmem:[#allocation172_spill] sm:$0xff]  ;;  %v10731_v49 = vld [vmem:[#allocation174_spill] sm:$0xff]  ;;  %v10733_v52 = vld [vmem:[#allocation105_spill] sm:$0xff]  ;;  %v3129_v24 = vmul.f32 1.442695, %v10734_v63 }
 0x3c1   : > { %10727 = vst [vmem:[#allocation184_spill] sm:$0xff] %v8263_v11  ;;  %v5050_v29 = vpop.eup %5049  ;;  %5069 = vpow2.f32 %v3009_v15  ;;  %v10732_v32 = vld [vmem:[#allocation118_spill] sm:$0xff]  ;;  %v3337_v50 = vpop.xlane.xlu0 %3336  ;;  %v3305_v15 = vadd.f32 %v7822_v33, %v10735_v35  ;;  %v10737_v25 = vld [vmem:[#allocation212_spill] sm:$0xff]  ;;  %v10739_v37 = vld [vmem:[#allocation109_spill] sm:$0xff] }
 0x3c2   : > { %2451 = vmax.xlane.f32.xlu1 %v10724_v0  ;;  %v3392_v60 = vadd.f32 %v10733_v52, %v10732_v32  ;;  %v5052_v14 = vpop.eup %5051  ;;  %5071 = vpow2.f32 %v3123_v8  ;;  %v10736_v0 = vld [vmem:[#allocation208_spill] sm:$0xff]  ;;  %v3308_v32 = vadd.f32 %v10739_v37, %v10738_v2  ;;  %v10740_v11 = vld [vmem:[#allocation207_spill] sm:$0xff]  ;;  %v10741_v40 = vld [vmem:[#allocation209_spill] sm:$0xff] }
 0x3c3   : > { %v5054_v9 = vpop.eup %5053  ;;  %5073 = vpow2.f32 %v3125_v6  ;;  %v3808_v51 = vmul.f32 %v5050_v29, %v10736_v0  ;;  %v3807_v5 = vmul.f32 %v5050_v29, %v10740_v11  ;;  %v3809_v63 = vmul.f32 %v5052_v14, %v10741_v40  ;;  %v10742_v3 = vld [vmem:[#allocation217_spill] sm:$0xff]  ;;  %v10745_v33 = vld [vmem:[#allocation214_spill] sm:$0xff]  ;;  %v10746_v42 = vld [vmem:[#allocation219_spill] sm:$0xff] }
 0x3c4   : > { %3390 = vadd.xlane.f32.xlu0 %v3389_v1  ;;  %v3810_v1 = vmul.f32 %v5052_v14, %v10737_v25  ;;  %v5056_v52 = vpop.eup %5055  ;;  %5075 = vpow2.f32 %v3127_v58  ;;  %v3340_v8 = vpop.xlane.xlu1 %3339  ;;  %v3752_v34 = vmul.f32 %v5054_v9, %v10742_v3  ;;  %v3751_v25 = vmul.f32 %v5054_v9, %v10745_v33 }
 0x3c5   : > { %v8290_v35 = vpop.eup %5057  ;;  %v3753_v44 = vmul.f32 %v5056_v52, %v10746_v42  ;;  %5077 = vpow2.f32 %v3129_v24  ;;  %v4029_v58 = vpack.c.bf16 %v3809_v63, %v3807_v5  ;;  %v3253_v37 = vpop.xlane.xlu0 %3252  ;;  %v10749_v14 = vsub.f32 %v10600_v41, %v8030_v23  ;;  %v10762_v63 = vld [vmem:[#allocation199_spill] sm:$0xff] }
 0x3c6   : > { %3393 = vadd.xlane.f32.xlu1 %v3392_v60  ;;  %10743 = vst [vmem:[#allocation188_spill] sm:$0xff] %v8290_v35  ;;  %v4030_v6 = vpack.c.bf16 %v3810_v1, %v3808_v51  ;;  %v10744_v60 = vld [vmem:[#allocation221_spill] sm:$0xff]  ;;  %v8295_v2 = vpop.eup %5059  ;;  %5079 = vrcp.f32 %v3337_v50  ;;  %v10751_v33 = vsub.f32 %v10601_v18, %v8030_v23  ;;  %v10753_v41 = vsub.f32 %v10609_v4, %v8049_v61 }
 0x3c7   : > { %v3754_v0 = vmul.f32 %v5056_v52, %v10744_v60  ;;  %10747 = vst [vmem:[#allocation183_spill] sm:$0xff] %v8295_v2  ;;  %v8297_v11 = vpop.eup %5061  ;;  %v3011_v3 = vmul.f32 1.442695, %v10749_v14  ;;  %v4001_v29 = vpack.c.bf16 %v3753_v44, %v3751_v25  ;;  %5081 = vrcp.f32 %v3340_v8  ;;  %v10759_v8 = vld [vmem:[#allocation137_spill] sm:$0xff]  ;;  %v10764_v60 = vld [vmem:[#allocation247_spill] sm:$0xff] }
 0x3c8   : > { %3306 = vadd.xlane.f32.xlu0 %v3305_v15  ;;  %10748 = vst [vmem:[#allocation185_spill] sm:$0xff] %v8297_v11  ;;  %4178 = vmatprep.subr.bf16.mxu0 %v4030_v6  ;;  %v8302_v15 = vpop.eup %5063  ;;  %v3013_v42 = vmul.f32 1.442695, %v10751_v33  ;;  %v3256_v9 = vpop.xlane.xlu1 %3255  ;;  %v3015_v24 = vmul.f32 1.442695, %v10753_v41  ;;  %5083 = vrcp.f32 %v3253_v37  ;;  %v10758_v23 = vsub.f32 %v10615_v19, %v8049_v61  ;;  %v10763_v61 = vld [vmem:[#allocation201_spill] sm:$0xff] }
 0x3c9   : > { %v4002_v51 = vpack.c.bf16 %v3754_v0, %v3752_v34  ;;  %10750 = vst [vmem:[#allocation193_spill] sm:$0xff] %v8302_v15  ;;  %4179 = vmatpush1.bf16.xpose.msra.mxu0 %v4029_v58  ;;  %v8307_v52 = vpop.eup %5065  ;;  %v10755_v34 = vld [vmem:[#allocation92_spill] sm:$0xff]  ;;  %5085 = vrcp.f32 %v3256_v9  ;;  %v8320_v1 = vpop.xlane.xlu0 %2400  ;;  %v3395_v4 = vadd.f32 %v7858_v54, %v10759_v8  ;;  %v10761_v37 = vsub.f32 %v10647_v20, %v8107_v16  ;;  %v10765_v0 = vld [vmem:[#allocation85_spill] sm:$0xff]  ;;  %v10769_v20 = vld [vmem:[#allocation38_spill] sm:$0xff] }
 0x3ca   : > { %3309 = vadd.xlane.f32.xlu1 %v3308_v32  ;;  %10752 = vst [vmem:[#allocation197_spill] sm:$0xff] %v8307_v52  ;;  %v10754_v32 = vld [vmem:[#allocation62_spill] sm:$0xff]  ;;  %v8315_v50 = vpop.eup %5067  ;;  %v3017_v18 = vmul.f32 1.442695, %v10758_v23  ;;  %5087 = vpow2.f32 %v3011_v3  ;;  %v10766_v25 = vmax.f32 %v10764_v60, %v10765_v0  ;;  %v10768_v14 = vsub.f32 %v10648_v36, %v8107_v16  ;;  %v10790_v54 = vld [vmem:[#allocation147_spill] sm:$0xff] }
 0x3cb   : > { %4129 = vmatprep.subr.bf16.mxu1 %v4002_v51  ;;  %v10756_v44 = vmax.f32 %v10754_v32, %v10755_v34  ;;  %10757 = vst [vmem:[#allocation190_spill] sm:$0xff] %v8315_v50  ;;  %v8324_v5 = vpop.eup %5069  ;;  %v3131_v40 = vmul.f32 1.442695, %v10761_v37  ;;  %5089 = vpow2.f32 %v3013_v42  ;;  %v10771_v9 = vsub.f32 %v10653_v43, %v8123_v46  ;;  %v10773_v42 = vld [vmem:[#allocation204_spill] sm:$0xff]  ;;  %v10783_v23 = vld [vmem:[#allocation182_spill] sm:$0xff]  ;;  %v10792_v6 = vld [vmem:[#allocation43_spill] sm:$0xff] }
 0x3cc   : > { %4130 = vmatpush1.bf16.xpose.msra.mxu1 %v4001_v29  ;;  %10760 = vst [vmem:[#allocation195_spill] sm:$0xff] %v8324_v5  ;;  %v8336_v58 = vpop.eup %5071  ;;  %v3133_v3 = vmul.f32 1.442695, %v10768_v14  ;;  %v8341_v51 = vpop.xlane.xlu1 %2403  ;;  %v3398_v29 = vadd.f32 %v10769_v20, %v7869_v28  ;;  %5091 = vpow2.f32 %v3015_v24  ;;  %v10775_v36 = vsub.f32 %v10654_v7, %v8123_v46  ;;  %v10789_v20 = vld [vmem:[#allocation145_spill] sm:$0xff]  ;;  %v10794_v32 = vld [vmem:[#allocation128_spill] sm:$0xff]  ;;  %v10801_v5 = vld [vmem:[#allocation238_spill] sm:$0xff] }
 0x3cd   : > { %2454 = vmax.xlane.f32.xlu0 %v10756_v44  ;;  %10767 = vst [vmem:[#allocation186_spill] sm:$0xff] %v8336_v58  ;;  %v8345_v33 = vpop.eup %5073  ;;  %v3135_v41 = vmul.f32 1.442695, %v10771_v9  ;;  %v10772_v44 = vld [vmem:[#allocation202_spill] sm:$0xff]  ;;  %5093 = vpow2.f32 %v3017_v18  ;;  %v8359_v14 = vpop.xlane.xlu0 %2316  ;;  %v10776_v43 = vsub.f32 %v10662_v45, %v8142_v62  ;;  %v10777_v9 = vld [vmem:[#allocation176_spill] sm:$0xff]  ;;  %v10780_v46 = vsub.f32 %v10668_v21, %v8142_v62  ;;  %v10781_v18 = vld [vmem:[#allocation179_spill] sm:$0xff] }
 0x3ce   : > { %2457 = vmax.xlane.f32.xlu1 %v10766_v25  ;;  %10770 = vst [vmem:[#allocation189_spill] sm:$0xff] %v8345_v33  ;;  %v8354_v16 = vpop.eup %5075  ;;  %v3137_v25 = vmul.f32 1.442695, %v10775_v36  ;;  %5095 = vpow2.f32 %v3131_v40  ;;  %v10786_v62 = vld [vmem:[#allocation161_spill] sm:$0xff] }
 0x3cf   : > { %10774 = vst [vmem:[#allocation191_spill] sm:$0xff] %v8354_v16  ;;  %v3019_v24 = vmul.f32 1.442695, %v10776_v43  ;;  %v8368_v19 = vpop.eup %5077  ;;  %5097 = vpow2.f32 %v3133_v3  ;;  %v3021_v7 = vmul.f32 1.442695, %v10780_v46  ;;  %v10782_v43 = vld [vmem:[#allocation181_spill] sm:$0xff] }
 0x3d0   : > { %10779 = vst [vmem:[#allocation194_spill] sm:$0xff] %v8368_v19  ;;  %v8375_v36 = vpop.xlane.xlu1 %2319  ;;  %v5080_v45 = vpop.eup %5079  ;;  %5099 = vpow2.f32 %v3135_v41  ;;  %v10785_v3 = vld [vmem:[#allocation115_spill] sm:$0xff]  ;;  %v10787_v21 = vld [vmem:[#allocation173_spill] sm:$0xff]  ;;  %v3401_v41 = vadd.f32 %v10790_v54, %v10789_v20  ;;  %v10795_v19 = vld [vmem:[#allocation230_spill] sm:$0xff] }
 0x3d1   : > { %3396 = vadd.xlane.f32.xlu0 %v3395_v4  ;;  %v10778_v4 = vld [vmem:[#allocation94_spill] sm:$0xff]  ;;  %v5082_v28 = vpop.eup %5081  ;;  %5101 = vpow2.f32 %v3137_v25  ;;  %v10788_v46 = vsub.f32 %v10786_v62, %v10787_v21  ;;  %v3343_v8 = vpop.xlane.xlu0 %3342  ;;  %v10793_v34 = vld [vmem:[#allocation149_spill] sm:$0xff]  ;;  %v3811_v62 = vmul.f32 %v5080_v45, %v10795_v19  ;;  %v10800_v54 = vld [vmem:[#allocation236_spill] sm:$0xff] }
 0x3d2   : > { %3399 = vadd.xlane.f32.xlu1 %v3398_v29  ;;  %v3311_v37 = vadd.f32 %v10778_v4, %v7883_v57  ;;  %v10784_v57 = vld [vmem:[#allocation123_spill] sm:$0xff]  ;;  %v5084_v0 = vpop.eup %5083  ;;  %5103 = vpow2.f32 %v3019_v24  ;;  %v10791_v29 = vld [vmem:[#allocation232_spill] sm:$0xff]  ;;  %v10797_v33 = vld [vmem:[#allocation237_spill] sm:$0xff] }
 0x3d3   : > { %v3314_v4 = vadd.f32 %v10785_v3, %v10784_v57  ;;  %v3023_v40 = vmul.f32 1.442695, %v10788_v46  ;;  %v3812_v60 = vmul.f32 %v5080_v45, %v10791_v29  ;;  %v3404_v57 = vadd.f32 %v10794_v32, %v10793_v34  ;;  %v5086_v3 = vpop.eup %5085  ;;  %v10796_v46 = vld [vmem:[#allocation233_spill] sm:$0xff]  ;;  %v10803_v19 = vld [vmem:[#allocation131_spill] sm:$0xff] }
 0x3d4   : > { %5105 = vpow2.f32 %v3021_v7  ;;  %v3346_v25 = vpop.xlane.xlu1 %3345  ;;  %v3813_v16 = vmul.f32 %v5082_v28, %v10796_v46  ;;  %v3756_v58 = vmul.f32 %v5084_v0, %v10797_v33  ;;  %v8395_v20 = vpop.eup %5087  ;;  %v3757_v50 = vmul.f32 %v5086_v3, %v10801_v5  ;;  %v10804_v45 = vld [vmem:[#allocation133_spill] sm:$0xff]  ;;  %v10805_v33 = vld [vmem:[#allocation162_spill] sm:$0xff] }
 0x3d5   : > { %3312 = vadd.xlane.f32.xlu0 %v3311_v37  ;;  %v3814_v37 = vmul.f32 %v5082_v28, %v10792_v6  ;;  %10798 = vst [vmem:[#allocation164_spill] sm:$0xff] %v8395_v20  ;;  %v3755_v6 = vmul.f32 %v5084_v0, %v10800_v54  ;;  %v8400_v34 = vpop.eup %5089  ;;  %5107 = vpow2.f32 %v3023_v40  ;;  %v3259_v32 = vpop.xlane.xlu0 %3258  ;;  %v3317_v28 = vadd.f32 %v10804_v45, %v10803_v19  ;;  %v10841_v19 = vld [vmem:[#allocation241_spill] sm:$0xff] }
 0x3d6   : > { %3315 = vadd.xlane.f32.xlu1 %v3314_v4  ;;  %v10799_v4 = vld [vmem:[#allocation65_spill] sm:$0xff]  ;;  %10802 = vst [vmem:[#allocation168_spill] sm:$0xff] %v8400_v34  ;;  %v4031_v7 = vpack.c.bf16 %v3813_v16, %v3811_v62  ;;  %v8404_v46 = vpop.eup %5091  ;;  %5109 = vrcp.f32 %v3343_v8  ;;  %v10807_v16 = vsub.f32 %v10707_v53, %v8216_v55  ;;  %v10811_v53 = vsub.f32 %v10713_v26, %v8232_v30 }
 0x3d7   : > { %v4032_v24 = vpack.c.bf16 %v3814_v37, %v3812_v60  ;;  %v3758_v29 = vmul.f32 %v5086_v3, %v10799_v4  ;;  %v10806_v60 = vsub.f32 %v10805_v33, %v10787_v21  ;;  %v4003_v0 = vpack.c.bf16 %v3757_v50, %v3755_v6  ;;  %v8409_v5 = vpop.eup %5093  ;;  %v10810_v50 = vld [vmem:[#allocation154_spill] sm:$0xff] }
 0x3d8   : > { %v3139_v40 = vmul.f32 1.442695, %v10807_v16  ;;  %5111 = vrcp.f32 %v3346_v25  ;;  %v3262_v3 = vpop.xlane.xlu1 %3261  ;;  %v8414_v37 = vpop.eup %5095  ;;  %v10808_v21 = vsub.f32 %v10708_v13, %v8216_v55  ;;  %v3143_v25 = vmul.f32 1.442695, %v10811_v53 }
 0x3d9   : > { %3402 = vadd.xlane.f32.xlu0 %v3401_v41  ;;  %v3025_v41 = vmul.f32 1.442695, %v10806_v60  ;;  %4180 = vmatprep.subr.bf16.mxu0 %v4032_v24  ;;  %v4004_v54 = vpack.c.bf16 %v3758_v29, %v3756_v58  ;;  %5113 = vrcp.f32 %v3259_v32  ;;  %v8421_v58 = vpop.eup %5097  ;;  %v8426_v24 = vpop.xlane.xlu0 %2406  ;;  %v10812_v55 = vsub.f32 %v10714_v31, %v8232_v30  ;;  %v10813_v32 = vld [vmem:[#allocation157_spill] sm:$0xff]  ;;  %v10814_v29 = vld [vmem:[#allocation158_spill] sm:$0xff] }
 0x3da   : > { %3405 = vadd.xlane.f32.xlu1 %v3404_v57  ;;  %4181 = vmatpush1.bf16.xpose.msra.mxu0 %v4031_v7  ;;  %v3141_v62 = vmul.f32 1.442695, %v10808_v21  ;;  %v10809_v57 = vld [vmem:[#allocation134_spill] sm:$0xff]  ;;  %5115 = vrcp.f32 %v3262_v3  ;;  %v8428_v4 = vpop.eup %5099  ;;  %v3407_v6 = vadd.f32 %v10814_v29, %v10813_v32  ;;  %v10815_v26 = vsub.f32 %v10721_v59, %v8251_v17  ;;  %v10833_v32 = vld [vmem:[#allocation156_spill] sm:$0xff]  ;;  %v10837_v29 = vld [vmem:[#allocation49_spill] sm:$0xff] }
 0x3db   : > { %4131 = vmatprep.subr.bf16.mxu1 %v4004_v54  ;;  %v3320_v8 = vadd.f32 %v10810_v50, %v10809_v57  ;;  %5117 = vpow2.f32 %v3025_v41  ;;  %v3145_v13 = vmul.f32 1.442695, %v10812_v55  ;;  %v8435_v7 = vpop.eup %5101  ;;  %v10817_v30 = vsub.f32 %v10729_v47, %v8251_v17  ;;  %v10818_v41 = vld [vmem:[#allocation160_spill] sm:$0xff]  ;;  %v10822_v17 = vld [vmem:[#allocation138_spill] sm:$0xff] }
 0x3dc   : > { %4132 = vmatpush1.bf16.xpose.msra.mxu1 %v4003_v0  ;;  %5119 = vpow2.f32 %v3139_v40  ;;  %v8440_v33 = vpop.xlane.xlu1 %2409  ;;  %v8442_v60 = vpop.eup %5103  ;;  %v10819_v54 = vld [vmem:[#allocation136_spill] sm:$0xff]  ;;  %v10820_v59 = vsub.f32 %v10730_v56, %v8270_v10  ;;  %v10821_v21 = vsub.f32 %v10731_v49, %v8270_v10 }
 0x3dd   : > { %3318 = vadd.xlane.f32.xlu0 %v3317_v28  ;;  %v3027_v28 = vmul.f32 1.442695, %v10815_v26  ;;  %10816 = vst [vmem:[#allocation172_spill] sm:$0xff] %v8442_v60  ;;  %5121 = vpow2.f32 %v3141_v62  ;;  %v3029_v31 = vmul.f32 1.442695, %v10817_v30  ;;  %v3410_v0 = vadd.f32 %v10819_v54, %v10818_v41  ;;  %v8454_v3 = vpop.xlane.xlu0 %2322  ;;  %v10823_v47 = vld [vmem:[#allocation140_spill] sm:$0xff] }
 0x3de   : > { %3321 = vadd.xlane.f32.xlu1 %v3320_v8  ;;  %v8449_v16 = vpop.eup %5105  ;;  %5123 = vpow2.f32 %v3143_v25  ;;  %v3031_v40 = vmul.f32 1.442695, %v10820_v59  ;;  %v3033_v62 = vmul.f32 1.442695, %v10821_v21  ;;  %v3419_v8 = vadd.f32 %v10823_v47, %v10822_v17  ;;  %v10827_v26 = vld [vmem:[#allocation152_spill] sm:$0xff]  ;;  %v10830_v21 = vld [vmem:[#allocation165_spill] sm:$0xff] }
 0x3df   : > { %5125 = vpow2.f32 %v3145_v13  ;;  %v8461_v53 = vpop.eup %5107  ;;  %v10825_v25 = vsub.f32 %v10762_v63, %v8320_v1  ;;  %v10826_v13 = vld [vmem:[#allocation142_spill] sm:$0xff]  ;;  %v10828_v30 = vsub.f32 %v10763_v61, %v8320_v1  ;;  %v10834_v41 = vld [vmem:[#allocation151_spill] sm:$0xff]  ;;  %v10835_v54 = vld [vmem:[#allocation69_spill] sm:$0xff] }
 0x3e0   : > { %10824 = vst [vmem:[#allocation174_spill] sm:$0xff] %v8461_v53  ;;  %5127 = vpow2.f32 %v3027_v28  ;;  %v8466_v56 = vpop.xlane.xlu1 %2325  ;;  %v3422_v49 = vadd.f32 %v10827_v26, %v10826_v13  ;;  %v10829_v28 = vld [vmem:[#allocation163_spill] sm:$0xff]  ;;  %v3416_v13 = vadd.f32 %v10834_v41, %v10833_v32  ;;  %v10836_v61 = vld [vmem:[#allocation36_spill] sm:$0xff] }
 0x3e1   : > { %3408 = vadd.xlane.f32.xlu0 %v3407_v6  ;;  %v3147_v55 = vmul.f32 1.442695, %v10825_v25  ;;  %v5110_v6 = vpop.eup %5109  ;;  %5129 = vpow2.f32 %v3029_v31  ;;  %v3349_v59 = vpop.xlane.xlu0 %3348  ;;  %v3413_v17 = vadd.f32 %v10830_v21, %v10829_v28  ;;  %v10831_v25 = vld [vmem:[#allocation239_spill] sm:$0xff]  ;;  %v10832_v31 = vld [vmem:[#allocation48_spill] sm:$0xff] }
 0x3e2   : > { %3411 = vadd.xlane.f32.xlu1 %v3410_v0  ;;  %v5112_v10 = vpop.eup %5111  ;;  %5131 = vpow2.f32 %v3031_v40  ;;  %v3149_v0 = vmul.f32 1.442695, %v10828_v30  ;;  %v3816_v47 = vmul.f32 %v5110_v6, %v10831_v25  ;;  %v3815_v1 = vmul.f32 %v5110_v6, %v10835_v54  ;;  %v10840_v21 = vld [vmem:[#allocation52_spill] sm:$0xff]  ;;  %v10843_v54 = vld [vmem:[#allocation153_spill] sm:$0xff]  ;;  %v10844_v6 = vld [vmem:[#allocation167_spill] sm:$0xff] }
 0x3e3   : > { %v5114_v63 = vpop.eup %5113  ;;  %5133 = vpow2.f32 %v3033_v62  ;;  %v3817_v30 = vmul.f32 %v5112_v10, %v10836_v61 }
 0x3e4   : > { %v5116_v26 = vpop.eup %5115  ;;  %5135 = vpow2.f32 %v3147_v55  ;;  %v3352_v40 = vpop.xlane.xlu1 %3351  ;;  %v3760_v57 = vmul.f32 %v5114_v63, %v10837_v29  ;;  %v10846_v29 = vsub.f32 %v10772_v44, %v8341_v51  ;;  %v10850_v44 = vsub.f32 %v10777_v9, %v8359_v14 }
 0x3e5   : > { %3420 = vadd.xlane.f32.xlu0 %v3419_v8  ;;  %v3818_v8 = vmul.f32 %v5112_v10, %v10832_v31  ;;  %v8482_v28 = vpop.eup %5117  ;;  %v3759_v31 = vmul.f32 %v5114_v63, %v10840_v21  ;;  %v3761_v50 = vmul.f32 %v5116_v26, %v10841_v19  ;;  %5137 = vpow2.f32 %v3149_v0  ;;  %v3265_v41 = vpop.xlane.xlu0 %3264 }
 0x3e6   : > { %3423 = vadd.xlane.f32.xlu1 %v3422_v49  ;;  %10838 = vst [vmem:[#allocation208_spill] sm:$0xff] %v8482_v28  ;;  %v10839_v49 = vld [vmem:[#allocation73_spill] sm:$0xff]  ;;  %v8487_v32 = vpop.eup %5119  ;;  %v4033_v55 = vpack.c.bf16 %v3817_v30, %v3815_v1  ;;  %v3425_v10 = vadd.f32 %v10844_v6, %v10843_v54  ;;  %5139 = vrcp.f32 %v3349_v59  ;;  %v3035_v1 = vmul.f32 1.442695, %v10850_v44  ;;  %v10851_v59 = vld [vmem:[#allocation210_spill] sm:$0xff] }
 0x3e7   : > { %v4034_v62 = vpack.c.bf16 %v3818_v8, %v3816_v47  ;;  %v3762_v25 = vmul.f32 %v5116_v26, %v10839_v49  ;;  %10842 = vst [vmem:[#allocation212_spill] sm:$0xff] %v8487_v32  ;;  %v8491_v61 = vpop.eup %5121  ;;  %v4005_v21 = vpack.c.bf16 %v3761_v50, %v3759_v31  ;;  %v10848_v26 = vsub.f32 %v10773_v42, %v8341_v51  ;;  %v10853_v50 = vld [vmem:[#allocation144_spill] sm:$0xff]  ;;  %v10864_v44 = vld [vmem:[#allocation125_spill] sm:$0xff] }
 0x3e8   : > { %10845 = vst [vmem:[#allocation207_spill] sm:$0xff] %v8491_v61  ;;  %v8496_v19 = vpop.eup %5123  ;;  %5141 = vrcp.f32 %v3352_v40  ;;  %v3268_v63 = vpop.xlane.xlu1 %3267  ;;  %v10855_v42 = vsub.f32 %v10781_v18, %v8359_v14  ;;  %v10860_v14 = vld [vmem:[#allocation146_spill] sm:$0xff]  ;;  %v10861_v18 = vld [vmem:[#allocation148_spill] sm:$0xff] }
 0x3e9   : > { %3414 = vadd.xlane.f32.xlu0 %v3413_v17  ;;  %v3151_v17 = vmul.f32 1.442695, %v10846_v29  ;;  %4182 = vmatprep.subr.bf16.mxu0 %v4034_v62  ;;  %v4006_v47 = vpack.c.bf16 %v3762_v25, %v3760_v57  ;;  %10847 = vst [vmem:[#allocation209_spill] sm:$0xff] %v8496_v19  ;;  %v3153_v0 = vmul.f32 1.442695, %v10848_v26  ;;  %v8501_v8 = vpop.eup %5125  ;;  %5143 = vrcp.f32 %v3265_v41  ;;  %v10852_v57 = vld [vmem:[#allocation170_spill] sm:$0xff]  ;;  %v8517_v9 = vpop.xlane.xlu0 %2412 }
 0x3ea   : > { %3417 = vadd.xlane.f32.xlu1 %v3416_v13  ;;  %4183 = vmatpush1.bf16.xpose.msra.mxu0 %v4033_v55  ;;  %10849 = vst [vmem:[#allocation217_spill] sm:$0xff] %v8501_v8  ;;  %v2679_v13 = vsub.f32 %v10851_v59, %v8426_v24  ;;  %v3428_v30 = vadd.f32 %v10853_v50, %v10852_v57  ;;  %v8510_v51 = vpop.eup %5127  ;;  %v3037_v40 = vmul.f32 1.442695, %v10855_v42  ;;  %v10856_v62 = vld [vmem:[#allocation213_spill] sm:$0xff]  ;;  %5145 = vrcp.f32 %v3268_v63  ;;  %v10859_v55 = vld [vmem:[#allocation215_spill] sm:$0xff]  ;;  %v10863_v63 = vld [vmem:[#allocation150_spill] sm:$0xff] }
 0x3eb   : > { %4133 = vmatprep.subr.bf16.mxu1 %v4006_v47  ;;  %10854 = vst [vmem:[#allocation221_spill] sm:$0xff] %v8510_v51  ;;  %v2680_v49 = vsub.f32 %v10856_v62, %v8426_v24  ;;  %v8519_v25 = vpop.eup %5129  ;;  %5147 = vpow2.f32 %v3151_v17  ;;  %v10858_v41 = vsub.f32 %v10782_v43, %v8375_v36  ;;  %v3515_v29 = vadd.f32 %v10861_v18, %v10860_v14  ;;  %v10873_v14 = vld [vmem:[#allocation246_spill] sm:$0xff]  ;;  %v10876_v18 = vld [vmem:[#allocation245_spill] sm:$0xff] }
 0x3ec   : > { %4134 = vmatpush1.bf16.xpose.msra.mxu1 %v4005_v21  ;;  %10857 = vst [vmem:[#allocation214_spill] sm:$0xff] %v8519_v25  ;;  %v8528_v47 = vpop.eup %5131  ;;  %5149 = vpow2.f32 %v3153_v0  ;;  %v10862_v24 = vsub.f32 %v10783_v23, %v8375_v36  ;;  %v8533_v26 = vpop.xlane.xlu1 %2415  ;;  %v3155_v43 = vmul.f32 1.442695, %v2679_v13  ;;  %v3518_v59 = vadd.f32 %v10864_v44, %v10863_v63  ;;  %v10865_v0 = vld [vmem:[#allocation218_spill] sm:$0xff]  ;;  %v10866_v36 = vld [vmem:[#allocation116_spill] sm:$0xff] }
 0x3ed   : > { %3426 = vadd.xlane.f32.xlu0 %v3425_v10  ;;  %v3039_v31 = vmul.f32 1.442695, %v10858_v41  ;;  %v2681_v10 = vsub.f32 %v10859_v55, %v8440_v33  ;;  %v8535_v17 = vpop.eup %5133  ;;  %5151 = vpow2.f32 %v3035_v1  ;;  %v3157_v42 = vmul.f32 1.442695, %v2680_v49  ;;  %v8543_v41 = vpop.xlane.xlu0 %2328  ;;  %v10867_v55 = vld [vmem:[#allocation169_spill] sm:$0xff] }
 0x3ee   : > { %3429 = vadd.xlane.f32.xlu1 %v3428_v30  ;;  %v3041_v21 = vmul.f32 1.442695, %v10862_v24  ;;  %v8539_v30 = vpop.eup %5135  ;;  %5153 = vpow2.f32 %v3037_v40  ;;  %v2682_v62 = vsub.f32 %v10865_v0, %v8440_v33  ;;  %v3431_v1 = vadd.f32 %v10867_v55, %v10866_v36  ;;  %v10869_v36 = vld [vmem:[#allocation178_spill] sm:$0xff]  ;;  %v10870_v55 = vld [vmem:[#allocation180_spill] sm:$0xff] }
 0x3ef   : > { %5155 = vpow2.f32 %v3039_v31  ;;  %v3159_v23 = vmul.f32 1.442695, %v2681_v10  ;;  %v8547_v13 = vpop.eup %5137  ;;  %v3434_v40 = vadd.f32 %v8190_v12, %v8185_v22  ;;  %v3521_v33 = vadd.f32 %v8199_v38, %v8194_v39  ;;  %v10871_v22 = vld [vmem:[#allocation192_spill] sm:$0xff]  ;;  %v10872_v39 = vld [vmem:[#allocation37_spill] sm:$0xff] }
 0x3f0   : > { %5157 = vpow2.f32 %v3041_v21  ;;  %v5140_v24 = vpop.eup %5139  ;;  %v3524_v49 = vadd.f32 %v8211_v27, %v8204_v48  ;;  %v3161_v10 = vmul.f32 1.442695, %v2682_v62  ;;  %v2624_v12 = vsub.f32 %v10871_v22, %v8454_v3  ;;  %v10878_v22 = vld [vmem:[#allocation250_spill] sm:$0xff] }
 0x3f1   : > { %3516 = vadd.xlane.f32.xlu0 %v3515_v29  ;;  %v8549_v29 = vpop.xlane.xlu1 %2331  ;;  %5159 = vpow2.f32 %v3155_v43  ;;  %v3355_v0 = vpop.xlane.xlu0 %3354  ;;  %v3437_v43 = vadd.f32 %v10870_v55, %v10869_v36  ;;  %v3820_v38 = vmul.f32 %v5140_v24, %v10872_v39  ;;  %v10877_v36 = vld [vmem:[#allocation83_spill] sm:$0xff]  ;;  %v10879_v39 = vld [vmem:[#allocation249_spill] sm:$0xff] }
 0x3f2   : > { %3519 = vadd.xlane.f32.xlu1 %v3518_v59  ;;  %v5142_v31 = vpop.eup %5141  ;;  %5161 = vpow2.f32 %v3157_v42  ;;  %v10868_v59 = vld [vmem:[#allocation187_spill] sm:$0xff]  ;;  %v10874_v42 = vld [vmem:[#allocation196_spill] sm:$0xff] }
 0x3f3   : > { %v2623_v21 = vsub.f32 %v10868_v59, %v8454_v3  ;;  %5163 = vpow2.f32 %v3159_v23  ;;  %v3822_v48 = vmul.f32 %v5142_v31, %v10873_v14  ;;  %v2625_v62 = vsub.f32 %v10874_v42, %v8466_v56  ;;  %v10875_v59 = vld [vmem:[#allocation242_spill] sm:$0xff]  ;;  %v10880_v14 = vld [vmem:[#allocation59_spill] sm:$0xff] }
 0x3f4   : > { %v3819_v44 = vmul.f32 %v5140_v24, %v10875_v59  ;;  %v3821_v57 = vmul.f32 %v5142_v31, %v10876_v18  ;;  %5165 = vpow2.f32 %v3161_v10  ;;  %v10881_v24 = vld [vmem:[#allocation198_spill] sm:$0xff]  ;;  %v10885_v10 = vld [vmem:[#allocation225_spill] sm:$0xff] }
 0x3f5   : > { %3432 = vadd.xlane.f32.xlu0 %v3431_v1  ;;  %v5144_v1 = vpop.eup %5143  ;;  %v3358_v63 = vpop.xlane.xlu1 %3357  ;;  %v4036_v54 = vpack.c.bf16 %v3822_v48, %v3820_v38  ;;  %v3043_v42 = vmul.f32 1.442695, %v2623_v21  ;;  %v2626_v59 = vsub.f32 %v10881_v24, %v8466_v56  ;;  %v10883_v38 = vld [vmem:[#allocation223_spill] sm:$0xff]  ;;  %5167 = vrcp.f32 %v3355_v0  ;;  %v10894_v24 = vld [vmem:[#allocation184_spill] sm:$0xff] }
 0x3f6   : > { %3435 = vadd.xlane.f32.xlu1 %v3434_v40  ;;  %v5146_v27 = vpop.eup %5145  ;;  %v3764_v55 = vmul.f32 %v5144_v1, %v10877_v36  ;;  %v3763_v40 = vmul.f32 %v5144_v1, %v10879_v39  ;;  %v4035_v18 = vpack.c.bf16 %v3821_v57, %v3819_v44  ;;  %v3271_v31 = vpop.xlane.xlu0 %3270  ;;  %v2683_v48 = vsub.f32 %v10883_v38, %v8517_v9  ;;  %v10887_v39 = vld [vmem:[#allocation226_spill] sm:$0xff] }
 0x3f7   : > { %v8570_v23 = vpop.eup %5147  ;;  %v3766_v3 = vmul.f32 %v5146_v27, %v10878_v22  ;;  %v3765_v50 = vmul.f32 %v5146_v27, %v10880_v14  ;;  %4184 = vmatprep.subr.bf16.mxu0 %v4036_v54  ;;  %v3045_v22 = vmul.f32 1.442695, %v2624_v12  ;;  %v2684_v21 = vsub.f32 %v10885_v10, %v8517_v9  ;;  %v10888_v54 = vld [vmem:[#allocation155_spill] sm:$0xff]  ;;  %v10891_v9 = vld [vmem:[#allocation228_spill] sm:$0xff] }
 0x3f8   : > { %v8575_v6 = vpop.eup %5149  ;;  %5169 = vrcp.f32 %v3358_v63  ;;  %4185 = vmatpush1.bf16.xpose.msra.mxu0 %v4035_v18  ;;  %v3047_v44 = vmul.f32 1.442695, %v2625_v62  ;;  %v2685_v14 = vsub.f32 %v10887_v39, %v8533_v26  ;;  %v3049_v12 = vmul.f32 1.442695, %v2626_v59 }
 0x3f9   : > { %3522 = vadd.xlane.f32.xlu0 %v3521_v33  ;;  %v8579_v36 = vpop.eup %5151  ;;  %v4008_v33 = vpack.c.bf16 %v3766_v3, %v3764_v55  ;;  %v4007_v1 = vpack.c.bf16 %v3765_v50, %v3763_v40  ;;  %v3274_v56 = vpop.xlane.xlu1 %3273  ;;  %5171 = vrcp.f32 %v3271_v31  ;;  %v10889_v50 = vld [vmem:[#allocation159_spill] sm:$0xff]  ;;  %v2686_v63 = vsub.f32 %v10891_v9, %v8533_v26  ;;  %v10893_v40 = vld [vmem:[#allocation200_spill] sm:$0xff] }
 0x3fa   : > { %10882 = vst [vmem:[#allocation219_spill] sm:$0xff] %v8579_v36  ;;  %3525 = vadd.xlane.f32.xlu1 %v3524_v49  ;;  %v8583_v27 = vpop.eup %5153  ;;  %v3440_v55 = vadd.f32 %v10889_v50, %v10888_v54  ;;  %5173 = vrcp.f32 %v3274_v56  ;;  %v8597_v0 = vpop.xlane.xlu0 %2418  ;;  %v3163_v3 = vmul.f32 1.442695, %v2683_v48  ;;  %v3527_v18 = vadd.f32 %v8290_v35, %v10894_v24  ;;  %v10908_v24 = vld [vmem:[#allocation91_spill] sm:$0xff]  ;;  %v10911_v35 = vld [vmem:[#allocation89_spill] sm:$0xff] }
 0x3fb   : > { %10884 = vst [vmem:[#allocation199_spill] sm:$0xff] %v8583_v27  ;;  %v8587_v57 = vpop.eup %5155  ;;  %4135 = vmatprep.subr.bf16.mxu1 %v4008_v33  ;;  %5175 = vpow2.f32 %v3043_v42  ;;  %v3165_v59 = vmul.f32 1.442695, %v2684_v21  ;;  %v3167_v33 = vmul.f32 1.442695, %v2685_v14  ;;  %v3530_v42 = vadd.f32 %v8297_v11, %v8295_v2 }
 0x3fc   : > { %10886 = vst [vmem:[#allocation201_spill] sm:$0xff] %v8587_v57  ;;  %v8593_v49 = vpop.eup %5157  ;;  %4136 = vmatpush1.bf16.xpose.msra.mxu1 %v4007_v1  ;;  %5177 = vpow2.f32 %v3045_v22  ;;  %v3169_v48 = vmul.f32 1.442695, %v2686_v63  ;;  %v10897_v1 = vld [vmem:[#allocation203_spill] sm:$0xff]  ;;  %v3443_v21 = vadd.f32 %v8307_v52, %v8302_v15  ;;  %v10902_v63 = vld [vmem:[#allocation189_spill] sm:$0xff] }
 0x3fd   : > { %3438 = vadd.xlane.f32.xlu0 %v3437_v43  ;;  %10890 = vst [vmem:[#allocation202_spill] sm:$0xff] %v8593_v49  ;;  %v8599_v62 = vpop.eup %5159  ;;  %v2627_v43 = vsub.f32 %v10893_v40, %v8543_v41  ;;  %v8607_v26 = vpop.xlane.xlu1 %2421  ;;  %5179 = vpow2.f32 %v3047_v44  ;;  %v2628_v10 = vsub.f32 %v10897_v1, %v8543_v41  ;;  %v10901_v41 = vld [vmem:[#allocation186_spill] sm:$0xff]  ;;  %v10905_v15 = vld [vmem:[#allocation205_spill] sm:$0xff] }
 0x3fe   : > { %10892 = vst [vmem:[#allocation204_spill] sm:$0xff] %v8599_v62  ;;  %3441 = vadd.xlane.f32.xlu1 %v3440_v55  ;;  %v8605_v31 = vpop.eup %5161  ;;  %5181 = vpow2.f32 %v3049_v12  ;;  %v8615_v56 = vpop.xlane.xlu0 %2334  ;;  %v10899_v55 = vld [vmem:[#allocation190_spill] sm:$0xff]  ;;  %v10900_v12 = vld [vmem:[#allocation195_spill] sm:$0xff]  ;;  %v3533_v40 = vadd.f32 %v10902_v63, %v10901_v41  ;;  %v10907_v41 = vld [vmem:[#allocation252_spill] sm:$0xff] }
 0x3ff   : > { %10895 = vst [vmem:[#allocation176_spill] sm:$0xff] %v8605_v31  ;;  %v8609_v38 = vpop.eup %5163  ;;  %5183 = vpow2.f32 %v3163_v3  ;;  %v3051_v22 = vmul.f32 1.442695, %v2627_v43  ;;  %v3446_v9 = vadd.f32 %v10900_v12, %v10899_v55  ;;  %v10903_v3 = vld [vmem:[#allocation191_spill] sm:$0xff]  ;;  %v10904_v43 = vld [vmem:[#allocation194_spill] sm:$0xff] }
 0x400   : > { %10896 = vst [vmem:[#allocation179_spill] sm:$0xff] %v8609_v38  ;;  %v8619_v39 = vpop.eup %5165  ;;  %5185 = vpow2.f32 %v3165_v59  ;;  %v3053_v1 = vmul.f32 1.442695, %v2628_v10  ;;  %v2629_v59 = vsub.f32 %v10905_v15, %v8549_v29  ;;  %v10906_v55 = vld [vmem:[#allocation206_spill] sm:$0xff]  ;;  %v10910_v15 = vld [vmem:[#allocation251_spill] sm:$0xff] }
 0x401   : > { %3528 = vadd.xlane.f32.xlu0 %v3527_v18  ;;  %10898 = vst [vmem:[#allocation181_spill] sm:$0xff] %v8619_v39  ;;  %v8621_v44 = vpop.xlane.xlu1 %2337  ;;  %v5168_v14 = vpop.eup %5167  ;;  %5187 = vpow2.f32 %v3167_v33  ;;  %v3536_v18 = vadd.f32 %v10904_v43, %v10903_v3  ;;  %v3449_v33 = vadd.f32 %v8400_v34, %v8395_v20  ;;  %v2630_v12 = vsub.f32 %v10906_v55, %v8549_v29  ;;  %v10912_v20 = vld [vmem:[#allocation74_spill] sm:$0xff]  ;;  %v10914_v29 = vld [vmem:[#allocation253_spill] sm:$0xff] }
 0x402   : > { %3531 = vadd.xlane.f32.xlu1 %v3530_v42  ;;  %v5170_v42 = vpop.eup %5169  ;;  %5189 = vpow2.f32 %v3169_v48  ;;  %v3361_v52 = vpop.xlane.xlu0 %3360  ;;  %v3824_v63 = vmul.f32 %v5168_v14, %v10907_v41  ;;  %v10909_v48 = vld [vmem:[#allocation234_spill] sm:$0xff]  ;;  %v3823_v11 = vmul.f32 %v5168_v14, %v10910_v15  ;;  %v10918_v14 = vld [vmem:[#allocation45_spill] sm:$0xff] }
 0x403   : > { %5191 = vpow2.f32 %v3051_v22  ;;  %v3826_v3 = vmul.f32 %v5170_v42, %v10908_v24  ;;  %v2687_v10 = vsub.f32 %v10909_v48, %v8597_v0  ;;  %v3825_v54 = vmul.f32 %v5170_v42, %v10911_v35  ;;  %v10916_v24 = vld [vmem:[#allocation95_spill] sm:$0xff] }
 0x404   : > { %5193 = vpow2.f32 %v3053_v1  ;;  %v3055_v48 = vmul.f32 1.442695, %v2629_v59  ;;  %v2688_v15 = vsub.f32 %v10918_v14, %v8597_v0  ;;  %v10920_v1 = vld [vmem:[#allocation34_spill] sm:$0xff] }
 0x405   : > { %3444 = vadd.xlane.f32.xlu0 %v3443_v21  ;;  %v5172_v21 = vpop.eup %5171  ;;  %v3364_v2 = vpop.xlane.xlu1 %3363  ;;  %v4038_v50 = vpack.c.bf16 %v3826_v3, %v3824_v63  ;;  %v4037_v35 = vpack.c.bf16 %v3825_v54, %v3823_v11  ;;  %v10919_v63 = vld [vmem:[#allocation33_spill] sm:$0xff]  ;;  %5195 = vrcp.f32 %v3361_v52  ;;  %v2690_v59 = vsub.f32 %v10920_v1, %v8607_v26 }
 0x406   : > { %3447 = vadd.xlane.f32.xlu1 %v3446_v9  ;;  %v5174_v43 = vpop.eup %5173  ;;  %v3768_v34 = vmul.f32 %v5172_v21, %v10912_v20  ;;  %v10915_v9 = vld [vmem:[#allocation93_spill] sm:$0xff]  ;;  %v3277_v42 = vpop.xlane.xlu0 %3276  ;;  %5197 = vrcp.f32 %v3364_v2  ;;  %v3171_v0 = vmul.f32 1.442695, %v2687_v10  ;;  %v3452_v52 = vadd.f32 %v8409_v5, %v8404_v46  ;;  %v10923_v10 = vld [vmem:[#allocation220_spill] sm:$0xff] }
 0x407   : > { %v8642_v22 = vpop.eup %5175  ;;  %v3770_v55 = vmul.f32 %v5174_v43, %v10914_v29  ;;  %v3767_v41 = vmul.f32 %v5172_v21, %v10915_v9  ;;  %v3769_v45 = vmul.f32 %v5174_v43, %v10916_v24  ;;  %4186 = vmatprep.subr.bf16.mxu0 %v4038_v50  ;;  %v3057_v29 = vmul.f32 1.442695, %v2630_v12  ;;  %v10921_v9 = vld [vmem:[#allocation211_spill] sm:$0xff]  ;;  %v10922_v50 = vld [vmem:[#allocation216_spill] sm:$0xff] }
 0x408   : > { %10913 = vst [vmem:[#allocation182_spill] sm:$0xff] %v8642_v22  ;;  %v8647_v39 = vpop.eup %5177  ;;  %4187 = vmatpush1.bf16.xpose.msra.mxu0 %v4037_v35  ;;  %v2631_v24 = vsub.f32 %v10921_v9, %v8615_v56  ;;  %5199 = vrcp.f32 %v3277_v42  ;;  %v2632_v2 = vsub.f32 %v10922_v50, %v8615_v56  ;;  %v3177_v14 = vmul.f32 1.442695, %v2690_v59 }
 0x409   : > { %3534 = vadd.xlane.f32.xlu0 %v3533_v40  ;;  %10917 = vst [vmem:[#allocation161_spill] sm:$0xff] %v8647_v39  ;;  %v8651_v20 = vpop.eup %5179  ;;  %v2689_v40 = vsub.f32 %v10919_v63, %v8607_v26  ;;  %v4010_v3 = vpack.c.bf16 %v3770_v55, %v3768_v34  ;;  %v4009_v21 = vpack.c.bf16 %v3769_v45, %v3767_v41  ;;  %v3280_v11 = vpop.xlane.xlu1 %3279  ;;  %v3173_v45 = vmul.f32 1.442695, %v2688_v15  ;;  %v10925_v63 = vld [vmem:[#allocation222_spill] sm:$0xff] }
 0x40a   : > { %3537 = vadd.xlane.f32.xlu1 %v3536_v18  ;;  %v8655_v43 = vpop.eup %5181  ;;  %5201 = vrcp.f32 %v3280_v11  ;;  %v8669_v26 = vpop.xlane.xlu0 %2424  ;;  %v3539_v55 = vadd.f32 %v8421_v58, %v8414_v37  ;;  %v3059_v35 = vmul.f32 1.442695, %v2631_v24  ;;  %v3061_v42 = vmul.f32 1.442695, %v2632_v2 }
 0x40b   : > { %v8659_v54 = vpop.eup %5183  ;;  %4137 = vmatprep.subr.bf16.mxu1 %v4010_v3  ;;  %5203 = vpow2.f32 %v3055_v48  ;;  %v3175_v18 = vmul.f32 1.442695, %v2689_v40  ;;  %v3542_v48 = vadd.f32 %v8435_v7, %v8428_v4  ;;  %v2634_v40 = vsub.f32 %v10925_v63, %v8621_v44 }
 0x40c   : > { %v8665_v34 = vpop.eup %5185  ;;  %4138 = vmatpush1.bf16.xpose.msra.mxu1 %v4009_v21  ;;  %5205 = vpow2.f32 %v3057_v29  ;;  %v3455_v29 = vadd.f32 %v8449_v16, %v8442_v60  ;;  %v3548_v9 = vadd.f32 %v8501_v8, %v8496_v19  ;;  %v10933_v8 = vld [vmem:[#allocation80_spill] sm:$0xff] }
 0x40d   : > { %3450 = vadd.xlane.f32.xlu0 %v3449_v33  ;;  %v8671_v12 = vpop.eup %5187  ;;  %v2633_v33 = vsub.f32 %v10923_v10, %v8621_v44  ;;  %v8679_v56 = vpop.xlane.xlu1 %2427  ;;  %5207 = vpow2.f32 %v3171_v0  ;;  %v3458_v0 = vadd.f32 %v8482_v28, %v8461_v53  ;;  %v3545_v44 = vadd.f32 %v8491_v61, %v8487_v32 }
 0x40e   : > { %3453 = vadd.xlane.f32.xlu1 %v3452_v52  ;;  %v8677_v41 = vpop.eup %5189  ;;  %5209 = vpow2.f32 %v3173_v45  ;;  %v8687_v3 = vpop.xlane.xlu0 %2340  ;;  %v3065_v52 = vmul.f32 1.442695, %v2634_v40  ;;  %v10927_v45 = vld [vmem:[#allocation50_spill] sm:$0xff] }
 0x40f   : > { %v8681_v15 = vpop.eup %5191  ;;  %5211 = vpow2.f32 %v3175_v18  ;;  %v3063_v21 = vmul.f32 1.442695, %v2633_v33  ;;  %v2691_v50 = vsub.f32 %v10927_v45, %v8669_v26  ;;  %v3461_v18 = vadd.f32 %v8519_v25, %v8510_v51  ;;  %v10928_v33 = vld [vmem:[#allocation54_spill] sm:$0xff]  ;;  %v10932_v45 = vld [vmem:[#allocation99_spill] sm:$0xff]  ;;  %v10934_v51 = vld [vmem:[#allocation257_spill] sm:$0xff] }
 0x410   : > { %10924 = vst [vmem:[#allocation173_spill] sm:$0xff] %v8681_v15  ;;  %v8691_v1 = vpop.eup %5193  ;;  %5213 = vpow2.f32 %v3177_v14  ;;  %v10929_v14 = vld [vmem:[#allocation101_spill] sm:$0xff] }
 0x411   : > { %3540 = vadd.xlane.f32.xlu0 %v3539_v55  ;;  %10926 = vst [vmem:[#allocation232_spill] sm:$0xff] %v8691_v1  ;;  %v8693_v59 = vpop.xlane.xlu1 %2343  ;;  %v5196_v11 = vpop.eup %5195  ;;  %5215 = vpow2.f32 %v3059_v35  ;;  %v2692_v55 = vsub.f32 %v10928_v33, %v8669_v26  ;;  %v10936_v26 = vld [vmem:[#allocation56_spill] sm:$0xff]  ;;  %v10937_v33 = vld [vmem:[#allocation255_spill] sm:$0xff] }
 0x412   : > { %3543 = vadd.xlane.f32.xlu1 %v3542_v48  ;;  %v5198_v24 = vpop.eup %5197  ;;  %5217 = vpow2.f32 %v3061_v42  ;;  %v3367_v2 = vpop.xlane.xlu0 %3366  ;;  %v3828_v35 = vmul.f32 %v5196_v11, %v10929_v14  ;;  %v10930_v48 = vld [vmem:[#allocation84_spill] sm:$0xff]  ;;  %v10931_v42 = vld [vmem:[#allocation71_spill] sm:$0xff]  ;;  %v3827_v19 = vmul.f32 %v5196_v11, %v10932_v45 }
 0x413   : > { %v5200_v10 = vpop.eup %5199  ;;  %5219 = vpow2.f32 %v3063_v21  ;;  %v3830_v63 = vmul.f32 %v5198_v24, %v10930_v48  ;;  %v2693_v40 = vsub.f32 %v10931_v42, %v8679_v56  ;;  %v3829_v61 = vmul.f32 %v5198_v24, %v10933_v8  ;;  %v10938_v48 = vld [vmem:[#allocation259_spill] sm:$0xff] }
 0x414   : > { %v3772_v25 = vmul.f32 %v5200_v10, %v10934_v51  ;;  %v3771_v14 = vmul.f32 %v5200_v10, %v10937_v33  ;;  %5221 = vpow2.f32 %v3065_v52  ;;  %v3179_v42 = vmul.f32 1.442695, %v2691_v50  ;;  %v10940_v11 = vld [vmem:[#allocation51_spill] sm:$0xff]  ;;  %v10946_v33 = vld [vmem:[#allocation229_spill] sm:$0xff] }
 0x415   : > { %3456 = vadd.xlane.f32.xlu0 %v3455_v29  ;;  %v5202_v29 = vpop.eup %5201  ;;  %v3370_v32 = vpop.xlane.xlu1 %3369  ;;  %v4040_v53 = vpack.c.bf16 %v3830_v63, %v3828_v35  ;;  %v2694_v45 = vsub.f32 %v10940_v11, %v8679_v56  ;;  %v4039_v8 = vpack.c.bf16 %v3829_v61, %v3827_v19  ;;  %v10942_v35 = vld [vmem:[#allocation224_spill] sm:$0xff]  ;;  %5223 = vrcp.f32 %v3367_v2  ;;  %v10944_v52 = vld [vmem:[#allocation227_spill] sm:$0xff] }
 0x416   : > { %3459 = vadd.xlane.f32.xlu1 %v3458_v0  ;;  %v8714_v21 = vpop.eup %5203  ;;  %v3774_v0 = vmul.f32 %v5202_v29, %v10936_v26  ;;  %v3773_v60 = vmul.f32 %v5202_v29, %v10938_v48  ;;  %v3283_v24 = vpop.xlane.xlu0 %3282  ;;  %v3181_v26 = vmul.f32 1.442695, %v2692_v55  ;;  %v2636_v50 = vsub.f32 %v10944_v52, %v8687_v3 }
 0x417   : > { %10935 = vst [vmem:[#allocation43_spill] sm:$0xff] %v8714_v21  ;;  %v8719_v28 = vpop.eup %5205  ;;  %4188 = vmatprep.subr.bf16.mxu0 %v4040_v53  ;;  %5225 = vrcp.f32 %v3370_v32  ;;  %v3183_v56 = vmul.f32 1.442695, %v2693_v40  ;;  %v2637_v48 = vsub.f32 %v10946_v33, %v8693_v59  ;;  %v10949_v40 = vld [vmem:[#allocation243_spill] sm:$0xff]  ;;  %v3557_v33 = vadd.f32 %v8605_v31, %v8599_v62  ;;  %v10958_v31 = vld [vmem:[#allocation88_spill] sm:$0xff] }
 0x418   : > { %10939 = vst [vmem:[#allocation230_spill] sm:$0xff] %v8719_v28  ;;  %v8723_v51 = vpop.eup %5207  ;;  %v4012_v10 = vpack.c.bf16 %v3774_v0, %v3772_v25  ;;  %v4011_v63 = vpack.c.bf16 %v3773_v60, %v3771_v14  ;;  %4189 = vmatpush1.bf16.xpose.msra.mxu0 %v4039_v8  ;;  %5227 = vrcp.f32 %v3283_v24  ;;  %v3464_v60 = vadd.f32 %v8535_v17, %v8528_v47 }
 0x419   : > { %3546 = vadd.xlane.f32.xlu0 %v3545_v44  ;;  %10941 = vst [vmem:[#allocation233_spill] sm:$0xff] %v8723_v51  ;;  %v2635_v44 = vsub.f32 %v10942_v35, %v8687_v3  ;;  %v8727_v29 = vpop.eup %5209  ;;  %v3286_v61 = vpop.xlane.xlu1 %3285  ;;  %v3185_v25 = vmul.f32 1.442695, %v2694_v45  ;;  %v10948_v3 = vld [vmem:[#allocation231_spill] sm:$0xff]  ;;  %v3069_v11 = vmul.f32 1.442695, %v2636_v50 }
 0x41a   : > { %3549 = vadd.xlane.f32.xlu1 %v3548_v9  ;;  %10943 = vst [vmem:[#allocation237_spill] sm:$0xff] %v8727_v29  ;;  %v8731_v19 = vpop.eup %5211  ;;  %4139 = vmatprep.subr.bf16.mxu1 %v4012_v10  ;;  %v2638_v32 = vsub.f32 %v10948_v3, %v8693_v59  ;;  %5229 = vrcp.f32 %v3286_v61  ;;  %v2431_v9 = vpop.xlane.xlu0 %2430  ;;  %v3071_v59 = vmul.f32 1.442695, %v2637_v48  ;;  %v10950_v35 = vld [vmem:[#allocation39_spill] sm:$0xff]  ;;  %v10951_v48 = vld [vmem:[#allocation181_spill] sm:$0xff] }
 0x41b   : > { %10945 = vst [vmem:[#allocation65_spill] sm:$0xff] %v8731_v19  ;;  %v8737_v53 = vpop.eup %5213  ;;  %4140 = vmatpush1.bf16.xpose.msra.mxu1 %v4011_v63  ;;  %5231 = vpow2.f32 %v3179_v42  ;;  %v3067_v55 = vmul.f32 1.442695, %v2635_v44  ;;  %v2695_v0 = vsub.f32 %v10949_v40, %v2431_v9  ;;  %v3554_v42 = vadd.f32 %v8575_v6, %v8570_v23 }
 0x41c   : > { %10947 = vst [vmem:[#allocation236_spill] sm:$0xff] %v8737_v53  ;;  %v8741_v2 = vpop.eup %5215  ;;  %5233 = vpow2.f32 %v3181_v26  ;;  %v3073_v24 = vmul.f32 1.442695, %v2638_v32  ;;  %v2696_v44 = vsub.f32 %v10950_v35, %v2431_v9  ;;  %v3467_v26 = vadd.f32 %v8583_v27, %v8579_v36  ;;  %v10952_v32 = vld [vmem:[#allocation40_spill] sm:$0xff]  ;;  %v10955_v35 = vld [vmem:[#allocation90_spill] sm:$0xff]  ;;  %v10959_v36 = vld [vmem:[#allocation111_spill] sm:$0xff] }
 0x41d   : > { %3462 = vadd.xlane.f32.xlu0 %v3461_v18  ;;  %v3551_v18 = vadd.f32 %v8547_v13, %v8539_v30  ;;  %v8746_v14 = vpop.eup %5217  ;;  %v2434_v45 = vpop.xlane.xlu1 %2433  ;;  %5235 = vpow2.f32 %v3183_v56  ;;  %v3187_v63 = vmul.f32 1.442695, %v2695_v0  ;;  %v3470_v56 = vadd.f32 %v8593_v49, %v8587_v57 }
 0x41e   : > { %3465 = vadd.xlane.f32.xlu1 %v3464_v60  ;;  %v8748_v8 = vpop.eup %5219  ;;  %5237 = vpow2.f32 %v3185_v25  ;;  %v8753_v10 = vpop.xlane.xlu0 %2346  ;;  %v3560_v60 = vadd.f32 %v10951_v48, %v8609_v38  ;;  %v3189_v3 = vmul.f32 1.442695, %v2696_v44  ;;  %v2697_v9 = vsub.f32 %v10952_v32, %v2434_v45  ;;  %v10956_v38 = vld [vmem:[#allocation235_spill] sm:$0xff]  ;;  %v10957_v48 = vld [vmem:[#allocation58_spill] sm:$0xff] }
 0x41f   : > { %5239 = vpow2.f32 %v3067_v55  ;;  %v8757_v52 = vpop.eup %5221  ;;  %v3473_v40 = vadd.f32 %v8647_v39, %v8642_v22 }
 0x420   : > { %5241 = vpow2.f32 %v3069_v11  ;;  %v5224_v61 = vpop.eup %5223 }
 0x421   : > { %3552 = vadd.xlane.f32.xlu0 %v3551_v18  ;;  %v8759_v50 = vpop.xlane.xlu1 %2349  ;;  %5243 = vpow2.f32 %v3071_v59  ;;  %v5226_v25 = vpop.eup %5225  ;;  %v10953_v18 = vld [vmem:[#allocation248_spill] sm:$0xff]  ;;  %v3831_v32 = vmul.f32 %v5224_v61, %v10957_v48 }
 0x422   : > { %3555 = vadd.xlane.f32.xlu1 %v3554_v42  ;;  %5245 = vpow2.f32 %v3073_v24  ;;  %v3373_v55 = vpop.xlane.xlu0 %3372  ;;  %v5228_v0 = vpop.eup %5227  ;;  %v2698_v11 = vsub.f32 %v10953_v18, %v2434_v45  ;;  %v10954_v59 = vld [vmem:[#allocation60_spill] sm:$0xff]  ;;  %v2639_v24 = vsub.f32 %v10956_v38, %v8753_v10  ;;  %v3833_v57 = vmul.f32 %v5226_v25, %v10958_v31  ;;  %v10962_v18 = vld [vmem:[#allocation81_spill] sm:$0xff] }
 0x423   : > { %5247 = vpow2.f32 %v3187_v63  ;;  %v3832_v42 = vmul.f32 %v5224_v61, %v10954_v59  ;;  %v3776_v22 = vmul.f32 %v5228_v0, %v10959_v36  ;;  %v10961_v45 = vld [vmem:[#allocation64_spill] sm:$0xff]  ;;  %v3775_v59 = vmul.f32 %v5228_v0, %v10962_v18  ;;  %v10964_v61 = vld [vmem:[#allocation63_spill] sm:$0xff] }
 0x424   : > { %v5230_v62 = vpop.eup %5229  ;;  %5249 = vpow2.f32 %v3189_v3  ;;  %v3191_v38 = vmul.f32 1.442695, %v2697_v9  ;;  %v2640_v48 = vsub.f32 %v10964_v61, %v8753_v10  ;;  %v4041_v31 = vpack.c.bf16 %v3833_v57, %v3831_v32  ;;  %v10966_v3 = vld [vmem:[#allocation35_spill] sm:$0xff] }
 0x425   : > { %3468 = vadd.xlane.f32.xlu0 %v3467_v26  ;;  %v3834_v26 = vmul.f32 %v5226_v25, %v10955_v35  ;;  %v3376_v44 = vpop.xlane.xlu1 %3375  ;;  %v8778_v39 = vpop.eup %5231  ;;  %v10963_v35 = vld [vmem:[#allocation113_spill] sm:$0xff]  ;;  %5251 = vrcp.f32 %v3373_v55  ;;  %v2642_v9 = vsub.f32 %v10966_v3, %v8759_v50  ;;  %v3075_v32 = vmul.f32 1.442695, %v2639_v24 }
 0x426   : > { %3471 = vadd.xlane.f32.xlu1 %v3470_v56  ;;  %10960 = vst [vmem:[#allocation238_spill] sm:$0xff] %v8778_v39  ;;  %v3778_v56 = vmul.f32 %v5230_v62, %v10961_v45  ;;  %v3777_v49 = vmul.f32 %v5230_v62, %v10963_v35  ;;  %v8783_v27 = vpop.eup %5233  ;;  %v3289_v25 = vpop.xlane.xlu0 %3288  ;;  %v3193_v45 = vmul.f32 1.442695, %v2698_v11  ;;  %5253 = vrcp.f32 %v3376_v44  ;;  %v10970_v24 = vld [vmem:[#allocation41_spill] sm:$0xff] }
 0x427   : > { %v4042_v63 = vpack.c.bf16 %v3834_v26, %v3832_v42  ;;  %v8787_v36 = vpop.eup %5235  ;;  %v10965_v42 = vld [vmem:[#allocation67_spill] sm:$0xff]  ;;  %5255 = vrcp.f32 %v3289_v25  ;;  %v3566_v61 = vadd.f32 %v8677_v41, %v8671_v12  ;;  %v10974_v25 = vld [vmem:[#allocation44_spill] sm:$0xff] }
 0x428   : > { %v4014_v0 = vpack.c.bf16 %v3778_v56, %v3776_v22  ;;  %v4013_v26 = vpack.c.bf16 %v3777_v49, %v3775_v59  ;;  %v8791_v62 = vpop.eup %5237  ;;  %v3077_v49 = vmul.f32 1.442695, %v2640_v48  ;;  %v10971_v56 = vld [vmem:[#allocation42_spill] sm:$0xff]  ;;  %v3081_v59 = vmul.f32 1.442695, %v2642_v9 }
 0x429   : > { %3558 = vadd.xlane.f32.xlu0 %v3557_v33  ;;  %v2641_v33 = vsub.f32 %v10965_v42, %v8759_v50  ;;  %4190 = vmatprep.subr.bf16.mxu0 %v4042_v63  ;;  %v3292_v57 = vpop.xlane.xlu1 %3291  ;;  %v8795_v10 = vpop.eup %5239  ;;  %v3563_v50 = vadd.f32 %v8665_v34, %v8659_v54  ;;  %v10975_v42 = vld [vmem:[#allocation46_spill] sm:$0xff] }
 0x42a   : > { %3561 = vadd.xlane.f32.xlu1 %v3560_v60  ;;  %4191 = vmatpush1.bf16.xpose.msra.mxu0 %v4041_v31  ;;  %10967 = vst [vmem:[#allocation162_spill] sm:$0xff] %v8795_v10  ;;  %v3476_v60 = vadd.f32 %v8655_v43, %v8651_v20  ;;  %v8799_v22 = vpop.eup %5241  ;;  %5257 = vrcp.f32 %v3292_v57  ;;  %v2437_v55 = vpop.xlane.xlu0 %2436  ;;  %v3479_v57 = vadd.f32 %v8691_v1, %v8681_v15 }
 0x42b   : > { %4141 = vmatprep.subr.bf16.mxu1 %v4014_v0  ;;  %10968 = vst [vmem:[#allocation239_spill] sm:$0xff] %v8799_v22  ;;  %v8803_v11 = vpop.eup %5243  ;;  %5259 = vpow2.f32 %v3191_v38  ;;  %v3079_v44 = vmul.f32 1.442695, %v2641_v33  ;;  %v2699_v63 = vsub.f32 %v10970_v24, %v2437_v55 }
 0x42c   : > { %4142 = vmatpush1.bf16.xpose.msra.mxu1 %v4013_v26  ;;  %10969 = vst [vmem:[#allocation48_spill] sm:$0xff] %v8803_v11  ;;  %v8807_v18 = vpop.eup %5245  ;;  %5261 = vpow2.f32 %v3193_v45  ;;  %v10976_v45 = vld [vmem:[#allocation47_spill] sm:$0xff] }
 0x42d   : > { %3474 = vadd.xlane.f32.xlu0 %v3473_v40  ;;  %v2700_v40 = vsub.f32 %v10971_v56, %v2437_v55  ;;  %10972 = vst [vmem:[#allocation69_spill] sm:$0xff] %v8807_v18  ;;  %v8811_v48 = vpop.eup %5247  ;;  %5263 = vpow2.f32 %v3075_v32  ;;  %v3195_v31 = vmul.f32 1.442695, %v2699_v63  ;;  %v10978_v63 = vld [vmem:[#allocation240_spill] sm:$0xff] }
 0x42e   : > { %3477 = vadd.xlane.f32.xlu1 %v3476_v60  ;;  %v2440_v35 = vpop.xlane.xlu1 %2439  ;;  %10973 = vst [vmem:[#allocation36_spill] sm:$0xff] %v8811_v48  ;;  %5265 = vpow2.f32 %v3077_v49  ;;  %v8818_v60 = vpop.eup %5249  ;;  %v3482_v49 = vadd.f32 %v8719_v28, %v8714_v21 }
 0x42f   : > { %v2701_v38 = vsub.f32 %v10974_v25, %v2440_v35  ;;  %v2702_v33 = vsub.f32 %v10975_v42, %v2440_v35  ;;  %v3197_v0 = vmul.f32 1.442695, %v2700_v40  ;;  %5267 = vpow2.f32 %v3079_v44  ;;  %10977 = vst [vmem:[#allocation49_spill] sm:$0xff] %v8818_v60  ;;  %v5252_v24 = vpop.eup %5251  ;;  %v10979_v25 = vld [vmem:[#allocation53_spill] sm:$0xff] }
 0x430   : > { %v2353_v26 = vpop.xlane.xlu0 %2352  ;;  %5269 = vpow2.f32 %v3081_v59  ;;  %v5254_v44 = vpop.eup %5253  ;;  %v3572_v59 = vadd.f32 %v8737_v53, %v8731_v19 }
 0x431   : > { %3564 = vadd.xlane.f32.xlu0 %v3563_v50  ;;  %v3199_v3 = vmul.f32 1.442695, %v2701_v38  ;;  %v2643_v9 = vsub.f32 %v10976_v45, %v2353_v26  ;;  %v3201_v32 = vmul.f32 1.442695, %v2702_v33  ;;  %5271 = vpow2.f32 %v3195_v31  ;;  %v10980_v38 = vld [vmem:[#allocation66_spill] sm:$0xff]  ;;  %v10981_v33 = vld [vmem:[#allocation61_spill] sm:$0xff] }
 0x432   : > { %3567 = vadd.xlane.f32.xlu1 %v3566_v61  ;;  %v2356_v55 = vpop.xlane.xlu1 %2355  ;;  %v3569_v50 = vadd.f32 %v8727_v29, %v8723_v51  ;;  %5273 = vpow2.f32 %v3197_v0  ;;  %v2644_v56 = vsub.f32 %v10978_v63, %v2353_v26  ;;  %v5256_v61 = vpop.eup %5255  ;;  %v3836_v42 = vmul.f32 %v5252_v24, %v10980_v38  ;;  %v10982_v0 = vld [vmem:[#allocation117_spill] sm:$0xff]  ;;  %v10983_v26 = vld [vmem:[#allocation68_spill] sm:$0xff]  ;;  %v10984_v63 = vld [vmem:[#allocation70_spill] sm:$0xff] }
 0x433   : > { %v3083_v40 = vmul.f32 1.442695, %v2643_v9  ;;  %5275 = vpow2.f32 %v3199_v3  ;;  %v2645_v31 = vsub.f32 %v10979_v25, %v2356_v55  ;;  %v3838_v45 = vmul.f32 %v5254_v44, %v10981_v33  ;;  %v10986_v3 = vld [vmem:[#allocation87_spill] sm:$0xff]  ;;  %v10988_v38 = vld [vmem:[#allocation98_spill] sm:$0xff] }
 0x434   : > { %v3379_v35 = vpop.xlane.xlu0 %3378  ;;  %5277 = vpow2.f32 %v3201_v32  ;;  %v3835_v29 = vmul.f32 %v5252_v24, %v10982_v0  ;;  %v3837_v9 = vmul.f32 %v5254_v44, %v10983_v26  ;;  %v3780_v21 = vmul.f32 %v5256_v61, %v10984_v63  ;;  %v10990_v32 = vld [vmem:[#allocation75_spill] sm:$0xff] }
 0x435   : > { %3480 = vadd.xlane.f32.xlu0 %v3479_v57  ;;  %v5258_v57 = vpop.eup %5257  ;;  %v4044_v19 = vpack.c.bf16 %v3838_v45, %v3836_v42  ;;  %5279 = vpow2.f32 %v3083_v40  ;;  %v2646_v1 = vsub.f32 %v10990_v32, %v2356_v55  ;;  %v3485_v44 = vadd.f32 %v8746_v14, %v8741_v2 }
 0x436   : > { %3483 = vadd.xlane.f32.xlu1 %v3482_v49  ;;  %v3382_v51 = vpop.xlane.xlu1 %3381  ;;  %v8833_v15 = vpop.eup %5259  ;;  %v3782_v25 = vmul.f32 %v5258_v57, %v10986_v3  ;;  %v10987_v49 = vld [vmem:[#allocation96_spill] sm:$0xff]  ;;  %v3781_v28 = vmul.f32 %v5258_v57, %v10988_v38  ;;  %v4043_v24 = vpack.c.bf16 %v3837_v9, %v3835_v29  ;;  %v3085_v42 = vmul.f32 1.442695, %v2644_v56  ;;  %v10993_v38 = vld [vmem:[#allocation78_spill] sm:$0xff] }
 0x437   : > { %10985 = vst [vmem:[#allocation73_spill] sm:$0xff] %v8833_v15  ;;  %v3779_v53 = vmul.f32 %v5256_v61, %v10987_v49  ;;  %v8838_v33 = vpop.eup %5261  ;;  %5281 = vrcp.f32 %v3379_v35  ;;  %4192 = vmatprep.subr.bf16.mxu0 %v4044_v19  ;;  %v3087_v57 = vmul.f32 1.442695, %v2645_v31  ;;  %v3488_v29 = vadd.f32 %v8757_v52, %v8748_v8  ;;  %v10992_v35 = vld [vmem:[#allocation76_spill] sm:$0xff] }
 0x438   : > { %10989 = vst [vmem:[#allocation52_spill] sm:$0xff] %v8838_v33  ;;  %v3295_v0 = vpop.xlane.xlu0 %3294  ;;  %v8843_v26 = vpop.eup %5263  ;;  %5283 = vrcp.f32 %v3382_v51  ;;  %4193 = vmatpush1.bf16.xpose.msra.mxu0 %v4043_v24  ;;  %v3089_v19 = vmul.f32 1.442695, %v2646_v1  ;;  %v10991_v51 = vld [vmem:[#allocation72_spill] sm:$0xff]  ;;  %v3575_v31 = vadd.f32 %v8783_v27, %v8778_v39  ;;  %v3578_v1 = vadd.f32 %v8791_v62, %v8787_v36  ;;  %v10994_v24 = vld [vmem:[#allocation97_spill] sm:$0xff] }
 0x439   : > { %3570 = vadd.xlane.f32.xlu0 %v3569_v50  ;;  %v4016_v50 = vpack.c.bf16 %v3782_v25, %v3780_v21  ;;  %v4015_v61 = vpack.c.bf16 %v3781_v28, %v3779_v53  ;;  %v8845_v45 = vpop.eup %5265  ;;  %5285 = vrcp.f32 %v3295_v0 }
 0x43a   : > { %3573 = vadd.xlane.f32.xlu1 %v3572_v59  ;;  %v3298_v40 = vpop.xlane.xlu1 %3297  ;;  %v8847_v55 = vpop.eup %5267 }
 0x43b   : > { %4143 = vmatprep.subr.bf16.mxu1 %v4016_v50  ;;  %v8851_v56 = vpop.eup %5269  ;;  %5287 = vrcp.f32 %v3298_v40  ;;  %v3491_v50 = vadd.f32 %v8799_v22, %v8795_v10  ;;  %v10995_v40 = vld [vmem:[#allocation244_spill] sm:$0xff] }
 0x43c   : > { %4144 = vmatpush1.bf16.xpose.msra.mxu1 %v4015_v61  ;;  %v2443_v28 = vpop.xlane.xlu0 %2442  ;;  %v8853_v21 = vpop.eup %5271  ;;  %5289 = vpow2.f32 %v3085_v42 }
 0x43d   : > { %3486 = vadd.xlane.f32.xlu0 %v3485_v44  ;;  %v2703_v53 = vsub.f32 %v10991_v51, %v2443_v28  ;;  %v2704_v59 = vsub.f32 %v10992_v35, %v2443_v28  ;;  %v8859_v9 = vpop.eup %5273  ;;  %5291 = vpow2.f32 %v3087_v57  ;;  %v10997_v51 = vld [vmem:[#allocation79_spill] sm:$0xff] }
 0x43e   : > { %3489 = vadd.xlane.f32.xlu1 %v3488_v29  ;;  %v8863_v3 = vpop.eup %5275  ;;  %5293 = vpow2.f32 %v3089_v19 }
 0x43f   : > { %v2446_v63 = vpop.xlane.xlu1 %2445  ;;  %v3203_v25 = vmul.f32 1.442695, %v2703_v53  ;;  %v3205_v49 = vmul.f32 1.442695, %v2704_v59  ;;  %v8867_v44 = vpop.eup %5277  ;;  %v3494_v59 = vadd.f32 %v8807_v18, %v8803_v11 }
 0x440   : > { %v2705_v32 = vsub.f32 %v10993_v38, %v2446_v63  ;;  %v2706_v0 = vsub.f32 %v10994_v24, %v2446_v63  ;;  %v8872_v28 = vpop.eup %5279  ;;  %v10998_v63 = vld [vmem:[#allocation55_spill] sm:$0xff]  ;;  %v10999_v24 = vld [vmem:[#allocation57_spill] sm:$0xff] }
 0x441   : > { %3576 = vadd.xlane.f32.xlu0 %v3575_v31  ;;  %v2359_v42 = vpop.xlane.xlu0 %2358  ;;  %5295 = vpow2.f32 %v3203_v25  ;;  %10996 = vst [vmem:[#allocation241_spill] sm:$0xff] %v8872_v28  ;;  %v5282_v19 = vpop.eup %5281  ;;  %v3581_v25 = vadd.f32 %v8818_v60, %v8811_v48  ;;  %v11002_v60 = vld [vmem:[#allocation100_spill] sm:$0xff] }
 0x442   : > { %v3207_v61 = vmul.f32 1.442695, %v2705_v32  ;;  %v3209_v57 = vmul.f32 1.442695, %v2706_v0  ;;  %v2647_v29 = vsub.f32 %v10995_v40, %v2359_v42  ;;  %3579 = vadd.xlane.f32.xlu1 %v3578_v1  ;;  %5297 = vpow2.f32 %v3205_v49  ;;  %v5284_v32 = vpop.eup %5283 }
 0x443   : > { %v2648_v53 = vsub.f32 %v10997_v51, %v2359_v42  ;;  %v2362_v35 = vpop.xlane.xlu1 %2361  ;;  %v3584_v42 = vadd.f32 %v8838_v33, %v8833_v15  ;;  %v5286_v40 = vpop.eup %5285 }
 0x444   : > { %5299 = vpow2.f32 %v3207_v61  ;;  %v3091_v31 = vmul.f32 1.442695, %v2647_v29  ;;  %v2649_v38 = vsub.f32 %v10998_v63, %v2362_v35  ;;  %v2650_v49 = vsub.f32 %v10999_v24, %v2362_v35  ;;  %v11000_v61 = vld [vmem:[#allocation102_spill] sm:$0xff]  ;;  %v11001_v63 = vld [vmem:[#allocation121_spill] sm:$0xff]  ;;  %v11004_v35 = vld [vmem:[#allocation124_spill] sm:$0xff] }
 0x445   : > { %3492 = vadd.xlane.f32.xlu0 %v3491_v50  ;;  %5301 = vpow2.f32 %v3209_v57  ;;  %v3093_v1 = vmul.f32 1.442695, %v2648_v53  ;;  %v3385_v0 = vpop.xlane.xlu0 %3384  ;;  %v3840_v29 = vmul.f32 %v5282_v19, %v11000_v61  ;;  %v3842_v50 = vmul.f32 %v5284_v32, %v11001_v63  ;;  %v5288_v11 = vpop.eup %5287  ;;  %v11003_v53 = vld [vmem:[#allocation119_spill] sm:$0xff]  ;;  %v11007_v61 = vld [vmem:[#allocation104_spill] sm:$0xff] }
 0x446   : > { %5303 = vpow2.f32 %v3091_v31  ;;  %v3095_v51 = vmul.f32 1.442695, %v2649_v38  ;;  %3495 = vadd.xlane.f32.xlu1 %v3494_v59  ;;  %v3839_v57 = vmul.f32 %v5282_v19, %v11002_v60  ;;  %v3841_v10 = vmul.f32 %v5284_v32, %v11003_v53  ;;  %v8888_v18 = vpop.eup %5289  ;;  %v11005_v31 = vld [vmem:[#allocation106_spill] sm:$0xff] }
 0x447   : > { %5305 = vpow2.f32 %v3093_v1  ;;  %v3388_v48 = vpop.xlane.xlu1 %3387  ;;  %v3784_v24 = vmul.f32 %v5286_v40, %v11004_v35  ;;  %v4046_v15 = vpack.c.bf16 %v3842_v50, %v3840_v29  ;;  %v3786_v38 = vmul.f32 %v5288_v11, %v11005_v31  ;;  %v11006_v59 = vld [vmem:[#allocation122_spill] sm:$0xff]  ;;  %v8893_v63 = vpop.eup %5291  ;;  %v11016_v31 = vld [vmem:[#allocation256_spill] sm:$0xff] }
 0x448   : > { %v3783_v33 = vmul.f32 %v5286_v40, %v11006_v59  ;;  %v3785_v22 = vmul.f32 %v5288_v11, %v11007_v61  ;;  %11008 = vst [vmem:[#allocation210_spill] sm:$0xff] %v8893_v63  ;;  %5307 = vpow2.f32 %v3095_v51  ;;  %v4045_v1 = vpack.c.bf16 %v3841_v10, %v3839_v57  ;;  %v8897_v29 = vpop.eup %5293  ;;  %v11017_v59 = vld [vmem:[#allocation258_spill] sm:$0xff] }
 0x449   : > { %3582 = vadd.xlane.f32.xlu0 %v3581_v25  ;;  %v3301_v39 = vpop.xlane.xlu0 %3300  ;;  %v3497_v60 = vadd.f32 %v8845_v45, %v8843_v26  ;;  %v3097_v19 = vmul.f32 1.442695, %v2650_v49  ;;  %5309 = vrcp.f32 %v3385_v0  ;;  %4194 = vmatprep.subr.bf16.mxu0 %v4046_v15  ;;  %v4018_v32 = vpack.c.bf16 %v3786_v38, %v3784_v24  ;;  %11009 = vst [vmem:[#allocation213_spill] sm:$0xff] %v8897_v29 }
 0x44a   : > { %3585 = vadd.xlane.f32.xlu1 %v3584_v42  ;;  %v4017_v25 = vpack.c.bf16 %v3785_v22, %v3783_v33  ;;  %5311 = vrcp.f32 %v3388_v48  ;;  %4195 = vmatpush1.bf16.xpose.msra.mxu0 %v4045_v1  ;;  %v3500_v10 = vadd.f32 %v8851_v56, %v8847_v55  ;;  %v11013_v22 = vld [vmem:[#allocation82_spill] sm:$0xff]  ;;  %v3590_v57 = vadd.f32 %v8867_v44, %v8863_v3 }
 0x44b   : > { %v3304_v40 = vpop.xlane.xlu1 %3303  ;;  %v8899_v11 = vpop.eup %5295  ;;  %5313 = vrcp.f32 %v3301_v39  ;;  %4145 = vmatprep.subr.bf16.mxu1 %v4018_v32  ;;  %v11014_v33 = vld [vmem:[#allocation254_spill] sm:$0xff]  ;;  %v3587_v39 = vadd.f32 %v8859_v9, %v8853_v21 }
 0x44c   : > { %11010 = vst [vmem:[#allocation215_spill] sm:$0xff] %v8899_v11  ;;  %v8903_v51 = vpop.eup %5297  ;;  %5315 = vrcp.f32 %v3304_v40  ;;  %4146 = vmatpush1.bf16.xpose.msra.mxu1 %v4017_v25  ;;  %v3503_v25 = vadd.f32 %v8888_v18, %v8872_v28 }
 0x44d   : > { %3498 = vadd.xlane.f32.xlu0 %v3497_v60  ;;  %11011 = vst [vmem:[#allocation218_spill] sm:$0xff] %v8903_v51  ;;  %v2449_v15 = vpop.xlane.xlu0 %2448  ;;  %5317 = vpow2.f32 %v3097_v19 }
 0x44e   : > { %v8905_v49 = vpop.eup %5299  ;;  %v2707_v48 = vsub.f32 %v11013_v22, %v2449_v15  ;;  %v2708_v0 = vsub.f32 %v11014_v33, %v2449_v15  ;;  %3501 = vadd.xlane.f32.xlu1 %v3500_v10  ;;  %v3506_v22 = vadd.f32 %v8897_v29, %v8893_v63  ;;  %v11022_v63 = vld [vmem:[#allocation132_spill] sm:$0xff] }
 0x44f   : > { %11012 = vst [vmem:[#allocation187_spill] sm:$0xff] %v8905_v49  ;;  %v8911_v42 = vpop.eup %5301  ;;  %v2452_v50 = vpop.xlane.xlu1 %2451 }
 0x450   : > { %11015 = vst [vmem:[#allocation192_spill] sm:$0xff] %v8911_v42  ;;  %v8915_v53 = vpop.eup %5303  ;;  %v3211_v35 = vmul.f32 1.442695, %v2707_v48  ;;  %v3213_v24 = vmul.f32 1.442695, %v2708_v0  ;;  %v2709_v38 = vsub.f32 %v11016_v31, %v2452_v50  ;;  %v2710_v61 = vsub.f32 %v11017_v59, %v2452_v50  ;;  %v11018_v0 = vld [vmem:[#allocation110_spill] sm:$0xff] }
 0x451   : > { %3588 = vadd.xlane.f32.xlu0 %v3587_v39  ;;  %v8919_v1 = vpop.eup %5305  ;;  %v3391_v60 = vpop.xlane.xlu0 %3390  ;;  %v3593_v50 = vadd.f32 %v8903_v51, %v8899_v11  ;;  %v11020_v31 = vld [vmem:[#allocation108_spill] sm:$0xff]  ;;  %v11021_v59 = vld [vmem:[#allocation127_spill] sm:$0xff] }
 0x452   : > { %5319 = vpow2.f32 %v3211_v35  ;;  %v3215_v19 = vmul.f32 1.442695, %v2709_v38  ;;  %v3217_v32 = vmul.f32 1.442695, %v2710_v61  ;;  %3591 = vadd.xlane.f32.xlu1 %v3590_v57  ;;  %v8923_v40 = vpop.eup %5307  ;;  %v11019_v35 = vld [vmem:[#allocation129_spill] sm:$0xff]  ;;  %v3509_v51 = vadd.f32 %v8919_v1, %v8915_v53 }
 0x453   : > { %5321 = vpow2.f32 %v3213_v24  ;;  %v3394_v10 = vpop.xlane.xlu1 %3393  ;;  %v5310_v15 = vpop.eup %5309 }
 0x454   : > { %5323 = vpow2.f32 %v3215_v19  ;;  %v5312_v48 = vpop.eup %5311  ;;  %v3844_v39 = vmul.f32 %v5310_v15, %v11018_v0  ;;  %v3843_v38 = vmul.f32 %v5310_v15, %v11020_v31  ;;  %v11024_v31 = vld [vmem:[#allocation130_spill] sm:$0xff] }
 0x455   : > { %3504 = vadd.xlane.f32.xlu0 %v3503_v25  ;;  %5325 = vpow2.f32 %v3217_v32  ;;  %v3307_v33 = vpop.xlane.xlu0 %3306  ;;  %v5314_v57 = vpop.eup %5313  ;;  %v3846_v24 = vmul.f32 %v5312_v48, %v11019_v35  ;;  %v3845_v61 = vmul.f32 %v5312_v48, %v11021_v59  ;;  %v3596_v32 = vadd.f32 %v8911_v42, %v8905_v49  ;;  %v11025_v59 = vld [vmem:[#allocation112_spill] sm:$0xff]  ;;  %v11026_v49 = vld [vmem:[#allocation62_spill] sm:$0xff] }
 0x456   : > { %5327 = vrcp.f32 %v3391_v60  ;;  %3507 = vadd.xlane.f32.xlu1 %v3506_v22  ;;  %v5316_v19 = vpop.eup %5315  ;;  %v3788_v0 = vmul.f32 %v5314_v57, %v11022_v63  ;;  %v11023_v22 = vld [vmem:[#allocation114_spill] sm:$0xff]  ;;  %v3787_v48 = vmul.f32 %v5314_v57, %v11024_v31  ;;  %v11027_v42 = vld [vmem:[#allocation92_spill] sm:$0xff] }
 0x457   : > { %5329 = vrcp.f32 %v3394_v10  ;;  %v3310_v25 = vpop.xlane.xlu1 %3309  ;;  %v8936_v28 = vpop.eup %5317  ;;  %v4048_v11 = vpack.c.bf16 %v3846_v24, %v3844_v39  ;;  %v4047_v60 = vpack.c.bf16 %v3845_v61, %v3843_v38  ;;  %v3790_v35 = vmul.f32 %v5316_v19, %v11023_v22 }
 0x458   : > { %5331 = vrcp.f32 %v3307_v33  ;;  %v3789_v10 = vmul.f32 %v5316_v19, %v11025_v59  ;;  %v3512_v24 = vadd.f32 %v8936_v28, %v8923_v40  ;;  %v11029_v19 = vld [vmem:[#allocation247_spill] sm:$0xff] }
 0x459   : > { %3594 = vadd.xlane.f32.xlu0 %v3593_v50  ;;  %5333 = vrcp.f32 %v3310_v25  ;;  %4196 = vmatprep.subr.bf16.mxu0 %v4048_v11  ;;  %v4020_v33 = vpack.c.bf16 %v3790_v35, %v3788_v0  ;;  %v11030_v11 = vld [vmem:[#allocation85_spill] sm:$0xff] }
 0x45a   : > { %v2455_v15 = vpop.xlane.xlu0 %2454  ;;  %3597 = vadd.xlane.f32.xlu1 %v3596_v32  ;;  %4197 = vmatpush1.bf16.xpose.msra.mxu0 %v4047_v60  ;;  %v4019_v50 = vpack.c.bf16 %v3789_v10, %v3787_v48  ;;  %v11034_v10 = vld [vmem:[#allocation86_spill] sm:$0xff] }
 0x45b   : > { %v2711_v63 = vsub.f32 %v11026_v49, %v2455_v15  ;;  %v2712_v29 = vsub.f32 %v11027_v42, %v2455_v15  ;;  %v2458_v39 = vpop.xlane.xlu1 %2457  ;;  %4147 = vmatprep.subr.bf16.mxu1 %v4020_v33 }
 0x45c   : > { %v8947_v38 = vpop.eup %5319  ;;  %v2713_v25 = vsub.f32 %v11029_v19, %v2458_v39  ;;  %v2714_v22 = vsub.f32 %v11030_v11, %v2458_v39  ;;  %4148 = vmatpush1.bf16.xpose.msra.mxu1 %v4019_v50  ;;  %v11035_v39 = vld [vmem:[#allocation105_spill] sm:$0xff] }
 0x45d   : > { %11028 = vst [vmem:[#allocation37_spill] sm:$0xff] %v8947_v38  ;;  %v3219_v57 = vmul.f32 1.442695, %v2711_v63  ;;  %v3221_v61 = vmul.f32 1.442695, %v2712_v29  ;;  %3510 = vadd.xlane.f32.xlu0 %v3509_v51  ;;  %v8951_v49 = vpop.eup %5321 }
 0x45e   : > { %11031 = vst [vmem:[#allocation246_spill] sm:$0xff] %v8951_v49  ;;  %v3397_v42 = vpop.xlane.xlu0 %3396  ;;  %v8953_v32 = vpop.eup %5323  ;;  %v3223_v0 = vmul.f32 1.442695, %v2713_v25  ;;  %v3225_v60 = vmul.f32 1.442695, %v2714_v22  ;;  %3513 = vadd.xlane.f32.xlu1 %v3512_v24  ;;  %v3599_v35 = vadd.f32 %v8951_v49, %v8947_v38  ;;  %v11036_v24 = vld [vmem:[#allocation103_spill] sm:$0xff] }
 0x45f   : > { %11032 = vst [vmem:[#allocation196_spill] sm:$0xff] %v8953_v32  ;;  %5335 = vpow2.f32 %v3219_v57  ;;  %v8957_v29 = vpop.eup %5325  ;;  %v3400_v15 = vpop.xlane.xlu1 %3399  ;;  %v11038_v22 = vld [vmem:[#allocation77_spill] sm:$0xff]  ;;  %v11055_v49 = vld [vmem:[#allocation128_spill] sm:$0xff] }
 0x460   : > { %11033 = vst [vmem:[#allocation242_spill] sm:$0xff] %v8957_v29  ;;  %5337 = vpow2.f32 %v3221_v61  ;;  %v5328_v31 = vpop.eup %5327  ;;  %v3602_v51 = vadd.f32 %v8957_v29, %v8953_v32  ;;  %v11037_v61 = vld [vmem:[#allocation118_spill] sm:$0xff]  ;;  %v11039_v38 = vld [vmem:[#allocation109_spill] sm:$0xff]  ;;  %v11041_v29 = vld [vmem:[#allocation135_spill] sm:$0xff] }
 0x461   : > { %5339 = vpow2.f32 %v3223_v0  ;;  %3600 = vadd.xlane.f32.xlu0 %v3599_v35  ;;  %v5330_v48 = vpop.eup %5329  ;;  %v3848_v63 = vmul.f32 %v5328_v31, %v11034_v10  ;;  %v3847_v57 = vmul.f32 %v5328_v31, %v11036_v24 }
 0x462   : > { %5341 = vpow2.f32 %v3225_v60  ;;  %v3313_v59 = vpop.xlane.xlu0 %3312  ;;  %v5332_v33 = vpop.eup %5331  ;;  %3603 = vadd.xlane.f32.xlu1 %v3602_v51  ;;  %v3850_v50 = vmul.f32 %v5330_v48, %v11035_v39  ;;  %v3849_v19 = vmul.f32 %v5330_v48, %v11037_v61 }
 0x463   : > { %5343 = vrcp.f32 %v3397_v42  ;;  %v5334_v25 = vpop.eup %5333  ;;  %v3316_v11 = vpop.xlane.xlu1 %3315  ;;  %v3792_v0 = vmul.f32 %v5332_v33, %v11038_v22  ;;  %v11040_v42 = vld [vmem:[#allocation107_spill] sm:$0xff] }
 0x464   : > { %5345 = vrcp.f32 %v3400_v15  ;;  %v4050_v35 = vpack.c.bf16 %v3850_v50, %v3848_v63  ;;  %v4049_v60 = vpack.c.bf16 %v3849_v19, %v3847_v57  ;;  %v3794_v32 = vmul.f32 %v5334_v25, %v11039_v38 }
 0x465   : > { %5347 = vrcp.f32 %v3313_v59  ;;  %v3791_v51 = vmul.f32 %v5332_v33, %v11040_v42  ;;  %v3793_v39 = vmul.f32 %v5334_v25, %v11041_v29  ;;  %v11046_v25 = vld [vmem:[#allocation139_spill] sm:$0xff]  ;;  %v11049_v42 = vld [vmem:[#allocation141_spill] sm:$0xff] }
 0x466   : > { %5349 = vrcp.f32 %v3316_v11  ;;  %v3403_v10 = vpop.xlane.xlu0 %3402  ;;  %4198 = vmatprep.subr.bf16.mxu0 %v4050_v35  ;;  %v4022_v31 = vpack.c.bf16 %v3794_v32, %v3792_v0  ;;  %v11047_v0 = vld [vmem:[#allocation38_spill] sm:$0xff] }
 0x467   : > { %5351 = vrcp.f32 %v3403_v10  ;;  %4199 = vmatpush1.bf16.xpose.msra.mxu0 %v4049_v60  ;;  %v3406_v48 = vpop.xlane.xlu1 %3405  ;;  %v4021_v15 = vpack.c.bf16 %v3793_v39, %v3791_v51  ;;  %v11048_v60 = vld [vmem:[#allocation137_spill] sm:$0xff] }
 0x468   : > { %4149 = vmatprep.subr.bf16.mxu1 %v4022_v31  ;;  %5353 = vrcp.f32 %v3406_v48  ;;  %v11050_v48 = vld [vmem:[#allocation94_spill] sm:$0xff] }
 0x469   : > { %v8969_v24 = vpop.eup %5335  ;;  %4150 = vmatpush1.bf16.xpose.msra.mxu1 %v4021_v15 }
 0x46a   : > { %11042 = vst [vmem:[#allocation245_spill] sm:$0xff] %v8969_v24  ;;  %v8971_v59 = vpop.eup %5337  ;;  %v3319_v38 = vpop.xlane.xlu0 %3318 }
 0x46b   : > { %11043 = vst [vmem:[#allocation83_spill] sm:$0xff] %v8971_v59  ;;  %v8973_v63 = vpop.eup %5339  ;;  %5355 = vrcp.f32 %v3319_v38  ;;  %v3605_v29 = vadd.f32 %v8971_v59, %v8969_v24  ;;  %v3322_v32 = vpop.xlane.xlu1 %3321 }
 0x46c   : > { %11044 = vst [vmem:[#allocation250_spill] sm:$0xff] %v8973_v63  ;;  %v8977_v33 = vpop.eup %5341  ;;  %5357 = vrcp.f32 %v3322_v32 }
 0x46d   : > { %11045 = vst [vmem:[#allocation249_spill] sm:$0xff] %v8977_v33  ;;  %v5344_v50 = vpop.eup %5343  ;;  %3606 = vadd.xlane.f32.xlu0 %v3605_v29  ;;  %v3608_v57 = vadd.f32 %v8977_v33, %v8973_v63  ;;  %v11051_v63 = vld [vmem:[#allocation115_spill] sm:$0xff]  ;;  %v11052_v33 = vld [vmem:[#allocation120_spill] sm:$0xff] }
 0x46e   : > { %v5346_v61 = vpop.eup %5345  ;;  %v3409_v19 = vpop.xlane.xlu0 %3408  ;;  %v3852_v11 = vmul.f32 %v5344_v50, %v11046_v25  ;;  %v3851_v10 = vmul.f32 %v5344_v50, %v11048_v60 }
 0x46f   : > { %v5348_v22 = vpop.eup %5347  ;;  %5359 = vrcp.f32 %v3409_v19  ;;  %3609 = vadd.xlane.f32.xlu1 %v3608_v57  ;;  %v3854_v35 = vmul.f32 %v5346_v61, %v11047_v0  ;;  %v3853_v51 = vmul.f32 %v5346_v61, %v11049_v42  ;;  %v3412_v31 = vpop.xlane.xlu1 %3411  ;;  %v11053_v57 = vld [vmem:[#allocation123_spill] sm:$0xff] }
 0x470   : > { %v5350_v39 = vpop.eup %5349  ;;  %v3796_v15 = vmul.f32 %v5348_v22, %v11050_v48  ;;  %5361 = vrcp.f32 %v3412_v31  ;;  %v3795_v19 = vmul.f32 %v5348_v22, %v11052_v33  ;;  %v11054_v42 = vld [vmem:[#allocation147_spill] sm:$0xff] }
 0x471   : > { %v5352_v38 = vpop.eup %5351  ;;  %v4052_v29 = vpack.c.bf16 %v3854_v35, %v3852_v11  ;;  %v4051_v32 = vpack.c.bf16 %v3853_v51, %v3851_v10  ;;  %v3798_v24 = vmul.f32 %v5350_v39, %v11051_v63  ;;  %v3797_v59 = vmul.f32 %v5350_v39, %v11053_v57  ;;  %v11056_v35 = vld [vmem:[#allocation149_spill] sm:$0xff]  ;;  %v11061_v57 = vld [vmem:[#allocation134_spill] sm:$0xff] }
 0x472   : > { %v3421_v25 = vpop.xlane.xlu0 %3420  ;;  %v5354_v0 = vpop.eup %5353  ;;  %v3856_v48 = vmul.f32 %v5352_v38, %v11054_v42  ;;  %v11057_v63 = vld [vmem:[#allocation145_spill] sm:$0xff] }
 0x473   : > { %4200 = vmatprep.subr.bf16.mxu0 %v4052_v29  ;;  %5363 = vrcp.f32 %v3421_v25  ;;  %v4024_v50 = vpack.c.bf16 %v3798_v24, %v3796_v15  ;;  %v3424_v61 = vpop.xlane.xlu1 %3423  ;;  %v4023_v60 = vpack.c.bf16 %v3797_v59, %v3795_v19  ;;  %v3858_v11 = vmul.f32 %v5354_v0, %v11055_v49  ;;  %v11058_v59 = vld [vmem:[#allocation133_spill] sm:$0xff]  ;;  %v11060_v49 = vld [vmem:[#allocation131_spill] sm:$0xff] }
 0x474   : > { %4201 = vmatpush1.bf16.xpose.msra.mxu0 %v4051_v32  ;;  %v3857_v10 = vmul.f32 %v5354_v0, %v11056_v35  ;;  %5365 = vrcp.f32 %v3424_v61  ;;  %v3855_v33 = vmul.f32 %v5352_v38, %v11057_v63  ;;  %v11059_v32 = vld [vmem:[#allocation154_spill] sm:$0xff] }
 0x475   : > { %v5356_v51 = vpop.eup %5355  ;;  %4151 = vmatprep.subr.bf16.mxu1 %v4024_v50  ;;  %v4054_v39 = vpack.c.bf16 %v3858_v11, %v3856_v48  ;;  %v11062_v11 = vld [vmem:[#allocation158_spill] sm:$0xff] }
 0x476   : > { %4152 = vmatpush1.bf16.xpose.msra.mxu1 %v4023_v60  ;;  %v3415_v22 = vpop.xlane.xlu0 %3414  ;;  %v5358_v31 = vpop.eup %5357  ;;  %v4053_v24 = vpack.c.bf16 %v3857_v10, %v3855_v33  ;;  %v3800_v29 = vmul.f32 %v5356_v51, %v11058_v59  ;;  %v3799_v19 = vmul.f32 %v5356_v51, %v11060_v49  ;;  %v11063_v10 = vld [vmem:[#allocation136_spill] sm:$0xff]  ;;  %v11065_v51 = vld [vmem:[#allocation157_spill] sm:$0xff] }
 0x477   : > { %5367 = vrcp.f32 %v3415_v22  ;;  %4202 = vmatprep.subr.bf16.mxu0 %v4054_v39  ;;  %v3418_v15 = vpop.xlane.xlu1 %3417  ;;  %v3802_v25 = vmul.f32 %v5358_v31, %v11059_v32  ;;  %v3801_v0 = vmul.f32 %v5358_v31, %v11061_v57  ;;  %v11064_v33 = vld [vmem:[#allocation160_spill] sm:$0xff] }
 0x478   : > { %5369 = vrcp.f32 %v3418_v15 }
 0x479   : > { %v5360_v50 = vpop.eup %5359  ;;  %v4026_v38 = vpack.c.bf16 %v3802_v25, %v3800_v29  ;;  %v4025_v60 = vpack.c.bf16 %v3801_v0, %v3799_v19  ;;  %v11066_v25 = vld [vmem:[#allocation140_spill] sm:$0xff]  ;;  %v11068_v0 = vld [vmem:[#allocation138_spill] sm:$0xff] }
 0x47a   : > { %v3427_v61 = vpop.xlane.xlu0 %3426  ;;  %v5362_v42 = vpop.eup %5361  ;;  %v3860_v35 = vmul.f32 %v5360_v50, %v11062_v11  ;;  %v3859_v31 = vmul.f32 %v5360_v50, %v11065_v51  ;;  %v11067_v19 = vld [vmem:[#allocation152_spill] sm:$0xff] }
 0x47b   : > { %5371 = vrcp.f32 %v3427_v61  ;;  %4153 = vmatprep.subr.bf16.mxu1 %v4026_v38  ;;  %v3430_v48 = vpop.xlane.xlu1 %3429  ;;  %v3862_v63 = vmul.f32 %v5362_v42, %v11063_v10  ;;  %v3861_v22 = vmul.f32 %v5362_v42, %v11064_v33  ;;  %v11069_v38 = vld [vmem:[#allocation142_spill] sm:$0xff] }
 0x47c   : > { %4203 = vmatpush1.bf16.xpose.msra.mxu0 %v4053_v24  ;;  %5373 = vrcp.f32 %v3430_v48 }
 0x47d   : > { %v5364_v39 = vpop.eup %5363  ;;  %v4056_v59 = vpack.c.bf16 %v3862_v63, %v3860_v35  ;;  %v4055_v32 = vpack.c.bf16 %v3861_v22, %v3859_v31  ;;  %v11070_v63 = vld [vmem:[#allocation165_spill] sm:$0xff]  ;;  %v11071_v22 = vld [vmem:[#allocation151_spill] sm:$0xff]  ;;  %v11072_v31 = vld [vmem:[#allocation156_spill] sm:$0xff] }
 0x47e   : > { %4154 = vmatpush1.bf16.xpose.msra.mxu1 %v4025_v60  ;;  %v3517_v15 = vpop.xlane.xlu0 %3516  ;;  %v5366_v29 = vpop.eup %5365  ;;  %v3868_v49 = vmul.f32 %v5364_v39, %v11066_v25  ;;  %v3867_v61 = vmul.f32 %v5364_v39, %v11068_v0  ;;  %v11073_v39 = vld [vmem:[#allocation6_spill] sm:$0xff]  ;;  %v11074_v25 = vld [vmem:[#allocation5_spill] sm:$0xff] }
 0x47f   : > { %5375 = vrcp.f32 %v3517_v15  ;;  %4204 = vmatprep.subr.bf16.mxu0 %v4056_v59  ;;  %v3520_v24 = vpop.xlane.xlu1 %3519  ;;  %v3870_v57 = vmul.f32 %v5366_v29, %v11067_v19  ;;  %v3869_v42 = vmul.f32 %v5366_v29, %v11069_v38  ;;  %v11075_v29 = vpack.c.bf16 %v11073_v39, %v11074_v25  ;;  %v11077_v19 = vld [vmem:[#allocation10_spill] sm:$0xff] }
 0x480   : > { %5377 = vrcp.f32 %v3520_v24  ;;  %v11076_v24 = vld [vmem:[#allocation163_spill] sm:$0xff]  ;;  %v11083_v39 = vld [vmem:[#allocation170_spill] sm:$0xff] }
 0x481   : > { %v5368_v11 = vpop.eup %5367  ;;  %v4060_v50 = vpack.c.bf16 %v3870_v57, %v3868_v49  ;;  %v4059_v60 = vpack.c.bf16 %v3869_v42, %v3867_v61  ;;  %v11078_v57 = vld [vmem:[#allocation8_spill] sm:$0xff] }
 0x482   : > { %v3433_v48 = vpop.xlane.xlu0 %3432  ;;  %v5370_v10 = vpop.eup %5369  ;;  %v3864_v33 = vmul.f32 %v5368_v11, %v11070_v63  ;;  %v3863_v49 = vmul.f32 %v5368_v11, %v11076_v24  ;;  %v11079_v0 = vpack.c.bf16 %v11077_v19, %v11078_v57  ;;  %v11081_v63 = vld [vmem:[#allocation144_spill] sm:$0xff] }
 0x483   : > { %5379 = vrcp.f32 %v3433_v48  ;;  %4229 = vmatprep.subr.bf16.mxu1 %v4060_v50  ;;  %v3436_v35 = vpop.xlane.xlu1 %3435  ;;  %v3866_v51 = vmul.f32 %v5370_v10, %v11071_v22  ;;  %v3865_v15 = vmul.f32 %v5370_v10, %v11072_v31  ;;  %v11080_v50 = vld [vmem:[#allocation167_spill] sm:$0xff]  ;;  %v11082_v31 = vld [vmem:[#allocation153_spill] sm:$0xff] }
 0x484   : > { %4205 = vmatpush1.bf16.xpose.msra.mxu0 %v4055_v32  ;;  %5381 = vrcp.f32 %v3436_v35 }
 0x485   : > { %v5372_v59 = vpop.eup %5371  ;;  %4156 = vmatmul.mubr.bf16.vlgmr.msra.gmra.mrb[168].mxu1 %v11075_v29  ;;  %v4058_v61 = vpack.c.bf16 %v3866_v51, %v3864_v33  ;;  %v4057_v42 = vpack.c.bf16 %v3865_v15, %v3863_v49  ;;  %v11084_v51 = vld [vmem:[#allocation148_spill] sm:$0xff]  ;;  %v11085_v49 = vld [vmem:[#allocation125_spill] sm:$0xff] }
 0x486   : > { %4165 = vmatprep.mubr.bf16.mxu1 %v11079_v0  ;;  %4230 = vmatpush1.bf16.xpose.msra.mxu1 %v4059_v60  ;;  %v3523_v32 = vpop.xlane.xlu0 %3522  ;;  %v5374_v38 = vpop.eup %5373  ;;  %v3872_v10 = vmul.f32 %v5372_v59, %v11080_v50  ;;  %v3871_v35 = vmul.f32 %v5372_v59, %v11082_v31  ;;  %v11086_v0 = vld [vmem:[#allocation150_spill] sm:$0xff]  ;;  %v11087_v59 = vld [vmem:[#allocation9_spill] sm:$0xff]  ;;  %v11088_v50 = vld [vmem:[#allocation7_spill] sm:$0xff] }
 0x487   : > { %5383 = vrcp.f32 %v3523_v32  ;;  %4206 = vmatprep.subr.bf16.mxu0 %v4058_v61  ;;  %v3526_v48 = vpop.xlane.xlu1 %3525  ;;  %v3874_v22 = vmul.f32 %v5374_v38, %v11081_v63  ;;  %v3873_v11 = vmul.f32 %v5374_v38, %v11083_v39  ;;  %v11089_v38 = vpack.c.bf16 %v11087_v59, %v11088_v50  ;;  %v11091_v63 = vld [vmem:[#allocation20_spill] sm:$0xff]  ;;  %v11097_v59 = vld [vmem:[#allocation166_spill] sm:$0xff] }
 0x488   : > { %5385 = vrcp.f32 %v3526_v48  ;;  %v11090_v48 = vld [vmem:[#allocation146_spill] sm:$0xff] }
 0x489   : > { %v5376_v25 = vpop.eup %5375  ;;  %v4062_v24 = vpack.c.bf16 %v3874_v22, %v3872_v10  ;;  %v4061_v60 = vpack.c.bf16 %v3873_v11, %v3871_v35  ;;  %v11092_v22 = vld [vmem:[#allocation18_spill] sm:$0xff] }
 0x48a   : > { %v3439_v29 = vpop.xlane.xlu0 %3438  ;;  %v5378_v19 = vpop.eup %5377  ;;  %v3932_v15 = vmul.f32 %v5376_v25, %v11084_v51  ;;  %v3931_v10 = vmul.f32 %v5376_v25, %v11090_v48  ;;  %v11095_v51 = vld [vmem:[#allocation171_spill] sm:$0xff] }
 0x48b   : > { %5387 = vrcp.f32 %v3439_v29  ;;  %4231 = vmatprep.subr.bf16.mxu1 %v4062_v24  ;;  %v3442_v33 = vpop.xlane.xlu1 %3441  ;;  %v3934_v57 = vmul.f32 %v5378_v19, %v11085_v49  ;;  %v3933_v32 = vmul.f32 %v5378_v19, %v11086_v0  ;;  %v11094_v24 = vld [vmem:[#allocation169_spill] sm:$0xff]  ;;  %v11096_v0 = vld [vmem:[#allocation116_spill] sm:$0xff] }
 0x48c   : > { %4207 = vmatpush1.bf16.xpose.msra.mxu0 %v4057_v42  ;;  %5389 = vrcp.f32 %v3442_v33  ;;  %v11093_v42 = vpack.c.bf16 %v11091_v63, %v11092_v22 }
 0x48d   : > { %v5380_v61 = vpop.eup %5379  ;;  %4166 = vmatmul.mubr.bf16.gmra.mrb[172].mxu1 %v11089_v38  ;;  %v4092_v35 = vpack.c.bf16 %v3934_v57, %v3932_v15  ;;  %v4091_v11 = vpack.c.bf16 %v3933_v32, %v3931_v10  ;;  %v11098_v15 = vld [vmem:[#allocation12_spill] sm:$0xff]  ;;  %v11099_v57 = vld [vmem:[#allocation11_spill] sm:$0xff]  ;;  %v11102_v10 = vld [vmem:[#allocation14_spill] sm:$0xff] }
 0x48e   : > { %4232 = vmatpush1.bf16.xpose.msra.mxu1 %v4061_v60  ;;  %4261 = vmatprep.mubr.bf16.mxu1 %v11093_v42  ;;  %v3529_v31 = vpop.xlane.xlu0 %3528  ;;  %v5382_v39 = vpop.eup %5381  ;;  %v3876_v19 = vmul.f32 %v5380_v61, %v11094_v24  ;;  %v3875_v33 = vmul.f32 %v5380_v61, %v11096_v0  ;;  %v11100_v22 = vpack.c.bf16 %v11098_v15, %v11099_v57  ;;  %v11101_v32 = vld [vmem:[#allocation16_spill] sm:$0xff]  ;;  %v11104_v61 = vld [vmem:[#allocation143_spill] sm:$0xff] }
 0x48f   : > { %5391 = vrcp.f32 %v3529_v31  ;;  %4282 = vmatprep.subr.bf16.mxu0 %v4092_v35  ;;  %v3532_v29 = vpop.xlane.xlu1 %3531  ;;  %v3878_v49 = vmul.f32 %v5382_v39, %v11095_v51  ;;  %v3877_v25 = vmul.f32 %v5382_v39, %v11097_v59  ;;  %v11103_v42 = vpack.c.bf16 %v11101_v32, %v11102_v10  ;;  %v11105_v39 = vld [vmem:[#allocation177_spill] sm:$0xff]  ;;  %v11108_v15 = vld [vmem:[#allocation180_spill] sm:$0xff]  ;;  %v11110_v10 = vld [vmem:[#allocation178_spill] sm:$0xff] }
 0x490   : > { %5393 = vrcp.f32 %v3532_v29  ;;  %v11106_v29 = vld [vmem:[#allocation175_spill] sm:$0xff] }
 0x491   : > { %v5384_v60 = vpop.eup %5383  ;;  %v4064_v38 = vpack.c.bf16 %v3878_v49, %v3876_v19  ;;  %v4063_v48 = vpack.c.bf16 %v3877_v25, %v3875_v33  ;;  %v11107_v49 = vld [vmem:[#allocation126_spill] sm:$0xff] }
 0x492   : > { %v3445_v50 = vpop.xlane.xlu0 %3444  ;;  %v5386_v63 = vpop.eup %5385  ;;  %v3936_v35 = vmul.f32 %v5384_v60, %v11104_v61  ;;  %v3935_v0 = vmul.f32 %v5384_v60, %v11107_v49  ;;  %v11116_v49 = vld [vmem:[#allocation26_spill] sm:$0xff] }
 0x493   : > { %4209 = vmatmul.mubr.bf16.vlgmr.msra.gmra.mrb[184].mxu0 %v11100_v22  ;;  %5395 = vrcp.f32 %v3445_v50  ;;  %v3448_v31 = vpop.xlane.xlu1 %3447  ;;  %v3938_v24 = vmul.f32 %v5386_v63, %v11105_v39  ;;  %v3937_v51 = vmul.f32 %v5386_v63, %v11106_v29  ;;  %4233 = vmatprep.subr.bf16.mxu1 %v4064_v38  ;;  %v11109_v22 = vld [vmem:[#allocation159_spill] sm:$0xff] }
 0x494   : > { %4218 = vmatprep.mubr.bf16.mxu0 %v11103_v42  ;;  %4283 = vmatpush1.bf16.xpose.msra.mxu0 %v4091_v11  ;;  %5397 = vrcp.f32 %v3448_v31  ;;  %v11111_v63 = vld [vmem:[#allocation155_spill] sm:$0xff] }
 0x495   : > { %v5388_v19 = vpop.eup %5387  ;;  %v4094_v59 = vpack.c.bf16 %v3938_v24, %v3936_v35  ;;  %v4093_v50 = vpack.c.bf16 %v3937_v51, %v3935_v0  ;;  %v11112_v35 = vld [vmem:[#allocation15_spill] sm:$0xff]  ;;  %v11113_v24 = vld [vmem:[#allocation13_spill] sm:$0xff]  ;;  %v11115_v51 = vld [vmem:[#allocation28_spill] sm:$0xff] }
 0x496   : > { %4234 = vmatpush1.bf16.xpose.msra.mxu1 %v4063_v48  ;;  %v3535_v33 = vpop.xlane.xlu0 %3534  ;;  %v5390_v25 = vpop.eup %5389  ;;  %v3880_v57 = vmul.f32 %v5388_v19, %v11108_v15  ;;  %v3879_v42 = vmul.f32 %v5388_v19, %v11110_v10  ;;  %v11114_v29 = vpack.c.bf16 %v11112_v35, %v11113_v24  ;;  %v11117_v0 = vpack.c.bf16 %v11115_v51, %v11116_v49  ;;  %v11118_v19 = vld [vmem:[#allocation188_spill] sm:$0xff]  ;;  %v11122_v35 = vld [vmem:[#allocation197_spill] sm:$0xff] }
 0x497   : > { %5399 = vrcp.f32 %v3535_v33  ;;  %4284 = vmatprep.subr.bf16.mxu0 %v4094_v59  ;;  %v3538_v11 = vpop.xlane.xlu1 %3537  ;;  %v3882_v32 = vmul.f32 %v5390_v25, %v11109_v22  ;;  %v3881_v61 = vmul.f32 %v5390_v25, %v11111_v63  ;;  %v11119_v25 = vld [vmem:[#allocation185_spill] sm:$0xff] }
 0x498   : > { %5401 = vrcp.f32 %v3538_v11  ;;  %v11120_v11 = vld [vmem:[#allocation183_spill] sm:$0xff]  ;;  %v11124_v49 = vld [vmem:[#allocation193_spill] sm:$0xff] }
 0x499   : > { %v5392_v38 = vpop.eup %5391  ;;  %v4066_v60 = vpack.c.bf16 %v3882_v32, %v3880_v57  ;;  %v4065_v48 = vpack.c.bf16 %v3881_v61, %v3879_v42  ;;  %v11121_v32 = vld [vmem:[#allocation184_spill] sm:$0xff] }
 0x49a   : > { %v3451_v31 = vpop.xlane.xlu0 %3450  ;;  %v5394_v39 = vpop.eup %5393  ;;  %v3940_v59 = vmul.f32 %v5392_v38, %v11118_v19  ;;  %v3939_v10 = vmul.f32 %v5392_v38, %v11121_v32 }
 0x49b   : > { %4219 = vmatmul.mubr.bf16.gmra.mrb[188].mxu0 %v11114_v29  ;;  %5403 = vrcp.f32 %v3451_v31  ;;  %v3454_v33 = vpop.xlane.xlu1 %3453  ;;  %v3942_v15 = vmul.f32 %v5394_v39, %v11119_v25  ;;  %v3941_v22 = vmul.f32 %v5394_v39, %v11120_v11  ;;  %4235 = vmatprep.subr.bf16.mxu1 %v4066_v60  ;;  %v11123_v29 = vld [vmem:[#allocation195_spill] sm:$0xff]  ;;  %v11125_v39 = vld [vmem:[#allocation190_spill] sm:$0xff] }
 0x49c   : > { %4285 = vmatpush1.bf16.xpose.msra.mxu0 %v4093_v50  ;;  %4314 = vmatprep.mubr.bf16.mxu0 %v11117_v0  ;;  %5405 = vrcp.f32 %v3454_v33 }
 0x49d   : > { %v5396_v57 = vpop.eup %5395  ;;  %v4096_v63 = vpack.c.bf16 %v3942_v15, %v3940_v59  ;;  %v4095_v61 = vpack.c.bf16 %v3941_v22, %v3939_v10  ;;  %v11126_v15 = vld [vmem:[#allocation189_spill] sm:$0xff]  ;;  %v11127_v22 = vld [vmem:[#allocation194_spill] sm:$0xff]  ;;  %v11128_v10 = vld [vmem:[#allocation191_spill] sm:$0xff] }
 0x49e   : > { %4236 = vmatpush1.bf16.xpose.msra.mxu1 %v4065_v48  ;;  %v3541_v42 = vpop.xlane.xlu0 %3540  ;;  %v5398_v50 = vpop.eup %5397  ;;  %v3884_v24 = vmul.f32 %v5396_v57, %v11122_v35  ;;  %v3883_v0 = vmul.f32 %v5396_v57, %v11124_v49  ;;  %v11129_v57 = vld [vmem:[#allocation186_spill] sm:$0xff] }
 0x49f   : > { %5407 = vrcp.f32 %v3541_v42  ;;  %4286 = vmatprep.subr.bf16.mxu0 %v4096_v63  ;;  %v3544_v31 = vpop.xlane.xlu1 %3543  ;;  %v3886_v51 = vmul.f32 %v5398_v50, %v11123_v29  ;;  %v3885_v19 = vmul.f32 %v5398_v50, %v11125_v39  ;;  %v11131_v39 = vld [vmem:[#allocation164_spill] sm:$0xff] }
 0x4a0   : > { %5409 = vrcp.f32 %v3544_v31 }
 0x4a1   : > { %v5400_v60 = vpop.eup %5399  ;;  %v4068_v38 = vpack.c.bf16 %v3886_v51, %v3884_v24  ;;  %v4067_v48 = vpack.c.bf16 %v3885_v19, %v3883_v0  ;;  %v11130_v51 = vld [vmem:[#allocation168_spill] sm:$0xff] }
 0x4a2   : > { %v3457_v33 = vpop.xlane.xlu0 %3456  ;;  %v5402_v25 = vpop.eup %5401  ;;  %v3944_v11 = vmul.f32 %v5400_v60, %v11126_v15  ;;  %v3943_v50 = vmul.f32 %v5400_v60, %v11129_v57 }
 0x4a3   : > { %5411 = vrcp.f32 %v3457_v33  ;;  %4237 = vmatprep.subr.bf16.mxu1 %v4068_v38  ;;  %v3460_v59 = vpop.xlane.xlu1 %3459  ;;  %v3946_v32 = vmul.f32 %v5402_v25, %v11127_v22  ;;  %v3945_v42 = vmul.f32 %v5402_v25, %v11128_v10 }
 0x4a4   : > { %4287 = vmatpush1.bf16.xpose.msra.mxu0 %v4095_v61  ;;  %5413 = vrcp.f32 %v3460_v59 }
 0x4a5   : > { %v5404_v63 = vpop.eup %5403  ;;  %v4098_v35 = vpack.c.bf16 %v3946_v32, %v3944_v11  ;;  %v4097_v29 = vpack.c.bf16 %v3945_v42, %v3943_v50 }
 0x4a6   : > { %4238 = vmatpush1.bf16.xpose.msra.mxu1 %v4067_v48  ;;  %v3547_v31 = vpop.xlane.xlu0 %3546  ;;  %v5406_v24 = vpop.eup %5405  ;;  %v3888_v49 = vmul.f32 %v5404_v63, %v11130_v51  ;;  %v3887_v19 = vmul.f32 %v5404_v63, %v11131_v39 }
 0x4a7   : > { %5415 = vrcp.f32 %v3547_v31  ;;  %4288 = vmatprep.subr.bf16.mxu0 %v4098_v35  ;;  %v3550_v61 = vpop.xlane.xlu1 %3549  ;;  %v3890_v0 = vmul.f32 %v5406_v24, %v8409_v5  ;;  %v3889_v33 = vmul.f32 %v5406_v24, %v8404_v46  ;;  %v11132_v35 = vld [vmem:[#allocation208_spill] sm:$0xff] }
 0x4a8   : > { %5417 = vrcp.f32 %v3550_v61  ;;  %v11133_v24 = vld [vmem:[#allocation172_spill] sm:$0xff] }
 0x4a9   : > { %v5408_v38 = vpop.eup %5407  ;;  %v4070_v60 = vpack.c.bf16 %v3890_v0, %v3888_v49  ;;  %v4069_v48 = vpack.c.bf16 %v3889_v33, %v3887_v19  ;;  %v11135_v19 = vld [vmem:[#allocation207_spill] sm:$0xff] }
 0x4aa   : > { %v3463_v25 = vpop.xlane.xlu0 %3462  ;;  %v5410_v59 = vpop.eup %5409  ;;  %v3948_v11 = vmul.f32 %v5408_v38, %v8421_v58  ;;  %v3947_v46 = vmul.f32 %v5408_v38, %v8414_v37  ;;  %v11136_v38 = vld [vmem:[#allocation217_spill] sm:$0xff] }
 0x4ab   : > { %5419 = vrcp.f32 %v3463_v25  ;;  %4239 = vmatprep.subr.bf16.mxu1 %v4070_v60  ;;  %v3466_v15 = vpop.xlane.xlu1 %3465  ;;  %v3950_v22 = vmul.f32 %v5410_v59, %v8435_v7  ;;  %v3949_v5 = vmul.f32 %v5410_v59, %v8428_v4  ;;  %v11137_v25 = vld [vmem:[#allocation209_spill] sm:$0xff]  ;;  %v11138_v59 = vld [vmem:[#allocation212_spill] sm:$0xff] }
 0x4ac   : > { %4289 = vmatpush1.bf16.xpose.msra.mxu0 %v4097_v29  ;;  %5421 = vrcp.f32 %v3466_v15  ;;  %v11134_v29 = vld [vmem:[#allocation174_spill] sm:$0xff] }
 0x4ad   : > { %v5412_v32 = vpop.eup %5411  ;;  %v4100_v42 = vpack.c.bf16 %v3950_v22, %v3948_v11  ;;  %v4099_v57 = vpack.c.bf16 %v3949_v5, %v3947_v46 }
 0x4ae   : > { %4240 = vmatpush1.bf16.xpose.msra.mxu1 %v4069_v48  ;;  %v3553_v10 = vpop.xlane.xlu0 %3552  ;;  %v5414_v63 = vpop.eup %5413  ;;  %v3892_v31 = vmul.f32 %v5412_v32, %v8449_v16  ;;  %v3891_v7 = vmul.f32 %v5412_v32, %v11133_v24 }
 0x4af   : > { %5423 = vrcp.f32 %v3553_v10  ;;  %4290 = vmatprep.subr.bf16.mxu0 %v4100_v42  ;;  %v3556_v50 = vpop.xlane.xlu1 %3555  ;;  %v3894_v58 = vmul.f32 %v5414_v63, %v11132_v35  ;;  %v3893_v4 = vmul.f32 %v5414_v63, %v11134_v29  ;;  %v11139_v10 = vld [vmem:[#allocation214_spill] sm:$0xff] }
 0x4b0   : > { %5425 = vrcp.f32 %v3556_v50 }
 0x4b1   : > { %v5416_v61 = vpop.eup %5415  ;;  %v4072_v37 = vpack.c.bf16 %v3894_v58, %v3892_v31  ;;  %v4071_v49 = vpack.c.bf16 %v3893_v4, %v3891_v7 }
 0x4b2   : > { %v3469_v51 = vpop.xlane.xlu0 %3468  ;;  %v5418_v0 = vpop.eup %5417  ;;  %v3952_v33 = vmul.f32 %v5416_v61, %v11135_v19  ;;  %v3951_v15 = vmul.f32 %v5416_v61, %v11138_v59 }
 0x4b3   : > { %5427 = vrcp.f32 %v3469_v51  ;;  %4241 = vmatprep.subr.bf16.mxu1 %v4072_v37  ;;  %v3472_v39 = vpop.xlane.xlu1 %3471  ;;  %v3954_v16 = vmul.f32 %v5418_v0, %v11136_v38  ;;  %v3953_v60 = vmul.f32 %v5418_v0, %v11137_v25  ;;  %v11141_v38 = vld [vmem:[#allocation199_spill] sm:$0xff]  ;;  %v11142_v25 = vld [vmem:[#allocation202_spill] sm:$0xff] }
 0x4b4   : > { %4291 = vmatpush1.bf16.xpose.msra.mxu0 %v4099_v57  ;;  %5429 = vrcp.f32 %v3472_v39  ;;  %v11140_v57 = vld [vmem:[#allocation221_spill] sm:$0xff] }
 0x4b5   : > { %v5420_v48 = vpop.eup %5419  ;;  %v4102_v22 = vpack.c.bf16 %v3954_v16, %v3952_v33  ;;  %v4101_v32 = vpack.c.bf16 %v3953_v60, %v3951_v15  ;;  %v11143_v60 = vld [vmem:[#allocation219_spill] sm:$0xff] }
 0x4b6   : > { %4242 = vmatpush1.bf16.xpose.msra.mxu1 %v4071_v49  ;;  %v3559_v11 = vpop.xlane.xlu0 %3558  ;;  %v5422_v5 = vpop.eup %5421  ;;  %v3896_v42 = vmul.f32 %v5420_v48, %v11139_v10  ;;  %v3895_v50 = vmul.f32 %v5420_v48, %v11140_v57  ;;  %v11144_v48 = vld [vmem:[#allocation201_spill] sm:$0xff] }
 0x4b7   : > { %5431 = vrcp.f32 %v3559_v11  ;;  %4292 = vmatprep.subr.bf16.mxu0 %v4102_v22  ;;  %v3562_v46 = vpop.xlane.xlu1 %3561  ;;  %v3898_v63 = vmul.f32 %v5422_v5, %v8535_v17  ;;  %v3897_v31 = vmul.f32 %v5422_v5, %v8528_v47  ;;  %v11146_v10 = vld [vmem:[#allocation181_spill] sm:$0xff] }
 0x4b8   : > { %5433 = vrcp.f32 %v3562_v46 }
 0x4b9   : > { %v5424_v35 = vpop.eup %5423  ;;  %v4074_v24 = vpack.c.bf16 %v3898_v63, %v3896_v42  ;;  %v4073_v7 = vpack.c.bf16 %v3897_v31, %v3895_v50  ;;  %v11147_v63 = vld [vmem:[#allocation179_spill] sm:$0xff]  ;;  %v11148_v31 = vld [vmem:[#allocation204_spill] sm:$0xff] }
 0x4ba   : > { %v3475_v58 = vpop.xlane.xlu0 %3474  ;;  %v5426_v29 = vpop.eup %5425  ;;  %v3956_v61 = vmul.f32 %v5424_v35, %v8547_v13  ;;  %v3955_v47 = vmul.f32 %v5424_v35, %v8539_v30 }
 0x4bb   : > { %5435 = vrcp.f32 %v3475_v58  ;;  %4243 = vmatprep.subr.bf16.mxu1 %v4074_v24  ;;  %v3478_v4 = vpop.xlane.xlu1 %3477  ;;  %v3958_v51 = vmul.f32 %v5426_v29, %v8575_v6  ;;  %v3957_v17 = vmul.f32 %v5426_v29, %v8570_v23 }
 0x4bc   : > { %4293 = vmatpush1.bf16.xpose.msra.mxu0 %v4101_v32  ;;  %5437 = vrcp.f32 %v3478_v4  ;;  %v11145_v32 = vld [vmem:[#allocation176_spill] sm:$0xff] }
 0x4bd   : > { %v5428_v37 = vpop.eup %5427  ;;  %v4104_v0 = vpack.c.bf16 %v3958_v51, %v3956_v61  ;;  %v4103_v19 = vpack.c.bf16 %v3957_v17, %v3955_v47  ;;  %v11149_v61 = vld [vmem:[#allocation161_spill] sm:$0xff] }
 0x4be   : > { %4244 = vmatpush1.bf16.xpose.msra.mxu1 %v4073_v7  ;;  %v3565_v49 = vpop.xlane.xlu0 %3564  ;;  %v5430_v39 = vpop.eup %5429  ;;  %v3900_v16 = vmul.f32 %v5428_v37, %v11141_v38  ;;  %v3899_v6 = vmul.f32 %v5428_v37, %v11143_v60  ;;  %v11150_v37 = vld [vmem:[#allocation182_spill] sm:$0xff] }
 0x4bf   : > { %5439 = vrcp.f32 %v3565_v49  ;;  %4294 = vmatprep.subr.bf16.mxu0 %v4104_v0  ;;  %v3568_v33 = vpop.xlane.xlu1 %3567  ;;  %v3902_v13 = vmul.f32 %v5430_v39, %v11142_v25  ;;  %v3901_v23 = vmul.f32 %v5430_v39, %v11144_v48 }
 0x4c0   : > { %5441 = vrcp.f32 %v3568_v33 }
 0x4c1   : > { %v5432_v59 = vpop.eup %5431  ;;  %v4076_v30 = vpack.c.bf16 %v3902_v13, %v3900_v16  ;;  %v4075_v11 = vpack.c.bf16 %v3901_v23, %v3899_v6 }
 0x4c2   : > { %v3481_v15 = vpop.xlane.xlu0 %3480  ;;  %v5434_v22 = vpop.eup %5433  ;;  %v3960_v46 = vmul.f32 %v5432_v59, %v11145_v32  ;;  %v3959_v35 = vmul.f32 %v5432_v59, %v11148_v31  ;;  %v11154_v32 = vld [vmem:[#allocation43_spill] sm:$0xff] }
 0x4c3   : > { %5443 = vrcp.f32 %v3481_v15  ;;  %4245 = vmatprep.subr.bf16.mxu1 %v4076_v30  ;;  %v3484_v5 = vpop.xlane.xlu1 %3483  ;;  %v3962_v42 = vmul.f32 %v5434_v22, %v11146_v10  ;;  %v3961_v57 = vmul.f32 %v5434_v22, %v11147_v63  ;;  %v11151_v30 = vld [vmem:[#allocation232_spill] sm:$0xff]  ;;  %v11152_v22 = vld [vmem:[#allocation230_spill] sm:$0xff] }
 0x4c4   : > { %4295 = vmatpush1.bf16.xpose.msra.mxu0 %v4103_v19  ;;  %5445 = vrcp.f32 %v3484_v5  ;;  %v11153_v5 = vld [vmem:[#allocation173_spill] sm:$0xff] }
 0x4c5   : > { %v5436_v50 = vpop.eup %5435  ;;  %v4106_v24 = vpack.c.bf16 %v3962_v42, %v3960_v46  ;;  %v4105_v29 = vpack.c.bf16 %v3961_v57, %v3959_v35  ;;  %v11156_v35 = vld [vmem:[#allocation236_spill] sm:$0xff] }
 0x4c6   : > { %4246 = vmatpush1.bf16.xpose.msra.mxu1 %v4075_v11  ;;  %v3571_v58 = vpop.xlane.xlu0 %3570  ;;  %v5438_v7 = vpop.eup %5437  ;;  %v3904_v51 = vmul.f32 %v5436_v50, %v11149_v61  ;;  %v3903_v47 = vmul.f32 %v5436_v50, %v11150_v37  ;;  %v11155_v50 = vld [vmem:[#allocation237_spill] sm:$0xff] }
 0x4c7   : > { %5447 = vrcp.f32 %v3571_v58  ;;  %4296 = vmatprep.subr.bf16.mxu0 %v4106_v24  ;;  %v3574_v4 = vpop.xlane.xlu1 %3573  ;;  %v3906_v17 = vmul.f32 %v5438_v7, %v8655_v43  ;;  %v3905_v49 = vmul.f32 %v5438_v7, %v8651_v20  ;;  %v11157_v24 = vld [vmem:[#allocation65_spill] sm:$0xff] }
 0x4c8   : > { %5449 = vrcp.f32 %v3574_v4  ;;  %v11158_v4 = vld [vmem:[#allocation233_spill] sm:$0xff] }
 0x4c9   : > { %v5440_v0 = vpop.eup %5439  ;;  %v4078_v19 = vpack.c.bf16 %v3906_v17, %v3904_v51  ;;  %v4077_v33 = vpack.c.bf16 %v3905_v49, %v3903_v47 }
 0x4ca   : > { %v3487_v39 = vpop.xlane.xlu0 %3486  ;;  %v5442_v38 = vpop.eup %5441  ;;  %v3964_v25 = vmul.f32 %v5440_v0, %v8665_v34  ;;  %v3963_v20 = vmul.f32 %v5440_v0, %v8659_v54 }
 0x4cb   : > { %5451 = vrcp.f32 %v3487_v39  ;;  %4247 = vmatprep.subr.bf16.mxu1 %v4078_v19  ;;  %v3490_v16 = vpop.xlane.xlu1 %3489  ;;  %v3966_v13 = vmul.f32 %v5442_v38, %v8677_v41  ;;  %v3965_v43 = vmul.f32 %v5442_v38, %v8671_v12 }
 0x4cc   : > { %4297 = vmatpush1.bf16.xpose.msra.mxu0 %v4105_v29  ;;  %5453 = vrcp.f32 %v3490_v16 }
 0x4cd   : > { %v5444_v60 = vpop.eup %5443  ;;  %v4108_v48 = vpack.c.bf16 %v3966_v13, %v3964_v25  ;;  %v4107_v59 = vpack.c.bf16 %v3965_v43, %v3963_v20 }
 0x4ce   : > { %4248 = vmatpush1.bf16.xpose.msra.mxu1 %v4077_v33  ;;  %v3577_v6 = vpop.xlane.xlu0 %3576  ;;  %v5446_v23 = vpop.eup %5445  ;;  %v3908_v11 = vmul.f32 %v5444_v60, %v11151_v30  ;;  %v3907_v41 = vmul.f32 %v5444_v60, %v11153_v5  ;;  %v11162_v5 = vld [vmem:[#allocation162_spill] sm:$0xff] }
 0x4cf   : > { %5455 = vrcp.f32 %v3577_v6  ;;  %4298 = vmatprep.subr.bf16.mxu0 %v4108_v48  ;;  %v3580_v15 = vpop.xlane.xlu1 %3579  ;;  %v3910_v34 = vmul.f32 %v5446_v23, %v11152_v22  ;;  %v3909_v12 = vmul.f32 %v5446_v23, %v11154_v32 }
 0x4d0   : > { %5457 = vrcp.f32 %v3580_v15 }
 0x4d1   : > { %v5448_v46 = vpop.eup %5447  ;;  %v4080_v54 = vpack.c.bf16 %v3910_v34, %v3908_v11  ;;  %v4079_v42 = vpack.c.bf16 %v3909_v12, %v3907_v41  ;;  %v11160_v11 = vld [vmem:[#allocation239_spill] sm:$0xff]  ;;  %v11161_v34 = vld [vmem:[#allocation69_spill] sm:$0xff]  ;;  %v11163_v41 = vld [vmem:[#allocation48_spill] sm:$0xff] }
 0x4d2   : > { %v3493_v10 = vpop.xlane.xlu0 %3492  ;;  %v5450_v63 = vpop.eup %5449  ;;  %v3968_v31 = vmul.f32 %v5448_v46, %v11155_v50  ;;  %v3967_v61 = vmul.f32 %v5448_v46, %v11158_v4  ;;  %v11165_v50 = vld [vmem:[#allocation52_spill] sm:$0xff] }
 0x4d3   : > { %5459 = vrcp.f32 %v3493_v10  ;;  %4249 = vmatprep.subr.bf16.mxu1 %v4080_v54  ;;  %v3496_v57 = vpop.xlane.xlu1 %3495  ;;  %v3970_v58 = vmul.f32 %v5450_v63, %v11156_v35  ;;  %v3969_v7 = vmul.f32 %v5450_v63, %v11157_v24  ;;  %v11164_v63 = vld [vmem:[#allocation49_spill] sm:$0xff] }
 0x4d4   : > { %4299 = vmatpush1.bf16.xpose.msra.mxu0 %v4107_v59  ;;  %5461 = vrcp.f32 %v3496_v57  ;;  %v11166_v35 = vld [vmem:[#allocation73_spill] sm:$0xff] }
 0x4d5   : > { %v5452_v29 = vpop.eup %5451  ;;  %v4110_v17 = vpack.c.bf16 %v3970_v58, %v3968_v31  ;;  %v4109_v47 = vpack.c.bf16 %v3969_v7, %v3967_v61  ;;  %v11167_v7 = vld [vmem:[#allocation36_spill] sm:$0xff] }
 0x4d6   : > { %4250 = vmatpush1.bf16.xpose.msra.mxu1 %v4079_v42  ;;  %v3583_v51 = vpop.xlane.xlu0 %3582  ;;  %v5454_v37 = vpop.eup %5453  ;;  %v3912_v0 = vmul.f32 %v5452_v29, %v8746_v14  ;;  %v3911_v19 = vmul.f32 %v5452_v29, %v8741_v2  ;;  %v11159_v2 = vld [vmem:[#allocation238_spill] sm:$0xff] }
 0x4d7   : > { %5463 = vrcp.f32 %v3583_v51  ;;  %4300 = vmatprep.subr.bf16.mxu0 %v4110_v17  ;;  %v3586_v49 = vpop.xlane.xlu1 %3585  ;;  %v3914_v39 = vmul.f32 %v5454_v37, %v8757_v52  ;;  %v3913_v33 = vmul.f32 %v5454_v37, %v8748_v8 }
 0x4d8   : > { %5465 = vrcp.f32 %v3586_v49 }
 0x4d9   : > { %v5456_v38 = vpop.eup %5455  ;;  %v4082_v25 = vpack.c.bf16 %v3914_v39, %v3912_v0  ;;  %v4081_v13 = vpack.c.bf16 %v3913_v33, %v3911_v19 }
 0x4da   : > { %v3499_v16 = vpop.xlane.xlu0 %3498  ;;  %v5458_v43 = vpop.eup %5457  ;;  %v3972_v20 = vmul.f32 %v5456_v38, %v8783_v27  ;;  %v3971_v8 = vmul.f32 %v5456_v38, %v11159_v2 }
 0x4db   : > { %5467 = vrcp.f32 %v3499_v16  ;;  %4251 = vmatprep.subr.bf16.mxu1 %v4082_v25  ;;  %v3502_v60 = vpop.xlane.xlu1 %3501  ;;  %v3974_v14 = vmul.f32 %v5458_v43, %v8791_v62  ;;  %v3973_v52 = vmul.f32 %v5458_v43, %v8787_v36 }
 0x4dc   : > { %4301 = vmatpush1.bf16.xpose.msra.mxu0 %v4109_v47  ;;  %5469 = vrcp.f32 %v3502_v60 }
 0x4dd   : > { %v5460_v6 = vpop.eup %5459  ;;  %v4112_v23 = vpack.c.bf16 %v3974_v14, %v3972_v20  ;;  %v4111_v15 = vpack.c.bf16 %v3973_v52, %v3971_v8  ;;  %v11168_v8 = vld [vmem:[#allocation213_spill] sm:$0xff] }
 0x4de   : > { %4252 = vmatpush1.bf16.xpose.msra.mxu1 %v4081_v13  ;;  %v3589_v48 = vpop.xlane.xlu0 %3588  ;;  %v5462_v59 = vpop.eup %5461  ;;  %v3916_v22 = vmul.f32 %v5460_v6, %v11160_v11  ;;  %v3915_v62 = vmul.f32 %v5460_v6, %v11162_v5  ;;  %v11171_v11 = vld [vmem:[#allocation218_spill] sm:$0xff]  ;;  %v11173_v5 = vld [vmem:[#allocation187_spill] sm:$0xff] }
 0x4df   : > { %5471 = vrcp.f32 %v3589_v48  ;;  %4302 = vmatprep.subr.bf16.mxu0 %v4112_v23  ;;  %v3592_v30 = vpop.xlane.xlu1 %3591  ;;  %v3918_v27 = vmul.f32 %v5462_v59, %v11161_v34  ;;  %v3917_v36 = vmul.f32 %v5462_v59, %v11163_v41  ;;  %v11169_v48 = vld [vmem:[#allocation241_spill] sm:$0xff]  ;;  %v11170_v23 = vld [vmem:[#allocation210_spill] sm:$0xff]  ;;  %v11172_v34 = vld [vmem:[#allocation192_spill] sm:$0xff] }
 0x4e0   : > { %5473 = vrcp.f32 %v3592_v30  ;;  %v11174_v41 = vld [vmem:[#allocation215_spill] sm:$0xff] }
 0x4e1   : > { %v5464_v32 = vpop.eup %5463  ;;  %v4084_v46 = vpack.c.bf16 %v3918_v27, %v3916_v22  ;;  %v4083_v10 = vpack.c.bf16 %v3917_v36, %v3915_v62 }
 0x4e2   : > { %v3505_v12 = vpop.xlane.xlu0 %3504  ;;  %v5466_v54 = vpop.eup %5465  ;;  %v3976_v57 = vmul.f32 %v5464_v32, %v11164_v63  ;;  %v3975_v29 = vmul.f32 %v5464_v32, %v11167_v7  ;;  %v11175_v7 = vld [vmem:[#allocation246_spill] sm:$0xff] }
 0x4e3   : > { %5475 = vrcp.f32 %v3505_v12  ;;  %4253 = vmatprep.subr.bf16.mxu1 %v4084_v46  ;;  %v3508_v42 = vpop.xlane.xlu1 %3507  ;;  %v3978_v31 = vmul.f32 %v5466_v54, %v11165_v50  ;;  %v3977_v58 = vmul.f32 %v5466_v54, %v11166_v35 }
 0x4e4   : > { %4303 = vmatpush1.bf16.xpose.msra.mxu0 %v4111_v15  ;;  %5477 = vrcp.f32 %v3508_v42 }
 0x4e5   : > { %v5468_v24 = vpop.eup %5467  ;;  %v4114_v61 = vpack.c.bf16 %v3978_v31, %v3976_v57  ;;  %v4113_v17 = vpack.c.bf16 %v3977_v58, %v3975_v29 }
 0x4e6   : > { %4254 = vmatpush1.bf16.xpose.msra.mxu1 %v4083_v10  ;;  %v3595_v4 = vpop.xlane.xlu0 %3594  ;;  %v5470_v51 = vpop.eup %5469  ;;  %v3920_v47 = vmul.f32 %v5468_v24, %v8845_v45  ;;  %v3919_v0 = vmul.f32 %v5468_v24, %v8843_v26 }
 0x4e7   : > { %5479 = vrcp.f32 %v3595_v4  ;;  %4304 = vmatprep.subr.bf16.mxu0 %v4114_v61  ;;  %v3598_v37 = vpop.xlane.xlu1 %3597  ;;  %v3922_v49 = vmul.f32 %v5470_v51, %v8851_v56  ;;  %v3921_v39 = vmul.f32 %v5470_v51, %v8847_v55  ;;  %v11176_v4 = vld [vmem:[#allocation242_spill] sm:$0xff] }
 0x4e8   : > { %5481 = vrcp.f32 %v3598_v37 }
 0x4e9   : > { %v5472_v19 = vpop.eup %5471  ;;  %v4086_v38 = vpack.c.bf16 %v3922_v49, %v3920_v47  ;;  %v4085_v16 = vpack.c.bf16 %v3921_v39, %v3919_v0  ;;  %v11179_v47 = vld [vmem:[#allocation19_spill] sm:$0xff]  ;;  %v11180_v49 = vld [vmem:[#allocation17_spill] sm:$0xff]  ;;  %v11182_v39 = vld [vmem:[#allocation24_spill] sm:$0xff] }
 0x4ea   : > { %v3511_v33 = vpop.xlane.xlu0 %3510  ;;  %v5474_v25 = vpop.eup %5473  ;;  %v3980_v43 = vmul.f32 %v5472_v19, %v8859_v9  ;;  %v3979_v26 = vmul.f32 %v5472_v19, %v8853_v21  ;;  %v11181_v0 = vpack.c.bf16 %v11179_v47, %v11180_v49  ;;  %v11183_v19 = vld [vmem:[#allocation22_spill] sm:$0xff] }
 0x4eb   : > { %5483 = vrcp.f32 %v3511_v33  ;;  %4255 = vmatprep.subr.bf16.mxu1 %v4086_v38  ;;  %v3514_v13 = vpop.xlane.xlu1 %3513  ;;  %v3982_v45 = vmul.f32 %v5474_v25, %v8867_v44  ;;  %v3981_v56 = vmul.f32 %v5474_v25, %v8863_v3  ;;  %v11184_v33 = vpack.c.bf16 %v11182_v39, %v11183_v19 }
 0x4ec   : > { %4305 = vmatpush1.bf16.xpose.msra.mxu0 %v4113_v17  ;;  %5485 = vrcp.f32 %v3514_v13  ;;  %v11186_v13 = vld [vmem:[#allocation249_spill] sm:$0xff] }
 0x4ed   : > { %v5476_v60 = vpop.eup %5475  ;;  %v4116_v20 = vpack.c.bf16 %v3982_v45, %v3980_v43  ;;  %v4115_v52 = vpack.c.bf16 %v3981_v56, %v3979_v26  ;;  %v11187_v45 = vld [vmem:[#allocation245_spill] sm:$0xff] }
 0x4ee   : > { %4256 = vmatpush1.bf16.xpose.msra.mxu1 %v4085_v16  ;;  %v3601_v55 = vpop.xlane.xlu0 %3600  ;;  %v5478_v14 = vpop.eup %5477  ;;  %v3924_v2 = vmul.f32 %v5476_v60, %v8888_v18  ;;  %v3923_v44 = vmul.f32 %v5476_v60, %v11169_v48  ;;  %v11185_v16 = vld [vmem:[#allocation83_spill] sm:$0xff]  ;;  %v11188_v60 = vld [vmem:[#allocation250_spill] sm:$0xff] }
 0x4ef   : > { %5487 = vrcp.f32 %v3601_v55  ;;  %4306 = vmatprep.subr.bf16.mxu0 %v4116_v20  ;;  %v3604_v6 = vpop.xlane.xlu1 %3603  ;;  %v3926_v9 = vmul.f32 %v5478_v14, %v11168_v8  ;;  %v3925_v3 = vmul.f32 %v5478_v14, %v11170_v23  ;;  %v11189_v14 = vld [vmem:[#allocation23_spill] sm:$0xff]  ;;  %v11197_v23 = vld [vmem:[#allocation30_spill] sm:$0xff] }
 0x4f0   : > { %5489 = vrcp.f32 %v3604_v6  ;;  %v11193_v8 = vld [vmem:[#allocation27_spill] sm:$0xff] }
 0x4f1   : > { %v5480_v59 = vpop.eup %5479  ;;  %v4088_v15 = vpack.c.bf16 %v3926_v9, %v3924_v2  ;;  %v4087_v21 = vpack.c.bf16 %v3925_v3, %v3923_v44  ;;  %v11192_v2 = vmov 0   ;;  %v11194_v9 = vld [vmem:[#allocation25_spill] sm:$0xff]  ;;  %v11196_v44 = vld [vmem:[#allocation32_spill] sm:$0xff] }
 0x4f2   : > { %v5482_v30 = vpop.eup %5481  ;;  %v3984_v22 = vmul.f32 %v5480_v59, %v11171_v11  ;;  %v3983_v36 = vmul.f32 %v5480_v59, %v11174_v41  ;;  %v11195_v48 = vpack.c.bf16 %v11193_v8, %v11194_v9  ;;  %v11198_v3 = vpack.c.bf16 %v11196_v44, %v11197_v23  ;;  %v11199_v59 = vld [vmem:[#allocation31_spill] sm:$0xff] }
 0x4f3   : > { %4257 = vmatprep.subr.bf16.mxu1 %v4088_v15  ;;  %v3986_v27 = vmul.f32 %v5482_v30, %v11172_v34  ;;  %v3985_v62 = vmul.f32 %v5482_v30, %v11173_v5  ;;  %v11200_v15 = vld [vmem:[#allocation29_spill] sm:$0xff] }
 0x4f4   : > { %4307 = vmatpush1.bf16.xpose.msra.mxu0 %v4115_v52  ;;  %v11190_v52 = vld [vmem:[#allocation21_spill] sm:$0xff] }
 0x4f5   : > { %v5484_v18 = vpop.eup %5483  ;;  %v4118_v32 = vpack.c.bf16 %v3986_v27, %v3984_v22  ;;  %v4117_v46 = vpack.c.bf16 %v3985_v62, %v3983_v36  ;;  %v11191_v6 = vpack.c.bf16 %v11189_v14, %v11190_v52 }
 0x4f6   : > { %4258 = vmatpush1.bf16.xpose.msra.mxu1 %v4087_v21  ;;  %v5486_v12 = vpop.eup %5485  ;;  %v3928_v10 = vmul.f32 %v5484_v18, %v8919_v1  ;;  %v3927_v42 = vmul.f32 %v5484_v18, %v8915_v53  ;;  %v11177_v1 = vld [vmem:[#allocation196_spill] sm:$0xff]  ;;  %v11178_v53 = vld [vmem:[#allocation37_spill] sm:$0xff]  ;;  %v11201_v21 = vpack.c.bf16 %v11199_v59, %v11200_v15 }
 0x4f7   : > { %4308 = vmatprep.subr.bf16.mxu0 %v4118_v32  ;;  %v3930_v54 = vmul.f32 %v5486_v12, %v8936_v28  ;;  %v3929_v63 = vmul.f32 %v5486_v12, %v8923_v40 }
 0x4f9   : > { %v5488_v57 = vpop.eup %5487  ;;  %v4090_v31 = vpack.c.bf16 %v3930_v54, %v3928_v10  ;;  %v4089_v35 = vpack.c.bf16 %v3929_v63, %v3927_v42 }
 0x4fa   : > { %v3607_v50 = vpop.xlane.xlu0 %3606  ;;  %v5490_v58 = vpop.eup %5489  ;;  %v3988_v29 = vmul.f32 %v5488_v57, %v11175_v7  ;;  %v3987_v40 = vmul.f32 %v5488_v57, %v11178_v53 }
 0x4fb   : > { %5491 = vrcp.f32 %v3607_v50  ;;  %4259 = vmatprep.subr.bf16.mxu1 %v4090_v31  ;;  %v3990_v61 = vmul.f32 %v5490_v58, %v11176_v4  ;;  %v3989_v51 = vmul.f32 %v5490_v58, %v11177_v1 }
 0x4fc   : > { %4309 = vmatpush1.bf16.xpose.msra.mxu0 %v4117_v46  ;;  %v3610_v24 = vpop.xlane.xlu1 %3609 }
 0x4fd   : > { %5493 = vrcp.f32 %v3610_v24  ;;  %v4120_v28 = vpack.c.bf16 %v3990_v61, %v3988_v29  ;;  %v4119_v17 = vpack.c.bf16 %v3989_v51, %v3987_v40  ;;  %v4352_v29 = vld [vmem:[%s9240_s6] sm:$0xf] }
 0x4fe   : > { %4260 = vmatpush1.bf16.xpose.msra.mxu1 %v4089_v35  ;;  %4355 = vperm.xlu0 %4700, %v4352_v29  }
 0x4ff   : > { %4310 = vmatprep.subr.bf16.mxu0 %v4120_v28 }
 0x504   : > { %4311 = vmatpush1.bf16.xpose.msra.mxu0 %v4119_v17 }
 0x505   : > { %v5492_v37 = vpop.eup %5491  ;;  %4262 = vmatmul.mubr.bf16.vlgmr.msra.gmra.mrb[176].mxu1 %v11181_v0 }
 0x506   : > { %4271 = vmatprep.mubr.bf16.mxu1 %v11184_v33  ;;  %v3992_v25 = vmul.f32 %v5492_v37, %v11185_v16  ;;  %v3991_v56 = vmul.f32 %v5492_v37, %v11187_v45 }
 0x507   : > { %v5494_v38 = vpop.eup %5493 }
 0x508   : > { %v3994_v43 = vmul.f32 %v5494_v38, %v11186_v13  ;;  %v3993_v26 = vmul.f32 %v5494_v38, %v11188_v60 }
 0x50a   : > { %v4122_v55 = vpack.c.bf16 %v3994_v43, %v3992_v25  ;;  %v4121_v20 = vpack.c.bf16 %v3993_v26, %v3991_v56 }
 0x50c   : > { %4312 = vmatprep.subr.bf16.mxu0 %v4122_v55  ;;  %v4351_v55 = vld [vmem:[%s9239_s5] sm:$0x3] }
 0x50d   : > { %4272 = vmatmul.mubr.bf16.gmra.mrb[180].mxu1 %v11191_v6  ;;  %4313 = vmatpush1.bf16.xpose.msra.mxu0 %v4121_v20 }
 0x50e   : > { %4390 = vmatprep.mubr.bf16.mxu1 %v11192_v2 }
 0x514   : > { %4315 = vmatmul.mubr.bf16.vlgmr.msra.gmra.mrb[192].mxu0 %v11195_v48 }
 0x515   : > { %4324 = vmatprep.mubr.bf16.mxu0 %v11198_v3 }
 0x51c   : > { %4325 = vmatmul.mubr.bf16.gmra.mrb[196].mxu0 %v11201_v21 }
 0x558   : > { %v4157_v30 = vpop.f32.mrb[168].mxu1 }
 0x559   : > { %v4159_v11 = vpop.f32.mrb[169].mxu1 }
 0x55a   : > { %v4161_v22 = vpop.f32.mrb[170].mxu1 }
 0x55b   : > { %v4335_v34 = vpack.c.bf16 %v4161_v22, %v4157_v30  ;;  %v4163_v27 = vpop.f32.mrb[171].mxu1 }
 0x55c   : > { %v4336_v5 = vpack.c.bf16 %v4163_v27, %v4159_v11 }
 0x55e   : > { %4358 = vmatprep.subr.bf16.mxu1 %v4336_v5 }
 0x55f   : > { %4359 = vmatpush1.bf16.msra.mxu1 %v4335_v34 }
 0x560   : > { %v4167_v62 = vpop.f32.mrb[172].mxu1 }
 0x561   : > { %v4169_v18 = vpop.f32.mrb[173].mxu1 }
 0x562   : > { %v4171_v41 = vpop.f32.mrb[174].mxu1 }
 0x563   : > { %v4337_v36 = vpack.c.bf16 %v4171_v41, %v4167_v62  ;;  %v4173_v32 = vpop.f32.mrb[175].mxu1 }
 0x564   : > { %v4338_v12 = vpack.c.bf16 %v4173_v32, %v4169_v18 }
 0x566   : > { %v4210_v46 = vpop.f32.mrb[184].mxu0  ;;  %4360 = vmatprep.subr.bf16.mxu1 %v4338_v12 }
 0x567   : > { %v4212_v10 = vpop.f32.mrb[185].mxu0  ;;  %4361 = vmatpush1.bf16.msra.mxu1 %v4337_v36 }
 0x568   : > { %v4214_v54 = vpop.f32.mrb[186].mxu0 }
 0x569   : > { %v4339_v42 = vpack.c.bf16 %v4214_v54, %v4210_v46  ;;  %v4216_v63 = vpop.f32.mrb[187].mxu0 }
 0x56a   : > { %v4340_v57 = vpack.c.bf16 %v4216_v63, %v4212_v10 }
 0x56c   : > { %4362 = vmatprep.subr.bf16.mxu1 %v4340_v57 }
 0x56d   : > { %4363 = vmatpush1.bf16.msra.mxu1 %v4339_v42 }
 0x56e   : > { %v4220_v50 = vpop.f32.mrb[188].mxu0 }
 0x56f   : > { %v4222_v31 = vpop.f32.mrb[189].mxu0 }
 0x570   : > { %v4224_v35 = vpop.f32.mrb[190].mxu0 }
 0x571   : > { %v4341_v58 = vpack.c.bf16 %v4224_v35, %v4220_v50  ;;  %v4226_v24 = vpop.f32.mrb[191].mxu0 }
 0x572   : > { %v4342_v7 = vpack.c.bf16 %v4226_v24, %v4222_v31 }
 0x574   : > { %4364 = vmatprep.subr.bf16.mxu1 %v4342_v7 }
 0x575   : > { %4365 = vmatpush1.bf16.msra.mxu1 %v4341_v58 }
 0x57d   : > { %v4356_v20 = vpop.permute.xlu0 %4355 }
 0x5d8   : > { %v4263_v4 = vpop.f32.mrb[176].mxu1 }
 0x5d9   : > { %v4265_v61 = vpop.f32.mrb[177].mxu1 }
 0x5da   : > { %v4267_v1 = vpop.f32.mrb[178].mxu1 }
 0x5db   : > { %v4343_v51 = vpack.c.bf16 %v4267_v1, %v4263_v4  ;;  %v4269_v28 = vpop.f32.mrb[179].mxu1 }
 0x5dc   : > { %v4344_v53 = vpack.c.bf16 %v4269_v28, %v4265_v61 }
 0x5de   : > { %4366 = vmatprep.subr.bf16.mxu1 %v4344_v53 }
 0x5df   : > { %4367 = vmatpush1.bf16.msra.mxu1 %v4343_v51 }
 0x5e0   : > { %v4273_v40 = vpop.f32.mrb[180].mxu1 }
 0x5e1   : > { %v4275_v17 = vpop.f32.mrb[181].mxu1 }
 0x5e2   : > { %v4277_v37 = vpop.f32.mrb[182].mxu1 }
 0x5e3   : > { %v4345_v47 = vpack.c.bf16 %v4277_v37, %v4273_v40  ;;  %v4279_v49 = vpop.f32.mrb[183].mxu1 }
 0x5e4   : > { %v4346_v0 = vpack.c.bf16 %v4279_v49, %v4275_v17 }
 0x5e6   : > { %4368 = vmatprep.subr.bf16.mxu1 %v4346_v0 }
 0x5e7   : > { %v4316_v39 = vpop.f32.mrb[192].mxu0  ;;  %4369 = vmatpush1.bf16.msra.mxu1 %v4345_v47 }
 0x5e8   : > { %v4318_v19 = vpop.f32.mrb[193].mxu0 }
 0x5e9   : > { %v4320_v33 = vpop.f32.mrb[194].mxu0 }
 0x5ea   : > { %v4347_v38 = vpack.c.bf16 %v4320_v33, %v4316_v39  ;;  %v4322_v16 = vpop.f32.mrb[195].mxu0 }
 0x5eb   : > { %v4348_v25 = vpack.c.bf16 %v4322_v16, %v4318_v19 }
 0x5ed   : > { %4370 = vmatprep.subr.bf16.mxu1 %v4348_v25 }
 0x5ee   : > { %4371 = vmatpush1.bf16.msra.mxu1 %v4347_v38 }
 0x5ef   : > { %v4326_v13 = vpop.f32.mrb[196].mxu0 }
 0x5f0   : > { %v4328_v43 = vpop.f32.mrb[197].mxu0 }
 0x5f1   : > { %v4330_v45 = vpop.f32.mrb[198].mxu0 }
 0x5f2   : > { %v4349_v56 = vpack.c.bf16 %v4330_v45, %v4326_v13  ;;  %v4332_v60 = vpop.f32.mrb[199].mxu0 }
 0x5f3   : > { %v4350_v26 = vpack.c.bf16 %v4332_v60, %v4328_v43 }
 0x5f5   : > { %4372 = vmatprep.subr.bf16.mxu1 %v4350_v26 }
 0x5f6   : > { %4373 = vmatpush1.bf16.msra.mxu1 %v4349_v56 }
 0x5f9   : > { %4391 = vmatmul.mubr.bf16.vlgmr.msra.gmra.mrb[184].mxu1 %v4351_v55 }
 0x6cc   : > { %v4392_v14 = vpop.f32.mrb[184].mxu1 }
 0x6cd   : > { %v4393_v52 = vadd.f32 %v4392_v14, %v4356_v20  ;;  %v4394_v6 = vpop.f32.mrb[185].mxu1 }
 0x6ce   : > { %v4395_v2 = vadd.f32 %v4394_v6, %v4356_v20  ;;  %v4396_v8 = vpop.f32.mrb[186].mxu1 }
 0x6cf   : > { %v4397_v9 = vpop.f32.mrb[187].mxu1 }
 0x6d0   : > { %v4401_v48 = vcombine.low %v4393_v52, %v4395_v2 }
 0x6d2   : > { %4403 = vst [vmem:[%s311_s10] sm:$0xff] %v4401_v48 }
 0x6d3   : > { %5508 = shalt.err (!%p5505_p5)
}
 0x6d4   : > { %s5509_s22 = scalar_lea.hbm %s9187_s17, 128  ;;  %s5513_s8 = scalar_lea.hbm %s9241_s7, 256 }
 0x6d5   : > { %p5510_p6 = scmp.ne.s32.totalorder %s9187_s17, %s5509_s22  ;;  %p5514_p10 = scmp.lt.u32.totalorder %s9187_s17, %s9241_s7 }
 0x6d6   : > { %p5515_p11 = scmp.lt.u32.totalorder %s5513_s8, %s5509_s22  ;;  %p5517_p13 = scmp.lt.u32.totalorder %s5509_s22, %s9187_s17 }
 0x6d7   : > { %p5511_p7 = pnand %p5510_p6, %p5657_p4 }
 0x6d8   : > { %p5516_p12 = por %p5515_p11, %p5514_p10 }
 0x6d9   : > { %p5512_p9 = pneg %p5511_p7 }
 0x6da   : > { %p5518_p0 = por %p5517_p13, %p5516_p12 }
 0x6dc   : > { %p5519_p1 = pnand %p5518_p0, %p5512_p9 }
 0x6de   : > { %5522 = shalt.err (!%p5519_p1)
}
 0x6df   : > { %4644 = dma.vmem_to_hbm [thread:$0]  (%p5657_p4), %s9189_s12, 128, %s9187_s17, %s4405_s18  }
 0x6e0 PF: > { %p4650_p2 = scmp.ge.s32.totalorder %s5573_s29, 2  ;;  %s4433_s16 = sand.u32 1, %s5553_s24  }
 0x6e1   : > { %s4434_s19 = scalar_lea.sflag [#allocation3], %s4433_s16 }
 0x6e2   : > { %p4647_p3 = pnand %p4650_p2, %p5664_p8 }
 0x6e4   : > { %5548 = dma.done.wait (!%p4647_p3), %s4434_s19, 128  }
 0x6e5   : > { %5550 = vsyncadd (!%p4647_p3), %s4434_s19, 4294967168  ;;  %s20_s29 = sadd.s32 1, %s5573_s29   ;;  %s11202_s24 = smov %s5557_s25 }
 0x6e6   : > { %p17_p5 = scmp.ge.s32.totalorder %s20_s29, 4   ;;  %s11203_s25 = smov %s5561_s26 }
 0x6e7   : > { %s11204_s26 = smov %s5670_s14  ;;  %s11205_s27 = smov %s5569_s28 }
 0x6e8   : > { %s11206_s28 = smov %s11208_s9  ;;  %19 = sbr.rel (!%p17_p5) target bundleno = 4 (0x4), region = 86 }
 0x6ef   :  { %4439 = vsyncpa [#allocation3], 1 }
 0x6f0   :  { %4441 = vsyncpa [#allocation3 + $0x1], 1 }

</bundles_post_ra>
